<compile_context>
chip_gen: v6e
topology: v6e:2x2x1
jax: 0.10.0
libtpu: 0.0.40
codegen_flags: <defaults>
</compile_context>

<pallas_src>
import math
from functools import partial

import numpy as np
import jax
import jax.numpy as jnp
from jax.experimental import pallas as pl
from jax.experimental.pallas import tpu as pltpu

EMBED_DIM = 32
NUM_HEADS = 4
NUM_LAYERS = 3            # constructor arg (PyTorch default is 10); grid scales without re-unrolling
FF_DIM = 2048             # nn.TransformerEncoderLayer default dim_feedforward
FF_CHUNK = 256            # FFN lane chunk kept resident in vregs (sweep 128/256/512 per chip)
LN_EPS = 1e-5
MXU_DTYPE = jnp.bfloat16  # MXU operand dtype; accumulation stays f32


# --------------------------------- kernel ---------------------------------- #

def _fused_forward_kernel(num_heads, num_layers, ff_dim, ff_chunk,
                          x_ref, cvec_ref, bias_ref, wh1_ref, mpool_ref,
                          wqkv_ref, wo_ref, w1_ref, w2_ref, pvec_ref, b1_ref,
                          o_ref, h_ref):
    """One grid step == one transformer layer (plus input proj at l==0 and the
    head/pool at l==last).  h_ref is the persistent (B*S, E) activation."""
    BS, E = h_ref.shape
    dh = E // num_heads
    scale = 1.0 / math.sqrt(dh)
    l = pl.program_id(0)

    # ---- input projection Linear(1, E): x * win + bin  (only at step 0) ---- #
    @pl.when(l == 0)
    def _():
        h_ref[...] = x_ref[...] * cvec_ref[0:1, :] + cvec_ref[1:2, :]

    x = h_ref[...]                                   # (BS, E) f32

    # per-head lane masks (precomputed constants, rows 8..8+H-1 of cvec)
    masks_f32 = [cvec_ref[8 + hh:9 + hh, :] for hh in range(num_heads)]
    masks_bf16 = [m.astype(MXU_DTYPE) for m in masks_f32]

    def layer_norm(v, g, b):
        mu = jnp.mean(v, axis=-1, keepdims=True)
        var = jnp.mean(jnp.square(v - mu), axis=-1, keepdims=True)
        return (v - mu) * jax.lax.rsqrt(var + LN_EPS) * g + b

    # ---------------------------- self-attention ---------------------------- #
    x16 = x.astype(MXU_DTYPE)
    q = jnp.dot(x16, wqkv_ref[0], preferred_element_type=jnp.float32) + pvec_ref[0:1, :]
    k = jnp.dot(x16, wqkv_ref[1], preferred_element_type=jnp.float32) + pvec_ref[1:2, :]
    v = jnp.dot(x16, wqkv_ref[2], preferred_element_type=jnp.float32) + pvec_ref[2:3, :]
    q16, k16, v16 = q.astype(MXU_DTYPE), k.astype(MXU_DTYPE), v.astype(MXU_DTYPE)

    # all heads' scores in one MXU push: masked q stacked along sublanes
    q_stacked = jnp.concatenate([q16 * m for m in masks_bf16], axis=0)   # (H*BS, E) bf16
    scores = jax.lax.dot_general(q_stacked, k16, (((1,), (1,)), ((), ())),
                                 preferred_element_type=jnp.float32)     # (H*BS, BS) f32
    scores = scores * scale + bias_ref[...]          # block-diagonal batch mask (f32)

    # single softmax pass over the stacked scores (f32)
    m_ = jnp.max(scores, axis=-1, keepdims=True)
    p = jnp.exp(scores - m_)
    denom = jnp.sum(p, axis=-1, keepdims=True)
    p16 = (p * pl.reciprocal(denom, approx=True)).astype(MXU_DTYPE)      # (H*BS, BS) bf16

    # ONE p@v matmul for all heads, then masked fold-down
    attn_stacked = jnp.dot(p16, v16, preferred_element_type=jnp.float32)  # (H*BS, E) f32
    attn = attn_stacked[0:BS] * masks_f32[0]
    for hh in range(1, num_heads):
        attn = attn + attn_stacked[hh * BS:(hh + 1) * BS] * masks_f32[hh]

    attn = jnp.dot(attn.astype(MXU_DTYPE), wo_ref[...],
                   preferred_element_type=jnp.float32) + pvec_ref[3:4, :]

    # residual + LayerNorm 1 (post-norm)
    y = layer_norm(x + attn, pvec_ref[5:6, :], pvec_ref[6:7, :])

    # ------------------------ feed-forward (chunked) ------------------------ #
    y16 = y.astype(MXU_DTYPE)
    ff = jnp.zeros((BS, E), jnp.float32)
    for c in range(ff_dim // ff_chunk):
        lo = c * ff_chunk
        h1 = jnp.dot(y16, w1_ref[:, lo:lo + ff_chunk],
                     preferred_element_type=jnp.float32) + b1_ref[0:1, lo:lo + ff_chunk]
        h1 = jnp.maximum(h1, 0.0)
        ff = ff + jnp.dot(h1.astype(MXU_DTYPE), w2_ref[lo:lo + ff_chunk, :],
                          preferred_element_type=jnp.float32)
    ff = ff + pvec_ref[4:5, :]

    # residual + LayerNorm 2
    h_new = layer_norm(y + ff, pvec_ref[7:8, :], pvec_ref[8:9, :])
    h_ref[...] = h_new

    # ----------------- head + folded output proj + pooling ------------------ #
    @pl.when(l == num_layers - 1)
    def _():
        y1 = jnp.maximum(
            jnp.dot(h_new.astype(MXU_DTYPE), wh1_ref[...],
                    preferred_element_type=jnp.float32) + cvec_ref[2:3, :], 0.0)
        # whead = wh2 @ wout^T folded at prep time -> per-token scalar as a ROW
        tok = jax.lax.dot_general(cvec_ref[3:4, :], y1, (((1,), (1,)), ((), ())),
                                  preferred_element_type=jnp.float32)     # (1, BS)
        out = jnp.dot(tok, mpool_ref[...], preferred_element_type=jnp.float32)  # (1, Ppad)
        o_ref[...] = out + cvec_ref[4:5, 0:1]


# ------------------------------ host helpers -------------------------------- #

def _adaptive_pool_matrix(in_size, out_size):
    """Row i averages input bins [floor(i*in/out), ceil((i+1)*in/out))."""
    m = np.zeros((out_size, in_size), dtype=np.float32)
    for i in range(out_size):
        start = (i * in_size) // out_size
        end = -((-(i + 1) * in_size) // out_size)
        m[i, start:end] = 1.0 / float(end - start)
    return m


def _pool_project_matrix(B, H, W, OH, OW):
    """(B*OH*OW, B*H*W) block-diagonal matrix == flattened adaptive_avg_pool2d."""
    ph = _adaptive_pool_matrix(H, OH)
    pw = _adaptive_pool_matrix(W, OW)
    blk = np.kron(ph, pw)                             # (OH*OW, H*W)
    m = np.zeros((B * OH * OW, B * H * W), dtype=np.float32)
    for b in range(B):
        m[b * OH * OW:(b + 1) * OH * OW, b * H * W:(b + 1) * H * W] = blk
    return m


def _attn_bias(B, S, num_heads):
    """(H*BS, BS) additive mask: 0 within a batch, -1e30 across batches."""
    BS = B * S
    r = np.arange(num_heads * BS)[:, None]
    c = np.arange(BS)[None, :]
    same = ((r // S) % B) == (c // S)
    return np.where(same, 0.0, -1e30).astype(np.float32)


# ----------------------------- params & packing ----------------------------- #

def init_params(key):
    """f32 master weights (stored (in, out))."""
    cnt = [0]

    def rnd(shape, scale=0.1):
        cnt[0] += 1
        return jax.random.normal(jax.random.fold_in(key, cnt[0]), shape, jnp.float32) * scale

    E, FF, L = EMBED_DIM, FF_DIM, NUM_LAYERS
    return {
        "win": rnd((1, E)), "bin": rnd((1, E), 0.01),
        "wqkv": rnd((L, E, 3 * E)), "bqkv": rnd((L, 1, 3 * E), 0.01),
        "wo": rnd((L, E, E)), "bo": rnd((L, 1, E), 0.01),
        "g1": jnp.ones((L, 1, E), jnp.float32), "be1": jnp.zeros((L, 1, E), jnp.float32),
        "w1": rnd((L, E, FF)), "b1": rnd((L, 1, FF), 0.01),
        "w2": rnd((L, FF, E)), "b2": rnd((L, 1, E), 0.01),
        "g2": jnp.ones((L, 1, E), jnp.float32), "be2": jnp.zeros((L, 1, E), jnp.float32),
        "wh1": rnd((E, E)), "bh1": rnd((1, E), 0.01),
        "wh2": rnd((E, E)), "bh2": rnd((1, E), 0.01),
        "wout": rnd((1, E)), "bout": rnd((1, 1), 0.01),
    }


def prepare_kernel_params(p):
    """Cast MXU operands to bf16, pack small per-layer params, fold the head."""
    E, L = EMBED_DIM, NUM_LAYERS
    dh = E // NUM_HEADS

    # per-layer small vectors: rows 0-2 = bq,bk,bv; 3=bo; 4=b2; 5=g1; 6=be1; 7=g2; 8=be2
    pvec = jnp.concatenate([
        p["bqkv"].reshape(L, 3, E),
        p["bo"], p["b2"], p["g1"], p["be1"], p["g2"], p["be2"],
    ], axis=1).astype(jnp.float32)                                   # (L, 9, E)

    # fold hierarchical[2] + output_projection: whead = wh2 @ wout^T, bhead scalar
    whead = (p["wh2"] @ p["wout"].T).reshape(1, E)                   # (1, E)
    bhead = (p["bh2"] @ p["wout"].T + p["bout"])[0, 0]

    cvec = jnp.zeros((16, E), jnp.float32)
    cvec = cvec.at[0].set(p["win"][0])
    cvec = cvec.at[1].set(p["bin"][0])
    cvec = cvec.at[2].set(p["bh1"][0])
    cvec = cvec.at[3].set(whead[0])
    cvec = cvec.at[4].set(jnp.full((E,), bhead, jnp.float32))
    for hh in range(NUM_HEADS):                                      # per-head lane masks
        cvec = cvec.at[8 + hh, hh * dh:(hh + 1) * dh].set(1.0)

    wqkv = jnp.stack([p["wqkv"][:, :, 0:E], p["wqkv"][:, :, E:2 * E],
                      p["wqkv"][:, :, 2 * E:3 * E]], axis=1)         # (L, 3, E, E)

    return {
        "cvec": cvec,
        "wh1": p["wh1"].astype(MXU_DTYPE),
        "wqkv": wqkv.astype(MXU_DTYPE),
        "wo": p["wo"].astype(MXU_DTYPE),
        "w1": p["w1"].astype(MXU_DTYPE),
        "w2": p["w2"].astype(MXU_DTYPE),
        "pvec": pvec,
        "b1": p["b1"].astype(jnp.float32),
    }


# --------------------------------- forward ----------------------------------- #

@partial(jax.jit, static_argnames=("target_hw",))
def forward(x, kp, target_hw):
    B, H, W = x.shape
    S = H * W
    BS = B * S
    OH, OW = target_hw
    P = B * OH * OW
    Ppad = ((P + 127) // 128) * 128
    E, FF, L, NH = EMBED_DIM, FF_DIM, NUM_LAYERS, NUM_HEADS

    assert BS % 8 == 0, "B*H*W must be a multiple of 8 for TPU sublane layout"

    x_seq = x.reshape(BS, 1).astype(jnp.float32)

    # trace-time constants (shapes are static under jit)
    mpoolT = np.zeros((BS, Ppad), np.float32)
    mpoolT[:, :P] = _pool_project_matrix(B, H, W, OH, OW).T
    mpoolT = jnp.asarray(mpoolT)
    bias = jnp.asarray(_attn_bias(B, S, NH))                         # (NH*BS, BS)

    args = (x_seq, kp["cvec"], bias, kp["wh1"], mpoolT,
            kp["wqkv"], kp["wo"], kp["w1"], kp["w2"], kp["pvec"], kp["b1"])

    in_specs = [
        pl.BlockSpec((BS, 1), lambda l: (0, 0)),                     # x
        pl.BlockSpec((16, E), lambda l: (0, 0)),                     # cvec (consts + masks)
        pl.BlockSpec((NH * BS, BS), lambda l: (0, 0)),               # attention bias
        pl.BlockSpec((E, E), lambda l: (0, 0)),                      # wh1 (bf16)
        pl.BlockSpec((BS, Ppad), lambda l: (0, 0)),                  # pooling matrix^T
        pl.BlockSpec((None, 3, E, E), lambda l: (l, 0, 0, 0)),       # wqkv  (per layer)
        pl.BlockSpec((None, E, E), lambda l: (l, 0, 0)),             # wo
        pl.BlockSpec((None, E, FF), lambda l: (l, 0, 0)),            # w1
        pl.BlockSpec((None, FF, E), lambda l: (l, 0, 0)),            # w2
        pl.BlockSpec((None, 9, E), lambda l: (l, 0, 0)),             # packed per-layer vecs
        pl.BlockSpec((None, 1, FF), lambda l: (l, 0, 0)),            # b1
    ]

    out = pl.pallas_call(
        partial(_fused_forward_kernel, NH, L, FF, FF_CHUNK),
        out_shape=jax.ShapeDtypeStruct((1, Ppad), jnp.float32),
        grid=(L,),
        in_specs=in_specs,
        out_specs=pl.BlockSpec((1, Ppad), lambda l: (0, 0)),
        scratch_shapes=[pltpu.VMEM((BS, E), jnp.float32)],           # persistent activations
        compiler_params=pltpu.CompilerParams(
            dimension_semantics=("arbitrary",)),                     # layer axis carries state
    )(*args)

    return out[0, :P].reshape(B, OH, OW)


# ------------------------- pure-JAX f32 reference ---------------------------- #

def ref_forward(x, p, target_hw):
    B, H, W = x.shape
    S = H * W
    E, nh = EMBED_DIM, NUM_HEADS
    dh = E // nh

    def ln(v, g, b):
        mu = v.mean(-1, keepdims=True)
        var = ((v - mu) ** 2).mean(-1, keepdims=True)
        return (v - mu) / jnp.sqrt(var + LN_EPS) * g + b

    h = x.reshape(B, S, 1) * p["win"][0] + p["bin"][0]
    for l in range(NUM_LAYERS):
        xin = h
        qkv = xin @ p["wqkv"][l] + p["bqkv"][l]
        q, k, v = jnp.split(qkv, 3, axis=-1)
        qh = q.reshape(B, S, nh, dh).transpose(0, 2, 1, 3)
        kh = k.reshape(B, S, nh, dh).transpose(0, 2, 1, 3)
        vh = v.reshape(B, S, nh, dh).transpose(0, 2, 1, 3)
        sc = jnp.einsum("bhqd,bhkd->bhqk", qh, kh) / math.sqrt(dh)
        pr = jax.nn.softmax(sc, axis=-1)
        av = jnp.einsum("bhqk,bhkd->bhqd", pr, vh).transpose(0, 2, 1, 3).reshape(B, S, E)
        att = av @ p["wo"][l] + p["bo"][l]
        y = ln(xin + att, p["g1"][l], p["be1"][l])
        ff = jnp.maximum(y @ p["w1"][l] + p["b1"][l], 0.0) @ p["w2"][l] + p["b2"][l]
        h = ln(y + ff, p["g2"][l], p["be2"][l])

    y1 = jnp.maximum(h @ p["wh1"] + p["bh1"], 0.0)
    y2 = y1 @ p["wh2"] + p["bh2"]
    out = (y2 * p["wout"][0]).sum(-1) + p["bout"][0, 0]              # (B, S)
    out = out.reshape(B, H, W)
    OH, OW = target_hw
    return out.reshape(B, OH, H // OH, OW, W // OW).mean(axis=(2, 4))


# ----------------------------------- main ------------------------------------ #

if __name__ == "__main__":
    key = jax.random.PRNGKey(0)
    params = init_params(key)
    kparams = prepare_kernel_params(params)

    B, H, W = 2, 8, 8
    x = jax.random.normal(jax.random.fold_in(key, 12345), (B, H, W), jnp.float32)
    target_shape = (B, 4, 4)                     # (batch, H_out, W_out)
    target_hw = (target_shape[1], target_shape[2])

    out = forward(x, kparams, target_hw)
    out = jax.block_until_ready(out)
    assert out.shape == (B, target_shape[1], target_shape[2]), out.shape
    assert bool(jnp.all(jnp.isfinite(out)))

    ref = ref_forward(x, params, target_hw)      # f32 reference (bf16 MXU tolerance)
    err = float(jnp.max(jnp.abs(out - ref)))
    assert err < 2e-2, f"max abs error vs f32 reference: {err}"

    print("KERNEL_OK")
</pallas_src>

<mosaic_0001>
module attributes {stable_mosaic.version = 11 : i64} {
  func.func @_fused_forward_kernel(%arg0: i32, %arg1: memref<128x1xf32, #tpu.memory_space<vmem>>, %arg2: memref<16x32xf32, #tpu.memory_space<vmem>>, %arg3: memref<512x128xf32, #tpu.memory_space<vmem>>, %arg4: memref<32x32xbf16, #tpu.memory_space<vmem>>, %arg5: memref<128x128xf32, #tpu.memory_space<vmem>>, %arg6: memref<1x3x32x32xbf16, #tpu.memory_space<vmem>>, %arg7: memref<1x32x32xbf16, #tpu.memory_space<vmem>>, %arg8: memref<1x32x2048xbf16, #tpu.memory_space<vmem>>, %arg9: memref<1x2048x32xbf16, #tpu.memory_space<vmem>>, %arg10: memref<1x9x32xf32, #tpu.memory_space<vmem>>, %arg11: memref<1x1x2048xf32, #tpu.memory_space<vmem>>, %arg12: memref<1x128xf32, #tpu.memory_space<vmem>>, %arg13: memref<128x32xf32, #tpu.memory_space<vmem>>) attributes {dimension_semantics = [#tpu.dimension_semantics<arbitrary>], iteration_bounds = array<i64: 3>, scalar_prefetch = 0 : i64, scratch_operands = 1 : i64, tpu.core_type = #tpu.core_type<tc>, window_params = [{pipeline_mode = #tpu.pipeline_mode<synchronous>, transform_indices = @transform_0, window_bounds = array<i64: 128, 1>}, {pipeline_mode = #tpu.pipeline_mode<synchronous>, transform_indices = @transform_1, window_bounds = array<i64: 16, 32>}, {pipeline_mode = #tpu.pipeline_mode<synchronous>, transform_indices = @transform_2, window_bounds = array<i64: 512, 128>}, {pipeline_mode = #tpu.pipeline_mode<synchronous>, transform_indices = @transform_3, window_bounds = array<i64: 32, 32>}, {pipeline_mode = #tpu.pipeline_mode<synchronous>, transform_indices = @transform_4, window_bounds = array<i64: 128, 128>}, {transform_indices = @transform_5, window_bounds = array<i64: 1, 3, 32, 32>}, {transform_indices = @transform_6, window_bounds = array<i64: 1, 32, 32>}, {transform_indices = @transform_7, window_bounds = array<i64: 1, 32, 2048>}, {transform_indices = @transform_8, window_bounds = array<i64: 1, 2048, 32>}, {transform_indices = @transform_9, window_bounds = array<i64: 1, 9, 32>}, {transform_indices = @transform_10, window_bounds = array<i64: 1, 1, 2048>}, {pipeline_mode = #tpu.pipeline_mode<synchronous>, transform_indices = @transform_11, window_bounds = array<i64: 1, 128>}]} {
    %c0_i32 = arith.constant 0 : i32
    %0 = arith.cmpi eq, %arg0, %c0_i32 : i32
    %1 = arith.extui %0 : i1 to i32
    %c0_i32_0 = arith.constant 0 : i32
    %2 = arith.cmpi ne, %1, %c0_i32_0 : i32
    scf.if %2 {
      %c0_154 = arith.constant 0 : index
      %c0_155 = arith.constant 0 : index
      %262 = vector.load %arg1[%c0_154, %c0_155] : memref<128x1xf32, #tpu.memory_space<vmem>>, vector<128x1xf32>
      %c0_156 = arith.constant 0 : index
      %c0_157 = arith.constant 0 : index
      %263 = vector.load %arg2[%c0_156, %c0_157] : memref<16x32xf32, #tpu.memory_space<vmem>>, vector<1x32xf32>
      %264 = vector.broadcast %262 : vector<128x1xf32> to vector<128x32xf32>
      %265 = vector.broadcast %263 : vector<1x32xf32> to vector<128x32xf32>
      %266 = arith.mulf %264, %265 : vector<128x32xf32>
      %c1_158 = arith.constant 1 : index
      %c0_159 = arith.constant 0 : index
      %267 = vector.load %arg2[%c1_158, %c0_159] : memref<16x32xf32, #tpu.memory_space<vmem>>, vector<1x32xf32>
      %268 = vector.broadcast %267 : vector<1x32xf32> to vector<128x32xf32>
      %269 = arith.addf %266, %268 : vector<128x32xf32>
      %c0_160 = arith.constant 0 : index
      %c0_161 = arith.constant 0 : index
      %270 = vector.load %arg13[%c0_160, %c0_161] : memref<128x32xf32, #tpu.memory_space<vmem>>, vector<128x32xf32>
      tpu.vector_store %arg13[%c0_160, %c0_161], %269 {strides = array<i32>} : memref<128x32xf32, #tpu.memory_space<vmem>>, vector<128x32xf32>,
    } else {
    }
    %c0 = arith.constant 0 : index
    %c0_1 = arith.constant 0 : index
    %3 = vector.load %arg13[%c0, %c0_1] : memref<128x32xf32, #tpu.memory_space<vmem>>, vector<128x32xf32>
    %c8 = arith.constant 8 : index
    %c0_2 = arith.constant 0 : index
    %4 = vector.load %arg2[%c8, %c0_2] : memref<16x32xf32, #tpu.memory_space<vmem>>, vector<1x32xf32>
    %c9 = arith.constant 9 : index
    %c0_3 = arith.constant 0 : index
    %5 = vector.load %arg2[%c9, %c0_3] : memref<16x32xf32, #tpu.memory_space<vmem>>, vector<1x32xf32>
    %c10 = arith.constant 10 : index
    %c0_4 = arith.constant 0 : index
    %6 = vector.load %arg2[%c10, %c0_4] : memref<16x32xf32, #tpu.memory_space<vmem>>, vector<1x32xf32>
    %c11 = arith.constant 11 : index
    %c0_5 = arith.constant 0 : index
    %7 = vector.load %arg2[%c11, %c0_5] : memref<16x32xf32, #tpu.memory_space<vmem>>, vector<1x32xf32>
    %8 = arith.truncf %4 : vector<1x32xf32> to vector<1x32xbf16>
    %9 = arith.truncf %5 : vector<1x32xf32> to vector<1x32xbf16>
    %10 = arith.truncf %6 : vector<1x32xf32> to vector<1x32xbf16>
    %11 = arith.truncf %7 : vector<1x32xf32> to vector<1x32xbf16>
    %12 = arith.truncf %3 : vector<128x32xf32> to vector<128x32xbf16>
    %c0_6 = arith.constant 0 : index
    %c0_7 = arith.constant 0 : index
    %c0_8 = arith.constant 0 : index
    %c0_9 = arith.constant 0 : index
    %13 = vector.load %arg6[%c0_6, %c0_7, %c0_8, %c0_9] : memref<1x3x32x32xbf16, #tpu.memory_space<vmem>>, vector<1x1x32x32xbf16>
    %14 = vector.shape_cast %13 : vector<1x1x32x32xbf16> to vector<32x32xbf16>
    %cst = arith.constant dense<0.000000e+00> : vector<128x32xf32>
    %15 = tpu.matmul %12, %14, %cst {dimension_numbers = #tpu.dot_dimension_numbers<[1], [0], [0], [1], [0, 0, 1, 1], [], []>} : vector<128x32xbf16>, vector<32x32xbf16>, vector<128x32xf32> -> vector<128x32xf32>
    %c0_10 = arith.constant 0 : index
    %c0_11 = arith.constant 0 : index
    %c0_12 = arith.constant 0 : index
    %16 = vector.load %arg10[%c0_10, %c0_11, %c0_12] : memref<1x9x32xf32, #tpu.memory_space<vmem>>, vector<1x1x32xf32>
    %17 = vector.shape_cast %16 : vector<1x1x32xf32> to vector<1x32xf32>
    %18 = vector.broadcast %17 : vector<1x32xf32> to vector<128x32xf32>
    %19 = arith.addf %15, %18 : vector<128x32xf32>
    %c0_13 = arith.constant 0 : index
    %c1 = arith.constant 1 : index
    %c0_14 = arith.constant 0 : index
    %c0_15 = arith.constant 0 : index
    %20 = vector.load %arg6[%c0_13, %c1, %c0_14, %c0_15] : memref<1x3x32x32xbf16, #tpu.memory_space<vmem>>, vector<1x1x32x32xbf16>
    %21 = vector.shape_cast %20 : vector<1x1x32x32xbf16> to vector<32x32xbf16>
    %cst_16 = arith.constant dense<0.000000e+00> : vector<128x32xf32>
    %22 = tpu.matmul %12, %21, %cst_16 {dimension_numbers = #tpu.dot_dimension_numbers<[1], [0], [0], [1], [0, 0, 1, 1], [], []>} : vector<128x32xbf16>, vector<32x32xbf16>, vector<128x32xf32> -> vector<128x32xf32>
    %c0_17 = arith.constant 0 : index
    %c1_18 = arith.constant 1 : index
    %c0_19 = arith.constant 0 : index
    %23 = vector.load %arg10[%c0_17, %c1_18, %c0_19] : memref<1x9x32xf32, #tpu.memory_space<vmem>>, vector<1x1x32xf32>
    %24 = vector.shape_cast %23 : vector<1x1x32xf32> to vector<1x32xf32>
    %25 = vector.broadcast %24 : vector<1x32xf32> to vector<128x32xf32>
    %26 = arith.addf %22, %25 : vector<128x32xf32>
    %c0_20 = arith.constant 0 : index
    %c2 = arith.constant 2 : index
    %c0_21 = arith.constant 0 : index
    %c0_22 = arith.constant 0 : index
    %27 = vector.load %arg6[%c0_20, %c2, %c0_21, %c0_22] : memref<1x3x32x32xbf16, #tpu.memory_space<vmem>>, vector<1x1x32x32xbf16>
    %28 = vector.shape_cast %27 : vector<1x1x32x32xbf16> to vector<32x32xbf16>
    %cst_23 = arith.constant dense<0.000000e+00> : vector<128x32xf32>
    %29 = tpu.matmul %12, %28, %cst_23 {dimension_numbers = #tpu.dot_dimension_numbers<[1], [0], [0], [1], [0, 0, 1, 1], [], []>} : vector<128x32xbf16>, vector<32x32xbf16>, vector<128x32xf32> -> vector<128x32xf32>
    %c0_24 = arith.constant 0 : index
    %c2_25 = arith.constant 2 : index
    %c0_26 = arith.constant 0 : index
    %30 = vector.load %arg10[%c0_24, %c2_25, %c0_26] : memref<1x9x32xf32, #tpu.memory_space<vmem>>, vector<1x1x32xf32>
    %31 = vector.shape_cast %30 : vector<1x1x32xf32> to vector<1x32xf32>
    %32 = vector.broadcast %31 : vector<1x32xf32> to vector<128x32xf32>
    %33 = arith.addf %29, %32 : vector<128x32xf32>
    %34 = arith.truncf %19 : vector<128x32xf32> to vector<128x32xbf16>
    %35 = arith.truncf %26 : vector<128x32xf32> to vector<128x32xbf16>
    %36 = arith.truncf %33 : vector<128x32xf32> to vector<128x32xbf16>
    %37 = vector.broadcast %8 : vector<1x32xbf16> to vector<128x32xbf16>
    %38 = arith.mulf %34, %37 : vector<128x32xbf16>
    %39 = vector.broadcast %9 : vector<1x32xbf16> to vector<128x32xbf16>
    %40 = arith.mulf %34, %39 : vector<128x32xbf16>
    %41 = vector.broadcast %10 : vector<1x32xbf16> to vector<128x32xbf16>
    %42 = arith.mulf %34, %41 : vector<128x32xbf16>
    %43 = vector.broadcast %11 : vector<1x32xbf16> to vector<128x32xbf16>
    %44 = arith.mulf %34, %43 : vector<128x32xbf16>
    %45 = tpu.concatenate %38, %40, %42, %44 in 0 : vector<128x32xbf16>, vector<128x32xbf16>, vector<128x32xbf16>, vector<128x32xbf16> -> vector<512x32xbf16>
    %cst_27 = arith.constant dense<0.000000e+00> : vector<512x128xf32>
    %46 = tpu.matmul %45, %35, %cst_27 {dimension_numbers = #tpu.dot_dimension_numbers<[1], [1], [0], [0], [0, 0, 1, 0], [], []>} : vector<512x32xbf16>, vector<128x32xbf16>, vector<512x128xf32> -> vector<512x128xf32>
    %cst_28 = arith.constant 0.353553385 : f32
    %47 = vector.broadcast %cst_28 : f32 to vector<512x128xf32>
    %48 = arith.mulf %46, %47 : vector<512x128xf32>
    %c0_29 = arith.constant 0 : index
    %c0_30 = arith.constant 0 : index
    %49 = vector.load %arg3[%c0_29, %c0_30] : memref<512x128xf32, #tpu.memory_space<vmem>>, vector<512x128xf32>
    %50 = arith.addf %48, %49 : vector<512x128xf32>
    %cst_31 = arith.constant dense<0xFF800000> : vector<512xf32>
    %51 = vector.multi_reduction <maximumf>, %50, %cst_31 [1] : vector<512x128xf32> to vector<512xf32>
    %52 = vector.shape_cast %51 : vector<512xf32> to vector<512x1xf32>
    %53 = vector.broadcast %52 : vector<512x1xf32> to vector<512x128xf32>
    %54 = arith.subf %50, %53 : vector<512x128xf32>
    %55 = math.exp %54 : vector<512x128xf32>
    %cst_32 = arith.constant dense<0.000000e+00> : vector<512xf32>
    %56 = vector.multi_reduction <add>, %55, %cst_32 [1] : vector<512x128xf32> to vector<512xf32>
    %57 = vector.shape_cast %56 : vector<512xf32> to vector<512x1xf32>
    %58 = tpu.reciprocal %57 {approx = true} : vector<512x1xf32> -> vector<512x1xf32>
    %59 = vector.broadcast %58 : vector<512x1xf32> to vector<512x128xf32>
    %60 = arith.mulf %55, %59 : vector<512x128xf32>
    %61 = arith.truncf %60 : vector<512x128xf32> to vector<512x128xbf16>
    %cst_33 = arith.constant dense<0.000000e+00> : vector<512x32xf32>
    %62 = tpu.matmul %61, %36, %cst_33 {dimension_numbers = #tpu.dot_dimension_numbers<[1], [0], [0], [1], [0, 0, 1, 1], [], []>} : vector<512x128xbf16>, vector<128x32xbf16>, vector<512x32xf32> -> vector<512x32xf32>
    %63 = vector.extract_strided_slice %62 {offsets = [0, 0], sizes = [128, 32], strides = [1, 1]} : vector<512x32xf32> to vector<128x32xf32>
    %64 = vector.broadcast %4 : vector<1x32xf32> to vector<128x32xf32>
    %65 = arith.mulf %63, %64 : vector<128x32xf32>
    %66 = vector.extract_strided_slice %62 {offsets = [128, 0], sizes = [128, 32], strides = [1, 1]} : vector<512x32xf32> to vector<128x32xf32>
    %67 = vector.broadcast %5 : vector<1x32xf32> to vector<128x32xf32>
    %68 = arith.mulf %66, %67 : vector<128x32xf32>
    %69 = arith.addf %65, %68 : vector<128x32xf32>
    %70 = vector.extract_strided_slice %62 {offsets = [256, 0], sizes = [128, 32], strides = [1, 1]} : vector<512x32xf32> to vector<128x32xf32>
    %71 = vector.broadcast %6 : vector<1x32xf32> to vector<128x32xf32>
    %72 = arith.mulf %70, %71 : vector<128x32xf32>
    %73 = arith.addf %69, %72 : vector<128x32xf32>
    %74 = vector.extract_strided_slice %62 {offsets = [384, 0], sizes = [128, 32], strides = [1, 1]} : vector<512x32xf32> to vector<128x32xf32>
    %75 = vector.broadcast %7 : vector<1x32xf32> to vector<128x32xf32>
    %76 = arith.mulf %74, %75 : vector<128x32xf32>
    %77 = arith.addf %73, %76 : vector<128x32xf32>
    %78 = arith.truncf %77 : vector<128x32xf32> to vector<128x32xbf16>
    %c0_34 = arith.constant 0 : index
    %c0_35 = arith.constant 0 : index
    %c0_36 = arith.constant 0 : index
    %79 = vector.load %arg7[%c0_34, %c0_35, %c0_36] : memref<1x32x32xbf16, #tpu.memory_space<vmem>>, vector<1x32x32xbf16>
    %80 = vector.shape_cast %79 : vector<1x32x32xbf16> to vector<32x32xbf16>
    %cst_37 = arith.constant dense<0.000000e+00> : vector<128x32xf32>
    %81 = tpu.matmul %78, %80, %cst_37 {dimension_numbers = #tpu.dot_dimension_numbers<[1], [0], [0], [1], [0, 0, 1, 1], [], []>} : vector<128x32xbf16>, vector<32x32xbf16>, vector<128x32xf32> -> vector<128x32xf32>
    %c0_38 = arith.constant 0 : index
    %c3 = arith.constant 3 : index
    %c0_39 = arith.constant 0 : index
    %82 = vector.load %arg10[%c0_38, %c3, %c0_39] : memref<1x9x32xf32, #tpu.memory_space<vmem>>, vector<1x1x32xf32>
    %83 = vector.shape_cast %82 : vector<1x1x32xf32> to vector<1x32xf32>
    %84 = vector.broadcast %83 : vector<1x32xf32> to vector<128x32xf32>
    %85 = arith.addf %81, %84 : vector<128x32xf32>
    %86 = arith.addf %3, %85 : vector<128x32xf32>
    %c0_40 = arith.constant 0 : index
    %c5 = arith.constant 5 : index
    %c0_41 = arith.constant 0 : index
    %87 = vector.load %arg10[%c0_40, %c5, %c0_41] : memref<1x9x32xf32, #tpu.memory_space<vmem>>, vector<1x1x32xf32>
    %88 = vector.shape_cast %87 : vector<1x1x32xf32> to vector<1x32xf32>
    %c0_42 = arith.constant 0 : index
    %c6 = arith.constant 6 : index
    %c0_43 = arith.constant 0 : index
    %89 = vector.load %arg10[%c0_42, %c6, %c0_43] : memref<1x9x32xf32, #tpu.memory_space<vmem>>, vector<1x1x32xf32>
    %90 = vector.shape_cast %89 : vector<1x1x32xf32> to vector<1x32xf32>
    %cst_44 = arith.constant dense<0.000000e+00> : vector<128xf32>
    %91 = vector.multi_reduction <add>, %86, %cst_44 [1] : vector<128x32xf32> to vector<128xf32>
    %92 = vector.shape_cast %91 : vector<128xf32> to vector<128x1xf32>
    %cst_45 = arith.constant 3.200000e+01 : f32
    %93 = vector.broadcast %cst_45 : f32 to vector<128x1xf32>
    %94 = arith.divf %92, %93 : vector<128x1xf32>
    %95 = vector.broadcast %94 : vector<128x1xf32> to vector<128x32xf32>
    %96 = arith.subf %86, %95 : vector<128x32xf32>
    %97 = arith.mulf %96, %96 : vector<128x32xf32>
    %cst_46 = arith.constant dense<0.000000e+00> : vector<128xf32>
    %98 = vector.multi_reduction <add>, %97, %cst_46 [1] : vector<128x32xf32> to vector<128xf32>
    %99 = vector.shape_cast %98 : vector<128xf32> to vector<128x1xf32>
    %cst_47 = arith.constant 3.200000e+01 : f32
    %100 = vector.broadcast %cst_47 : f32 to vector<128x1xf32>
    %101 = arith.divf %99, %100 : vector<128x1xf32>
    %102 = vector.broadcast %94 : vector<128x1xf32> to vector<128x32xf32>
    %103 = arith.subf %86, %102 : vector<128x32xf32>
    %cst_48 = arith.constant 9.99999974E-6 : f32
    %104 = vector.broadcast %cst_48 : f32 to vector<128x1xf32>
    %105 = arith.addf %101, %104 : vector<128x1xf32>
    %106 = math.rsqrt %105 : vector<128x1xf32>
    %107 = vector.broadcast %106 : vector<128x1xf32> to vector<128x32xf32>
    %108 = arith.mulf %103, %107 : vector<128x32xf32>
    %109 = vector.broadcast %88 : vector<1x32xf32> to vector<128x32xf32>
    %110 = arith.mulf %108, %109 : vector<128x32xf32>
    %111 = vector.broadcast %90 : vector<1x32xf32> to vector<128x32xf32>
    %112 = arith.addf %110, %111 : vector<128x32xf32>
    %113 = arith.truncf %112 : vector<128x32xf32> to vector<128x32xbf16>
    %cst_49 = arith.constant 0.000000e+00 : f32
    %114 = vector.broadcast %cst_49 : f32 to vector<128x32xf32>
    %c0_50 = arith.constant 0 : index
    %c0_51 = arith.constant 0 : index
    %c0_52 = arith.constant 0 : index
    %115 = vector.load %arg8[%c0_50, %c0_51, %c0_52] : memref<1x32x2048xbf16, #tpu.memory_space<vmem>>, vector<1x32x256xbf16>
    %116 = vector.shape_cast %115 : vector<1x32x256xbf16> to vector<32x256xbf16>
    %cst_53 = arith.constant dense<0.000000e+00> : vector<128x256xf32>
    %117 = tpu.matmul %113, %116, %cst_53 {dimension_numbers = #tpu.dot_dimension_numbers<[1], [0], [0], [1], [0, 0, 1, 1], [], []>} : vector<128x32xbf16>, vector<32x256xbf16>, vector<128x256xf32> -> vector<128x256xf32>
    %c0_54 = arith.constant 0 : index
    %c0_55 = arith.constant 0 : index
    %c0_56 = arith.constant 0 : index
    %118 = vector.load %arg11[%c0_54, %c0_55, %c0_56] : memref<1x1x2048xf32, #tpu.memory_space<vmem>>, vector<1x1x256xf32>
    %119 = vector.shape_cast %118 : vector<1x1x256xf32> to vector<1x256xf32>
    %120 = vector.broadcast %119 : vector<1x256xf32> to vector<128x256xf32>
    %121 = arith.addf %117, %120 : vector<128x256xf32>
    %cst_57 = arith.constant 0.000000e+00 : f32
    %122 = vector.broadcast %cst_57 : f32 to vector<128x256xf32>
    %123 = arith.maximumf %121, %122 : vector<128x256xf32>
    %124 = arith.truncf %123 : vector<128x256xf32> to vector<128x256xbf16>
    %c0_58 = arith.constant 0 : index
    %c0_59 = arith.constant 0 : index
    %c0_60 = arith.constant 0 : index
    %125 = vector.load %arg9[%c0_58, %c0_59, %c0_60] : memref<1x2048x32xbf16, #tpu.memory_space<vmem>>, vector<1x256x32xbf16>
    %126 = vector.shape_cast %125 : vector<1x256x32xbf16> to vector<256x32xbf16>
    %cst_61 = arith.constant dense<0.000000e+00> : vector<128x32xf32>
    %127 = tpu.matmul %124, %126, %cst_61 {dimension_numbers = #tpu.dot_dimension_numbers<[1], [0], [0], [1], [0, 0, 1, 1], [], []>} : vector<128x256xbf16>, vector<256x32xbf16>, vector<128x32xf32> -> vector<128x32xf32>
    %128 = arith.addf %114, %127 : vector<128x32xf32>
    %c0_62 = arith.constant 0 : index
    %c0_63 = arith.constant 0 : index
    %c256 = arith.constant 256 : index
    %129 = vector.load %arg8[%c0_62, %c0_63, %c256] : memref<1x32x2048xbf16, #tpu.memory_space<vmem>>, vector<1x32x256xbf16>
    %130 = vector.shape_cast %129 : vector<1x32x256xbf16> to vector<32x256xbf16>
    %cst_64 = arith.constant dense<0.000000e+00> : vector<128x256xf32>
    %131 = tpu.matmul %113, %130, %cst_64 {dimension_numbers = #tpu.dot_dimension_numbers<[1], [0], [0], [1], [0, 0, 1, 1], [], []>} : vector<128x32xbf16>, vector<32x256xbf16>, vector<128x256xf32> -> vector<128x256xf32>
    %c0_65 = arith.constant 0 : index
    %c0_66 = arith.constant 0 : index
    %c256_67 = arith.constant 256 : index
    %132 = vector.load %arg11[%c0_65, %c0_66, %c256_67] : memref<1x1x2048xf32, #tpu.memory_space<vmem>>, vector<1x1x256xf32>
    %133 = vector.shape_cast %132 : vector<1x1x256xf32> to vector<1x256xf32>
    %134 = vector.broadcast %133 : vector<1x256xf32> to vector<128x256xf32>
    %135 = arith.addf %131, %134 : vector<128x256xf32>
    %cst_68 = arith.constant 0.000000e+00 : f32
    %136 = vector.broadcast %cst_68 : f32 to vector<128x256xf32>
    %137 = arith.maximumf %135, %136 : vector<128x256xf32>
    %138 = arith.truncf %137 : vector<128x256xf32> to vector<128x256xbf16>
    %c0_69 = arith.constant 0 : index
    %c256_70 = arith.constant 256 : index
    %c0_71 = arith.constant 0 : index
    %139 = vector.load %arg9[%c0_69, %c256_70, %c0_71] : memref<1x2048x32xbf16, #tpu.memory_space<vmem>>, vector<1x256x32xbf16>
    %140 = vector.shape_cast %139 : vector<1x256x32xbf16> to vector<256x32xbf16>
    %cst_72 = arith.constant dense<0.000000e+00> : vector<128x32xf32>
    %141 = tpu.matmul %138, %140, %cst_72 {dimension_numbers = #tpu.dot_dimension_numbers<[1], [0], [0], [1], [0, 0, 1, 1], [], []>} : vector<128x256xbf16>, vector<256x32xbf16>, vector<128x32xf32> -> vector<128x32xf32>
    %142 = arith.addf %128, %141 : vector<128x32xf32>
    %c0_73 = arith.constant 0 : index
    %c0_74 = arith.constant 0 : index
    %c512 = arith.constant 512 : index
    %143 = vector.load %arg8[%c0_73, %c0_74, %c512] : memref<1x32x2048xbf16, #tpu.memory_space<vmem>>, vector<1x32x256xbf16>
    %144 = vector.shape_cast %143 : vector<1x32x256xbf16> to vector<32x256xbf16>
    %cst_75 = arith.constant dense<0.000000e+00> : vector<128x256xf32>
    %145 = tpu.matmul %113, %144, %cst_75 {dimension_numbers = #tpu.dot_dimension_numbers<[1], [0], [0], [1], [0, 0, 1, 1], [], []>} : vector<128x32xbf16>, vector<32x256xbf16>, vector<128x256xf32> -> vector<128x256xf32>
    %c0_76 = arith.constant 0 : index
    %c0_77 = arith.constant 0 : index
    %c512_78 = arith.constant 512 : index
    %146 = vector.load %arg11[%c0_76, %c0_77, %c512_78] : memref<1x1x2048xf32, #tpu.memory_space<vmem>>, vector<1x1x256xf32>
    %147 = vector.shape_cast %146 : vector<1x1x256xf32> to vector<1x256xf32>
    %148 = vector.broadcast %147 : vector<1x256xf32> to vector<128x256xf32>
    %149 = arith.addf %145, %148 : vector<128x256xf32>
    %cst_79 = arith.constant 0.000000e+00 : f32
    %150 = vector.broadcast %cst_79 : f32 to vector<128x256xf32>
    %151 = arith.maximumf %149, %150 : vector<128x256xf32>
    %152 = arith.truncf %151 : vector<128x256xf32> to vector<128x256xbf16>
    %c0_80 = arith.constant 0 : index
    %c512_81 = arith.constant 512 : index
    %c0_82 = arith.constant 0 : index
    %153 = vector.load %arg9[%c0_80, %c512_81, %c0_82] : memref<1x2048x32xbf16, #tpu.memory_space<vmem>>, vector<1x256x32xbf16>
    %154 = vector.shape_cast %153 : vector<1x256x32xbf16> to vector<256x32xbf16>
    %cst_83 = arith.constant dense<0.000000e+00> : vector<128x32xf32>
    %155 = tpu.matmul %152, %154, %cst_83 {dimension_numbers = #tpu.dot_dimension_numbers<[1], [0], [0], [1], [0, 0, 1, 1], [], []>} : vector<128x256xbf16>, vector<256x32xbf16>, vector<128x32xf32> -> vector<128x32xf32>
    %156 = arith.addf %142, %155 : vector<128x32xf32>
    %c0_84 = arith.constant 0 : index
    %c0_85 = arith.constant 0 : index
    %c768 = arith.constant 768 : index
    %157 = vector.load %arg8[%c0_84, %c0_85, %c768] : memref<1x32x2048xbf16, #tpu.memory_space<vmem>>, vector<1x32x256xbf16>
    %158 = vector.shape_cast %157 : vector<1x32x256xbf16> to vector<32x256xbf16>
    %cst_86 = arith.constant dense<0.000000e+00> : vector<128x256xf32>
    %159 = tpu.matmul %113, %158, %cst_86 {dimension_numbers = #tpu.dot_dimension_numbers<[1], [0], [0], [1], [0, 0, 1, 1], [], []>} : vector<128x32xbf16>, vector<32x256xbf16>, vector<128x256xf32> -> vector<128x256xf32>
    %c0_87 = arith.constant 0 : index
    %c0_88 = arith.constant 0 : index
    %c768_89 = arith.constant 768 : index
    %160 = vector.load %arg11[%c0_87, %c0_88, %c768_89] : memref<1x1x2048xf32, #tpu.memory_space<vmem>>, vector<1x1x256xf32>
    %161 = vector.shape_cast %160 : vector<1x1x256xf32> to vector<1x256xf32>
    %162 = vector.broadcast %161 : vector<1x256xf32> to vector<128x256xf32>
    %163 = arith.addf %159, %162 : vector<128x256xf32>
    %cst_90 = arith.constant 0.000000e+00 : f32
    %164 = vector.broadcast %cst_90 : f32 to vector<128x256xf32>
    %165 = arith.maximumf %163, %164 : vector<128x256xf32>
    %166 = arith.truncf %165 : vector<128x256xf32> to vector<128x256xbf16>
    %c0_91 = arith.constant 0 : index
    %c768_92 = arith.constant 768 : index
    %c0_93 = arith.constant 0 : index
    %167 = vector.load %arg9[%c0_91, %c768_92, %c0_93] : memref<1x2048x32xbf16, #tpu.memory_space<vmem>>, vector<1x256x32xbf16>
    %168 = vector.shape_cast %167 : vector<1x256x32xbf16> to vector<256x32xbf16>
    %cst_94 = arith.constant dense<0.000000e+00> : vector<128x32xf32>
    %169 = tpu.matmul %166, %168, %cst_94 {dimension_numbers = #tpu.dot_dimension_numbers<[1], [0], [0], [1], [0, 0, 1, 1], [], []>} : vector<128x256xbf16>, vector<256x32xbf16>, vector<128x32xf32> -> vector<128x32xf32>
    %170 = arith.addf %156, %169 : vector<128x32xf32>
    %c0_95 = arith.constant 0 : index
    %c0_96 = arith.constant 0 : index
    %c1024 = arith.constant 1024 : index
    %171 = vector.load %arg8[%c0_95, %c0_96, %c1024] : memref<1x32x2048xbf16, #tpu.memory_space<vmem>>, vector<1x32x256xbf16>
    %172 = vector.shape_cast %171 : vector<1x32x256xbf16> to vector<32x256xbf16>
    %cst_97 = arith.constant dense<0.000000e+00> : vector<128x256xf32>
    %173 = tpu.matmul %113, %172, %cst_97 {dimension_numbers = #tpu.dot_dimension_numbers<[1], [0], [0], [1], [0, 0, 1, 1], [], []>} : vector<128x32xbf16>, vector<32x256xbf16>, vector<128x256xf32> -> vector<128x256xf32>
    %c0_98 = arith.constant 0 : index
    %c0_99 = arith.constant 0 : index
    %c1024_100 = arith.constant 1024 : index
    %174 = vector.load %arg11[%c0_98, %c0_99, %c1024_100] : memref<1x1x2048xf32, #tpu.memory_space<vmem>>, vector<1x1x256xf32>
    %175 = vector.shape_cast %174 : vector<1x1x256xf32> to vector<1x256xf32>
    %176 = vector.broadcast %175 : vector<1x256xf32> to vector<128x256xf32>
    %177 = arith.addf %173, %176 : vector<128x256xf32>
    %cst_101 = arith.constant 0.000000e+00 : f32
    %178 = vector.broadcast %cst_101 : f32 to vector<128x256xf32>
    %179 = arith.maximumf %177, %178 : vector<128x256xf32>
    %180 = arith.truncf %179 : vector<128x256xf32> to vector<128x256xbf16>
    %c0_102 = arith.constant 0 : index
    %c1024_103 = arith.constant 1024 : index
    %c0_104 = arith.constant 0 : index
    %181 = vector.load %arg9[%c0_102, %c1024_103, %c0_104] : memref<1x2048x32xbf16, #tpu.memory_space<vmem>>, vector<1x256x32xbf16>
    %182 = vector.shape_cast %181 : vector<1x256x32xbf16> to vector<256x32xbf16>
    %cst_105 = arith.constant dense<0.000000e+00> : vector<128x32xf32>
    %183 = tpu.matmul %180, %182, %cst_105 {dimension_numbers = #tpu.dot_dimension_numbers<[1], [0], [0], [1], [0, 0, 1, 1], [], []>} : vector<128x256xbf16>, vector<256x32xbf16>, vector<128x32xf32> -> vector<128x32xf32>
    %184 = arith.addf %170, %183 : vector<128x32xf32>
    %c0_106 = arith.constant 0 : index
    %c0_107 = arith.constant 0 : index
    %c1280 = arith.constant 1280 : index
    %185 = vector.load %arg8[%c0_106, %c0_107, %c1280] : memref<1x32x2048xbf16, #tpu.memory_space<vmem>>, vector<1x32x256xbf16>
    %186 = vector.shape_cast %185 : vector<1x32x256xbf16> to vector<32x256xbf16>
    %cst_108 = arith.constant dense<0.000000e+00> : vector<128x256xf32>
    %187 = tpu.matmul %113, %186, %cst_108 {dimension_numbers = #tpu.dot_dimension_numbers<[1], [0], [0], [1], [0, 0, 1, 1], [], []>} : vector<128x32xbf16>, vector<32x256xbf16>, vector<128x256xf32> -> vector<128x256xf32>
    %c0_109 = arith.constant 0 : index
    %c0_110 = arith.constant 0 : index
    %c1280_111 = arith.constant 1280 : index
    %188 = vector.load %arg11[%c0_109, %c0_110, %c1280_111] : memref<1x1x2048xf32, #tpu.memory_space<vmem>>, vector<1x1x256xf32>
    %189 = vector.shape_cast %188 : vector<1x1x256xf32> to vector<1x256xf32>
    %190 = vector.broadcast %189 : vector<1x256xf32> to vector<128x256xf32>
    %191 = arith.addf %187, %190 : vector<128x256xf32>
    %cst_112 = arith.constant 0.000000e+00 : f32
    %192 = vector.broadcast %cst_112 : f32 to vector<128x256xf32>
    %193 = arith.maximumf %191, %192 : vector<128x256xf32>
    %194 = arith.truncf %193 : vector<128x256xf32> to vector<128x256xbf16>
    %c0_113 = arith.constant 0 : index
    %c1280_114 = arith.constant 1280 : index
    %c0_115 = arith.constant 0 : index
    %195 = vector.load %arg9[%c0_113, %c1280_114, %c0_115] : memref<1x2048x32xbf16, #tpu.memory_space<vmem>>, vector<1x256x32xbf16>
    %196 = vector.shape_cast %195 : vector<1x256x32xbf16> to vector<256x32xbf16>
    %cst_116 = arith.constant dense<0.000000e+00> : vector<128x32xf32>
    %197 = tpu.matmul %194, %196, %cst_116 {dimension_numbers = #tpu.dot_dimension_numbers<[1], [0], [0], [1], [0, 0, 1, 1], [], []>} : vector<128x256xbf16>, vector<256x32xbf16>, vector<128x32xf32> -> vector<128x32xf32>
    %198 = arith.addf %184, %197 : vector<128x32xf32>
    %c0_117 = arith.constant 0 : index
    %c0_118 = arith.constant 0 : index
    %c1536 = arith.constant 1536 : index
    %199 = vector.load %arg8[%c0_117, %c0_118, %c1536] : memref<1x32x2048xbf16, #tpu.memory_space<vmem>>, vector<1x32x256xbf16>
    %200 = vector.shape_cast %199 : vector<1x32x256xbf16> to vector<32x256xbf16>
    %cst_119 = arith.constant dense<0.000000e+00> : vector<128x256xf32>
    %201 = tpu.matmul %113, %200, %cst_119 {dimension_numbers = #tpu.dot_dimension_numbers<[1], [0], [0], [1], [0, 0, 1, 1], [], []>} : vector<128x32xbf16>, vector<32x256xbf16>, vector<128x256xf32> -> vector<128x256xf32>
    %c0_120 = arith.constant 0 : index
    %c0_121 = arith.constant 0 : index
    %c1536_122 = arith.constant 1536 : index
    %202 = vector.load %arg11[%c0_120, %c0_121, %c1536_122] : memref<1x1x2048xf32, #tpu.memory_space<vmem>>, vector<1x1x256xf32>
    %203 = vector.shape_cast %202 : vector<1x1x256xf32> to vector<1x256xf32>
    %204 = vector.broadcast %203 : vector<1x256xf32> to vector<128x256xf32>
    %205 = arith.addf %201, %204 : vector<128x256xf32>
    %cst_123 = arith.constant 0.000000e+00 : f32
    %206 = vector.broadcast %cst_123 : f32 to vector<128x256xf32>
    %207 = arith.maximumf %205, %206 : vector<128x256xf32>
    %208 = arith.truncf %207 : vector<128x256xf32> to vector<128x256xbf16>
    %c0_124 = arith.constant 0 : index
    %c1536_125 = arith.constant 1536 : index
    %c0_126 = arith.constant 0 : index
    %209 = vector.load %arg9[%c0_124, %c1536_125, %c0_126] : memref<1x2048x32xbf16, #tpu.memory_space<vmem>>, vector<1x256x32xbf16>
    %210 = vector.shape_cast %209 : vector<1x256x32xbf16> to vector<256x32xbf16>
    %cst_127 = arith.constant dense<0.000000e+00> : vector<128x32xf32>
    %211 = tpu.matmul %208, %210, %cst_127 {dimension_numbers = #tpu.dot_dimension_numbers<[1], [0], [0], [1], [0, 0, 1, 1], [], []>} : vector<128x256xbf16>, vector<256x32xbf16>, vector<128x32xf32> -> vector<128x32xf32>
    %212 = arith.addf %198, %211 : vector<128x32xf32>
    %c0_128 = arith.constant 0 : index
    %c0_129 = arith.constant 0 : index
    %c1792 = arith.constant 1792 : index
    %213 = vector.load %arg8[%c0_128, %c0_129, %c1792] : memref<1x32x2048xbf16, #tpu.memory_space<vmem>>, vector<1x32x256xbf16>
    %214 = vector.shape_cast %213 : vector<1x32x256xbf16> to vector<32x256xbf16>
    %cst_130 = arith.constant dense<0.000000e+00> : vector<128x256xf32>
    %215 = tpu.matmul %113, %214, %cst_130 {dimension_numbers = #tpu.dot_dimension_numbers<[1], [0], [0], [1], [0, 0, 1, 1], [], []>} : vector<128x32xbf16>, vector<32x256xbf16>, vector<128x256xf32> -> vector<128x256xf32>
    %c0_131 = arith.constant 0 : index
    %c0_132 = arith.constant 0 : index
    %c1792_133 = arith.constant 1792 : index
    %216 = vector.load %arg11[%c0_131, %c0_132, %c1792_133] : memref<1x1x2048xf32, #tpu.memory_space<vmem>>, vector<1x1x256xf32>
    %217 = vector.shape_cast %216 : vector<1x1x256xf32> to vector<1x256xf32>
    %218 = vector.broadcast %217 : vector<1x256xf32> to vector<128x256xf32>
    %219 = arith.addf %215, %218 : vector<128x256xf32>
    %cst_134 = arith.constant 0.000000e+00 : f32
    %220 = vector.broadcast %cst_134 : f32 to vector<128x256xf32>
    %221 = arith.maximumf %219, %220 : vector<128x256xf32>
    %222 = arith.truncf %221 : vector<128x256xf32> to vector<128x256xbf16>
    %c0_135 = arith.constant 0 : index
    %c1792_136 = arith.constant 1792 : index
    %c0_137 = arith.constant 0 : index
    %223 = vector.load %arg9[%c0_135, %c1792_136, %c0_137] : memref<1x2048x32xbf16, #tpu.memory_space<vmem>>, vector<1x256x32xbf16>
    %224 = vector.shape_cast %223 : vector<1x256x32xbf16> to vector<256x32xbf16>
    %cst_138 = arith.constant dense<0.000000e+00> : vector<128x32xf32>
    %225 = tpu.matmul %222, %224, %cst_138 {dimension_numbers = #tpu.dot_dimension_numbers<[1], [0], [0], [1], [0, 0, 1, 1], [], []>} : vector<128x256xbf16>, vector<256x32xbf16>, vector<128x32xf32> -> vector<128x32xf32>
    %226 = arith.addf %212, %225 : vector<128x32xf32>
    %c0_139 = arith.constant 0 : index
    %c4 = arith.constant 4 : index
    %c0_140 = arith.constant 0 : index
    %227 = vector.load %arg10[%c0_139, %c4, %c0_140] : memref<1x9x32xf32, #tpu.memory_space<vmem>>, vector<1x1x32xf32>
    %228 = vector.shape_cast %227 : vector<1x1x32xf32> to vector<1x32xf32>
    %229 = vector.broadcast %228 : vector<1x32xf32> to vector<128x32xf32>
    %230 = arith.addf %226, %229 : vector<128x32xf32>
    %231 = arith.addf %112, %230 : vector<128x32xf32>
    %c0_141 = arith.constant 0 : index
    %c7 = arith.constant 7 : index
    %c0_142 = arith.constant 0 : index
    %232 = vector.load %arg10[%c0_141, %c7, %c0_142] : memref<1x9x32xf32, #tpu.memory_space<vmem>>, vector<1x1x32xf32>
    %233 = vector.shape_cast %232 : vector<1x1x32xf32> to vector<1x32xf32>
    %c0_143 = arith.constant 0 : index
    %c8_144 = arith.constant 8 : index
    %c0_145 = arith.constant 0 : index
    %234 = vector.load %arg10[%c0_143, %c8_144, %c0_145] : memref<1x9x32xf32, #tpu.memory_space<vmem>>, vector<1x1x32xf32>
    %235 = vector.shape_cast %234 : vector<1x1x32xf32> to vector<1x32xf32>
    %cst_146 = arith.constant dense<0.000000e+00> : vector<128xf32>
    %236 = vector.multi_reduction <add>, %231, %cst_146 [1] : vector<128x32xf32> to vector<128xf32>
    %237 = vector.shape_cast %236 : vector<128xf32> to vector<128x1xf32>
    %cst_147 = arith.constant 3.200000e+01 : f32
    %238 = vector.broadcast %cst_147 : f32 to vector<128x1xf32>
    %239 = arith.divf %237, %238 : vector<128x1xf32>
    %240 = vector.broadcast %239 : vector<128x1xf32> to vector<128x32xf32>
    %241 = arith.subf %231, %240 : vector<128x32xf32>
    %242 = arith.mulf %241, %241 : vector<128x32xf32>
    %cst_148 = arith.constant dense<0.000000e+00> : vector<128xf32>
    %243 = vector.multi_reduction <add>, %242, %cst_148 [1] : vector<128x32xf32> to vector<128xf32>
    %244 = vector.shape_cast %243 : vector<128xf32> to vector<128x1xf32>
    %cst_149 = arith.constant 3.200000e+01 : f32
    %245 = vector.broadcast %cst_149 : f32 to vector<128x1xf32>
    %246 = arith.divf %244, %245 : vector<128x1xf32>
    %247 = vector.broadcast %239 : vector<128x1xf32> to vector<128x32xf32>
    %248 = arith.subf %231, %247 : vector<128x32xf32>
    %cst_150 = arith.constant 9.99999974E-6 : f32
    %249 = vector.broadcast %cst_150 : f32 to vector<128x1xf32>
    %250 = arith.addf %246, %249 : vector<128x1xf32>
    %251 = math.rsqrt %250 : vector<128x1xf32>
    %252 = vector.broadcast %251 : vector<128x1xf32> to vector<128x32xf32>
    %253 = arith.mulf %248, %252 : vector<128x32xf32>
    %254 = vector.broadcast %233 : vector<1x32xf32> to vector<128x32xf32>
    %255 = arith.mulf %253, %254 : vector<128x32xf32>
    %256 = vector.broadcast %235 : vector<1x32xf32> to vector<128x32xf32>
    %257 = arith.addf %255, %256 : vector<128x32xf32>
    %c0_151 = arith.constant 0 : index
    %c0_152 = arith.constant 0 : index
    %258 = vector.load %arg13[%c0_151, %c0_152] : memref<128x32xf32, #tpu.memory_space<vmem>>, vector<128x32xf32>
    tpu.vector_store %arg13[%c0_151, %c0_152], %257 {strides = array<i32>} : memref<128x32xf32, #tpu.memory_space<vmem>>, vector<128x32xf32>,
    %c2_i32 = arith.constant 2 : i32
    %259 = arith.cmpi eq, %arg0, %c2_i32 : i32
    %260 = arith.extui %259 : i1 to i32
    %c0_i32_153 = arith.constant 0 : i32
    %261 = arith.cmpi ne, %260, %c0_i32_153 : i32
    scf.if %261 {
      %262 = arith.truncf %257 : vector<128x32xf32> to vector<128x32xbf16>
      %c0_154 = arith.constant 0 : index
      %c0_155 = arith.constant 0 : index
      %263 = vector.load %arg4[%c0_154, %c0_155] : memref<32x32xbf16, #tpu.memory_space<vmem>>, vector<32x32xbf16>
      %cst_156 = arith.constant dense<0.000000e+00> : vector<128x32xf32>
      %264 = tpu.matmul %262, %263, %cst_156 {dimension_numbers = #tpu.dot_dimension_numbers<[1], [0], [0], [1], [0, 0, 1, 1], [], []>} : vector<128x32xbf16>, vector<32x32xbf16>, vector<128x32xf32> -> vector<128x32xf32>
      %c2_157 = arith.constant 2 : index
      %c0_158 = arith.constant 0 : index
      %265 = vector.load %arg2[%c2_157, %c0_158] : memref<16x32xf32, #tpu.memory_space<vmem>>, vector<1x32xf32>
      %266 = vector.broadcast %265 : vector<1x32xf32> to vector<128x32xf32>
      %267 = arith.addf %264, %266 : vector<128x32xf32>
      %cst_159 = arith.constant 0.000000e+00 : f32
      %268 = vector.broadcast %cst_159 : f32 to vector<128x32xf32>
      %269 = arith.maximumf %267, %268 : vector<128x32xf32>
      %c3_160 = arith.constant 3 : index
      %c0_161 = arith.constant 0 : index
      %270 = vector.load %arg2[%c3_160, %c0_161] : memref<16x32xf32, #tpu.memory_space<vmem>>, vector<1x32xf32>
      %cst_162 = arith.constant dense<0.000000e+00> : vector<1x128xf32>
      %271 = tpu.matmul %270, %269, %cst_162 {dimension_numbers = #tpu.dot_dimension_numbers<[1], [1], [0], [0], [0, 0, 1, 0], [], []>} : vector<1x32xf32>, vector<128x32xf32>, vector<1x128xf32> -> vector<1x128xf32>
      %c0_163 = arith.constant 0 : index
      %c0_164 = arith.constant 0 : index
      %272 = vector.load %arg5[%c0_163, %c0_164] : memref<128x128xf32, #tpu.memory_space<vmem>>, vector<128x128xf32>
      %cst_165 = arith.constant dense<0.000000e+00> : vector<1x128xf32>
      %273 = tpu.matmul %271, %272, %cst_165 {dimension_numbers = #tpu.dot_dimension_numbers<[1], [0], [0], [1], [0, 0, 1, 1], [], []>} : vector<1x128xf32>, vector<128x128xf32>, vector<1x128xf32> -> vector<1x128xf32>
      %c4_166 = arith.constant 4 : index
      %c0_167 = arith.constant 0 : index
      %274 = vector.load %arg2[%c4_166, %c0_167] : memref<16x32xf32, #tpu.memory_space<vmem>>, vector<1x1xf32>
      %275 = vector.broadcast %274 : vector<1x1xf32> to vector<1x128xf32>
      %276 = arith.addf %273, %275 : vector<1x128xf32>
      %c0_168 = arith.constant 0 : index
      %c0_169 = arith.constant 0 : index
      %277 = vector.load %arg12[%c0_168, %c0_169] : memref<1x128xf32, #tpu.memory_space<vmem>>, vector<1x128xf32>
      tpu.vector_store %arg12[%c0_168, %c0_169], %276 {strides = array<i32>} : memref<1x128xf32, #tpu.memory_space<vmem>>, vector<1x128xf32>,
    } else {
    }
    return
  }
  func.func @transform_0(%arg0: i32) -> (i32, i32) {
    %c0_i32 = arith.constant 0 : i32
    %c0_i32_0 = arith.constant 0 : i32
    %c0_i32_1 = arith.constant 0 : i32
    return %c0_i32, %c0_i32_0 : i32, i32
  }
  func.func @transform_1(%arg0: i32) -> (i32, i32) {
    %c0_i32 = arith.constant 0 : i32
    %c0_i32_0 = arith.constant 0 : i32
    %c0_i32_1 = arith.constant 0 : i32
    return %c0_i32, %c0_i32_0 : i32, i32
  }
  func.func @transform_2(%arg0: i32) -> (i32, i32) {
    %c0_i32 = arith.constant 0 : i32
    %c0_i32_0 = arith.constant 0 : i32
    %c0_i32_1 = arith.constant 0 : i32
    return %c0_i32, %c0_i32_0 : i32, i32
  }
  func.func @transform_3(%arg0: i32) -> (i32, i32) {
    %c0_i32 = arith.constant 0 : i32
    %c0_i32_0 = arith.constant 0 : i32
    %c0_i32_1 = arith.constant 0 : i32
    return %c0_i32, %c0_i32_0 : i32, i32
  }
  func.func @transform_4(%arg0: i32) -> (i32, i32) {
    %c0_i32 = arith.constant 0 : i32
    %c0_i32_0 = arith.constant 0 : i32
    %c0_i32_1 = arith.constant 0 : i32
    return %c0_i32, %c0_i32_0 : i32, i32
  }
  func.func @transform_5(%arg0: i32) -> (i32, i32, i32, i32) {
    %c0_i32 = arith.constant 0 : i32
    %c0_i32_0 = arith.constant 0 : i32
    %c0_i32_1 = arith.constant 0 : i32
    %c0_i32_2 = arith.constant 0 : i32
    return %arg0, %c0_i32, %c0_i32_0, %c0_i32_1 : i32, i32, i32, i32
  }
  func.func @transform_6(%arg0: i32) -> (i32, i32, i32) {
    %c0_i32 = arith.constant 0 : i32
    %c0_i32_0 = arith.constant 0 : i32
    %c0_i32_1 = arith.constant 0 : i32
    return %arg0, %c0_i32, %c0_i32_0 : i32, i32, i32
  }
  func.func @transform_7(%arg0: i32) -> (i32, i32, i32) {
    %c0_i32 = arith.constant 0 : i32
    %c0_i32_0 = arith.constant 0 : i32
    %c0_i32_1 = arith.constant 0 : i32
    return %arg0, %c0_i32, %c0_i32_0 : i32, i32, i32
  }
  func.func @transform_8(%arg0: i32) -> (i32, i32, i32) {
    %c0_i32 = arith.constant 0 : i32
    %c0_i32_0 = arith.constant 0 : i32
    %c0_i32_1 = arith.constant 0 : i32
    return %arg0, %c0_i32, %c0_i32_0 : i32, i32, i32
  }
  func.func @transform_9(%arg0: i32) -> (i32, i32, i32) {
    %c0_i32 = arith.constant 0 : i32
    %c0_i32_0 = arith.constant 0 : i32
    %c0_i32_1 = arith.constant 0 : i32
    return %arg0, %c0_i32, %c0_i32_0 : i32, i32, i32
  }
  func.func @transform_10(%arg0: i32) -> (i32, i32, i32) {
    %c0_i32 = arith.constant 0 : i32
    %c0_i32_0 = arith.constant 0 : i32
    %c0_i32_1 = arith.constant 0 : i32
    return %arg0, %c0_i32, %c0_i32_0 : i32, i32, i32
  }
  func.func @transform_11(%arg0: i32) -> (i32, i32) {
    %c0_i32 = arith.constant 0 : i32
    %c0_i32_0 = arith.constant 0 : i32
    %c0_i32_1 = arith.constant 0 : i32
    return %c0_i32, %c0_i32_0 : i32, i32
  }
}

</mosaic_0001>

<bundles_post_ra>
// kernel: squeeze.1
= control target key start
LH: loop header
LB: loop body
LE: loop exit
PB: predicated region body
PF: predicated region fallthrough
CT: control target
= control target key end

     0   :  { %s139_s0 = inlined_call_operand.vmem [shape: f32[32], index: 0, kind: input, shape index: {}]   ;;  %s140_s1 = inlined_call_operand.hbm [shape: f32[2,4,4], index: 1, kind: output, shape index: {}]  }
   0x1   :  { %v6_v0 = vld [vmem:[%s139_s0] sm:$0x1] }
   0x2   :  { %7 = vst [vmem:[#allocation3] sm:$0x1] %v6_v0 }
   0x3   :  { %2 = vsyncpa [#allocation1], 0  ;;  %s107_s0 = smov 124   ;;  %s108_s8 = smov 116   ;;  %vm9_vm0 = vcmask 31744  }
   0x4   :  { %s109_s9 = smov 120   ;;  %s110_s10 = smov 112  }
   0x5   :  { %s111_s11 = smov 108   ;;  %s112_s12 = smov 104  }
   0x6   :  { %s113_s13 = smov 100   ;;  %s114_s14 = smov [#allocation0]  }
   0x7   :  { %s71_s15 = sshll.u32 %s114_s14, 4  ;;  %s72_s15 = int_to_ptr.vmem [resolvable:$true] %s71_s15 }
   0x8   :  { %s85_s16 = scalar_lea.vmem %s72_s15, 128  ;;  %p90_p1 = scmp.lt.s32.totalorder %s72_s15, %s72_s15 }
   0x9   :  { %v11_v1 = vld [vmem:[#allocation3] sm:$0x1]   ;;  %p86_p0 = scmp.ne.s32.totalorder %s72_s15, %s85_s16  ;;  %p91_p2 = scmp.lt.s32.totalorder %s85_s16, %s85_s16 }
   0xa   :  { %v23_v2 = vld [vmem:[#allocation3] sm:$0x1]   ;;  %12 = vrot.lane.b32.xlu0 %v11_v1, %s107_s0 }
   0xb   :  { %24 = vrot.lane.b32.xlu1 %v23_v2, %s108_s8  ;;  %v17_v3 = vld [vmem:[#allocation3] sm:$0x1]   ;;  %p92_p3 = por %p91_p2, %p90_p1 }
   0xc   :  { %v29_v4 = vld [vmem:[#allocation3] sm:$0x1]  }
   0xd   :  { %v8_v5 = vld [vmem:[#allocation3] sm:$0x1]   ;;  %p93_p4 = pnand %p92_p3, %p86_p0 }
   0xe   :  { %10 = vst.msk [vmem:[#allocation2] sm:$0x1] %vm9_vm0, %v8_v5   ;;  %18 = vrot.lane.b32.xlu0 %v17_v3, %s109_s9  ;;  %v35_v6 = vld [vmem:[#allocation3] sm:$0x1]  }
   0xf   :  { %30 = vrot.lane.b32.xlu1 %v29_v4, %s110_s10  ;;  %v41_v7 = vld [vmem:[#allocation3] sm:$0x1]  }
  0x10   :  { %v47_v8 = vld [vmem:[#allocation3] sm:$0x1]  }
  0x12   :  { %36 = vrot.lane.b32.xlu0 %v35_v6, %s111_s11 }
  0x13   :  { %42 = vrot.lane.b32.xlu1 %v41_v7, %s112_s12 }
  0x16   :  { %48 = vrot.lane.b32.xlu0 %v47_v8, %s113_s13 }
  0x7c   :  { %v13_v9 = vpop.permute.xlu0 %12  }
  0x7d   :  { %v25_v10 = vpop.permute.xlu1 %24   ;;  %16 = vst.msk [vmem:[#allocation2 + $0x1] sm:$0x1] %vm9_vm0, %v13_v9  }
  0x7e   :  { %28 = vst.msk [vmem:[#allocation2 + $0x3] sm:$0x1] %vm9_vm0, %v25_v10  }
  0x80   :  { %v19_v11 = vpop.permute.xlu0 %18  }
  0x81   :  { %v31_v12 = vpop.permute.xlu1 %30   ;;  %22 = vst.msk [vmem:[#allocation2 + $0x2] sm:$0x1] %vm9_vm0, %v19_v11  }
  0x82   :  { %34 = vst.msk [vmem:[#allocation2 + $0x8] sm:$0x1] %vm9_vm0, %v31_v12  }
  0x84   :  { %v37_v13 = vpop.permute.xlu0 %36  }
  0x85   :  { %v43_v14 = vpop.permute.xlu1 %42   ;;  %40 = vst.msk [vmem:[#allocation2 + $0x9] sm:$0x1] %vm9_vm0, %v37_v13  }
  0x86   :  { %46 = vst.msk [vmem:[#allocation2 + $0xa] sm:$0x1] %vm9_vm0, %v43_v14  }
  0x88   :  { %v49_v15 = vpop.permute.xlu0 %48   ;;  %v57_v16 = vld [vmem:[#allocation2] sm:$0xf] }
  0x89   :  { %52 = vst.msk [vmem:[#allocation2 + $0xb] sm:$0x1] %vm9_vm0, %v49_v15   ;;  %60 = vst [vmem:[#allocation0] sm:$0xf] %v57_v16 }
  0x90   :  { %v62_v17 = vld [vmem:[#allocation2 + $0x8] sm:$0xf] }
  0x91   :  { %66 = vst [vmem:[#allocation0 + $0x4] sm:$0xf] %v62_v17 }
  0x92   :  { %96 = shalt.err (!%p93_p4)
}
  0x93   :  { %74 = dma.vmem_to_hbm [thread:$0]  %s72_s15, 128, %s140_s1, [#allocation1]  }
  0x94   :  { %105 = dma.done.wait [#allocation1], 128  }
  0x95   :  { %106 = vsyncadd [#allocation1], 4294967168 }
  0x96   :  { %76 = vsyncpa [#allocation1], 1 }

// kernel: forward.1
= control target key start
LH: loop header
LB: loop body
LE: loop exit
PB: predicated region body
PF: predicated region fallthrough
CT: control target
= control target key end

     0   :  { %s9404_s17 = smov 0   ;;  %s12395_s0 = inlined_call_operand.vmem [shape: f32[128,1], index: 0, kind: input, shape index: {}]   ;;  %s12396_s1 = inlined_call_operand.vmem [shape: f32[16,32], index: 1, kind: input, shape index: {}]   ;;  %s12397_s2 = inlined_call_operand.vmem [shape: f32[512,128], index: 2, kind: input, shape index: {}]   ;;  %s12398_s3 = inlined_call_operand.vmem [shape: bf16[32,32], index: 3, kind: input, shape index: {}]   ;;  %s12399_s4 = inlined_call_operand.vmem [shape: f32[128,128], index: 4, kind: input, shape index: {}]   ;;  %s12400_s5 = inlined_call_operand.vmem [shape: bf16[3,3,32,32], index: 5, kind: input, shape index: {}]   ;;  %s12401_s6 = inlined_call_operand.vmem [shape: bf16[3,32,32], index: 6, kind: input, shape index: {}]   ;;  %s12402_s7 = inlined_call_operand.vmem [shape: bf16[3,32,2048], index: 7, kind: input, shape index: {}]   ;;  %s12403_s8 = inlined_call_operand.vmem [shape: bf16[3,2048,32], index: 8, kind: input, shape index: {}]   ;;  %s12404_s9 = inlined_call_operand.vmem [shape: f32[3,9,32], index: 9, kind: input, shape index: {}]   ;;  %s12405_s10 = inlined_call_operand.vmem [shape: f32[3,1,2048], index: 10, kind: input, shape index: {}]   ;;  %s12406_s11 = inlined_call_operand.vmem [shape: f32[1,128], index: 11, kind: output, shape index: {}]  }
   0x1   :  { %12456 = sst [smem:[#allocation29_spill]] %s12401_s6 }
   0x2 LB: > { %12457 = sst [smem:[#allocation3_spill]] %s9337_s17  ;;  %s9410_s18 = sadd.s32 4294967295, %s9337_s17   ;;  %s9337_s17 = sphi %s9404_s17, %s21_s17  }
   0x3   : > { %p7452_p0 = scmp.ge.s32.totalorder %s9337_s17, 1  ;;  %p381_p1 = scmp.lt.s32.totalorder %s9337_s17, 4 }
   0x5   : > { %p382_p2 = pnand %p7452_p0, %p381_p1 }
   0x7   : > { %385 = sbr.rel (%p382_p2) target bundleno = 3949 (0xf6d), region = 64 }
   0xc   : > { %p440_p3 = scmp.lt.s32.totalorder %s9410_s18, 2  ;;  %s12458_s6 = sld [smem:[#allocation29_spill]] }
   0xd   : > { %p7463_p4 = scmp.ne.s32.totalorder %s9410_s18, 0 }
   0xe   : > { %s441_s19 = scalar_select %p440_p3, %s9410_s18, 2 }
  0x10   : > { %s8832_s20 = smul.u32 48, %s441_s19  ;;  %s7810_s21 = sshll.u32 %s441_s19, 4 }
  0x11   : > { %s7811_s25 = sshll.u32 %s441_s19, 8  ;;  %s7812_s13 = sshll.u32 %s441_s19, 10 }
  0x12   : > { %s9419_s24 = scalar_lea.vmem %s12458_s6, %s7810_s21  ;;  %s9424_s28 = scalar_lea.vmem %s12400_s5, %s8832_s20 }
  0x13   : > { %s9429_s12 = scalar_lea.vmem %s12402_s7, %s7811_s25  ;;  %s9434_s16 = scalar_lea.vmem %s12404_s9, %s7810_s21 }
  0x14   : > { %s9439_s6 = scalar_lea.vmem %s12403_s8, %s7812_s13  ;;  %s9444_s20 = scalar_lea.vmem %s12405_s10, %s7810_s21 }
  0x15   : > { %473 = sbr.rel (%p7463_p4) target bundleno = 185 (0xb9), region = 68 }
  0x1a   : > { %v476_v0 = vld [vmem:[%s12395_s0 + $0x10] sm:$0xff]  ;;  %v474_v1 = vld [vmem:[%s12395_s0] sm:$0xff]  ;;  %v9339_v2 = vmov 0   ;;  %v477_v3 = vld [vmem:[%s12395_s0 + $0x18] sm:$0xff]  ;;  %vm612_vm0 = vcmask 261120  }
  0x1b   : > { %8847 = vset.pattern.permute.xlu1 %v9339_v2  ;;  %8846 = vset.pattern.permute.xlu0 %v9339_v2  ;;  %v475_v4 = vld [vmem:[%s12395_s0 + $0x8] sm:$0xff]  ;;  %v478_v6 = vld [vmem:[%s12395_s0 + $0x20] sm:$0xff]  ;;  %v481_v7 = vld [vmem:[%s12395_s0 + $0x38] sm:$0xff] }
  0x1c   : > { %503 = vperm.xlu1 %8847, %v476_v0   ;;  %493 = vperm.xlu0 %8846, %v474_v1   ;;  %v479_v5 = vld [vmem:[%s12395_s0 + $0x28] sm:$0xff]  ;;  %v480_v8 = vld [vmem:[%s12395_s0 + $0x30] sm:$0xff]  ;;  %v482_v10 = vld [vmem:[%s12395_s0 + $0x40] sm:$0xff] }
  0x1d   : > { %v483_v9 = vld [vmem:[%s12395_s0 + $0x48] sm:$0xff]  ;;  %v485_v11 = vld [vmem:[%s12395_s0 + $0x58] sm:$0xff]  ;;  %v484_v12 = vld [vmem:[%s12395_s0 + $0x50] sm:$0xff] }
  0x1e   : > { %v487_v13 = vld [vmem:[%s12395_s0 + $0x68] sm:$0xff]  ;;  %v486_v14 = vld [vmem:[%s12395_s0 + $0x60] sm:$0xff]  ;;  %v489_v15 = vld [vmem:[%s12395_s0 + $0x78] sm:$0xff] }
  0x1f   : > { %v488_v16 = vld [vmem:[%s12395_s0 + $0x70] sm:$0xff]  ;;  %v7464_v17 = vld [vmem:[%s12396_s1] ss:$0 sm:$0xff]  ;;  %v9501_v18 = vld [vmem:[%s12396_s1 + $0x1] ss:$0 sm:$0xff] }
  0x20   : > { %508 = vperm.xlu1 %8847, %v477_v3   ;;  %498 = vperm.xlu0 %8846, %v475_v4  }
  0x24   : > { %518 = vperm.xlu1 %8847, %v479_v5   ;;  %513 = vperm.xlu0 %8846, %v478_v6  }
  0x28   : > { %528 = vperm.xlu1 %8847, %v481_v7   ;;  %523 = vperm.xlu0 %8846, %v480_v8  }
  0x2c   : > { %538 = vperm.xlu1 %8847, %v483_v9   ;;  %533 = vperm.xlu0 %8846, %v482_v10  }
  0x30   : > { %548 = vperm.xlu1 %8847, %v485_v11   ;;  %543 = vperm.xlu0 %8846, %v484_v12  }
  0x34   : > { %558 = vperm.xlu1 %8847, %v487_v13   ;;  %553 = vperm.xlu0 %8846, %v486_v14  }
  0x38   : > { %568 = vperm.xlu1 %8847, %v489_v15   ;;  %563 = vperm.xlu0 %8846, %v488_v16  }
  0x97   : > { %v504_v19 = vpop.permute.xlu1 %503  ;;  %v494_v20 = vpop.permute.xlu0 %493 }
  0x98   : > { %v577_v21 = vmul.f32 %v7464_v17, %v504_v19  ;;  %v575_v22 = vmul.f32 %v7464_v17, %v494_v20 }
  0x9a   : > { %v598_v23 = vadd.f32 %v9501_v18, %v577_v21  ;;  %v596_v24 = vadd.f32 %v9501_v18, %v575_v22 }
  0x9b   : > { %v509_v25 = vpop.permute.xlu1 %508  ;;  %v499_v26 = vpop.permute.xlu0 %498 }
  0x9c   : > { %615 = vst.msk [vmem:[#allocation2 + $0x10] sm:$0xff] %vm612_vm0, %v598_v23  ;;  %613 = vst.msk [vmem:[#allocation2] sm:$0xff] %vm612_vm0, %v596_v24  ;;  %v578_v27 = vmul.f32 %v7464_v17, %v509_v25  ;;  %v576_v28 = vmul.f32 %v7464_v17, %v499_v26 }
  0x9e   : > { %v599_v29 = vadd.f32 %v9501_v18, %v578_v27  ;;  %v597_v30 = vadd.f32 %v9501_v18, %v576_v28 }
  0x9f   : > { %v519_v31 = vpop.permute.xlu1 %518  ;;  %v514_v32 = vpop.permute.xlu0 %513 }
  0xa0   : > { %616 = vst.msk [vmem:[#allocation2 + $0x18] sm:$0xff] %vm612_vm0, %v599_v29  ;;  %614 = vst.msk [vmem:[#allocation2 + $0x8] sm:$0xff] %vm612_vm0, %v597_v30  ;;  %v580_v33 = vmul.f32 %v7464_v17, %v519_v31  ;;  %v579_v34 = vmul.f32 %v7464_v17, %v514_v32 }
  0xa2   : > { %v601_v35 = vadd.f32 %v9501_v18, %v580_v33  ;;  %v600_v36 = vadd.f32 %v9501_v18, %v579_v34 }
  0xa3   : > { %v529_v37 = vpop.permute.xlu1 %528  ;;  %v524_v38 = vpop.permute.xlu0 %523 }
  0xa4   : > { %618 = vst.msk [vmem:[#allocation2 + $0x28] sm:$0xff] %vm612_vm0, %v601_v35  ;;  %617 = vst.msk [vmem:[#allocation2 + $0x20] sm:$0xff] %vm612_vm0, %v600_v36  ;;  %v582_v39 = vmul.f32 %v7464_v17, %v529_v37  ;;  %v581_v40 = vmul.f32 %v7464_v17, %v524_v38 }
  0xa6   : > { %v603_v41 = vadd.f32 %v9501_v18, %v582_v39  ;;  %v602_v42 = vadd.f32 %v9501_v18, %v581_v40 }
  0xa7   : > { %v539_v43 = vpop.permute.xlu1 %538  ;;  %v534_v44 = vpop.permute.xlu0 %533 }
  0xa8   : > { %620 = vst.msk [vmem:[#allocation2 + $0x38] sm:$0xff] %vm612_vm0, %v603_v41  ;;  %619 = vst.msk [vmem:[#allocation2 + $0x30] sm:$0xff] %vm612_vm0, %v602_v42  ;;  %v584_v45 = vmul.f32 %v7464_v17, %v539_v43  ;;  %v583_v46 = vmul.f32 %v7464_v17, %v534_v44 }
  0xaa   : > { %v605_v47 = vadd.f32 %v9501_v18, %v584_v45  ;;  %v604_v48 = vadd.f32 %v9501_v18, %v583_v46 }
  0xab   : > { %v549_v49 = vpop.permute.xlu1 %548  ;;  %v544_v50 = vpop.permute.xlu0 %543 }
  0xac   : > { %622 = vst.msk [vmem:[#allocation2 + $0x48] sm:$0xff] %vm612_vm0, %v605_v47  ;;  %621 = vst.msk [vmem:[#allocation2 + $0x40] sm:$0xff] %vm612_vm0, %v604_v48  ;;  %v586_v51 = vmul.f32 %v7464_v17, %v549_v49  ;;  %v585_v52 = vmul.f32 %v7464_v17, %v544_v50 }
  0xae   : > { %v607_v53 = vadd.f32 %v9501_v18, %v586_v51  ;;  %v606_v54 = vadd.f32 %v9501_v18, %v585_v52 }
  0xaf   : > { %v559_v55 = vpop.permute.xlu1 %558  ;;  %v554_v56 = vpop.permute.xlu0 %553 }
  0xb0   : > { %624 = vst.msk [vmem:[#allocation2 + $0x58] sm:$0xff] %vm612_vm0, %v607_v53  ;;  %623 = vst.msk [vmem:[#allocation2 + $0x50] sm:$0xff] %vm612_vm0, %v606_v54  ;;  %v588_v57 = vmul.f32 %v7464_v17, %v559_v55  ;;  %v587_v58 = vmul.f32 %v7464_v17, %v554_v56 }
  0xb2   : > { %v609_v59 = vadd.f32 %v9501_v18, %v588_v57  ;;  %v608_v60 = vadd.f32 %v9501_v18, %v587_v58 }
  0xb3   : > { %v569_v61 = vpop.permute.xlu1 %568  ;;  %v564_v62 = vpop.permute.xlu0 %563 }
  0xb4   : > { %626 = vst.msk [vmem:[#allocation2 + $0x68] sm:$0xff] %vm612_vm0, %v609_v59  ;;  %625 = vst.msk [vmem:[#allocation2 + $0x60] sm:$0xff] %vm612_vm0, %v608_v60  ;;  %v590_v63 = vmul.f32 %v7464_v17, %v569_v61  ;;  %v589_v0 = vmul.f32 %v7464_v17, %v564_v62 }
  0xb6   : > { %v611_v1 = vadd.f32 %v9501_v18, %v590_v63  ;;  %v610_v2 = vadd.f32 %v9501_v18, %v589_v0 }
  0xb8   : > { %628 = vst.msk [vmem:[#allocation2 + $0x78] sm:$0xff] %vm612_vm0, %v611_v1  ;;  %627 = vst.msk [vmem:[#allocation2 + $0x70] sm:$0xff] %vm612_vm0, %v610_v2 }
  0xb9 PF: > { %v8848_v3 = vld [vmem:[%s9424_s28 + $0x8] sm:$0xff]   ;;  %v8849_v4 = vld [vmem:[%s9424_s28] sm:$0xff]   ;;  %vm682_vm1 = vcmask 261120   ;;  %v639_v7 = vld [vmem:[#allocation2 + $0x50] sm:$0xff]  ;;  %v1069_v31 = vlaneseq  ;;  %p7779_p5 = scmp.ne.s32.totalorder %s9410_s18, 2 }
  0xba   : > { %8820 = vmatprep.subr.bf16.mxu1 %v8848_v3  ;;  %v637_v5 = vld [vmem:[#allocation2 + $0x40] sm:$0xff]  ;;  %v638_v6 = vld [vmem:[#allocation2 + $0x48] sm:$0xff]  ;;  %8490 = vmatprep.subr.bf16.mxu0 %v8848_v3  ;;  %v640_v9 = vld [vmem:[#allocation2 + $0x58] sm:$0xff] }
  0xbb   : > { %8822 = vmatpush3.bf16.msra.mxu1 %v8848_v3  ;;  %v9537_v8 = vpack.c.bf16 %v638_v6, %v637_v5  ;;  %8491 = vmatpush3.bf16.msra.mxu0 %v8848_v3  ;;  %v8850_v10 = vld [vmem:[%s9424_s28 + $0x18] sm:$0xff]   ;;  %v641_v11 = vld [vmem:[#allocation2 + $0x60] sm:$0xff]  ;;  %v642_v12 = vld [vmem:[#allocation2 + $0x68] sm:$0xff]  ;;  %v9542_v13 = vpack.c.bf16 %v640_v9, %v639_v7  ;;  %v9588_v35 = vshrl.u32 %v1069_v31, 7 }
  0xbc   : > { %8821 = vmatprep.subr.bf16.mxu1 %v8849_v4  ;;  %8492 = vmatprep.subr.bf16.mxu0 %v8849_v4  ;;  %v629_v14 = vld [vmem:[#allocation2] sm:$0xff]  ;;  %v9544_v15 = vpack.c.bf16 %v642_v12, %v641_v11  ;;  %v630_v16 = vld [vmem:[#allocation2 + $0x8] sm:$0xff]  ;;  %v631_v17 = vld [vmem:[#allocation2 + $0x10] sm:$0xff] }
  0xbd   : > { %8502 = vmatprep.mubr.msk.bf16.mxu1 %vm682_vm1, %v9537_v8  ;;  %v632_v18 = vld [vmem:[#allocation2 + $0x18] sm:$0xff]  ;;  %v8851_v19 = vld [vmem:[%s9424_s28 + $0x10] sm:$0xff]   ;;  %v653_v20 = vpack.c.bf16 %v630_v16, %v629_v14  ;;  %v633_v21 = vld [vmem:[#allocation2 + $0x20] sm:$0xff]  ;;  %12459 = vst [vmem:[#allocation4_spill] sm:$0xff] %v9588_v35  ;;  %v9591_v41 = vsub.s32 0, %v9588_v35 }
  0xbe   : > { %v634_v22 = vld [vmem:[#allocation2 + $0x28] sm:$0xff]  ;;  %v9549_v25 = vpack.c.bf16 %v632_v18, %v631_v17  ;;  %v635_v27 = vld [vmem:[#allocation2 + $0x30] sm:$0xff]  ;;  %v636_v28 = vld [vmem:[#allocation2 + $0x38] sm:$0xff] }
  0xbf   : > { %8823 = vmatpush3.bf16.msra.mxu1 %v8849_v4  ;;  %8493 = vmatpush3.bf16.msra.mxu0 %v8849_v4  ;;  %v643_v23 = vld [vmem:[#allocation2 + $0x70] sm:$0xff]  ;;  %v644_v24 = vld [vmem:[#allocation2 + $0x78] sm:$0xff]  ;;  %v9554_v26 = vpack.c.bf16 %v634_v22, %v633_v21  ;;  %v9564_v30 = vpack.c.bf16 %v636_v28, %v635_v27  ;;  %v645_v32 = vld [vmem:[%s12396_s1 + $0x8] sm:$0x1]  ;;  %12460 = vst [vmem:[#allocation5_spill] sm:$0xff] %v9591_v41 }
  0xc0   : > { %8510 = vmatprep.subr.bf16.mxu1 %v8850_v10  ;;  %8494 = vmatprep.mubr.msk.bf16.mxu0 %vm682_vm1, %v653_v20  ;;  %v9560_v29 = vpack.c.bf16 %v644_v24, %v643_v23  ;;  %v7466_v33 = vld [vmem:[%s9434_s16] ss:$0 sm:$0xff]  ;;  %v649_v34 = vpack.c.bf16 %v645_v32, %v645_v32  ;;  %v7481_v22 = vld [vmem:[%s9434_s16 + $0x1] ss:$0 sm:$0xff] }
  0xc1   : > { %v1651_v35 = vld [vmem:[%s12397_s2 + $0x1a0] sm:$0xff] }
  0xc2   : > { %8503 = vmatmul.mubr.msk.bf16.vlgmr.msra.gmra.mxu1 %vm682_vm1, %v9542_v13  ;;  %8495 = vmatmul.mubr.msk.bf16.vlgmr.msra.gmra.mxu0 %vm682_vm1, %v9549_v25  ;;  %v1067_v40 = vpack.i.b16 %v649_v34, %v649_v34 }
  0xc3   : > { %8511 = vmatpush3.bf16.msra.mxu1 %v8850_v10  ;;  %8506 = vmatprep.mubr.msk.bf16.mxu1 %vm682_vm1, %v9544_v15 }
  0xc4   : > { %8512 = vmatprep.subr.bf16.mxu1 %v8851_v19  ;;  %8498 = vmatprep.mubr.msk.bf16.mxu0 %vm682_vm1, %v9554_v26  ;;  %v9594_v49 = vrot.slane %v1067_v40, %v9591_v41 }
  0xc7   : > { %8513 = vmatpush3.bf16.msra.mxu1 %v8851_v19 }
  0xca   : > { %8507 = vmatmul.mubr.msk.bf16.gmra.mxu1 %vm682_vm1, %v9560_v29  ;;  %8499 = vmatmul.mubr.msk.bf16.gmra.mxu0 %vm682_vm1, %v9564_v30 }
  0xcb   : > { %8514 = vmatprep.mubr.msk.bf16.mxu1 %vm682_vm1, %v653_v20  ;;  %8534 = vmatprep.mubr.msk.bf16.mxu0 %vm682_vm1, %v653_v20 }
  0xd2   : > { %8515 = vmatmul.mubr.msk.bf16.vlgmr.msra.gmra.mxu1 %vm682_vm1, %v9549_v25 }
  0xd3   : > { %8518 = vmatprep.mubr.msk.bf16.mxu1 %vm682_vm1, %v9554_v26 }
  0xda   : > { %8519 = vmatmul.mubr.msk.bf16.gmra.mxu1 %vm682_vm1, %v9564_v30 }
  0xdb   : > { %8522 = vmatprep.mubr.msk.bf16.mxu1 %vm682_vm1, %v9537_v8 }
  0xe2   : > { %8523 = vmatmul.mubr.msk.bf16.gmra.mxu1 %vm682_vm1, %v9542_v13 }
  0xe3   : > { %8526 = vmatprep.mubr.msk.bf16.mxu1 %vm682_vm1, %v9544_v15 }
  0xea   : > { %8527 = vmatmul.mubr.msk.bf16.gmra.mxu1 %vm682_vm1, %v9560_v29 }
 0x182   : > { %v8504_v36 = vpop.f32.mrf.mxu1  ;;  %v8496_v39 = vpop.f32.mrf.mxu0 }
 0x183   : > { %v782_v37 = vadd.f32 %v8504_v36, %v7466_v33  ;;  %v750_v43 = vadd.f32 %v8496_v39, %v7466_v33 }
 0x184   : > { %v773_v38 = vpop.f32.mrf.mxu1  ;;  %v741_v45 = vpop.f32.mrf.mxu0 }
 0x185   : > { %v774_v42 = vadd.f32 %v7466_v33, %v773_v38  ;;  %v742_v52 = vadd.f32 %v7466_v33, %v741_v45 }
 0x186   : > { %v8505_v44 = vpop.f32.mrf.mxu1  ;;  %v8497_v48 = vpop.f32.mrf.mxu0 }
 0x187   : > { %v785_v46 = vadd.f32 %v8505_v44, %v7466_v33  ;;  %v753_v53 = vadd.f32 %v8497_v48, %v7466_v33 }
 0x188   : > { %v776_v47 = vpop.f32.mrf.mxu1  ;;  %v744_v55 = vpop.f32.mrf.mxu0 }
 0x189   : > { %v9596_v50 = vpack.c.bf16 %v785_v46, %v782_v37  ;;  %v777_v51 = vadd.f32 %v7466_v33, %v776_v47  ;;  %v9600_v58 = vpack.c.bf16 %v753_v53, %v750_v43  ;;  %v745_v59 = vadd.f32 %v7466_v33, %v744_v55 }
 0x18a   : > { %v8508_v54 = vpop.f32.mrf.mxu1  ;;  %v8500_v61 = vpop.f32.mrf.mxu0 }
 0x18b   : > { %v9598_v56 = vpack.c.bf16 %v777_v51, %v774_v42  ;;  %v798_v57 = vadd.f32 %v8508_v54, %v7466_v33  ;;  %v1078_v62 = vmul.bf16 %v9594_v49, %v9596_v50  ;;  %v1074_v0 = vmul.bf16 %v9594_v49, %v9600_v58 }
 0x18c   : > { %v789_v60 = vpop.f32.mrf.mxu1  ;;  %v9606_v1 = vpack.c.bf16 %v745_v59, %v742_v52  ;;  %v757_v3 = vpop.f32.mrf.mxu0  ;;  %v766_v6 = vadd.f32 %v8500_v61, %v7466_v33 }
 0x18d   : > { %v790_v63 = vadd.f32 %v7466_v33, %v789_v60  ;;  %v1077_v4 = vmul.bf16 %v9594_v49, %v9598_v56  ;;  %v758_v14 = vadd.f32 %v7466_v33, %v757_v3 }
 0x18e   : > { %v8509_v2 = vpop.f32.mrf.mxu1  ;;  %v1073_v7 = vmul.bf16 %v9594_v49, %v9606_v1  ;;  %v8501_v10 = vpop.f32.mrf.mxu0 }
 0x18f   : > { %v801_v5 = vadd.f32 %v8509_v2, %v7466_v33  ;;  %v769_v16 = vadd.f32 %v8501_v10, %v7466_v33 }
 0x190   : > { %v792_v9 = vpop.f32.mrf.mxu1  ;;  %8566 = vmatprep.mubr.msk.bf16.mxu1 %vm682_vm1, %v1073_v7  ;;  %v760_v18 = vpop.f32.mrf.mxu0 }
 0x191   : > { %v9612_v11 = vpack.c.bf16 %v801_v5, %v798_v57  ;;  %v793_v12 = vadd.f32 %v7466_v33, %v792_v9  ;;  %v9617_v20 = vpack.c.bf16 %v769_v16, %v766_v6  ;;  %v761_v21 = vadd.f32 %v7466_v33, %v760_v18 }
 0x192   : > { %v8516_v17 = vpop.f32.mrf.mxu1 }
 0x193   : > { %v9615_v19 = vpack.c.bf16 %v793_v12, %v790_v63  ;;  %v1080_v24 = vmul.bf16 %v9594_v49, %v9612_v11  ;;  %v9622_v27 = vpack.c.bf16 %v761_v21, %v758_v14  ;;  %v1076_v28 = vmul.bf16 %v9594_v49, %v9617_v20 }
 0x194   : > { %v860_v23 = vpop.f32.mrf.mxu1  ;;  %v869_v34 = vadd.f32 %v8516_v17, %v7481_v22 }
 0x195   : > { %v1079_v31 = vmul.bf16 %v9594_v49, %v9615_v19  ;;  %v1075_v37 = vmul.bf16 %v9594_v49, %v9622_v27  ;;  %v647_v49 = vld [vmem:[%s12396_s1 + $0xa] sm:$0x1] }
 0x196   : > { %v8517_v32 = vpop.f32.mrf.mxu1 }
 0x197   : > { %v872_v36 = vadd.f32 %v8517_v32, %v7481_v22 }
 0x198   : > { %v863_v33 = vpop.f32.mrf.mxu1 }
 0x199   : > { %v1051_v38 = vpack.c.bf16 %v872_v36, %v869_v34 }
 0x19a   : > { %v8520_v39 = vpop.f32.mrf.mxu1 }
 0x19b   : > { %v885_v16 = vadd.f32 %v8520_v39, %v7481_v22  ;;  %v864_v39 = vadd.f32 %v7481_v22, %v863_v33 }
 0x19c   : > { %v876_v40 = vpop.f32.mrf.mxu1 }
 0x19d   : > { %v877_v32 = vadd.f32 %v7481_v22, %v876_v40 }
 0x19e   : > { %v8521_v42 = vpop.f32.mrf.mxu1 }
 0x19f   : > { %v888_v14 = vadd.f32 %v8521_v42, %v7481_v22  ;;  %v861_v42 = vadd.f32 %v7481_v22, %v860_v23 }
 0x1a0   : > { %v879_v43 = vpop.f32.mrf.mxu1 }
 0x1a1   : > { %v1053_v17 = vpack.c.bf16 %v888_v14, %v885_v16  ;;  %v880_v21 = vadd.f32 %v7481_v22, %v879_v43 }
 0x1a2   : > { %v8524_v44 = vpop.f32.mrf.mxu1 }
 0x1a3   : > { %v901_v3 = vadd.f32 %v8524_v44, %v7481_v22  ;;  %v1052_v34 = vpack.c.bf16 %v880_v21, %v877_v32  ;;  %v1232_v36 = vsel %vm682_vm1, %v1053_v17, 0 }
 0x1a4   : > { %v892_v45 = vpop.f32.mrf.mxu1 }
 0x1a5   : > { %v893_v9 = vadd.f32 %v7481_v22, %v892_v45  ;;  %v1229_v44 = vsel %vm682_vm1, %v1052_v34, 0  ;;  %v1050_v45 = vpack.c.bf16 %v864_v39, %v861_v42  ;;  %v1605_v39 = vld [vmem:[%s12397_s2 + $0x30] sm:$0xff] }
 0x1a6   : > { %v8525_v46 = vpop.f32.mrf.mxu1 }
 0x1a7   : > { %v904_v2 = vadd.f32 %v8525_v46, %v7481_v22  ;;  %v1226_v46 = vsel %vm682_vm1, %v1051_v38, 0  ;;  %v1223_v40 = vsel %vm682_vm1, %v1050_v45, 0 }
 0x1a8   : > { %v895_v47 = vpop.f32.mrf.mxu1 }
 0x1a9   : > { %v1055_v5 = vpack.c.bf16 %v904_v2, %v901_v3  ;;  %v896_v7 = vadd.f32 %v7481_v22, %v895_v47 }
 0x1aa   : > { %v8528_v48 = vpop.f32.mrf.mxu1 }
 0x1ab   : > { %v917_v53 = vadd.f32 %v8528_v48, %v7481_v22  ;;  %v1054_v10 = vpack.c.bf16 %v896_v7, %v893_v9  ;;  %v1238_v12 = vsel %vm682_vm1, %v1055_v5, 0 }
 0x1ac   : > { %v908_v51 = vpop.f32.mrf.mxu1 }
 0x1ad   : > { %v909_v57 = vadd.f32 %v7481_v22, %v908_v51  ;;  %v1235_v18 = vsel %vm682_vm1, %v1054_v10, 0 }
 0x1ae   : > { %v8529_v52 = vpop.f32.mrf.mxu1 }
 0x1af   : > { %v920_v54 = vadd.f32 %v8529_v52, %v7481_v22 }
 0x1b0   : > { %v911_v55 = vpop.f32.mrf.mxu1 }
 0x1b1   : > { %v1057_v59 = vpack.c.bf16 %v920_v54, %v917_v53  ;;  %v912_v60 = vadd.f32 %v7481_v22, %v911_v55  ;;  %v646_v22 = vld [vmem:[%s12396_s1 + $0x9] sm:$0x1] }
 0x1b2   : > { %v650_v23 = vpack.c.bf16 %v646_v22, %v646_v22 }
 0x1b3   : > { %v1056_v61 = vpack.c.bf16 %v912_v60, %v909_v57  ;;  %8824 = vmatprep.subr.msk.bf16.mxu1 %vm682_vm1, %v1057_v59  ;;  %v1244_v63 = vsel %vm682_vm1, %v1057_v59, 0  ;;  %v648_v59 = vld [vmem:[%s12396_s1 + $0xb] sm:$0x1] }
 0x1b4   : > { %8551 = vmatpush3.bf16.xpose.msra.mxu1 %v1244_v63  ;;  %v652_v60 = vpack.c.bf16 %v648_v59, %v648_v59 }
 0x1b5   : > { %8825 = vmatprep.subr.msk.bf16.mxu1 %vm682_vm1, %v1056_v61  ;;  %v1241_v6 = vsel %vm682_vm1, %v1056_v61, 0 }
 0x1b6   : > { %v1112_v2 = vpack.i.b16 %v652_v60, %v652_v60  ;;  %v1608_v60 = vld [vmem:[%s12397_s2 + $0x48] sm:$0xff] }
 0x1b8   : > { %v1117_v3 = vrot.slane %v1112_v2, %v9591_v41 }
 0x1ba   : > { %v1119_v7 = vmul.bf16 %v1117_v3, %v9600_v58  ;;  %v1120_v9 = vmul.bf16 %v1117_v3, %v9622_v27  ;;  %v1124_v14 = vmul.bf16 %v1117_v3, %v9615_v19 }
 0x1bc   : > { %8553 = vmatpush3.bf16.xpose.msra.mxu1 %v1241_v6  ;;  %v1118_v6 = vmul.bf16 %v1117_v3, %v9606_v1 }
 0x1bd   : > { %8826 = vmatprep.subr.msk.bf16.mxu1 %vm682_vm1, %v1055_v5 }
 0x1c4   : > { %8555 = vmatpush3.bf16.xpose.msra.mxu1 %v1238_v12  ;;  %v1122_v12 = vmul.bf16 %v1117_v3, %v9598_v56 }
 0x1c5   : > { %8827 = vmatprep.subr.msk.bf16.mxu1 %vm682_vm1, %v1054_v10  ;;  %v1121_v10 = vmul.bf16 %v1117_v3, %v9617_v20 }
 0x1cc   : > { %8557 = vmatpush3.bf16.xpose.msra.mxu1 %v1235_v18 }
 0x1cd   : > { %8828 = vmatprep.subr.msk.bf16.mxu1 %vm682_vm1, %v1053_v17  ;;  %v1600_v17 = vld [vmem:[%s12397_s2 + $0x8] sm:$0xff] }
 0x1d4   : > { %8559 = vmatpush3.bf16.xpose.msra.mxu1 %v1232_v36 }
 0x1d5   : > { %8829 = vmatprep.subr.msk.bf16.mxu1 %vm682_vm1, %v1052_v34 }
 0x1dc   : > { %8561 = vmatpush3.bf16.xpose.msra.mxu1 %v1229_v44 }
 0x1dd   : > { %8830 = vmatprep.subr.msk.bf16.mxu1 %vm682_vm1, %v1051_v38 }
 0x1e4   : > { %8563 = vmatpush3.bf16.xpose.msra.mxu1 %v1226_v46 }
 0x1e5   : > { %8831 = vmatprep.subr.msk.bf16.mxu1 %vm682_vm1, %v1050_v45  ;;  %v1606_v45 = vld [vmem:[%s12397_s2 + $0x38] sm:$0xff] }
 0x1ec   : > { %8565 = vmatpush3.bf16.xpose.msra.mxu1 %v1223_v40 }
 0x1f3   : > { %8567 = vmatmul.mubr.msk.bf16.vlgmr.msra.gmra.mxu1 %vm682_vm1, %v1074_v0  ;;  %v1082_v0 = vpack.i.b16 %v650_v23, %v650_v23 }
 0x1f4   : > { %8570 = vmatprep.mubr.msk.bf16.mxu1 %vm682_vm1, %v1075_v37 }
 0x1fb   : > { %8571 = vmatmul.mubr.msk.bf16.gmra.mxu1 %vm682_vm1, %v1076_v28  ;;  %v1087_v28 = vrot.slane %v1082_v0, %v9591_v41  ;;  %v1603_v0 = vld [vmem:[%s12397_s2 + $0x20] sm:$0xff] }
 0x1fc   : > { %8574 = vmatprep.mubr.msk.bf16.mxu1 %vm682_vm1, %v1077_v4 }
 0x1fd   : > { %v1088_v4 = vmul.bf16 %v1087_v28, %v9606_v1  ;;  %v1089_v37 = vmul.bf16 %v1087_v28, %v9600_v58  ;;  %v1092_v33 = vmul.bf16 %v1087_v28, %v9598_v56  ;;  %v1093_v38 = vmul.bf16 %v1087_v28, %v9596_v50 }
 0x1fe   : > { %v1094_v43 = vmul.bf16 %v1087_v28, %v9615_v19  ;;  %v1095_v51 = vmul.bf16 %v1087_v28, %v9612_v11 }
 0x203   : > { %8575 = vmatmul.mubr.msk.bf16.gmra.mxu1 %vm682_vm1, %v1078_v62  ;;  %v1090_v62 = vmul.bf16 %v1087_v28, %v9622_v27 }
 0x204   : > { %8578 = vmatprep.mubr.msk.bf16.mxu1 %vm682_vm1, %v1079_v31  ;;  %v1091_v31 = vmul.bf16 %v1087_v28, %v9617_v20 }
 0x20b   : > { %8579 = vmatmul.mubr.msk.bf16.gmra.mxu1 %vm682_vm1, %v1080_v24  ;;  %v651_v24 = vpack.c.bf16 %v647_v49, %v647_v49 }
 0x20c   : > { %8582 = vmatprep.mubr.msk.bf16.mxu1 %vm682_vm1, %v1088_v4 }
 0x20d   : > { %v1097_v47 = vpack.i.b16 %v651_v24, %v651_v24  ;;  %v1609_v24 = vld [vmem:[%s12397_s2 + $0x50] sm:$0xff] }
 0x20f   : > { %v1102_v48 = vrot.slane %v1097_v47, %v9591_v41  ;;  %v1610_v47 = vld [vmem:[%s12397_s2 + $0x58] sm:$0xff] }
 0x211   : > { %v1103_v52 = vmul.bf16 %v1102_v48, %v9606_v1  ;;  %v1104_v53 = vmul.bf16 %v1102_v48, %v9600_v58  ;;  %v1105_v54 = vmul.bf16 %v1102_v48, %v9622_v27  ;;  %v1106_v55 = vmul.bf16 %v1102_v48, %v9617_v20  ;;  %v8852_v27 = vld [vmem:[%s9424_s28 + $0x28] sm:$0xff]  }
 0x212   : > { %v1107_v57 = vmul.bf16 %v1102_v48, %v9598_v56  ;;  %v1108_v61 = vmul.bf16 %v1102_v48, %v9596_v50  ;;  %v1109_v63 = vmul.bf16 %v1102_v48, %v9615_v19  ;;  %v1110_v5 = vmul.bf16 %v1102_v48, %v9612_v11  ;;  %8530 = vmatprep.subr.bf16.mxu0 %v8852_v27  ;;  %v8853_v56 = vld [vmem:[%s9424_s28 + $0x20] sm:$0xff]  }
 0x213   : > { %8583 = vmatmul.mubr.msk.bf16.gmra.mxu1 %vm682_vm1, %v1089_v37  ;;  %v1123_v1 = vmul.bf16 %v1117_v3, %v9596_v50  ;;  %v1125_v58 = vmul.bf16 %v1117_v3, %v9612_v11  ;;  %8531 = vmatpush3.bf16.msra.mxu0 %v8852_v27  ;;  %v1613_v3 = vld [vmem:[%s12397_s2 + $0x70] sm:$0xff] }
 0x214   : > { %8586 = vmatprep.mubr.msk.bf16.mxu1 %vm682_vm1, %v1090_v62  ;;  %8532 = vmatprep.subr.bf16.mxu0 %v8853_v56  ;;  %v1604_v62 = vld [vmem:[%s12397_s2 + $0x28] sm:$0xff] }
 0x217   : > { %8533 = vmatpush3.bf16.msra.mxu0 %v8853_v56 }
 0x21a   : > { %8535 = vmatmul.mubr.msk.bf16.vlgmr.msra.gmra.mxu0 %vm682_vm1, %v9549_v25  ;;  %v1601_v25 = vld [vmem:[%s12397_s2 + $0x10] sm:$0xff] }
 0x21b   : > { %8587 = vmatmul.mubr.msk.bf16.gmra.mxu1 %vm682_vm1, %v1091_v31  ;;  %8538 = vmatprep.mubr.msk.bf16.mxu0 %vm682_vm1, %v9554_v26 }
 0x21c   : > { %8590 = vmatprep.mubr.msk.bf16.mxu1 %vm682_vm1, %v1092_v33 }
 0x222   : > { %8539 = vmatmul.mubr.msk.bf16.gmra.mxu0 %vm682_vm1, %v9564_v30 }
 0x223   : > { %8591 = vmatmul.mubr.msk.bf16.gmra.mxu1 %vm682_vm1, %v1093_v38  ;;  %8542 = vmatprep.mubr.msk.bf16.mxu0 %vm682_vm1, %v9537_v8  ;;  %v1599_v8 = vld [vmem:[%s12397_s2] sm:$0xff] }
 0x224   : > { %8594 = vmatprep.mubr.msk.bf16.mxu1 %vm682_vm1, %v1094_v43 }
 0x22a   : > { %8543 = vmatmul.mubr.msk.bf16.gmra.mxu0 %vm682_vm1, %v9542_v13 }
 0x22b   : > { %8595 = vmatmul.mubr.msk.bf16.gmra.mxu1 %vm682_vm1, %v1095_v51  ;;  %8546 = vmatprep.mubr.msk.bf16.mxu0 %vm682_vm1, %v9544_v15  ;;  %v1602_v15 = vld [vmem:[%s12397_s2 + $0x18] sm:$0xff] }
 0x22c   : > { %8598 = vmatprep.mubr.msk.bf16.mxu1 %vm682_vm1, %v1103_v52 }
 0x232   : > { %8547 = vmatmul.mubr.msk.bf16.gmra.mxu0 %vm682_vm1, %v9560_v29 }
 0x233   : > { %8599 = vmatmul.mubr.msk.bf16.gmra.mxu1 %vm682_vm1, %v1104_v53 }
 0x234   : > { %8602 = vmatprep.mubr.msk.bf16.mxu1 %vm682_vm1, %v1105_v54  ;;  %v1607_v54 = vld [vmem:[%s12397_s2 + $0x40] sm:$0xff] }
 0x23b   : > { %8603 = vmatmul.mubr.msk.bf16.gmra.mxu1 %vm682_vm1, %v1106_v55 }
 0x23c   : > { %8606 = vmatprep.mubr.msk.bf16.mxu1 %vm682_vm1, %v1107_v57 }
 0x243   : > { %8607 = vmatmul.mubr.msk.bf16.gmra.mxu1 %vm682_vm1, %v1108_v61 }
 0x244   : > { %8610 = vmatprep.mubr.msk.bf16.mxu1 %vm682_vm1, %v1109_v63 }
 0x24b   : > { %8611 = vmatmul.mubr.msk.bf16.gmra.mxu1 %vm682_vm1, %v1110_v5 }
 0x24c   : > { %8614 = vmatprep.mubr.msk.bf16.mxu1 %vm682_vm1, %v1118_v6 }
 0x253   : > { %8615 = vmatmul.mubr.msk.bf16.gmra.mxu1 %vm682_vm1, %v1119_v7  ;;  %v1614_v7 = vld [vmem:[%s12397_s2 + $0x78] sm:$0xff] }
 0x254   : > { %8618 = vmatprep.mubr.msk.bf16.mxu1 %vm682_vm1, %v1120_v9 }
 0x25b   : > { %8619 = vmatmul.mubr.msk.bf16.gmra.mxu1 %vm682_vm1, %v1121_v10 }
 0x25c   : > { %8622 = vmatprep.mubr.msk.bf16.mxu1 %vm682_vm1, %v1122_v12 }
 0x263   : > { %8623 = vmatmul.mubr.msk.bf16.gmra.mxu1 %vm682_vm1, %v1123_v1 }
 0x264   : > { %8626 = vmatprep.mubr.msk.bf16.mxu1 %vm682_vm1, %v1124_v14  ;;  %v1611_v14 = vld [vmem:[%s12397_s2 + $0x60] sm:$0xff] }
 0x26b   : > { %8627 = vmatmul.mubr.msk.bf16.gmra.mxu1 %vm682_vm1, %v1125_v58 }
 0x2b3   : > { %v8568_v50 = vpop.f32.mrf.mxu1 }
 0x2b4   : > { %v1537_v26 = vmul.f32 0.35355338, %v8568_v50  ;;  %v1612_v50 = vld [vmem:[%s12397_s2 + $0x68] sm:$0xff] }
 0x2b5   : > { %v1280_v11 = vpop.f32.mrf.mxu1 }
 0x2b6   : > { %v1535_v30 = vmul.f32 0.35355338, %v1280_v11  ;;  %v9753_v19 = vadd.f32 %v1601_v25, %v1537_v26 }
 0x2b7   : > { %v8569_v13 = vpop.f32.mrf.mxu1 }
 0x2b8   : > { %v1538_v29 = vmul.f32 0.35355338, %v8569_v13  ;;  %1731 = vmax.xlane.f32.xlu1 %v9753_v19  ;;  %v9759_v20 = vadd.f32 %v1599_v8, %v1535_v30  ;;  %v1617_v8 = vld [vmem:[%s12397_s2 + $0x90] sm:$0xff] }
 0x2b9   : > { %v1283_v16 = vpop.f32.mrf.mxu1 }
 0x2ba   : > { %v1536_v18 = vmul.f32 0.35355338, %v1283_v16  ;;  %1727 = vmax.xlane.f32.xlu0 %v9759_v20  ;;  %v9765_v21 = vadd.f32 %v1602_v15, %v1538_v29  ;;  %v1618_v15 = vld [vmem:[%s12397_s2 + $0x98] sm:$0xff] }
 0x2bb   : > { %v8572_v32 = vpop.f32.mrf.mxu1 }
 0x2bc   : > { %v1541_v34 = vmul.f32 0.35355338, %v8572_v32  ;;  %1733 = vmax.xlane.f32.xlu1 %v9765_v21  ;;  %v9768_v36 = vadd.f32 %v1600_v17, %v1536_v18  ;;  %v1615_v32 = vld [vmem:[%s12397_s2 + $0x80] sm:$0xff] }
 0x2bd   : > { %v1296_v44 = vpop.f32.mrf.mxu1 }
 0x2be   : > { %1729 = vmax.xlane.f32.xlu0 %v9768_v36  ;;  %v1539_v46 = vmul.f32 0.35355338, %v1296_v44  ;;  %v9777_v22 = vadd.f32 %v1605_v39, %v1541_v34 }
 0x2bf   : > { %v8573_v42 = vpop.f32.mrf.mxu1 }
 0x2c0   : > { %v1542_v40 = vmul.f32 0.35355338, %v8573_v42  ;;  %v9789_v33 = vadd.f32 %v1603_v0, %v1539_v46  ;;  %v1616_v42 = vld [vmem:[%s12397_s2 + $0x88] sm:$0xff] }
 0x2c1   : > { %v1299_v23 = vpop.f32.mrf.mxu1 }
 0x2c2   : > { %v1540_v28 = vmul.f32 0.35355338, %v1299_v23  ;;  %1739 = vmax.xlane.f32.xlu0 %v9777_v22  ;;  %v9783_v4 = vadd.f32 %v1606_v45, %v1542_v40  ;;  %v1621_v23 = vld [vmem:[%s12397_s2 + $0xb0] sm:$0xff] }
 0x2c3   : > { %v8576_v37 = vpop.f32.mrf.mxu1 }
 0x2c4   : > { %v1545_v31 = vmul.f32 0.35355338, %v8576_v37  ;;  %1741 = vmax.xlane.f32.xlu1 %v9783_v4  ;;  %v9795_v38 = vadd.f32 %v1604_v62, %v1540_v28  ;;  %v1622_v37 = vld [vmem:[%s12397_s2 + $0xb8] sm:$0xff] }
 0x2c5   : > { %v1312_v49 = vpop.f32.mrf.mxu1 }
 0x2c6   : > { %1735 = vmax.xlane.f32.xlu0 %v9789_v33  ;;  %v1543_v48 = vmul.f32 0.35355338, %v1312_v49  ;;  %v9801_v52 = vadd.f32 %v1609_v24, %v1545_v31 }
 0x2c7   : > { %v8577_v43 = vpop.f32.mrf.mxu1 }
 0x2c8   : > { %v1546_v51 = vmul.f32 0.35355338, %v8577_v43  ;;  %1737 = vmax.xlane.f32.xlu1 %v9795_v38  ;;  %v9813_v63 = vadd.f32 %v1607_v54, %v1543_v48  ;;  %v1619_v43 = vld [vmem:[%s12397_s2 + $0xa0] sm:$0xff] }
 0x2c9   : > { %v1315_v53 = vpop.f32.mrf.mxu1 }
 0x2ca   : > { %v1544_v55 = vmul.f32 0.35355338, %v1315_v53  ;;  %1747 = vmax.xlane.f32.xlu0 %v9801_v52  ;;  %v9807_v57 = vadd.f32 %v1610_v47, %v1546_v51  ;;  %v1620_v53 = vld [vmem:[%s12397_s2 + $0xa8] sm:$0xff] }
 0x2cb   : > { %v8580_v59 = vpop.f32.mrf.mxu1 }
 0x2cc   : > { %v1549_v61 = vmul.f32 0.35355338, %v8580_v59  ;;  %1749 = vmax.xlane.f32.xlu1 %v9807_v57  ;;  %v9819_v5 = vadd.f32 %v1608_v60, %v1544_v55  ;;  %v1625_v60 = vld [vmem:[%s12397_s2 + $0xd0] sm:$0xff] }
 0x2cd   : > { %v1328_v2 = vpop.f32.mrf.mxu1 }
 0x2ce   : > { %1743 = vmax.xlane.f32.xlu0 %v9813_v63  ;;  %v1547_v9 = vmul.f32 0.35355338, %v1328_v2  ;;  %v9825_v12 = vadd.f32 %v1613_v3, %v1549_v61  ;;  %v1626_v3 = vld [vmem:[%s12397_s2 + $0xd8] sm:$0xff] }
 0x2cf   : > { %v8581_v6 = vpop.f32.mrf.mxu1 }
 0x2d0   : > { %v1550_v10 = vmul.f32 0.35355338, %v8581_v6  ;;  %1745 = vmax.xlane.f32.xlu1 %v9819_v5  ;;  %v9837_v26 = vadd.f32 %v1611_v14, %v1547_v9 }
 0x2d1   : > { %v1331_v1 = vpop.f32.mrf.mxu1 }
 0x2d2   : > { %v1548_v58 = vmul.f32 0.35355338, %v1331_v1  ;;  %1755 = vmax.xlane.f32.xlu0 %v9825_v12  ;;  %v9831_v27 = vadd.f32 %v1614_v7, %v1550_v10  ;;  %v1623_v1 = vld [vmem:[%s12397_s2 + $0xc0] sm:$0xff] }
 0x2d3   : > { %v8584_v56 = vpop.f32.mrf.mxu1 }
 0x2d4   : > { %v1553_v25 = vmul.f32 0.35355338, %v8584_v56  ;;  %1757 = vmax.xlane.f32.xlu1 %v9831_v27  ;;  %v9843_v30 = vadd.f32 %v1612_v50, %v1548_v58  ;;  %v1624_v50 = vld [vmem:[%s12397_s2 + $0xc8] sm:$0xff] }
 0x2d5   : > { %v1344_v11 = vpop.f32.mrf.mxu1 }
 0x2d6   : > { %1751 = vmax.xlane.f32.xlu0 %v9837_v26  ;;  %v1551_v29 = vmul.f32 0.35355338, %v1344_v11  ;;  %v9849_v17 = vadd.f32 %v1617_v8, %v1553_v25 }
 0x2d7   : > { %v8585_v13 = vpop.f32.mrf.mxu1 }
 0x2d8   : > { %v1554_v16 = vmul.f32 0.35355338, %v8585_v13  ;;  %1753 = vmax.xlane.f32.xlu1 %v9843_v30  ;;  %v9861_v46 = vadd.f32 %v1615_v32, %v1551_v29  ;;  %v1629_v13 = vld [vmem:[%s12397_s2 + $0xf0] sm:$0xff] }
 0x2d9   : > { %v1347_v18 = vpop.f32.mrf.mxu1 }
 0x2da   : > { %v1552_v34 = vmul.f32 0.35355338, %v1347_v18  ;;  %1763 = vmax.xlane.f32.xlu0 %v9849_v17  ;;  %v9855_v44 = vadd.f32 %v1618_v15, %v1554_v16  ;;  %v1630_v16 = vld [vmem:[%s12397_s2 + $0xf8] sm:$0xff] }
 0x2db   : > { %v8588_v39 = vpop.f32.mrf.mxu1 }
 0x2dc   : > { %v1557_v45 = vmul.f32 0.35355338, %v8588_v39  ;;  %1765 = vmax.xlane.f32.xlu1 %v9855_v44  ;;  %v9867_v0 = vadd.f32 %v1616_v42, %v1552_v34  ;;  %v1627_v42 = vld [vmem:[%s12397_s2 + $0xe0] sm:$0xff] }
 0x2dd   : > { %v1360_v40 = vpop.f32.mrf.mxu1 }
 0x2de   : > { %1759 = vmax.xlane.f32.xlu0 %v9861_v46  ;;  %v1555_v62 = vmul.f32 0.35355338, %v1360_v40  ;;  %v9873_v49 = vadd.f32 %v1621_v23, %v1557_v45 }
 0x2df   : > { %v8589_v28 = vpop.f32.mrf.mxu1 }
 0x2e0   : > { %v1558_v31 = vmul.f32 0.35355338, %v8589_v28  ;;  %1761 = vmax.xlane.f32.xlu1 %v9867_v0  ;;  %v9885_v55 = vadd.f32 %v1619_v43, %v1555_v62  ;;  %v1628_v28 = vld [vmem:[%s12397_s2 + $0xe8] sm:$0xff] }
 0x2e1   : > { %v1363_v24 = vpop.f32.mrf.mxu1 }
 0x2e2   : > { %v1556_v47 = vmul.f32 0.35355338, %v1363_v24  ;;  %1771 = vmax.xlane.f32.xlu0 %v9873_v49  ;;  %v9879_v48 = vadd.f32 %v1622_v37, %v1558_v31  ;;  %v1633_v24 = vld [vmem:[%s12397_s2 + $0x110] sm:$0xff] }
 0x2e3   : > { %v8592_v51 = vpop.f32.mrf.mxu1 }
 0x2e4   : > { %v1561_v54 = vmul.f32 0.35355338, %v8592_v51  ;;  %1773 = vmax.xlane.f32.xlu1 %v9879_v48  ;;  %v9891_v61 = vadd.f32 %v1620_v53, %v1556_v47  ;;  %v1634_v51 = vld [vmem:[%s12397_s2 + $0x118] sm:$0xff] }
 0x2e5   : > { %v1376_v59 = vpop.f32.mrf.mxu1 }
 0x2e6   : > { %1767 = vmax.xlane.f32.xlu0 %v9885_v55  ;;  %v1559_v6 = vmul.f32 0.35355338, %v1376_v59  ;;  %v9897_v9 = vadd.f32 %v1625_v60, %v1561_v54 }
 0x2e7   : > { %v8593_v2 = vpop.f32.mrf.mxu1 }
 0x2e8   : > { %v1562_v7 = vmul.f32 0.35355338, %v8593_v2  ;;  %1769 = vmax.xlane.f32.xlu1 %v9891_v61  ;;  %v9909_v11 = vadd.f32 %v1623_v1, %v1559_v6  ;;  %v1631_v2 = vld [vmem:[%s12397_s2 + $0x100] sm:$0xff] }
 0x2e9   : > { %v1379_v10 = vpop.f32.mrf.mxu1 }
 0x2ea   : > { %v1560_v14 = vmul.f32 0.35355338, %v1379_v10  ;;  %1779 = vmax.xlane.f32.xlu0 %v9897_v9  ;;  %v9903_v58 = vadd.f32 %v1626_v3, %v1562_v7  ;;  %v1632_v10 = vld [vmem:[%s12397_s2 + $0x108] sm:$0xff] }
 0x2eb   : > { %v8596_v56 = vpop.f32.mrf.mxu1 }
 0x2ec   : > { %v1565_v25 = vmul.f32 0.35355338, %v8596_v56  ;;  %1781 = vmax.xlane.f32.xlu1 %v9903_v58  ;;  %v9915_v15 = vadd.f32 %v1624_v50, %v1560_v14  ;;  %v1637_v50 = vld [vmem:[%s12397_s2 + $0x130] sm:$0xff] }
 0x2ed   : > { %v1392_v8 = vpop.f32.mrf.mxu1 }
 0x2ee   : > { %1775 = vmax.xlane.f32.xlu0 %v9909_v11  ;;  %v1563_v18 = vmul.f32 0.35355338, %v1392_v8  ;;  %v9921_v34 = vadd.f32 %v1629_v13, %v1565_v25  ;;  %v1638_v13 = vld [vmem:[%s12397_s2 + $0x138] sm:$0xff] }
 0x2ef   : > { %v8597_v29 = vpop.f32.mrf.mxu1 }
 0x2f0   : > { %v1566_v32 = vmul.f32 0.35355338, %v8597_v29  ;;  %1777 = vmax.xlane.f32.xlu1 %v9915_v15  ;;  %v9933_v62 = vadd.f32 %v1627_v42, %v1563_v18 }
 0x2f1   : > { %v1395_v39 = vpop.f32.mrf.mxu1 }
 0x2f2   : > { %v1564_v45 = vmul.f32 0.35355338, %v1395_v39  ;;  %1787 = vmax.xlane.f32.xlu0 %v9921_v34  ;;  %v9927_v40 = vadd.f32 %v1630_v16, %v1566_v32  ;;  %v1635_v39 = vld [vmem:[%s12397_s2 + $0x120] sm:$0xff] }
 0x2f3   : > { %v8600_v23 = vpop.f32.mrf.mxu1 }
 0x2f4   : > { %v1569_v37 = vmul.f32 0.35355338, %v8600_v23  ;;  %1789 = vmax.xlane.f32.xlu1 %v9927_v40  ;;  %v9939_v43 = vadd.f32 %v1628_v28, %v1564_v45  ;;  %v1636_v28 = vld [vmem:[%s12397_s2 + $0x128] sm:$0xff] }
 0x2f5   : > { %v1408_v31 = vpop.f32.mrf.mxu1 }
 0x2f6   : > { %1783 = vmax.xlane.f32.xlu0 %v9933_v62  ;;  %v1567_v53 = vmul.f32 0.35355338, %v1408_v31  ;;  %v9945_v59 = vadd.f32 %v1633_v24, %v1569_v37 }
 0x2f7   : > { %v8601_v47 = vpop.f32.mrf.mxu1 }
 0x2f8   : > { %v1570_v54 = vmul.f32 0.35355338, %v8601_v47  ;;  %1785 = vmax.xlane.f32.xlu1 %v9939_v43  ;;  %v9957_v14 = vadd.f32 %v1631_v2, %v1567_v53  ;;  %v1641_v47 = vld [vmem:[%s12397_s2 + $0x150] sm:$0xff] }
 0x2f9   : > { %v1411_v60 = vpop.f32.mrf.mxu1 }
 0x2fa   : > { %v1568_v3 = vmul.f32 0.35355338, %v1411_v60  ;;  %1795 = vmax.xlane.f32.xlu0 %v9945_v59  ;;  %v9951_v6 = vadd.f32 %v1634_v51, %v1570_v54  ;;  %v1642_v54 = vld [vmem:[%s12397_s2 + $0x158] sm:$0xff] }
 0x2fb   : > { %v8604_v7 = vpop.f32.mrf.mxu1 }
 0x2fc   : > { %v1573_v1 = vmul.f32 0.35355338, %v8604_v7  ;;  %1797 = vmax.xlane.f32.xlu1 %v9951_v6  ;;  %v9963_v25 = vadd.f32 %v1632_v10, %v1568_v3  ;;  %v1639_v10 = vld [vmem:[%s12397_s2 + $0x140] sm:$0xff] }
 0x2fd   : > { %v1424_v56 = vpop.f32.mrf.mxu1 }
 0x2fe   : > { %1791 = vmax.xlane.f32.xlu0 %v9957_v14  ;;  %v1571_v29 = vmul.f32 0.35355338, %v1424_v56  ;;  %v9969_v18 = vadd.f32 %v1637_v50, %v1573_v1 }
 0x2ff   : > { %v8605_v8 = vpop.f32.mrf.mxu1 }
 0x300   : > { %v1574_v16 = vmul.f32 0.35355338, %v8605_v8  ;;  %1793 = vmax.xlane.f32.xlu1 %v9963_v25  ;;  %v9981_v31 = vadd.f32 %v1635_v39, %v1571_v29  ;;  %v1640_v8 = vld [vmem:[%s12397_s2 + $0x148] sm:$0xff] }
 0x301   : > { %v1427_v32 = vpop.f32.mrf.mxu1 }
 0x302   : > { %v1572_v42 = vmul.f32 0.35355338, %v1427_v32  ;;  %1803 = vmax.xlane.f32.xlu0 %v9969_v18  ;;  %v9975_v45 = vadd.f32 %v1638_v13, %v1574_v16  ;;  %v1645_v32 = vld [vmem:[%s12397_s2 + $0x170] sm:$0xff] }
 0x303   : > { %v8608_v23 = vpop.f32.mrf.mxu1 }
 0x304   : > { %v1577_v37 = vmul.f32 0.35355338, %v8608_v23  ;;  %1805 = vmax.xlane.f32.xlu1 %v9975_v45  ;;  %v9987_v51 = vadd.f32 %v1636_v28, %v1572_v42  ;;  %v1646_v23 = vld [vmem:[%s12397_s2 + $0x178] sm:$0xff] }
 0x305   : > { %v1440_v24 = vpop.f32.mrf.mxu1 }
 0x306   : > { %1799 = vmax.xlane.f32.xlu0 %v9981_v31  ;;  %v1575_v60 = vmul.f32 0.35355338, %v1440_v24  ;;  %v9993_v3 = vadd.f32 %v1641_v47, %v1577_v37 }
 0x307   : > { %v8609_v53 = vpop.f32.mrf.mxu1 }
 0x308   : > { %v1578_v2 = vmul.f32 0.35355338, %v8609_v53  ;;  %1801 = vmax.xlane.f32.xlu1 %v9987_v51  ;;  %v10005_v29 = vadd.f32 %v1639_v10, %v1575_v60  ;;  %v1643_v53 = vld [vmem:[%s12397_s2 + $0x160] sm:$0xff] }
 0x309   : > { %v1443_v7 = vpop.f32.mrf.mxu1 }
 0x30a   : > { %v1576_v1 = vmul.f32 0.35355338, %v1443_v7  ;;  %1811 = vmax.xlane.f32.xlu0 %v9993_v3  ;;  %v9999_v56 = vadd.f32 %v1642_v54, %v1578_v2  ;;  %v1644_v7 = vld [vmem:[%s12397_s2 + $0x168] sm:$0xff] }
 0x30b   : > { %v8612_v50 = vpop.f32.mrf.mxu1 }
 0x30c   : > { %12461 = vst [vmem:[#allocation6_spill] sm:$0xff] %v9999_v56  ;;  %v1581_v13 = vmul.f32 0.35355338, %v8612_v50  ;;  %1813 = vmax.xlane.f32.xlu1 %v9999_v56  ;;  %v10011_v39 = vadd.f32 %v1640_v8, %v1576_v1  ;;  %v1649_v8 = vld [vmem:[%s12397_s2 + $0x190] sm:$0xff] }
 0x30d   : > { %v1456_v16 = vpop.f32.mrf.mxu1 }
 0x30e   : > { %1807 = vmax.xlane.f32.xlu0 %v10005_v29  ;;  %12462 = vst [vmem:[#allocation7_spill] sm:$0xff] %v10011_v39  ;;  %v1579_v28 = vmul.f32 0.35355338, %v1456_v16  ;;  %v10017_v24 = vadd.f32 %v1645_v32, %v1581_v13  ;;  %v1650_v32 = vld [vmem:[%s12397_s2 + $0x198] sm:$0xff] }
 0x30f   : > { %v8613_v42 = vpop.f32.mrf.mxu1 }
 0x310   : > { %v1582_v37 = vmul.f32 0.35355338, %v8613_v42  ;;  %1809 = vmax.xlane.f32.xlu1 %v10011_v39  ;;  %12463 = vst [vmem:[#allocation8_spill] sm:$0xff] %v10017_v24  ;;  %v10029_v1 = vadd.f32 %v1643_v53, %v1579_v28 }
 0x311   : > { %v1459_v47 = vpop.f32.mrf.mxu1 }
 0x312   : > { %v1580_v54 = vmul.f32 0.35355338, %v1459_v47  ;;  %1819 = vmax.xlane.f32.xlu0 %v10017_v24  ;;  %v10023_v60 = vadd.f32 %v1646_v23, %v1582_v37  ;;  %12465 = vst [vmem:[#allocation10_spill] sm:$0xff] %v10029_v1  ;;  %v1647_v47 = vld [vmem:[%s12397_s2 + $0x180] sm:$0xff] }
 0x313   : > { %v8616_v2 = vpop.f32.mrf.mxu1 }
 0x314   : > { %12464 = vst [vmem:[#allocation9_spill] sm:$0xff] %v10023_v60  ;;  %v1585_v10 = vmul.f32 0.35355338, %v8616_v2  ;;  %1821 = vmax.xlane.f32.xlu1 %v10023_v60  ;;  %v10035_v13 = vadd.f32 %v1644_v7, %v1580_v54  ;;  %v1648_v7 = vld [vmem:[%s12397_s2 + $0x188] sm:$0xff] }
 0x315   : > { %v1472_v50 = vpop.f32.mrf.mxu1 }
 0x316   : > { %1815 = vmax.xlane.f32.xlu0 %v10029_v1  ;;  %12466 = vst [vmem:[#allocation11_spill] sm:$0xff] %v10035_v13  ;;  %v1583_v42 = vmul.f32 0.35355338, %v1472_v50  ;;  %v10041_v28 = vadd.f32 %v1649_v8, %v1585_v10 }
 0x317   : > { %v8617_v16 = vpop.f32.mrf.mxu1 }
 0x318   : > { %v1586_v23 = vmul.f32 0.35355338, %v8617_v16  ;;  %1817 = vmax.xlane.f32.xlu1 %v10035_v13  ;;  %12467 = vst [vmem:[#allocation12_spill] sm:$0xff] %v10041_v28  ;;  %v10053_v10 = vadd.f32 %v1647_v47, %v1583_v42  ;;  %v1653_v16 = vld [vmem:[%s12397_s2 + $0x1b0] sm:$0xff] }
 0x319   : > { %v1475_v37 = vpop.f32.mrf.mxu1 }
 0x31a   : > { %v1584_v53 = vmul.f32 0.35355338, %v1475_v37  ;;  %1827 = vmax.xlane.f32.xlu0 %v10041_v28  ;;  %v10047_v54 = vadd.f32 %v1650_v32, %v1586_v23  ;;  %12469 = vst [vmem:[#allocation14_spill] sm:$0xff] %v10053_v10  ;;  %v1654_v23 = vld [vmem:[%s12397_s2 + $0x1b8] sm:$0xff] }
 0x31b   : > { %v8620_v2 = vpop.f32.mrf.mxu1 }
 0x31c   : > { %12468 = vst [vmem:[#allocation13_spill] sm:$0xff] %v10047_v54  ;;  %v1589_v50 = vmul.f32 0.35355338, %v8620_v2  ;;  %1829 = vmax.xlane.f32.xlu1 %v10047_v54  ;;  %v10059_v37 = vadd.f32 %v1648_v7, %v1584_v53 }
 0x31d   : > { %v1488_v8 = vpop.f32.mrf.mxu1 }
 0x31e   : > { %1823 = vmax.xlane.f32.xlu0 %v10053_v10  ;;  %12470 = vst [vmem:[#allocation15_spill] sm:$0xff] %v10059_v37  ;;  %v1587_v41 = vmul.f32 0.35355338, %v1488_v8  ;;  %v10065_v42 = vadd.f32 %v1653_v16, %v1589_v50  ;;  %v1652_v8 = vld [vmem:[%s12397_s2 + $0x1a8] sm:$0xff] }
 0x31f   : > { %v8621_v32 = vpop.f32.mrf.mxu1 }
 0x320   : > { %v1590_v2 = vmul.f32 0.35355338, %v8621_v32  ;;  %1825 = vmax.xlane.f32.xlu1 %v10059_v37  ;;  %12471 = vst [vmem:[#allocation16_spill] sm:$0xff] %v10065_v42  ;;  %v10077_v50 = vadd.f32 %v1651_v35, %v1587_v41  ;;  %v1657_v37 = vld [vmem:[%s12397_s2 + $0x1d0] sm:$0xff] }
 0x321   : > { %v1491_v47 = vpop.f32.mrf.mxu1 }
 0x322   : > { %v1588_v54 = vmul.f32 0.35355338, %v1491_v47  ;;  %1835 = vmax.xlane.f32.xlu0 %v10065_v42  ;;  %v10071_v53 = vadd.f32 %v1654_v23, %v1590_v2  ;;  %12473 = vst [vmem:[#allocation18_spill] sm:$0xff] %v10077_v50  ;;  %v1658_v2 = vld [vmem:[%s12397_s2 + $0x1d8] sm:$0xff] }
 0x323   : > { %v8624_v7 = vpop.f32.mrf.mxu1 }
 0x324   : > { %12472 = vst [vmem:[#allocation17_spill] sm:$0xff] %v10071_v53  ;;  %v1593_v32 = vmul.f32 0.35355338, %v8624_v7  ;;  %1837 = vmax.xlane.f32.xlu1 %v10071_v53  ;;  %v10083_v47 = vadd.f32 %v1652_v8, %v1588_v54  ;;  %v1655_v53 = vld [vmem:[%s12397_s2 + $0x1c0] sm:$0xff] }
 0x325   : > { %v1504_v16 = vpop.f32.mrf.mxu1 }
 0x326   : > { %1831 = vmax.xlane.f32.xlu0 %v10077_v50  ;;  %12474 = vst [vmem:[#allocation19_spill] sm:$0xff] %v10083_v47  ;;  %v1591_v42 = vmul.f32 0.35355338, %v1504_v16  ;;  %v10089_v35 = vadd.f32 %v1657_v37, %v1593_v32  ;;  %v1656_v16 = vld [vmem:[%s12397_s2 + $0x1c8] sm:$0xff] }
 0x327   : > { %v8625_v23 = vpop.f32.mrf.mxu1 }
 0x328   : > { %v1594_v7 = vmul.f32 0.35355338, %v8625_v23  ;;  %1833 = vmax.xlane.f32.xlu1 %v10083_v47  ;;  %12475 = vst [vmem:[#allocation20_spill] sm:$0xff] %v10089_v35  ;;  %v10103_v37 = vadd.f32 %v1655_v53, %v1591_v42  ;;  %v1659_v23 = vld [vmem:[%s12397_s2 + $0x1e0] sm:$0xff]  ;;  %v1660_v42 = vld [vmem:[%s12397_s2 + $0x1e8] sm:$0xff] }
 0x329   : > { %v1507_v41 = vpop.f32.mrf.mxu1 }
 0x32a   : > { %v1592_v10 = vmul.f32 0.35355338, %v1507_v41  ;;  %1843 = vmax.xlane.f32.xlu0 %v10089_v35  ;;  %v10095_v54 = vadd.f32 %v1658_v2, %v1594_v7  ;;  %12477 = vst [vmem:[#allocation22_spill] sm:$0xff] %v10103_v37 }
 0x32b   : > { %v10097_v8 = vpop.f32.mrf.mxu1 }
 0x32c   : > { %12476 = vst [vmem:[#allocation21_spill] sm:$0xff] %v10095_v54  ;;  %1845 = vmax.xlane.f32.xlu1 %v10095_v54  ;;  %v10109_v2 = vadd.f32 %v1656_v16, %v1592_v10  ;;  %v10123_v10 = vpop.f32.mrf.mxu0 }
 0x32d   : > { %v1520_v32 = vpop.f32.mrf.mxu1 }
 0x32e   : > { %v1595_v41 = vmul.f32 0.35355338, %v1520_v32  ;;  %1839 = vmax.xlane.f32.xlu0 %v10103_v37  ;;  %12478 = vst [vmem:[#allocation23_spill] sm:$0xff] %v10109_v2  ;;  %v10125_v16 = vpop.f32.mrf.mxu0 }
 0x32f   : > { %v10111_v7 = vpop.f32.mrf.mxu1 }
 0x330   : > { %1841 = vmax.xlane.f32.xlu1 %v10109_v2  ;;  %v10114_v35 = vadd.f32 %v1659_v23, %v1595_v41  ;;  %v10127_v32 = vpop.f32.mrf.mxu0 }
 0x331   : > { %v1523_v47 = vpop.f32.mrf.mxu1 }
 0x332   : > { %12479 = vst [vmem:[#allocation24_spill] sm:$0xff] %v10114_v35  ;;  %v1596_v53 = vmul.f32 0.35355338, %v1523_v47  ;;  %1847 = vmax.xlane.f32.xlu0 %v10114_v35  ;;  %v10130_v2 = vpop.f32.mrf.mxu0 }
 0x334   : > { %v10120_v54 = vadd.f32 %v1660_v42, %v1596_v53  ;;  %v10133_v35 = vpop.f32.mrf.mxu0 }
 0x336   : > { %12480 = vst [vmem:[#allocation25_spill] sm:$0xff] %v10120_v54  ;;  %1849 = vmax.xlane.f32.xlu1 %v10120_v54  ;;  %v10136_v28 = vpop.f32.mrf.mxu0 }
 0x341   : > { %v1732_v23 = vpop.xlane.xlu1 %1731 }
 0x342   : > { %v1857_v41 = vsub.f32 %v9753_v19, %v1732_v23  ;;  %v10139_v19 = vpop.f32.mrf.mxu0 }
 0x343   : > { %v1728_v37 = vpop.xlane.xlu0 %1727 }
 0x344   : > { %v1923_v50 = vmul.f32 1.442695, %v1857_v41  ;;  %v1855_v47 = vsub.f32 %v9759_v20, %v1728_v37  ;;  %v10141_v41 = vpop.f32.mrf.mxu0 }
 0x345   : > { %v1734_v42 = vpop.xlane.xlu1 %1733 }
 0x346   : > { %8984 = vpow2.f32 %v1923_v50  ;;  %v1919_v53 = vmul.f32 1.442695, %v1855_v47  ;;  %v1858_v54 = vsub.f32 %v9765_v21, %v1734_v42  ;;  %v8544_v50 = vpop.f32.mrf.mxu0 }
 0x347   : > { %v1730_v13 = vpop.xlane.xlu0 %1729 }
 0x348   : > { %v1925_v60 = vmul.f32 1.442695, %v1858_v54  ;;  %v1856_v1 = vsub.f32 %v9768_v36, %v1730_v13  ;;  %8986 = vpow2.f32 %v1919_v53  ;;  %v1011_v24 = vpop.f32.mrf.mxu0 }
 0x34a   : > { %8988 = vpow2.f32 %v1925_v60  ;;  %v1921_v23 = vmul.f32 1.442695, %v1856_v1  ;;  %v8545_v60 = vpop.f32.mrf.mxu0 }
 0x34b   : > { %v1740_v20 = vpop.xlane.xlu0 %1739 }
 0x34c   : > { %v1861_v37 = vsub.f32 %v9777_v22, %v1740_v20  ;;  %8990 = vpow2.f32 %v1921_v23  ;;  %v1014_v22 = vpop.f32.mrf.mxu0 }
 0x34d   : > { %v1742_v47 = vpop.xlane.xlu1 %1741 }
 0x34e   : > { %v1931_v21 = vmul.f32 1.442695, %v1861_v37  ;;  %v1862_v42 = vsub.f32 %v9783_v4, %v1742_v47  ;;  %v10152_v47 = vld [vmem:[%s9434_s16 + $0x2] ss:$0 sm:$0xff] }
 0x34f   : > { %v1736_v54 = vpop.xlane.xlu0 %1735 }
 0x350   : > { %8992 = vpow2.f32 %v1931_v21  ;;  %v1933_v36 = vmul.f32 1.442695, %v1862_v42  ;;  %v1859_v13 = vsub.f32 %v9789_v33, %v1736_v54  ;;  %v8548_v21 = vpop.f32.mrf.mxu0 }
 0x351   : > { %v1738_v1 = vpop.xlane.xlu1 %1737 }
 0x352   : > { %8994 = vpow2.f32 %v1933_v36  ;;  %v1927_v53 = vmul.f32 1.442695, %v1859_v13  ;;  %v1860_v39 = vsub.f32 %v9795_v38, %v1738_v1  ;;  %v1027_v36 = vpop.f32.mrf.mxu0 }
 0x353   : > { %v10147_v20 = vpop.eup %8984  ;;  %v1748_v23 = vpop.xlane.xlu0 %1747 }
 0x354   : > { %12481 = vst [vmem:[#allocation26_spill] sm:$0xff] %v10147_v20  ;;  %8996 = vpow2.f32 %v1927_v53  ;;  %v1929_v37 = vmul.f32 1.442695, %v1860_v39  ;;  %v1865_v4 = vsub.f32 %v9801_v52, %v1748_v23  ;;  %2051 = vadd.xlane.f32.xlu0 %v10147_v20  ;;  %v1036_v39 = vadd.f32 %v8548_v21, %v10152_v47  ;;  %v8549_v23 = vpop.f32.mrf.mxu0 }
 0x355   : > { %v1750_v33 = vpop.xlane.xlu1 %1749  ;;  %v10154_v42 = vpop.eup %8986 }
 0x356   : > { %12482 = vst [vmem:[#allocation27_spill] sm:$0xff] %v10154_v42  ;;  %8998 = vpow2.f32 %v1929_v37  ;;  %v1939_v54 = vmul.f32 1.442695, %v1865_v4  ;;  %v1866_v38 = vsub.f32 %v9807_v57, %v1750_v33  ;;  %v1028_v37 = vadd.f32 %v10152_v47, %v1027_v36  ;;  %v1030_v56 = vpop.f32.mrf.mxu0 }
 0x357   : > { %v10157_v13 = vpop.eup %8988  ;;  %v1744_v1 = vpop.xlane.xlu0 %1743  ;;  %v1039_v57 = vadd.f32 %v8549_v23, %v10152_v47  ;;  %v1015_v23 = vadd.f32 %v10152_v47, %v1014_v22 }
 0x358   : > { %12483 = vst [vmem:[#allocation28_spill] sm:$0xff] %v10157_v13  ;;  %9000 = vpow2.f32 %v1939_v54  ;;  %v1941_v52 = vmul.f32 1.442695, %v1866_v38  ;;  %v1863_v53 = vsub.f32 %v9813_v63, %v1744_v1  ;;  %2047 = vadd.xlane.f32.xlu0 %v10154_v42  ;;  %2053 = vadd.xlane.f32.xlu1 %v10157_v13  ;;  %v1020_v63 = vadd.f32 %v8544_v50, %v10152_v47 }
 0x359   : > { %v1746_v20 = vpop.xlane.xlu1 %1745  ;;  %v10166_v21 = vpop.eup %8990  ;;  %v1023_v38 = vadd.f32 %v8545_v60, %v10152_v47  ;;  %v1065_v1 = vpack.c.bf16 %v1039_v57, %v1036_v39  ;;  %v1031_v42 = vadd.f32 %v10152_v47, %v1030_v56  ;;  %v1012_v39 = vadd.f32 %v10152_v47, %v1011_v24 }
 0x35a   : > { %9002 = vpow2.f32 %v1941_v52  ;;  %v1935_v4 = vmul.f32 1.442695, %v1863_v53  ;;  %v1864_v33 = vsub.f32 %v9819_v5, %v1746_v20 }
 0x35b   : > { %v1756_v54 = vpop.xlane.xlu0 %1755  ;;  %v1064_v20 = vpack.c.bf16 %v1031_v42, %v1028_v37  ;;  %8630 = vmatprep.subr.bf16.mxu0 %v1065_v1 }
 0x35c   : > { %9004 = vpow2.f32 %v1935_v4  ;;  %v1937_v13 = vmul.f32 1.442695, %v1864_v33  ;;  %v1869_v36 = vsub.f32 %v9825_v12, %v1756_v54  ;;  %2049 = vadd.xlane.f32.xlu1 %v10166_v21  ;;  %8631 = vmatpush3.bf16.msra.mxu0 %v1065_v1  ;;  %v1063_v12 = vpack.c.bf16 %v1023_v38, %v1020_v63 }
 0x35d   : > { %v10173_v52 = vpop.eup %8992  ;;  %v1758_v5 = vpop.xlane.xlu1 %1757  ;;  %8632 = vmatprep.subr.bf16.mxu0 %v1064_v20  ;;  %v1004_v33 = vadd.f32 %v10133_v35, %v10152_v47  ;;  %v1062_v54 = vpack.c.bf16 %v1015_v23, %v1012_v39 }
 0x35e   : > { %9006 = vpow2.f32 %v1937_v13  ;;  %v1947_v53 = vmul.f32 1.442695, %v1869_v36  ;;  %v1870_v50 = vsub.f32 %v9831_v27, %v1758_v5  ;;  %2059 = vadd.xlane.f32.xlu0 %v10173_v52 }
 0x35f   : > { %v10177_v60 = vpop.eup %8994  ;;  %v1752_v56 = vpop.xlane.xlu0 %1751 }
 0x360   : > { %9008 = vpow2.f32 %v1947_v53  ;;  %v1949_v57 = vmul.f32 1.442695, %v1870_v50  ;;  %v1867_v42 = vsub.f32 %v9837_v26, %v1752_v56  ;;  %2061 = vadd.xlane.f32.xlu1 %v10177_v60  ;;  %8633 = vmatpush3.bf16.msra.mxu0 %v1064_v20  ;;  %v1007_v26 = vadd.f32 %v10139_v19, %v10152_v47 }
 0x361   : > { %v10183_v13 = vpop.eup %8996  ;;  %v1754_v27 = vpop.xlane.xlu1 %1753  ;;  %8634 = vmatprep.subr.bf16.mxu0 %v1063_v12  ;;  %v996_v20 = vadd.f32 %v10152_v47, %v10136_v28 }
 0x362   : > { %9010 = vpow2.f32 %v1949_v57  ;;  %v1943_v37 = vmul.f32 1.442695, %v1867_v42  ;;  %v1868_v4 = vsub.f32 %v9843_v30, %v1754_v27  ;;  %2055 = vadd.xlane.f32.xlu0 %v10183_v13  ;;  %v1061_v53 = vpack.c.bf16 %v1007_v26, %v1004_v33 }
 0x363   : > { %v10187_v24 = vpop.eup %8998  ;;  %v1764_v22 = vpop.xlane.xlu0 %1763  ;;  %v988_v57 = vadd.f32 %v10123_v10, %v10152_v47  ;;  %v980_v26 = vadd.f32 %v10152_v47, %v10125_v16 }
 0x364   : > { %9012 = vpow2.f32 %v1943_v37  ;;  %v1945_v63 = vmul.f32 1.442695, %v1868_v4  ;;  %v1873_v38 = vsub.f32 %v9849_v17, %v1764_v22  ;;  %2057 = vadd.xlane.f32.xlu1 %v10187_v24  ;;  %8635 = vmatpush3.bf16.msra.mxu0 %v1063_v12  ;;  %v999_v17 = vadd.f32 %v10152_v47, %v10141_v41 }
 0x365   : > { %v10195_v30 = vpop.eup %9000  ;;  %v1766_v1 = vpop.xlane.xlu1 %1765  ;;  %8636 = vmatprep.subr.bf16.mxu0 %v1062_v54 }
 0x366   : > { %9014 = vpow2.f32 %v1945_v63  ;;  %v1955_v36 = vmul.f32 1.442695, %v1873_v38  ;;  %v1874_v5 = vsub.f32 %v9855_v44, %v1766_v1  ;;  %2067 = vadd.xlane.f32.xlu0 %v10195_v30  ;;  %v1060_v42 = vpack.c.bf16 %v999_v17, %v996_v20 }
 0x367   : > { %v10199_v35 = vpop.eup %9002  ;;  %v1760_v19 = vpop.xlane.xlu0 %1759 }
 0x368   : > { %9016 = vpow2.f32 %v1955_v36  ;;  %v1957_v50 = vmul.f32 1.442695, %v1874_v5  ;;  %v1871_v56 = vsub.f32 %v9861_v46, %v1760_v19  ;;  %2069 = vadd.xlane.f32.xlu1 %v10199_v35  ;;  %8637 = vmatpush3.bf16.msra.mxu0 %v1062_v54  ;;  %v991_v46 = vadd.f32 %v10127_v32, %v10152_v47 }
 0x369   : > { %v10207_v44 = vpop.eup %9004  ;;  %v1762_v39 = vpop.xlane.xlu1 %1761  ;;  %8638 = vmatprep.subr.bf16.mxu0 %v1061_v53 }
 0x36a   : > { %9018 = vpow2.f32 %v1957_v50  ;;  %v1951_v12 = vmul.f32 1.442695, %v1871_v56  ;;  %v1872_v23 = vsub.f32 %v9867_v0, %v1762_v39  ;;  %2063 = vadd.xlane.f32.xlu0 %v10207_v44  ;;  %v1059_v54 = vpack.c.bf16 %v991_v46, %v988_v57 }
 0x36b   : > { %v10211_v28 = vpop.eup %9006  ;;  %v1772_v41 = vpop.xlane.xlu0 %1771 }
 0x36c   : > { %9020 = vpow2.f32 %v1951_v12  ;;  %v1953_v27 = vmul.f32 1.442695, %v1872_v23  ;;  %v1877_v37 = vsub.f32 %v9873_v49, %v1772_v41  ;;  %2065 = vadd.xlane.f32.xlu1 %v10211_v28  ;;  %8639 = vmatpush3.bf16.msra.mxu0 %v1061_v53  ;;  %v983_v49 = vadd.f32 %v10152_v47, %v10130_v2 }
 0x36d   : > { %v10219_v0 = vpop.eup %9008  ;;  %v1774_v4 = vpop.xlane.xlu1 %1773  ;;  %8640 = vmatprep.subr.bf16.mxu0 %v1060_v42 }
 0x36e   : > { %9022 = vpow2.f32 %v1953_v27  ;;  %v1963_v22 = vmul.f32 1.442695, %v1877_v37  ;;  %v1878_v33 = vsub.f32 %v9879_v48, %v1774_v4  ;;  %2075 = vadd.xlane.f32.xlu0 %v10219_v0  ;;  %v1058_v47 = vpack.c.bf16 %v983_v49, %v980_v26 }
 0x36f   : > { %v10223_v10 = vpop.eup %9010  ;;  %v1768_v32 = vpop.xlane.xlu0 %1767 }
 0x370   : > { %9024 = vpow2.f32 %v1963_v22  ;;  %v1965_v63 = vmul.f32 1.442695, %v1878_v33  ;;  %v1875_v38 = vsub.f32 %v9885_v55, %v1768_v32  ;;  %2077 = vadd.xlane.f32.xlu1 %v10223_v10  ;;  %8641 = vmatpush3.bf16.msra.mxu0 %v1060_v42 }
 0x371   : > { %v10231_v48 = vpop.eup %9012  ;;  %v1770_v1 = vpop.xlane.xlu1 %1769  ;;  %8642 = vmatprep.subr.bf16.mxu0 %v1059_v54 }
 0x372   : > { %9026 = vpow2.f32 %v1965_v63  ;;  %v1959_v36 = vmul.f32 1.442695, %v1875_v38  ;;  %v1876_v5 = vsub.f32 %v9891_v61, %v1770_v1  ;;  %2071 = vadd.xlane.f32.xlu0 %v10231_v48 }
 0x373   : > { %v10235_v16 = vpop.eup %9014  ;;  %v1780_v2 = vpop.xlane.xlu0 %1779 }
 0x374   : > { %9028 = vpow2.f32 %v1959_v36  ;;  %v1961_v19 = vmul.f32 1.442695, %v1876_v5  ;;  %v1881_v55 = vsub.f32 %v9897_v9, %v1780_v2  ;;  %2073 = vadd.xlane.f32.xlu1 %v10235_v16  ;;  %8643 = vmatpush3.bf16.msra.mxu0 %v1059_v54  ;;  %v1597_v2 = vmul.f32 0.35355338, %v10097_v8 }
 0x375   : > { %v10239_v20 = vpop.eup %9016  ;;  %v1782_v53 = vpop.xlane.xlu1 %1781  ;;  %8644 = vmatprep.subr.bf16.mxu0 %v1058_v47 }
 0x376   : > { %9030 = vpow2.f32 %v1961_v19  ;;  %v1971_v17 = vmul.f32 1.442695, %v1881_v55  ;;  %v1882_v61 = vsub.f32 %v9903_v58, %v1782_v53  ;;  %2083 = vadd.xlane.f32.xlu0 %v10239_v20  ;;  %v1598_v53 = vmul.f32 0.35355338, %v10111_v7  ;;  %v1662_v7 = vld [vmem:[%s12397_s2 + $0x1f8] sm:$0xff] }
 0x377   : > { %v10243_v50 = vpop.eup %9018  ;;  %v1776_v56 = vpop.xlane.xlu0 %1775 }
 0x378   : > { %9032 = vpow2.f32 %v1971_v17  ;;  %v1973_v39 = vmul.f32 1.442695, %v1882_v61  ;;  %v1879_v9 = vsub.f32 %v9909_v11, %v1776_v56  ;;  %2085 = vadd.xlane.f32.xlu1 %v10243_v50  ;;  %8645 = vmatpush3.bf16.msra.mxu0 %v1058_v47  ;;  %v1661_v61 = vld [vmem:[%s12397_s2 + $0x1f0] sm:$0xff] }
 0x379   : > { %v10247_v12 = vpop.eup %9020  ;;  %v1778_v23 = vpop.xlane.xlu1 %1777 }
 0x37a   : > { %9034 = vpow2.f32 %v1973_v39  ;;  %v1967_v41 = vmul.f32 1.442695, %v1879_v9  ;;  %v1880_v58 = vsub.f32 %v9915_v15, %v1778_v23  ;;  %2079 = vadd.xlane.f32.xlu0 %v10247_v12 }
 0x37b   : > { %v10251_v57 = vpop.eup %9022  ;;  %v1788_v46 = vpop.xlane.xlu0 %1787 }
 0x37c   : > { %9036 = vpow2.f32 %v1967_v41  ;;  %v1969_v42 = vmul.f32 1.442695, %v1880_v58  ;;  %2081 = vadd.xlane.f32.xlu1 %v10251_v57  ;;  %v1885_v15 = vsub.f32 %v9921_v34, %v1788_v46  ;;  %v10294_v41 = vadd.f32 %v1661_v61, %v1597_v2 }
 0x37d   : > { %v10254_v11 = vpop.eup %9024  ;;  %v1790_v27 = vpop.xlane.xlu1 %1789 }
 0x37e   : > { %9038 = vpow2.f32 %v1969_v42  ;;  %2091 = vadd.xlane.f32.xlu0 %v10254_v11  ;;  %v1886_v26 = vsub.f32 %v9927_v40, %v1790_v27  ;;  %v1979_v1 = vmul.f32 1.442695, %v1885_v15 }
 0x37f   : > { %v10257_v37 = vpop.eup %9026  ;;  %v1784_v4 = vpop.xlane.xlu0 %1783 }
 0x380   : > { %v1883_v22 = vsub.f32 %v9933_v62, %v1784_v4  ;;  %2093 = vadd.xlane.f32.xlu1 %v10257_v37  ;;  %v1981_v5 = vmul.f32 1.442695, %v1886_v26 }
 0x381   : > { %v10262_v33 = vpop.eup %9028  ;;  %v1786_v32 = vpop.xlane.xlu1 %1785 }
 0x382   : > { %v1975_v54 = vmul.f32 1.442695, %v1883_v22  ;;  %v1884_v49 = vsub.f32 %v9939_v43, %v1786_v32  ;;  %2087 = vadd.xlane.f32.xlu0 %v10262_v33 }
 0x383   : > { %v10267_v63 = vpop.eup %9030  ;;  %v1796_v38 = vpop.xlane.xlu0 %1795 }
 0x384   : > { %9040 = vpow2.f32 %v1975_v54  ;;  %v1977_v34 = vmul.f32 1.442695, %v1884_v49  ;;  %2089 = vadd.xlane.f32.xlu1 %v10267_v63  ;;  %v1889_v47 = vsub.f32 %v9945_v59, %v1796_v38 }
 0x385   : > { %v10270_v62 = vpop.eup %9032  ;;  %v1798_v36 = vpop.xlane.xlu1 %1797 }
 0x386   : > { %9042 = vpow2.f32 %v1977_v34  ;;  %2099 = vadd.xlane.f32.xlu0 %v10270_v62  ;;  %v1890_v56 = vsub.f32 %v9951_v6, %v1798_v36  ;;  %v1987_v9 = vmul.f32 1.442695, %v1889_v47  ;;  %v12484_v47 = vld [vmem:[#allocation6_spill] sm:$0xff] }
 0x387   : > { %v10273_v40 = vpop.eup %9034  ;;  %v1792_v43 = vpop.xlane.xlu0 %1791  ;;  %9044 = vpow2.f32 %v1979_v1 }
 0x388   : > { %v1887_v19 = vsub.f32 %v9957_v14, %v1792_v43  ;;  %2101 = vadd.xlane.f32.xlu1 %v10273_v40  ;;  %9046 = vpow2.f32 %v1981_v5  ;;  %v1989_v58 = vmul.f32 1.442695, %v1890_v56 }
 0x389   : > { %v10279_v55 = vpop.eup %9036  ;;  %v1794_v17 = vpop.xlane.xlu1 %1793 }
 0x38a   : > { %v1983_v8 = vmul.f32 1.442695, %v1887_v19  ;;  %v1888_v39 = vsub.f32 %v9963_v25, %v1794_v17  ;;  %2095 = vadd.xlane.f32.xlu0 %v10279_v55  ;;  %v10297_v25 = vadd.f32 %v1662_v7, %v1598_v53  ;;  %v12485_v17 = vld [vmem:[#allocation7_spill] sm:$0xff] }
 0x38b   : > { %v10288_v59 = vpop.eup %9038  ;;  %v1804_v14 = vpop.xlane.xlu0 %1803 }
 0x38c   : > { %9048 = vpow2.f32 %v1983_v8  ;;  %v1985_v23 = vmul.f32 1.442695, %v1888_v39  ;;  %2097 = vadd.xlane.f32.xlu1 %v10288_v59  ;;  %v1893_v42 = vsub.f32 %v9969_v18, %v1804_v14 }
 0x38d   : > { %v1806_v6 = vpop.xlane.xlu1 %1805 }
 0x38e   : > { %9050 = vpow2.f32 %v1985_v23  ;;  %1851 = vmax.xlane.f32.xlu0 %v10294_v41  ;;  %v1894_v22 = vsub.f32 %v9975_v45, %v1806_v6  ;;  %v1995_v38 = vmul.f32 1.442695, %v1893_v42  ;;  %v12486_v6 = vld [vmem:[#allocation8_spill] sm:$0xff] }
 0x38f   : > { %v1800_v46 = vpop.xlane.xlu0 %1799  ;;  %9052 = vpow2.f32 %v1987_v9 }
 0x390   : > { %v1891_v27 = vsub.f32 %v9981_v31, %v1800_v46  ;;  %1853 = vmax.xlane.f32.xlu1 %v10297_v25  ;;  %9054 = vpow2.f32 %v1989_v58  ;;  %v1997_v34 = vmul.f32 1.442695, %v1894_v22  ;;  %v12487_v46 = vld [vmem:[#allocation10_spill] sm:$0xff]  ;;  %v12488_v22 = vld [vmem:[#allocation9_spill] sm:$0xff] }
 0x391   : > { %v10302_v4 = vpop.eup %9040  ;;  %v1802_v15 = vpop.xlane.xlu1 %1801 }
 0x392   : > { %v1991_v32 = vmul.f32 1.442695, %v1891_v27  ;;  %v1892_v26 = vsub.f32 %v9987_v51, %v1802_v15  ;;  %2103 = vadd.xlane.f32.xlu0 %v10302_v4 }
 0x393   : > { %v10307_v54 = vpop.eup %9042  ;;  %v1812_v49 = vpop.xlane.xlu0 %1811 }
 0x394   : > { %9056 = vpow2.f32 %v1991_v32  ;;  %v1993_v18 = vmul.f32 1.442695, %v1892_v26  ;;  %2105 = vadd.xlane.f32.xlu1 %v10307_v54  ;;  %v10310_v31 = vpop.eup %9044  ;;  %v1897_v36 = vsub.f32 %v9993_v3, %v1812_v49  ;;  %v12489_v49 = vld [vmem:[#allocation11_spill] sm:$0xff] }
 0x395   : > { %v1814_v1 = vpop.xlane.xlu1 %1813  ;;  %v10313_v45 = vpop.eup %9046 }
 0x396   : > { %9058 = vpow2.f32 %v1993_v18  ;;  %2107 = vadd.xlane.f32.xlu0 %v10310_v31  ;;  %v1898_v19 = vsub.f32 %v12484_v47, %v1814_v1  ;;  %v2003_v39 = vmul.f32 1.442695, %v1897_v36 }
 0x397   : > { %v1808_v51 = vpop.xlane.xlu0 %1807  ;;  %9060 = vpow2.f32 %v1995_v38 }
 0x398   : > { %v1895_v5 = vsub.f32 %v10005_v29, %v1808_v51  ;;  %2109 = vadd.xlane.f32.xlu1 %v10313_v45  ;;  %9062 = vpow2.f32 %v1997_v34  ;;  %v2005_v7 = vmul.f32 1.442695, %v1898_v19 }
 0x399   : > { %v10318_v43 = vpop.eup %9048  ;;  %v1810_v2 = vpop.xlane.xlu1 %1809 }
 0x39a   : > { %v1999_v53 = vmul.f32 1.442695, %v1895_v5  ;;  %v1896_v61 = vsub.f32 %v12485_v17, %v1810_v2  ;;  %2111 = vadd.xlane.f32.xlu0 %v10318_v43 }
 0x39b   : > { %v10323_v56 = vpop.eup %9050  ;;  %v1820_v8 = vpop.xlane.xlu0 %1819 }
 0x39c   : > { %9064 = vpow2.f32 %v1999_v53  ;;  %v2001_v3 = vmul.f32 1.442695, %v1896_v61  ;;  %2113 = vadd.xlane.f32.xlu1 %v10323_v56  ;;  %v10326_v29 = vpop.eup %9052  ;;  %v1901_v58 = vsub.f32 %v12486_v6, %v1820_v8  ;;  %v12490_v53 = vld [vmem:[#allocation12_spill] sm:$0xff]  ;;  %v12491_v61 = vld [vmem:[#allocation14_spill] sm:$0xff]  ;;  %v12493_v6 = vld [vmem:[#allocation15_spill] sm:$0xff] }
 0x39d   : > { %v1822_v14 = vpop.xlane.xlu1 %1821  ;;  %v10329_v9 = vpop.eup %9054 }
 0x39e   : > { %9066 = vpow2.f32 %v2001_v3  ;;  %2115 = vadd.xlane.f32.xlu0 %v10326_v29  ;;  %v1902_v32 = vsub.f32 %v12488_v22, %v1822_v14  ;;  %v2011_v34 = vmul.f32 1.442695, %v1901_v58  ;;  %v12492_v14 = vld [vmem:[#allocation13_spill] sm:$0xff] }
 0x39f   : > { %v1816_v23 = vpop.xlane.xlu0 %1815  ;;  %9068 = vpow2.f32 %v2003_v39 }
 0x3a0   : > { %v1899_v42 = vsub.f32 %v12487_v46, %v1816_v23  ;;  %2117 = vadd.xlane.f32.xlu1 %v10329_v9  ;;  %9070 = vpow2.f32 %v2005_v7  ;;  %v2013_v2 = vmul.f32 1.442695, %v1902_v32 }
 0x3a1   : > { %v10334_v27 = vpop.eup %9056  ;;  %v1818_v15 = vpop.xlane.xlu1 %1817 }
 0x3a2   : > { %v2007_v26 = vmul.f32 1.442695, %v1899_v42  ;;  %v1900_v38 = vsub.f32 %v12489_v49, %v1818_v15  ;;  %2119 = vadd.xlane.f32.xlu0 %v10334_v27 }
 0x3a3   : > { %v10339_v18 = vpop.eup %9058  ;;  %v1828_v1 = vpop.xlane.xlu0 %1827 }
 0x3a4   : > { %9072 = vpow2.f32 %v2007_v26  ;;  %v2009_v51 = vmul.f32 1.442695, %v1900_v38  ;;  %2121 = vadd.xlane.f32.xlu1 %v10339_v18  ;;  %v10342_v36 = vpop.eup %9060  ;;  %v1905_v17 = vsub.f32 %v12490_v53, %v1828_v1 }
 0x3a5   : > { %v1830_v5 = vpop.xlane.xlu1 %1829  ;;  %v10345_v47 = vpop.eup %9062 }
 0x3a6   : > { %9074 = vpow2.f32 %v2009_v51  ;;  %2123 = vadd.xlane.f32.xlu0 %v10342_v36  ;;  %v1906_v7 = vsub.f32 %v12492_v14, %v1830_v5  ;;  %v2019_v15 = vmul.f32 1.442695, %v1905_v17  ;;  %v12495_v5 = vld [vmem:[#allocation18_spill] sm:$0xff]  ;;  %v12497_v17 = vld [vmem:[#allocation17_spill] sm:$0xff] }
 0x3a7   : > { %v1824_v19 = vpop.xlane.xlu0 %1823  ;;  %9076 = vpow2.f32 %v2011_v34  ;;  %v12494_v34 = vld [vmem:[#allocation16_spill] sm:$0xff] }
 0x3a8   : > { %v1903_v8 = vsub.f32 %v12491_v61, %v1824_v19  ;;  %2125 = vadd.xlane.f32.xlu1 %v10345_v47  ;;  %9078 = vpow2.f32 %v2013_v2  ;;  %v2021_v49 = vmul.f32 1.442695, %v1906_v7 }
 0x3a9   : > { %v10350_v39 = vpop.eup %9064  ;;  %v1826_v3 = vpop.xlane.xlu1 %1825 }
 0x3aa   : > { %v2015_v23 = vmul.f32 1.442695, %v1903_v8  ;;  %v1904_v58 = vsub.f32 %v12493_v6, %v1826_v3  ;;  %2127 = vadd.xlane.f32.xlu0 %v10350_v39  ;;  %v12498_v3 = vld [vmem:[#allocation19_spill] sm:$0xff] }
 0x3ab   : > { %v10355_v46 = vpop.eup %9066  ;;  %v1836_v42 = vpop.xlane.xlu0 %1835 }
 0x3ac   : > { %9080 = vpow2.f32 %v2015_v23  ;;  %v2017_v22 = vmul.f32 1.442695, %v1904_v58  ;;  %2129 = vadd.xlane.f32.xlu1 %v10355_v46  ;;  %v10358_v32 = vpop.eup %9068  ;;  %v1909_v51 = vsub.f32 %v12494_v34, %v1836_v42 }
 0x3ad   : > { %v1838_v26 = vpop.xlane.xlu1 %1837  ;;  %v10361_v38 = vpop.eup %9070 }
 0x3ae   : > { %9082 = vpow2.f32 %v2017_v22  ;;  %2131 = vadd.xlane.f32.xlu0 %v10358_v32  ;;  %v1910_v61 = vsub.f32 %v12497_v17, %v1838_v26  ;;  %v2027_v6 = vmul.f32 1.442695, %v1909_v51  ;;  %v12505_v17 = vld [vmem:[#allocation21_spill] sm:$0xff] }
 0x3af   : > { %v1832_v1 = vpop.xlane.xlu0 %1831  ;;  %9084 = vpow2.f32 %v2019_v15 }
 0x3b0   : > { %v1907_v2 = vsub.f32 %v12495_v5, %v1832_v1  ;;  %2133 = vadd.xlane.f32.xlu1 %v10361_v38  ;;  %9086 = vpow2.f32 %v2021_v49  ;;  %v2029_v22 = vmul.f32 1.442695, %v1910_v61  ;;  %v12502_v1 = vld [vmem:[#allocation20_spill] sm:$0xff]  ;;  %v12503_v5 = vld [vmem:[#allocation22_spill] sm:$0xff] }
 0x3b1   : > { %v10366_v19 = vpop.eup %9072  ;;  %v1834_v53 = vpop.xlane.xlu1 %1833 }
 0x3b2   : > { %12496 = vst [vmem:[#allocation6_spill] sm:$0xff] %v10366_v19  ;;  %v2023_v8 = vmul.f32 1.442695, %v1907_v2  ;;  %v1908_v14 = vsub.f32 %v12498_v3, %v1834_v53  ;;  %2135 = vadd.xlane.f32.xlu0 %v10366_v19  ;;  %v12506_v3 = vld [vmem:[#allocation23_spill] sm:$0xff] }
 0x3b3   : > { %v10371_v7 = vpop.eup %9074  ;;  %v1844_v23 = vpop.xlane.xlu0 %1843 }
 0x3b4   : > { %12499 = vst [vmem:[#allocation7_spill] sm:$0xff] %v10371_v7  ;;  %9088 = vpow2.f32 %v2023_v8  ;;  %v2025_v58 = vmul.f32 1.442695, %v1908_v14  ;;  %2137 = vadd.xlane.f32.xlu1 %v10371_v7  ;;  %v10374_v42 = vpop.eup %9076  ;;  %v1913_v34 = vsub.f32 %v12502_v1, %v1844_v23 }
 0x3b5   : > { %12500 = vst [vmem:[#allocation8_spill] sm:$0xff] %v10374_v42  ;;  %v1846_v15 = vpop.xlane.xlu1 %1845  ;;  %v10377_v26 = vpop.eup %9078 }
 0x3b6   : > { %9090 = vpow2.f32 %v2025_v58  ;;  %2139 = vadd.xlane.f32.xlu0 %v10374_v42  ;;  %12501 = vst [vmem:[#allocation10_spill] sm:$0xff] %v10377_v26  ;;  %v1914_v8 = vsub.f32 %v12505_v17, %v1846_v15  ;;  %v2035_v42 = vmul.f32 1.442695, %v1913_v34  ;;  %v12511_v17 = vld [vmem:[#allocation25_spill] sm:$0xff] }
 0x3b7   : > { %v1840_v49 = vpop.xlane.xlu0 %1839  ;;  %9092 = vpow2.f32 %v2027_v6 }
 0x3b8   : > { %v1911_v2 = vsub.f32 %v12503_v5, %v1840_v49  ;;  %2141 = vadd.xlane.f32.xlu1 %v10377_v26  ;;  %9094 = vpow2.f32 %v2029_v22  ;;  %v12508_v49 = vld [vmem:[#allocation24_spill] sm:$0xff]  ;;  %v2037_v22 = vmul.f32 1.442695, %v1914_v8 }
 0x3b9   : > { %v10382_v51 = vpop.eup %9080  ;;  %v1842_v53 = vpop.xlane.xlu1 %1841 }
 0x3ba   : > { %12504 = vst [vmem:[#allocation9_spill] sm:$0xff] %v10382_v51  ;;  %v2031_v61 = vmul.f32 1.442695, %v1911_v2  ;;  %v1912_v14 = vsub.f32 %v12506_v3, %v1842_v53  ;;  %2143 = vadd.xlane.f32.xlu0 %v10382_v51 }
 0x3bb   : > { %v10387_v58 = vpop.eup %9082  ;;  %v1848_v6 = vpop.xlane.xlu0 %1847 }
 0x3bc   : > { %12507 = vst [vmem:[#allocation11_spill] sm:$0xff] %v10387_v58  ;;  %9096 = vpow2.f32 %v2031_v61  ;;  %v2033_v23 = vmul.f32 1.442695, %v1912_v14  ;;  %v1915_v1 = vsub.f32 %v12508_v49, %v1848_v6  ;;  %2145 = vadd.xlane.f32.xlu1 %v10387_v58  ;;  %v10391_v5 = vpop.eup %9084 }
 0x3bd   : > { %12509 = vst [vmem:[#allocation12_spill] sm:$0xff] %v10391_v5  ;;  %v10394_v15 = vpop.eup %9086 }
 0x3be   : > { %9098 = vpow2.f32 %v2033_v23  ;;  %2147 = vadd.xlane.f32.xlu0 %v10391_v5  ;;  %12510 = vst [vmem:[#allocation14_spill] sm:$0xff] %v10394_v15  ;;  %v2039_v53 = vmul.f32 1.442695, %v1915_v1 }
 0x3bf   : > { %v1850_v2 = vpop.xlane.xlu1 %1849  ;;  %9100 = vpow2.f32 %v2035_v42 }
 0x3c0   : > { %v1916_v3 = vsub.f32 %v12511_v17, %v1850_v2  ;;  %2149 = vadd.xlane.f32.xlu1 %v10394_v15  ;;  %9102 = vpow2.f32 %v2037_v22 }
 0x3c1   : > { %v10398_v34 = vpop.eup %9088  ;;  %9104 = vpow2.f32 %v2039_v53 }
 0x3c2   : > { %12512 = vst [vmem:[#allocation13_spill] sm:$0xff] %v10398_v34  ;;  %v2041_v61 = vmul.f32 1.442695, %v1916_v3  ;;  %2151 = vadd.xlane.f32.xlu0 %v10398_v34 }
 0x3c3   : > { %v10401_v14 = vpop.eup %9090 }
 0x3c4   : > { %12513 = vst [vmem:[#allocation15_spill] sm:$0xff] %v10401_v14  ;;  %2153 = vadd.xlane.f32.xlu1 %v10401_v14  ;;  %v10404_v8 = vpop.eup %9092  ;;  %9106 = vpow2.f32 %v2041_v61 }
 0x3c5   : > { %12514 = vst [vmem:[#allocation16_spill] sm:$0xff] %v10404_v8  ;;  %v10407_v42 = vpop.eup %9094 }
 0x3c6   : > { %2155 = vadd.xlane.f32.xlu0 %v10404_v8  ;;  %12515 = vst [vmem:[#allocation18_spill] sm:$0xff] %v10407_v42 }
 0x3c8   : > { %2157 = vadd.xlane.f32.xlu1 %v10407_v42 }
 0x3c9   : > { %v10410_v6 = vpop.eup %9096 }
 0x3ca   : > { %12516 = vst [vmem:[#allocation17_spill] sm:$0xff] %v10410_v6  ;;  %2159 = vadd.xlane.f32.xlu0 %v10410_v6 }
 0x3cb   : > { %v10413_v23 = vpop.eup %9098 }
 0x3cc   : > { %12517 = vst [vmem:[#allocation19_spill] sm:$0xff] %v10413_v23  ;;  %2161 = vadd.xlane.f32.xlu1 %v10413_v23  ;;  %v10416_v49 = vpop.eup %9100 }
 0x3cd   : > { %12518 = vst [vmem:[#allocation20_spill] sm:$0xff] %v10416_v49  ;;  %v10419_v1 = vpop.eup %9102 }
 0x3ce   : > { %2163 = vadd.xlane.f32.xlu0 %v10416_v49  ;;  %12519 = vst [vmem:[#allocation22_spill] sm:$0xff] %v10419_v1  ;;  %v10422_v22 = vpop.eup %9104 }
 0x3cf   : > { %12520 = vst [vmem:[#allocation21_spill] sm:$0xff] %v10422_v22 }
 0x3d0   : > { %2165 = vadd.xlane.f32.xlu1 %v10419_v1 }
 0x3d1   : > { %v10425_v2 = vpop.eup %9106 }
 0x3d2   : > { %2167 = vadd.xlane.f32.xlu0 %v10422_v22  ;;  %12521 = vst [vmem:[#allocation23_spill] sm:$0xff] %v10425_v2 }
 0x3d4   : > { %2169 = vadd.xlane.f32.xlu1 %v10425_v2 }
 0x3dd   : > { %v2052_v53 = vpop.xlane.xlu0 %2051 }
 0x3e1   : > { %v2048_v17 = vpop.xlane.xlu0 %2047  ;;  %v2054_v3 = vpop.xlane.xlu1 %2053 }
 0x3e2   : > { %9108 = vrcp.f32 %v2054_v3 }
 0x3e3   : > { %9110 = vrcp.f32 %v2048_v17  ;;  %v12522_v17 = vld [vmem:[#allocation28_spill] sm:$0xff] }
 0x3e4   : > { %9112 = vrcp.f32 %v2052_v53 }
 0x3e5   : > { %v2050_v61 = vpop.xlane.xlu1 %2049 }
 0x3e6   : > { %9114 = vrcp.f32 %v2050_v61  ;;  %v12523_v61 = vld [vmem:[#allocation27_spill] sm:$0xff] }
 0x3e7   : > { %v2060_v49 = vpop.xlane.xlu0 %2059 }
 0x3e9   : > { %v2062_v23 = vpop.xlane.xlu1 %2061 }
 0x3ea   : > { %9116 = vrcp.f32 %v2062_v23 }
 0x3eb   : > { %v2056_v1 = vpop.xlane.xlu0 %2055 }
 0x3ec   : > { %9118 = vrcp.f32 %v2056_v1 }
 0x3ed   : > { %9120 = vrcp.f32 %v2060_v49  ;;  %v2058_v6 = vpop.xlane.xlu1 %2057  ;;  %v12524_v49 = vld [vmem:[#allocation26_spill] sm:$0xff] }
 0x3ee   : > { %9122 = vrcp.f32 %v2058_v6 }
 0x3ef   : > { %v2068_v22 = vpop.xlane.xlu0 %2067  ;;  %v9109_v42 = vpop.eup %9108 }
 0x3f0   : > { %v9111_v8 = vpop.eup %9110  ;;  %v2242_v53 = vmul.f32 %v9109_v42, %v12522_v17 }
 0x3f1   : > { %v2070_v2 = vpop.xlane.xlu1 %2069  ;;  %v9113_v14 = vpop.eup %9112  ;;  %v2239_v15 = vmul.f32 %v9111_v8, %v12523_v61 }
 0x3f2   : > { %9124 = vrcp.f32 %v2070_v2  ;;  %v2241_v5 = vmul.f32 %v9113_v14, %v12524_v49 }
 0x3f3   : > { %v9115_v34 = vpop.eup %9114  ;;  %v2064_v3 = vpop.xlane.xlu0 %2063 }
 0x3f4   : > { %9126 = vrcp.f32 %v2064_v3  ;;  %v2240_v23 = vmul.f32 %v9115_v34, %v10166_v21  ;;  %v2304_v51 = vpack.c.bf16 %v2242_v53, %v2241_v5 }
 0x3f5   : > { %9128 = vrcp.f32 %v2068_v22  ;;  %v2066_v1 = vpop.xlane.xlu1 %2065 }
 0x3f6   : > { %9130 = vrcp.f32 %v2066_v1  ;;  %v2303_v6 = vpack.c.bf16 %v2240_v23, %v2239_v15 }
 0x3f7   : > { %v2076_v58 = vpop.xlane.xlu0 %2075  ;;  %v9117_v26 = vpop.eup %9116 }
 0x3f8   : > { %8646 = vmatprep.mubr.bf16.mxu0 %v2303_v6  ;;  %v2246_v8 = vmul.f32 %v9117_v26, %v10177_v60 }
 0x3f9   : > { %v9119_v7 = vpop.eup %9118  ;;  %8647 = vmatmul.mubr.bf16.vlgmr.msra.gmra.mxu0 %v2304_v51  ;;  %v2078_v2 = vpop.xlane.xlu1 %2077 }
 0x3fa   : > { %v9121_v19 = vpop.eup %9120  ;;  %9132 = vrcp.f32 %v2078_v2  ;;  %v2243_v21 = vmul.f32 %v9119_v7, %v10183_v13 }
 0x3fb   : > { %v9123_v42 = vpop.eup %9122  ;;  %v2072_v3 = vpop.xlane.xlu0 %2071  ;;  %v2245_v5 = vmul.f32 %v9121_v19, %v10173_v52 }
 0x3fc   : > { %9134 = vrcp.f32 %v2072_v3  ;;  %v2244_v34 = vmul.f32 %v9123_v42, %v10187_v24 }
 0x3fd   : > { %9136 = vrcp.f32 %v2076_v58  ;;  %v2074_v15 = vpop.xlane.xlu1 %2073  ;;  %v2306_v51 = vpack.c.bf16 %v2246_v8, %v2245_v5 }
 0x3fe   : > { %9138 = vrcp.f32 %v2074_v15  ;;  %v2305_v14 = vpack.c.bf16 %v2244_v34, %v2243_v21 }
 0x3ff   : > { %v2084_v22 = vpop.xlane.xlu0 %2083  ;;  %v9125_v17 = vpop.eup %9124 }
 0x400   : > { %8650 = vmatprep.mubr.bf16.mxu0 %v2305_v14  ;;  %v2250_v13 = vmul.f32 %v9125_v17, %v10199_v35 }
 0x401   : > { %v9127_v53 = vpop.eup %9126  ;;  %8651 = vmatmul.mubr.bf16.gmra.mxu0 %v2306_v51  ;;  %v2086_v61 = vpop.xlane.xlu1 %2085 }
 0x402   : > { %v9129_v23 = vpop.eup %9128  ;;  %9140 = vrcp.f32 %v2086_v61  ;;  %v2247_v24 = vmul.f32 %v9127_v53, %v10207_v44 }
 0x403   : > { %v9131_v60 = vpop.eup %9130  ;;  %v2080_v26 = vpop.xlane.xlu0 %2079  ;;  %v2249_v7 = vmul.f32 %v9129_v23, %v10195_v30 }
 0x404   : > { %9142 = vrcp.f32 %v2080_v26  ;;  %v2248_v52 = vmul.f32 %v9131_v60, %v10211_v28 }
 0x405   : > { %9144 = vrcp.f32 %v2084_v22  ;;  %v2082_v19 = vpop.xlane.xlu1 %2081  ;;  %v2308_v49 = vpack.c.bf16 %v2250_v13, %v2249_v7 }
 0x406   : > { %9146 = vrcp.f32 %v2082_v19  ;;  %v2307_v58 = vpack.c.bf16 %v2248_v52, %v2247_v24 }
 0x407   : > { %v2092_v1 = vpop.xlane.xlu0 %2091  ;;  %v9133_v6 = vpop.eup %9132 }
 0x408   : > { %8654 = vmatprep.mubr.bf16.mxu0 %v2307_v58  ;;  %v2254_v44 = vmul.f32 %v9133_v6, %v10223_v10 }
 0x409   : > { %v9135_v2 = vpop.eup %9134  ;;  %8655 = vmatmul.mubr.bf16.gmra.mxu0 %v2308_v49  ;;  %v2094_v42 = vpop.xlane.xlu1 %2093 }
 0x40a   : > { %v9137_v3 = vpop.eup %9136  ;;  %9148 = vrcp.f32 %v2094_v42  ;;  %v2251_v28 = vmul.f32 %v9135_v2, %v10231_v48 }
 0x40b   : > { %v9139_v35 = vpop.eup %9138  ;;  %v2088_v8 = vpop.xlane.xlu0 %2087  ;;  %v2253_v34 = vmul.f32 %v9137_v3, %v10219_v0 }
 0x40c   : > { %9150 = vrcp.f32 %v2088_v8  ;;  %v2252_v30 = vmul.f32 %v9139_v35, %v10235_v16 }
 0x40d   : > { %9152 = vrcp.f32 %v2092_v1  ;;  %v2090_v21 = vpop.xlane.xlu1 %2089  ;;  %v2310_v14 = vpack.c.bf16 %v2254_v44, %v2253_v34 }
 0x40e   : > { %9154 = vrcp.f32 %v2090_v21  ;;  %v2309_v15 = vpack.c.bf16 %v2252_v30, %v2251_v28 }
 0x40f   : > { %v2100_v5 = vpop.xlane.xlu0 %2099  ;;  %v9141_v22 = vpop.eup %9140 }
 0x410   : > { %8658 = vmatprep.mubr.bf16.mxu0 %v2309_v15  ;;  %v2258_v48 = vmul.f32 %v9141_v22, %v10243_v50 }
 0x411   : > { %v9143_v51 = vpop.eup %9142  ;;  %8659 = vmatmul.mubr.bf16.gmra.mxu0 %v2310_v14  ;;  %v2102_v17 = vpop.xlane.xlu1 %2101 }
 0x412   : > { %v9145_v53 = vpop.eup %9144  ;;  %9156 = vrcp.f32 %v2102_v17  ;;  %v2255_v16 = vmul.f32 %v9143_v51, %v10247_v12 }
 0x413   : > { %v9147_v10 = vpop.eup %9146  ;;  %v2096_v61 = vpop.xlane.xlu0 %2095  ;;  %v2257_v60 = vmul.f32 %v9145_v53, %v10239_v20 }
 0x414   : > { %9158 = vrcp.f32 %v2096_v61  ;;  %v2256_v0 = vmul.f32 %v9147_v10, %v10251_v57 }
 0x415   : > { %9160 = vrcp.f32 %v2100_v5  ;;  %v2098_v23 = vpop.xlane.xlu1 %2097  ;;  %v2312_v24 = vpack.c.bf16 %v2258_v48, %v2257_v60 }
 0x416   : > { %9162 = vrcp.f32 %v2098_v23  ;;  %v2311_v26 = vpack.c.bf16 %v2256_v0, %v2255_v16 }
 0x417   : > { %v1852_v13 = vpop.xlane.xlu0 %1851  ;;  %v9149_v52 = vpop.eup %9148 }
 0x418   : > { %v1917_v19 = vsub.f32 %v10294_v41, %v1852_v13  ;;  %8662 = vmatprep.mubr.bf16.mxu0 %v2311_v26  ;;  %v2262_v6 = vmul.f32 %v9149_v52, %v10257_v37 }
 0x419   : > { %v9151_v7 = vpop.eup %9150  ;;  %8663 = vmatmul.mubr.bf16.gmra.mxu0 %v2312_v24  ;;  %v1854_v50 = vpop.xlane.xlu1 %1853 }
 0x41a   : > { %v9153_v58 = vpop.eup %9152  ;;  %v2043_v1 = vmul.f32 1.442695, %v1917_v19  ;;  %v1918_v12 = vsub.f32 %v10297_v25, %v1854_v50  ;;  %v2259_v2 = vmul.f32 %v9151_v7, %v10262_v33 }
 0x41b   : > { %v9155_v57 = vpop.eup %9154  ;;  %v2104_v49 = vpop.xlane.xlu0 %2103  ;;  %v2261_v3 = vmul.f32 %v9153_v58, %v10254_v11 }
 0x41c   : > { %9164 = vpow2.f32 %v2043_v1  ;;  %v2045_v20 = vmul.f32 1.442695, %v1918_v12  ;;  %v2260_v42 = vmul.f32 %v9155_v57, %v10267_v63 }
 0x41d   : > { %9166 = vrcp.f32 %v2104_v49  ;;  %v2106_v41 = vpop.xlane.xlu1 %2105  ;;  %v2314_v44 = vpack.c.bf16 %v2262_v6, %v2261_v3 }
 0x41e   : > { %9168 = vpow2.f32 %v2045_v20  ;;  %v2313_v35 = vpack.c.bf16 %v2260_v42, %v2259_v2 }
 0x41f   : > { %9170 = vrcp.f32 %v2106_v41  ;;  %v2108_v8 = vpop.xlane.xlu0 %2107  ;;  %v9157_v25 = vpop.eup %9156 }
 0x420   : > { %9172 = vrcp.f32 %v2108_v8  ;;  %8666 = vmatprep.mubr.bf16.mxu0 %v2313_v35  ;;  %v2266_v63 = vmul.f32 %v9157_v25, %v10273_v40 }
 0x421   : > { %v9159_v28 = vpop.eup %9158  ;;  %8667 = vmatmul.mubr.bf16.gmra.mxu0 %v2314_v44  ;;  %v2110_v37 = vpop.xlane.xlu1 %2109 }
 0x422   : > { %v9161_v30 = vpop.eup %9160  ;;  %9174 = vrcp.f32 %v2110_v37  ;;  %v2263_v11 = vmul.f32 %v9159_v28, %v10279_v55 }
 0x423   : > { %v9163_v33 = vpop.eup %9162  ;;  %v2112_v21 = vpop.xlane.xlu0 %2111  ;;  %v2265_v5 = vmul.f32 %v9161_v30, %v10270_v62 }
 0x424   : > { %9176 = vrcp.f32 %v2112_v21  ;;  %v2264_v34 = vmul.f32 %v9163_v33, %v10288_v59 }
 0x425   : > { %v2114_v15 = vpop.xlane.xlu1 %2113  ;;  %v2316_v51 = vpack.c.bf16 %v2266_v63, %v2265_v5 }
 0x426   : > { %9178 = vrcp.f32 %v2114_v15  ;;  %v2315_v14 = vpack.c.bf16 %v2264_v34, %v2263_v11 }
 0x427   : > { %v2116_v22 = vpop.xlane.xlu0 %2115 }
 0x428   : > { %9180 = vrcp.f32 %v2116_v22  ;;  %8670 = vmatprep.mubr.bf16.mxu0 %v2315_v14 }
 0x429   : > { %v10458_v17 = vpop.eup %9164  ;;  %8671 = vmatmul.mubr.bf16.gmra.mxu0 %v2316_v51  ;;  %v2118_v53 = vpop.xlane.xlu1 %2117 }
 0x42a   : > { %v9167_v10 = vpop.eup %9166  ;;  %9182 = vrcp.f32 %v2118_v53  ;;  %2171 = vadd.xlane.f32.xlu0 %v10458_v17 }
 0x42b   : > { %v10461_v40 = vpop.eup %9168  ;;  %v2120_v55 = vpop.xlane.xlu0 %2119  ;;  %v2267_v48 = vmul.f32 %v9167_v10, %v10302_v4 }
 0x42c   : > { %v9171_v59 = vpop.eup %9170  ;;  %9184 = vrcp.f32 %v2120_v55  ;;  %2173 = vadd.xlane.f32.xlu1 %v10461_v40  ;;  %v12526_v55 = vld [vmem:[#allocation7_spill] sm:$0xff] }
 0x42d   : > { %v9173_v62 = vpop.eup %9172  ;;  %v2122_v61 = vpop.xlane.xlu1 %2121  ;;  %v2268_v16 = vmul.f32 %v9171_v59, %v10307_v54 }
 0x42e   : > { %9186 = vrcp.f32 %v2122_v61  ;;  %v2269_v26 = vmul.f32 %v9173_v62, %v10310_v31 }
 0x42f   : > { %v9175_v0 = vpop.eup %9174  ;;  %v2124_v23 = vpop.xlane.xlu0 %2123  ;;  %v2317_v60 = vpack.c.bf16 %v2268_v16, %v2267_v48 }
 0x430   : > { %9188 = vrcp.f32 %v2124_v23  ;;  %v2270_v13 = vmul.f32 %v9175_v0, %v10313_v45  ;;  %v12528_v23 = vld [vmem:[#allocation10_spill] sm:$0xff] }
 0x431   : > { %v9177_v24 = vpop.eup %9176  ;;  %8674 = vmatprep.mubr.bf16.mxu0 %v2317_v60  ;;  %v2126_v52 = vpop.xlane.xlu1 %2125 }
 0x432   : > { %9190 = vrcp.f32 %v2126_v52  ;;  %v2318_v19 = vpack.c.bf16 %v2270_v13, %v2269_v26  ;;  %v2271_v4 = vmul.f32 %v9177_v24, %v10318_v43 }
 0x433   : > { %v9179_v7 = vpop.eup %9178  ;;  %v2128_v50 = vpop.xlane.xlu0 %2127 }
 0x434   : > { %9192 = vrcp.f32 %v2128_v50  ;;  %8675 = vmatmul.mubr.bf16.gmra.mxu0 %v2318_v19  ;;  %v2272_v54 = vmul.f32 %v9179_v7, %v10323_v56  ;;  %v12529_v7 = vld [vmem:[#allocation9_spill] sm:$0xff] }
 0x435   : > { %v9181_v58 = vpop.eup %9180  ;;  %v2130_v1 = vpop.xlane.xlu1 %2129 }
 0x436   : > { %9194 = vrcp.f32 %v2130_v1  ;;  %v2319_v12 = vpack.c.bf16 %v2272_v54, %v2271_v4  ;;  %v2273_v45 = vmul.f32 %v9181_v58, %v10326_v29  ;;  %v12530_v4 = vld [vmem:[#allocation11_spill] sm:$0xff] }
 0x437   : > { %v9183_v31 = vpop.eup %9182  ;;  %v2132_v57 = vpop.xlane.xlu0 %2131 }
 0x438   : > { %9196 = vrcp.f32 %v2132_v57  ;;  %8678 = vmatprep.mubr.bf16.mxu0 %v2319_v12  ;;  %v2274_v49 = vmul.f32 %v9183_v31, %v10329_v9 }
 0x439   : > { %v9185_v6 = vpop.eup %9184  ;;  %v2134_v20 = vpop.xlane.xlu1 %2133 }
 0x43a   : > { %9198 = vrcp.f32 %v2134_v20  ;;  %v2320_v2 = vpack.c.bf16 %v2274_v49, %v2273_v45  ;;  %v2275_v56 = vmul.f32 %v9185_v6, %v10334_v27  ;;  %v12531_v45 = vld [vmem:[#allocation12_spill] sm:$0xff]  ;;  %v12532_v6 = vld [vmem:[#allocation14_spill] sm:$0xff] }
 0x43b   : > { %v9187_v42 = vpop.eup %9186  ;;  %v2136_v43 = vpop.xlane.xlu0 %2135 }
 0x43c   : > { %9200 = vrcp.f32 %v2136_v43  ;;  %8679 = vmatmul.mubr.bf16.gmra.mxu0 %v2320_v2  ;;  %v2276_v41 = vmul.f32 %v9187_v42, %v10339_v18 }
 0x43d   : > { %v9189_v3 = vpop.eup %9188  ;;  %v2138_v35 = vpop.xlane.xlu1 %2137 }
 0x43e   : > { %9202 = vrcp.f32 %v2138_v35  ;;  %v2321_v8 = vpack.c.bf16 %v2276_v41, %v2275_v56  ;;  %v2277_v9 = vmul.f32 %v9189_v3, %v10342_v36  ;;  %v12533_v3 = vld [vmem:[#allocation13_spill] sm:$0xff] }
 0x43f   : > { %v9191_v44 = vpop.eup %9190  ;;  %v2140_v29 = vpop.xlane.xlu0 %2139 }
 0x440   : > { %9204 = vrcp.f32 %v2140_v29  ;;  %8682 = vmatprep.mubr.bf16.mxu0 %v2321_v8  ;;  %v2278_v25 = vmul.f32 %v9191_v44, %v10345_v47  ;;  %v12534_v8 = vld [vmem:[#allocation15_spill] sm:$0xff] }
 0x441   : > { %v9193_v28 = vpop.eup %9192  ;;  %v2142_v37 = vpop.xlane.xlu1 %2141 }
 0x442   : > { %9206 = vrcp.f32 %v2142_v37  ;;  %v2322_v30 = vpack.c.bf16 %v2278_v25, %v2277_v9  ;;  %v2279_v18 = vmul.f32 %v9193_v28, %v10350_v39  ;;  %v12535_v37 = vld [vmem:[#allocation16_spill] sm:$0xff] }
 0x443   : > { %v9195_v33 = vpop.eup %9194  ;;  %v2144_v27 = vpop.xlane.xlu0 %2143 }
 0x444   : > { %9208 = vrcp.f32 %v2144_v27  ;;  %8683 = vmatmul.mubr.bf16.gmra.mxu0 %v2322_v30  ;;  %v2280_v21 = vmul.f32 %v9195_v33, %v10355_v46  ;;  %v12525_v46 = vld [vmem:[#allocation6_spill] sm:$0xff] }
 0x445   : > { %v9197_v63 = vpop.eup %9196  ;;  %v2146_v11 = vpop.xlane.xlu1 %2145  ;;  %v12536_v33 = vld [vmem:[#allocation18_spill] sm:$0xff] }
 0x446   : > { %9210 = vrcp.f32 %v2146_v11  ;;  %v2323_v34 = vpack.c.bf16 %v2280_v21, %v2279_v18  ;;  %v2281_v47 = vmul.f32 %v9197_v63, %v10358_v32  ;;  %v12537_v11 = vld [vmem:[#allocation17_spill] sm:$0xff] }
 0x447   : > { %v9199_v15 = vpop.eup %9198  ;;  %v2148_v36 = vpop.xlane.xlu0 %2147 }
 0x448   : > { %9212 = vrcp.f32 %v2148_v36  ;;  %8686 = vmatprep.mubr.bf16.mxu0 %v2323_v34  ;;  %v2282_v5 = vmul.f32 %v9199_v15, %v10361_v38  ;;  %v12527_v38 = vld [vmem:[#allocation8_spill] sm:$0xff]  ;;  %v12538_v15 = vld [vmem:[#allocation19_spill] sm:$0xff] }
 0x449   : > { %v9201_v14 = vpop.eup %9200  ;;  %v2150_v22 = vpop.xlane.xlu1 %2149 }
 0x44a   : > { %9214 = vrcp.f32 %v2150_v22  ;;  %v2324_v51 = vpack.c.bf16 %v2282_v5, %v2281_v47  ;;  %v2283_v10 = vmul.f32 %v9201_v14, %v12525_v46  ;;  %v12539_v22 = vld [vmem:[#allocation20_spill] sm:$0xff]  ;;  %v8854_v46 = vld [vmem:[%s9419_s24 + $0x8] sm:$0xff]  }
 0x44b   : > { %v9203_v53 = vpop.eup %9202  ;;  %v2152_v39 = vpop.xlane.xlu0 %2151  ;;  %8710 = vmatprep.subr.bf16.mxu0 %v8854_v46 }
 0x44c   : > { %9216 = vrcp.f32 %v2152_v39  ;;  %8687 = vmatmul.mubr.bf16.gmra.mxu0 %v2324_v51  ;;  %v2284_v59 = vmul.f32 %v9203_v53, %v12526_v55  ;;  %v12540_v53 = vld [vmem:[#allocation22_spill] sm:$0xff] }
 0x44d   : > { %v9205_v62 = vpop.eup %9204  ;;  %v2154_v61 = vpop.xlane.xlu1 %2153  ;;  %8711 = vmatpush3.bf16.msra.mxu0 %v8854_v46 }
 0x44e   : > { %9218 = vrcp.f32 %v2154_v61  ;;  %v2325_v48 = vpack.c.bf16 %v2284_v59, %v2283_v10  ;;  %v2285_v0 = vmul.f32 %v9205_v62, %v12527_v38  ;;  %v12541_v62 = vld [vmem:[#allocation21_spill] sm:$0xff]  ;;  %v8855_v38 = vld [vmem:[%s9419_s24] sm:$0xff]  }
 0x44f   : > { %v9207_v16 = vpop.eup %9206  ;;  %v2156_v32 = vpop.xlane.xlu0 %2155  ;;  %8712 = vmatprep.subr.bf16.mxu0 %v8855_v38 }
 0x450   : > { %9220 = vrcp.f32 %v2156_v32  ;;  %8690 = vmatprep.mubr.bf16.mxu0 %v2325_v48  ;;  %v2286_v60 = vmul.f32 %v9207_v16, %v12528_v23  ;;  %v12542_v48 = vld [vmem:[#allocation23_spill] sm:$0xff] }
 0x451   : > { %v9209_v26 = vpop.eup %9208  ;;  %v2158_v13 = vpop.xlane.xlu1 %2157  ;;  %8713 = vmatpush3.bf16.msra.mxu0 %v8855_v38 }
 0x452   : > { %9222 = vrcp.f32 %v2158_v13  ;;  %v2326_v24 = vpack.c.bf16 %v2286_v60, %v2285_v0  ;;  %v2287_v50 = vmul.f32 %v9209_v26, %v12529_v7 }
 0x453   : > { %v9211_v52 = vpop.eup %9210  ;;  %v2160_v19 = vpop.xlane.xlu0 %2159 }
 0x454   : > { %9224 = vrcp.f32 %v2160_v19  ;;  %8691 = vmatmul.mubr.bf16.gmra.mxu0 %v2326_v24  ;;  %v2288_v54 = vmul.f32 %v9211_v52, %v12530_v4 }
 0x455   : > { %v9213_v58 = vpop.eup %9212  ;;  %v2162_v1 = vpop.xlane.xlu1 %2161 }
 0x456   : > { %9226 = vrcp.f32 %v2162_v1  ;;  %v2327_v12 = vpack.c.bf16 %v2288_v54, %v2287_v50  ;;  %v2289_v49 = vmul.f32 %v9213_v58, %v12531_v45 }
 0x457   : > { %v9215_v31 = vpop.eup %9214  ;;  %v2164_v57 = vpop.xlane.xlu0 %2163 }
 0x458   : > { %9228 = vrcp.f32 %v2164_v57  ;;  %8694 = vmatprep.mubr.bf16.mxu0 %v2327_v12  ;;  %v2290_v20 = vmul.f32 %v9215_v31, %v12532_v6  ;;  %v10517_v6 = vld [vmem:[%s12396_s1 + $0x8] ss:$0 sm:$0xff] }
 0x459   : > { %v9217_v2 = vpop.eup %9216  ;;  %v2166_v42 = vpop.xlane.xlu1 %2165 }
 0x45a   : > { %9230 = vrcp.f32 %v2166_v42  ;;  %v2328_v43 = vpack.c.bf16 %v2290_v20, %v2289_v49  ;;  %v2291_v35 = vmul.f32 %v9217_v2, %v12533_v3 }
 0x45b   : > { %v9219_v56 = vpop.eup %9218  ;;  %v2168_v41 = vpop.xlane.xlu0 %2167 }
 0x45c   : > { %9232 = vrcp.f32 %v2168_v41  ;;  %8695 = vmatmul.mubr.bf16.gmra.mxu0 %v2328_v43  ;;  %v2292_v44 = vmul.f32 %v9219_v56, %v12534_v8  ;;  %v10524_v43 = vld [vmem:[%s12396_s1 + $0x9] ss:$0 sm:$0xff] }
 0x45d   : > { %v9221_v29 = vpop.eup %9220  ;;  %v2170_v9 = vpop.xlane.xlu1 %2169 }
 0x45e   : > { %9234 = vrcp.f32 %v2170_v9  ;;  %v2329_v25 = vpack.c.bf16 %v2292_v44, %v2291_v35  ;;  %v2293_v30 = vmul.f32 %v9221_v29, %v12535_v37 }
 0x45f   : > { %v9223_v28 = vpop.eup %9222 }
 0x460   : > { %8698 = vmatprep.mubr.bf16.mxu0 %v2329_v25  ;;  %v2294_v27 = vmul.f32 %v9223_v28, %v12536_v33 }
 0x461   : > { %v9225_v18 = vpop.eup %9224 }
 0x462   : > { %v2330_v21 = vpack.c.bf16 %v2294_v27, %v2293_v30  ;;  %v2295_v34 = vmul.f32 %v9225_v18, %v12537_v11 }
 0x463   : > { %v9227_v63 = vpop.eup %9226 }
 0x464   : > { %8699 = vmatmul.mubr.bf16.gmra.mxu0 %v2330_v21  ;;  %v2296_v36 = vmul.f32 %v9227_v63, %v12538_v15 }
 0x465   : > { %v9229_v47 = vpop.eup %9228 }
 0x466   : > { %v2331_v5 = vpack.c.bf16 %v2296_v36, %v2295_v34  ;;  %v2297_v51 = vmul.f32 %v9229_v47, %v12539_v22 }
 0x467   : > { %v9231_v14 = vpop.eup %9230 }
 0x468   : > { %8702 = vmatprep.mubr.bf16.mxu0 %v2331_v5  ;;  %v2298_v39 = vmul.f32 %v9231_v14, %v12540_v53 }
 0x469   : > { %v9233_v10 = vpop.eup %9232 }
 0x46a   : > { %v2332_v55 = vpack.c.bf16 %v2298_v39, %v2297_v51  ;;  %v2299_v61 = vmul.f32 %v9233_v10, %v12541_v62 }
 0x46b   : > { %v9235_v59 = vpop.eup %9234 }
 0x46c   : > { %8703 = vmatmul.mubr.bf16.gmra.mxu0 %v2332_v55  ;;  %v2300_v16 = vmul.f32 %v9235_v59, %v12542_v48 }
 0x46e   : > { %v2333_v32 = vpack.c.bf16 %v2300_v16, %v2299_v61 }
 0x470   : > { %8706 = vmatprep.mubr.bf16.mxu0 %v2333_v32 }
 0x4b3   : > { %v2172_v0 = vpop.xlane.xlu0 %2171 }
 0x4b4   : > { %9236 = vrcp.f32 %v2172_v0 }
 0x4b5   : > { %v2174_v23 = vpop.xlane.xlu1 %2173 }
 0x4b6   : > { %9238 = vrcp.f32 %v2174_v23 }
 0x4b9   : > { %v8648_v60 = vpop.f32.mrf.mxu0 }
 0x4ba   : > { %v2630_v35 = vmul.f32 %v10517_v6, %v8648_v60 }
 0x4bb   : > { %v2369_v26 = vpop.f32.mrf.mxu0 }
 0x4bc   : > { %v2628_v29 = vmul.f32 %v10517_v6, %v2369_v26 }
 0x4bd   : > { %v10500_v13 = vpop.f32.mrf.mxu0 }
 0x4bf   : > { %v10502_v24 = vpop.f32.mrf.mxu0 }
 0x4c1   : > { %v9237_v52 = vpop.eup %9236  ;;  %v8652_v19 = vpop.f32.mrf.mxu0 }
 0x4c2   : > { %v2301_v4 = vmul.f32 %v9237_v52, %v10458_v17  ;;  %v2634_v27 = vmul.f32 %v10517_v6, %v8652_v19 }
 0x4c3   : > { %v9239_v7 = vpop.eup %9238  ;;  %v2385_v50 = vpop.f32.mrf.mxu0 }
 0x4c4   : > { %v2302_v54 = vmul.f32 %v9239_v7, %v10461_v40  ;;  %v2632_v63 = vmul.f32 %v10517_v6, %v2385_v50 }
 0x4c5   : > { %v10506_v58 = vpop.f32.mrf.mxu0 }
 0x4c6   : > { %v2334_v1 = vpack.c.bf16 %v2302_v54, %v2301_v4 }
 0x4c7   : > { %v10508_v12 = vpop.f32.mrf.mxu0 }
 0x4c8   : > { %8707 = vmatmul.mubr.bf16.gmra.mxu0 %v2334_v1 }
 0x4c9   : > { %v8656_v31 = vpop.f32.mrf.mxu0 }
 0x4ca   : > { %v2638_v14 = vmul.f32 %v10517_v6, %v8656_v31 }
 0x4cb   : > { %v2401_v57 = vpop.f32.mrf.mxu0 }
 0x4cc   : > { %v2636_v53 = vmul.f32 %v10517_v6, %v2401_v57 }
 0x4cd   : > { %v10510_v45 = vpop.f32.mrf.mxu0 }
 0x4cf   : > { %v10512_v49 = vpop.f32.mrf.mxu0 }
 0x4d1   : > { %v8660_v17 = vpop.f32.mrf.mxu0 }
 0x4d2   : > { %v2642_v40 = vmul.f32 %v10517_v6, %v8660_v17 }
 0x4d3   : > { %v2417_v20 = vpop.f32.mrf.mxu0 }
 0x4d4   : > { %v2640_v2 = vmul.f32 %v10517_v6, %v2417_v20 }
 0x4d5   : > { %v8661_v42 = vpop.f32.mrf.mxu0 }
 0x4d6   : > { %v2643_v56 = vmul.f32 %v10517_v6, %v8661_v42 }
 0x4d7   : > { %v2420_v41 = vpop.f32.mrf.mxu0 }
 0x4d8   : > { %v2641_v26 = vmul.f32 %v10517_v6, %v2420_v41 }
 0x4d9   : > { %v8664_v3 = vpop.f32.mrf.mxu0 }
 0x4da   : > { %v2650_v8 = vmul.f32 %v10524_v43, %v8664_v3 }
 0x4db   : > { %v2433_v44 = vpop.f32.mrf.mxu0 }
 0x4dc   : > { %v10530_v9 = vadd.f32 %v2650_v8, %v2630_v35  ;;  %v2648_v25 = vmul.f32 %v10524_v43, %v2433_v44 }
 0x4dd   : > { %v8665_v28 = vpop.f32.mrf.mxu0 }
 0x4de   : > { %v10533_v37 = vadd.f32 %v2648_v25, %v2628_v29 }
 0x4df   : > { %v2436_v30 = vpop.f32.mrf.mxu0 }
 0x4e1   : > { %v8668_v33 = vpop.f32.mrf.mxu0 }
 0x4e2   : > { %v2654_v18 = vmul.f32 %v10524_v43, %v8668_v33 }
 0x4e3   : > { %v2449_v21 = vpop.f32.mrf.mxu0 }
 0x4e4   : > { %v10538_v11 = vadd.f32 %v2654_v18, %v2634_v27  ;;  %v2652_v34 = vmul.f32 %v10524_v43, %v2449_v21  ;;  %v10587_v21 = vld [vmem:[%s12396_s1 + $0xb] ss:$0 sm:$0xff] }
 0x4e5   : > { %v10541_v15 = vpop.f32.mrf.mxu0 }
 0x4e6   : > { %v10543_v36 = vadd.f32 %v2652_v34, %v2632_v63  ;;  %v2651_v63 = vmul.f32 %v10524_v43, %v8665_v28 }
 0x4e7   : > { %v10545_v47 = vpop.f32.mrf.mxu0 }
 0x4e9   : > { %v8672_v5 = vpop.f32.mrf.mxu0 }
 0x4ea   : > { %v2658_v22 = vmul.f32 %v10524_v43, %v8672_v5 }
 0x4eb   : > { %v2465_v51 = vpop.f32.mrf.mxu0 }
 0x4ec   : > { %v10550_v39 = vadd.f32 %v2658_v22, %v2638_v14  ;;  %v2656_v46 = vmul.f32 %v10524_v43, %v2465_v51  ;;  %v2649_v14 = vmul.f32 %v10524_v43, %v2436_v30  ;;  %v2631_v51 = vmul.f32 %v10517_v6, %v10500_v13 }
 0x4ed   : > { %v10555_v55 = vpop.f32.mrf.mxu0 }
 0x4ee   : > { %v10553_v10 = vadd.f32 %v2656_v46, %v2636_v53 }
 0x4ef   : > { %v10557_v59 = vpop.f32.mrf.mxu0 }
 0x4f4   : > { %v8676_v62 = vpop.f32.mrf.mxu0 }
 0x4f5   : > { %v2662_v61 = vmul.f32 %v10524_v43, %v8676_v62 }
 0x4f6   : > { %v2481_v48 = vpop.f32.mrf.mxu0 }
 0x4f7   : > { %v2678_v16 = vadd.f32 %v2662_v61, %v2642_v40  ;;  %v2660_v32 = vmul.f32 %v10524_v43, %v2481_v48  ;;  %v2629_v61 = vmul.f32 %v10517_v6, %v10502_v24  ;;  %v2655_v24 = vmul.f32 %v10524_v43, %v10541_v15 }
 0x4f8   : > { %v8677_v38 = vpop.f32.mrf.mxu0 }
 0x4f9   : > { %v2676_v0 = vadd.f32 %v2660_v32, %v2640_v2  ;;  %v2663_v23 = vmul.f32 %v10524_v43, %v8677_v38  ;;  %v2665_v38 = vadd.f32 %v2649_v14, %v2629_v61 }
 0x4fa   : > { %v2484_v60 = vpop.f32.mrf.mxu0 }
 0x4fb   : > { %v2679_v52 = vadd.f32 %v2663_v23, %v2643_v56  ;;  %v2661_v19 = vmul.f32 %v10524_v43, %v2484_v60  ;;  %v10575_v56 = vld [vmem:[%s12396_s1 + $0xa] ss:$0 sm:$0xff] }
 0x4fc   : > { %v8680_v7 = vpop.f32.mrf.mxu0 }
 0x4fd   : > { %v2677_v50 = vadd.f32 %v2661_v19, %v2641_v26  ;;  %v2686_v53 = vmul.f32 %v10575_v56, %v8680_v7 }
 0x4fe   : > { %v2497_v4 = vpop.f32.mrf.mxu0 }
 0x4ff   : > { %v2684_v28 = vmul.f32 %v10575_v56, %v2497_v4  ;;  %v2702_v13 = vadd.f32 %v2686_v53, %v10530_v9  ;;  %v2653_v9 = vmul.f32 %v10524_v43, %v10545_v47 }
 0x500   : > { %v8681_v54 = vpop.f32.mrf.mxu0 }
 0x501   : > { %v2687_v46 = vmul.f32 %v10575_v56, %v8681_v54 }
 0x502   : > { %v2500_v1 = vpop.f32.mrf.mxu0 }
 0x503   : > { %v2685_v32 = vmul.f32 %v10575_v56, %v2500_v1  ;;  %v2635_v1 = vmul.f32 %v10517_v6, %v10506_v58 }
 0x504   : > { %v8684_v31 = vpop.f32.mrf.mxu0 }
 0x505   : > { %v2701_v7 = vadd.f32 %v2685_v32, %v2665_v38 }
 0x506   : > { %v2513_v57 = vpop.f32.mrf.mxu0 }
 0x508   : > { %v8685_v17 = vpop.f32.mrf.mxu0 }
 0x50a   : > { %v2516_v40 = vpop.f32.mrf.mxu0 }
 0x50b   : > { %v2689_v58 = vmul.f32 %v10575_v56, %v2516_v40 }
 0x50c   : > { %v10564_v20 = vpop.f32.mrf.mxu0 }
 0x50d   : > { %v2694_v32 = vmul.f32 %v10575_v56, %v10564_v20 }
 0x50e   : > { %v10566_v2 = vpop.f32.mrf.mxu0 }
 0x510   : > { %v10568_v42 = vpop.f32.mrf.mxu0 }
 0x512   : > { %v10570_v3 = vpop.f32.mrf.mxu0 }
 0x514   : > { %v8692_v41 = vpop.f32.mrf.mxu0 }
 0x515   : > { %v2698_v35 = vmul.f32 %v10575_v56, %v8692_v41  ;;  %v2690_v41 = vmul.f32 %v10575_v56, %v8684_v31 }
 0x516   : > { %v2545_v8 = vpop.f32.mrf.mxu0 }
 0x517   : > { %v10578_v44 = vadd.f32 %v2698_v35, %v2678_v16  ;;  %v2696_v29 = vmul.f32 %v10575_v56, %v2545_v8  ;;  %v2667_v16 = vadd.f32 %v2651_v63, %v2631_v51  ;;  %v2691_v8 = vmul.f32 %v10575_v56, %v8685_v17 }
 0x518   : > { %v8693_v25 = vpop.f32.mrf.mxu0  ;;  %v2671_v63 = vadd.f32 %v2655_v24, %v2635_v1 }
 0x519   : > { %v10581_v33 = vadd.f32 %v2696_v29, %v2676_v0  ;;  %v2699_v27 = vmul.f32 %v10575_v56, %v8693_v25  ;;  %v2703_v23 = vadd.f32 %v2687_v46, %v2667_v16  ;;  %v2633_v25 = vmul.f32 %v10517_v6, %v10508_v12 }
 0x51a   : > { %v2548_v18 = vpop.f32.mrf.mxu0  ;;  %v2707_v17 = vadd.f32 %v2691_v8, %v2671_v63  ;;  %v2659_v12 = vmul.f32 %v10524_v43, %v10555_v55  ;;  %v2657_v16 = vmul.f32 %v10524_v43, %v10557_v59  ;;  %v2693_v43 = vmul.f32 %v10575_v56, %v10570_v3 }
 0x51b   : > { %v10590_v34 = vadd.f32 %v2699_v27, %v2679_v52  ;;  %v2697_v5 = vmul.f32 %v10575_v56, %v2548_v18  ;;  %v2700_v52 = vadd.f32 %v2684_v28, %v10533_v37  ;;  %v2688_v27 = vmul.f32 %v10575_v56, %v2513_v57 }
 0x51c   : > { %v8696_v22 = vpop.f32.mrf.mxu0  ;;  %v2669_v14 = vadd.f32 %v2653_v9, %v2633_v25 }
 0x51d   : > { %v10598_v62 = vadd.f32 %v2697_v5, %v2677_v50  ;;  %v2722_v30 = vmul.f32 %v10587_v21, %v8696_v22  ;;  %v2706_v22 = vadd.f32 %v2690_v41, %v10538_v11  ;;  %v2704_v57 = vadd.f32 %v2688_v27, %v10543_v36 }
 0x51e   : > { %v2561_v48 = vpop.f32.mrf.mxu0  ;;  %v2705_v46 = vadd.f32 %v2689_v58, %v2669_v14  ;;  %v2695_v36 = vmul.f32 %v10575_v56, %v10568_v42  ;;  %v2710_v42 = vadd.f32 %v2694_v32, %v10550_v39 }
 0x51f   : > { %v2720_v60 = vmul.f32 %v10587_v21, %v2561_v48  ;;  %v2738_v50 = vadd.f32 %v2722_v30, %v2702_v13  ;;  %v2639_v48 = vmul.f32 %v10517_v6, %v10510_v45  ;;  %v2637_v13 = vmul.f32 %v10517_v6, %v10512_v49 }
 0x520   : > { %v8697_v0 = vpop.f32.mrf.mxu0 }
 0x521   : > { %v2723_v26 = vmul.f32 %v10587_v21, %v8697_v0  ;;  %v2736_v15 = vadd.f32 %v2720_v60, %v2700_v52  ;;  %v2675_v60 = vadd.f32 %v2659_v12, %v2639_v48  ;;  %v9311_v48 = vld [vmem:[#allocation2 + $0x18] sm:$0xff] }
 0x522   : > { %v2564_v19 = vpop.f32.mrf.mxu0 }
 0x523   : > { %v2739_v4 = vadd.f32 %v2723_v26, %v2703_v23  ;;  %v2721_v54 = vmul.f32 %v10587_v21, %v2564_v19  ;;  %v2692_v23 = vmul.f32 %v10575_v56, %v10566_v2  ;;  %v2673_v26 = vadd.f32 %v2657_v16, %v2637_v13 }
 0x524   : > { %v8700_v35 = vpop.f32.mrf.mxu0  ;;  %v2711_v52 = vadd.f32 %v2695_v36, %v2675_v60 }
 0x525   : > { %v2753_v29 = vpack.c.bf16 %v2739_v4, %v2738_v50  ;;  %v2737_v37 = vadd.f32 %v2721_v54, %v2701_v7  ;;  %v2726_v47 = vmul.f32 %v10587_v21, %v8700_v35  ;;  %v2708_v6 = vadd.f32 %v2692_v23, %v10553_v10 }
 0x526   : > { %v2577_v18 = vpop.f32.mrf.mxu0  ;;  %v2709_v3 = vadd.f32 %v2693_v43, %v2673_v26 }
 0x527   : > { %v2752_v5 = vpack.c.bf16 %v2737_v37, %v2736_v15  ;;  %v2724_v51 = vmul.f32 %v10587_v21, %v2577_v18  ;;  %v2742_v61 = vadd.f32 %v2726_v47, %v2706_v22  ;;  %v10667_v47 = vld [vmem:[%s9434_s16 + $0x3] ss:$0 sm:$0xff] }
 0x528   : > { %v8701_v31 = vpop.f32.mrf.mxu0 }
 0x529   : > { %v2727_v53 = vmul.f32 %v10587_v21, %v8701_v31  ;;  %8714 = vmatprep.mubr.msk.bf16.mxu0 %vm682_vm1, %v2752_v5  ;;  %v2740_v30 = vadd.f32 %v2724_v51, %v2704_v57 }
 0x52a   : > { %v2580_v40 = vpop.f32.mrf.mxu0  ;;  %8715 = vmatmul.mubr.msk.bf16.vlgmr.msra.gmra.mxu0 %vm682_vm1, %v2753_v29 }
 0x52b   : > { %v2743_v28 = vadd.f32 %v2727_v53, %v2707_v17  ;;  %v2725_v11 = vmul.f32 %v10587_v21, %v2580_v40 }
 0x52c   : > { %v8704_v55 = vpop.f32.mrf.mxu0 }
 0x52d   : > { %v2755_v38 = vpack.c.bf16 %v2743_v28, %v2742_v61  ;;  %v2741_v0 = vadd.f32 %v2725_v11, %v2705_v46  ;;  %v2730_v20 = vmul.f32 %v10587_v21, %v8704_v55  ;;  %v9310_v46 = vld [vmem:[#allocation2 + $0x8] sm:$0xff] }
 0x52e   : > { %v2593_v45 = vpop.f32.mrf.mxu0 }
 0x52f   : > { %v2754_v59 = vpack.c.bf16 %v2741_v0, %v2740_v30  ;;  %v2728_v19 = vmul.f32 %v10587_v21, %v2593_v45  ;;  %v2746_v56 = vadd.f32 %v2730_v20, %v2710_v42  ;;  %v9313_v45 = vld [vmem:[#allocation2 + $0x30] sm:$0xff] }
 0x530   : > { %v8705_v24 = vpop.f32.mrf.mxu0 }
 0x531   : > { %v2731_v49 = vmul.f32 %v10587_v21, %v8705_v24  ;;  %8718 = vmatprep.mubr.msk.bf16.mxu0 %vm682_vm1, %v2754_v59  ;;  %v2744_v4 = vadd.f32 %v2728_v19, %v2708_v6  ;;  %v9314_v24 = vld [vmem:[#allocation2 + $0x28] sm:$0xff] }
 0x532   : > { %v2596_v2 = vpop.f32.mrf.mxu0  ;;  %8719 = vmatmul.mubr.msk.bf16.gmra.mxu0 %vm682_vm1, %v2755_v38  ;;  %v9312_v38 = vld [vmem:[#allocation2 + $0x20] sm:$0xff] }
 0x533   : > { %v2747_v7 = vadd.f32 %v2731_v49, %v2711_v52  ;;  %v2729_v50 = vmul.f32 %v10587_v21, %v2596_v2  ;;  %v9315_v52 = vld [vmem:[#allocation2 + $0x38] sm:$0xff] }
 0x535   : > { %v2757_v54 = vpack.c.bf16 %v2747_v7, %v2746_v56  ;;  %v2745_v39 = vadd.f32 %v2729_v50, %v2709_v3  ;;  %v9316_v50 = vld [vmem:[#allocation2 + $0x40] sm:$0xff] }
 0x537   : > { %v2756_v1 = vpack.c.bf16 %v2745_v39, %v2744_v4 }
 0x539   : > { %8722 = vmatprep.mubr.msk.bf16.mxu0 %vm682_vm1, %v2756_v1  ;;  %v9317_v1 = vld [vmem:[#allocation2 + $0x50] sm:$0xff] }
 0x53a   : > { %8723 = vmatmul.mubr.msk.bf16.gmra.mxu0 %vm682_vm1, %v2757_v54 }
 0x588   : > { %v8708_v9 = vpop.f32.mrf.mxu0 }
 0x589   : > { %v2734_v10 = vmul.f32 %v10587_v21, %v8708_v9 }
 0x58a   : > { %v2609_v41 = vpop.f32.mrf.mxu0 }
 0x58b   : > { %v2732_v8 = vmul.f32 %v10587_v21, %v2609_v41  ;;  %v2750_v37 = vadd.f32 %v2734_v10, %v10578_v44 }
 0x58c   : > { %v8709_v35 = vpop.f32.mrf.mxu0 }
 0x58d   : > { %v2735_v15 = vmul.f32 %v10587_v21, %v8709_v35  ;;  %v2748_v18 = vadd.f32 %v2732_v8, %v10581_v33  ;;  %v9309_v33 = vld [vmem:[#allocation2 + $0x10] sm:$0xff]  ;;  %v9318_v8 = vld [vmem:[#allocation2 + $0x48] sm:$0xff] }
 0x58e   : > { %v2612_v29 = vpop.f32.mrf.mxu0 }
 0x58f   : > { %v2751_v25 = vadd.f32 %v2735_v15, %v10590_v34  ;;  %v2733_v27 = vmul.f32 %v10587_v21, %v2612_v29  ;;  %v9308_v21 = vld [vmem:[#allocation2] sm:$0xff]  ;;  %v9319_v29 = vld [vmem:[#allocation2 + $0x58] sm:$0xff] }
 0x591   : > { %v2759_v63 = vpack.c.bf16 %v2751_v25, %v2750_v37  ;;  %v2749_v58 = vadd.f32 %v2733_v27, %v10598_v62 }
 0x593   : > { %v2758_v5 = vpack.c.bf16 %v2749_v58, %v2748_v18 }
 0x595   : > { %8726 = vmatprep.mubr.msk.bf16.mxu0 %vm682_vm1, %v2758_v5 }
 0x596   : > { %8727 = vmatmul.mubr.msk.bf16.gmra.mxu0 %vm682_vm1, %v2759_v63 }
 0x5ea   : > { %v8716_v14 = vpop.f32.mrf.mxu0 }
 0x5eb   : > { %v2848_v31 = vadd.f32 %v8716_v14, %v10667_v47 }
 0x5ec   : > { %v2839_v44 = vpop.f32.mrf.mxu0 }
 0x5ed   : > { %v2840_v34 = vadd.f32 %v10667_v47, %v2839_v44  ;;  %v10673_v51 = vadd.f32 %v9309_v33, %v2848_v31  ;;  %v9320_v44 = vld [vmem:[#allocation2 + $0x60] sm:$0xff] }
 0x5ee   : > { %v8717_v22 = vpop.f32.mrf.mxu0 }
 0x5ef   : > { %v10671_v17 = vadd.f32 %v9308_v21, %v2840_v34  ;;  %v2851_v53 = vadd.f32 %v8717_v22, %v10667_v47  ;;  %v2926_v11 = vsel %vm682_vm1, %v10673_v51, 0.0  ;;  %v9321_v21 = vld [vmem:[#allocation2 + $0x70] sm:$0xff] }
 0x5f0   : > { %v2842_v62 = vpop.f32.mrf.mxu0 }
 0x5f1   : > { %v2843_v12 = vadd.f32 %v10667_v47, %v2842_v62  ;;  %v2920_v57 = vsel %vm682_vm1, %v10671_v17, 0.0  ;;  %v10683_v16 = vadd.f32 %v9311_v48, %v2851_v53 }
 0x5f2   : > { %v8720_v40 = vpop.f32.mrf.mxu0  ;;  %2921 = vadd.xlane.f32.xlu0 %v2920_v57  ;;  %v9322_v57 = vld [vmem:[#allocation2 + $0x68] sm:$0xff] }
 0x5f3   : > { %v10679_v61 = vadd.f32 %v9310_v46, %v2843_v12  ;;  %v2864_v32 = vadd.f32 %v8720_v40, %v10667_v47  ;;  %v2929_v59 = vsel %vm682_vm1, %v10683_v16, 0.0  ;;  %v9323_v46 = vld [vmem:[#allocation2 + $0x78] sm:$0xff] }
 0x5f4   : > { %v2855_v28 = vpop.f32.mrf.mxu0 }
 0x5f5   : > { %v2856_v55 = vadd.f32 %v10667_v47, %v2855_v28  ;;  %v2923_v36 = vsel %vm682_vm1, %v10679_v61, 0.0  ;;  %v10692_v60 = vadd.f32 %v9313_v45, %v2864_v32 }
 0x5f6   : > { %v8721_v30 = vpop.f32.mrf.mxu0  ;;  %2924 = vadd.xlane.f32.xlu1 %v2923_v36  ;;  %2927 = vadd.xlane.f32.xlu0 %v2926_v11 }
 0x5f7   : > { %v10689_v0 = vadd.f32 %v9312_v38, %v2856_v55  ;;  %v2867_v13 = vadd.f32 %v8721_v30, %v10667_v47  ;;  %v2938_v56 = vsel %vm682_vm1, %v10692_v60, 0.0 }
 0x5f8   : > { %v2858_v23 = vpop.f32.mrf.mxu0 }
 0x5f9   : > { %v2859_v43 = vadd.f32 %v10667_v47, %v2858_v23  ;;  %v2932_v20 = vsel %vm682_vm1, %v10689_v0, 0.0  ;;  %v10701_v19 = vadd.f32 %v9315_v52, %v2867_v13 }
 0x5fa   : > { %v8724_v26 = vpop.f32.mrf.mxu0  ;;  %2930 = vadd.xlane.f32.xlu1 %v2929_v59  ;;  %2933 = vadd.xlane.f32.xlu0 %v2932_v20 }
 0x5fb   : > { %v10699_v42 = vadd.f32 %v9314_v24, %v2859_v43  ;;  %v2880_v6 = vadd.f32 %v8724_v26, %v10667_v47  ;;  %v2941_v39 = vsel %vm682_vm1, %v10701_v19, 0.0 }
 0x5fc   : > { %v2871_v49 = vpop.f32.mrf.mxu0 }
 0x5fd   : > { %v2872_v2 = vadd.f32 %v10667_v47, %v2871_v49  ;;  %v2935_v3 = vsel %vm682_vm1, %v10699_v42, 0.0  ;;  %v10713_v9 = vadd.f32 %v9317_v1, %v2880_v6 }
 0x5fe   : > { %v8725_v7 = vpop.f32.mrf.mxu0  ;;  %2936 = vadd.xlane.f32.xlu1 %v2935_v3  ;;  %2939 = vadd.xlane.f32.xlu0 %v2938_v56 }
 0x5ff   : > { %v10709_v4 = vadd.f32 %v9316_v50, %v2872_v2  ;;  %v2883_v41 = vadd.f32 %v8725_v7, %v10667_v47  ;;  %v2950_v27 = vsel %vm682_vm1, %v10713_v9, 0.0 }
 0x600   : > { %v2874_v54 = vpop.f32.mrf.mxu0 }
 0x601   : > { %v2875_v10 = vadd.f32 %v10667_v47, %v2874_v54  ;;  %v2944_v35 = vsel %vm682_vm1, %v10709_v4, 0.0  ;;  %v10721_v37 = vadd.f32 %v9319_v29, %v2883_v41 }
 0x602   : > { %2942 = vadd.xlane.f32.xlu1 %v2941_v39  ;;  %2945 = vadd.xlane.f32.xlu0 %v2944_v35 }
 0x603   : > { %v10719_v15 = vadd.f32 %v9318_v8, %v2875_v10  ;;  %v2953_v18 = vsel %vm682_vm1, %v10721_v37, 0.0 }
 0x605   : > { %v2947_v25 = vsel %vm682_vm1, %v10719_v15, 0.0 }
 0x606   : > { %2948 = vadd.xlane.f32.xlu1 %v2947_v25  ;;  %2951 = vadd.xlane.f32.xlu0 %v2950_v27 }
 0x60a   : > { %2954 = vadd.xlane.f32.xlu1 %v2953_v18 }
 0x656   : > { %v8728_v63 = vpop.f32.mrf.mxu0 }
 0x657   : > { %v2896_v5 = vadd.f32 %v8728_v63, %v10667_v47 }
 0x658   : > { %v2887_v58 = vpop.f32.mrf.mxu0 }
 0x659   : > { %v2888_v14 = vadd.f32 %v10667_v47, %v2887_v58  ;;  %v10733_v33 = vadd.f32 %v9321_v21, %v2896_v5 }
 0x65a   : > { %v8729_v31 = vpop.f32.mrf.mxu0 }
 0x65b   : > { %v10731_v34 = vadd.f32 %v9320_v44, %v2888_v14  ;;  %v2899_v62 = vadd.f32 %v8729_v31, %v10667_v47  ;;  %v2962_v48 = vsel %vm682_vm1, %v10733_v33, 0.0 }
 0x65c   : > { %v2890_v22 = vpop.f32.mrf.mxu0 }
 0x65d   : > { %v2891_v53 = vadd.f32 %v10667_v47, %v2890_v22  ;;  %v2956_v12 = vsel %vm682_vm1, %v10731_v34, 0.0  ;;  %v10741_v28 = vadd.f32 %v9323_v46, %v2899_v62 }
 0x65e   : > { %2957 = vadd.xlane.f32.xlu0 %v2956_v12 }
 0x65f   : > { %v10739_v40 = vadd.f32 %v9322_v57, %v2891_v53  ;;  %v2965_v47 = vsel %vm682_vm1, %v10741_v28, 0.0 }
 0x661   : > { %v2959_v11 = vsel %vm682_vm1, %v10739_v40, 0.0 }
 0x662   : > { %2960 = vadd.xlane.f32.xlu1 %v2959_v11  ;;  %2963 = vadd.xlane.f32.xlu0 %v2962_v48 }
 0x666   : > { %2966 = vadd.xlane.f32.xlu1 %v2965_v47 }
 0x67b   : > { %v2922_v32 = vpop.xlane.xlu0 %2921 }
 0x67c   : > { %v2969_v55 = vmul.f32 0.03125, %v2922_v32 }
 0x67e   : > { %v10750_v36 = vsub.f32 %v10671_v17, %v2969_v55  ;;  %v3179_v55 = vld [vmem:[%s9429_s12 + $0x80] sm:$0xff] }
 0x67f   : > { %v2925_v30 = vpop.xlane.xlu1 %2924  ;;  %v2928_v38 = vpop.xlane.xlu0 %2927 }
 0x680   : > { %v2970_v13 = vmul.f32 0.03125, %v2925_v30  ;;  %v2971_v23 = vmul.f32 0.03125, %v2928_v38  ;;  %v3001_v45 = vmul.f32 %v10750_v36, %v10750_v36  ;;  %v3180_v30 = vld [vmem:[%s9429_s12 + $0xc0] sm:$0xff] }
 0x681   : > { %v7555_v38 = vcombine.high %v3179_v55, %v3180_v30 }
 0x682   : > { %v10755_v43 = vsub.f32 %v10679_v61, %v2970_v13  ;;  %v10758_v59 = vsub.f32 %v10673_v51, %v2971_v23  ;;  %v3017_v20 = vsel %vm682_vm1, %v3001_v45, 0.0  ;;  %v3433_v13 = vld [vmem:[%s9429_s12 + $0xc8] sm:$0xff]  ;;  %v7554_v23 = vcombine.low %v3179_v55, %v3180_v30 }
 0x683   : > { %v2931_v26 = vpop.xlane.xlu1 %2930  ;;  %v2934_v24 = vpop.xlane.xlu0 %2933  ;;  %3018 = vadd.xlane.f32.xlu0 %v3017_v20  ;;  %3249 = vmatprep.subr.bf16.mxu1 %v7555_v38 }
 0x684   : > { %v2972_v17 = vmul.f32 0.03125, %v2931_v26  ;;  %v2973_v52 = vmul.f32 0.03125, %v2934_v24  ;;  %v3002_v49 = vmul.f32 %v10755_v43, %v10755_v43  ;;  %v3003_v6 = vmul.f32 %v10758_v59, %v10758_v59  ;;  %3250 = vmatpush1.bf16.msra.mxu1 %v7554_v23  ;;  %v3177_v26 = vld [vmem:[%s9429_s12] sm:$0xff] }
 0x685   : > { %v3178_v24 = vld [vmem:[%s9429_s12 + $0x40] sm:$0xff] }
 0x686   : > { %v10766_v2 = vsub.f32 %v10683_v16, %v2972_v17  ;;  %v10769_v61 = vsub.f32 %v10689_v0, %v2973_v52  ;;  %v3020_v51 = vsel %vm682_vm1, %v3002_v49, 0.0  ;;  %v3023_v3 = vsel %vm682_vm1, %v3003_v6, 0.0  ;;  %v3430_v17 = vld [vmem:[%s9429_s12 + $0x8] sm:$0xff] }
 0x687   : > { %v2937_v56 = vpop.xlane.xlu1 %2936  ;;  %v2940_v7 = vpop.xlane.xlu0 %2939  ;;  %3021 = vadd.xlane.f32.xlu1 %v3020_v51  ;;  %3024 = vadd.xlane.f32.xlu0 %v3023_v3  ;;  %v7553_v52 = vcombine.high %v3177_v26, %v3178_v24  ;;  %v3431_v49 = vld [vmem:[%s9429_s12 + $0x48] sm:$0xff]  ;;  %v7552_v6 = vcombine.low %v3177_v26, %v3178_v24  ;;  %v8856_v24 = vld [vmem:[%s9439_s6 + $0xf8] sm:$0xff]  }
 0x688   : > { %v2974_v50 = vmul.f32 0.03125, %v2937_v56  ;;  %v2975_v54 = vmul.f32 0.03125, %v2940_v7  ;;  %v3004_v39 = vmul.f32 %v10766_v2, %v10766_v2  ;;  %v3005_v16 = vmul.f32 %v10769_v61, %v10769_v61 }
 0x689   : > { %v7564_v51 = vcombine.low %v3430_v17, %v3431_v49  ;;  %v7565_v3 = vcombine.high %v3430_v17, %v3431_v49  ;;  %3251 = vmatprep.subr.bf16.mxu1 %v7553_v52  ;;  %v12453_v56 = vmov 0   ;;  %v8857_v17 = vld [vmem:[%s9439_s6 + $0x78] sm:$0xff]   ;;  %v10859_v52 = vld [vmem:[%s9434_s16 + $0x5] ss:$0 sm:$0xff] }
 0x68a   : > { %v10778_v1 = vsub.f32 %v10699_v42, %v2974_v50  ;;  %v10781_v0 = vsub.f32 %v10692_v60, %v2975_v54  ;;  %v3026_v41 = vsel %vm682_vm1, %v3004_v39, 0.0  ;;  %v3029_v10 = vsel %vm682_vm1, %v3005_v16, 0.0  ;;  %3252 = vmatpush1.bf16.msra.mxu1 %v7552_v6  ;;  %3269 = vmatprep.mubr.bf16.mxu1 %v12453_v56 }
 0x68b   : > { %v2943_v35 = vpop.xlane.xlu1 %2942  ;;  %v2946_v8 = vpop.xlane.xlu0 %2945  ;;  %3027 = vadd.xlane.f32.xlu1 %v3026_v41  ;;  %3030 = vadd.xlane.f32.xlu0 %v3029_v10 }
 0x68c   : > { %v2976_v29 = vmul.f32 0.03125, %v2943_v35  ;;  %v2977_v25 = vmul.f32 0.03125, %v2946_v8  ;;  %v3006_v27 = vmul.f32 %v10778_v1, %v10778_v1  ;;  %v3007_v42 = vmul.f32 %v10781_v0, %v10781_v0  ;;  %3498 = vmatprep.mubr.bf16.mxu0 %v12453_v56  ;;  %7934 = vmatprep.subr.bf16.mxu1 %v8856_v24 }
 0x68e   : > { %v10790_v18 = vsub.f32 %v10701_v19, %v2976_v29  ;;  %v10793_v60 = vsub.f32 %v10709_v4, %v2977_v25  ;;  %v3032_v63 = vsel %vm682_vm1, %v3006_v27, 0.0  ;;  %v3035_v58 = vsel %vm682_vm1, %v3007_v42, 0.0 }
 0x68f   : > { %v2949_v5 = vpop.xlane.xlu1 %2948  ;;  %v2952_v14 = vpop.xlane.xlu0 %2951  ;;  %3033 = vadd.xlane.f32.xlu1 %v3032_v63  ;;  %3036 = vadd.xlane.f32.xlu0 %v3035_v58 }
 0x690   : > { %v2978_v31 = vmul.f32 0.03125, %v2949_v5  ;;  %v2979_v44 = vmul.f32 0.03125, %v2952_v14  ;;  %v3008_v22 = vmul.f32 %v10790_v18, %v10790_v18  ;;  %v3009_v19 = vmul.f32 %v10793_v60, %v10793_v60 }
 0x692   : > { %v10802_v21 = vsub.f32 %v10719_v15, %v2978_v31  ;;  %v10805_v4 = vsub.f32 %v10713_v9, %v2979_v44  ;;  %v3038_v62 = vsel %vm682_vm1, %v3008_v22, 0.0  ;;  %v3041_v53 = vsel %vm682_vm1, %v3009_v19, 0.0 }
 0x693   : > { %v2955_v12 = vpop.xlane.xlu1 %2954  ;;  %3039 = vadd.xlane.f32.xlu1 %v3038_v62  ;;  %3042 = vadd.xlane.f32.xlu0 %v3041_v53 }
 0x694   : > { %v2980_v57 = vmul.f32 0.03125, %v2955_v12  ;;  %v3010_v46 = vmul.f32 %v10802_v21, %v10802_v21  ;;  %v3011_v15 = vmul.f32 %v10805_v4, %v10805_v4 }
 0x696   : > { %v10814_v9 = vsub.f32 %v10721_v37, %v2980_v57  ;;  %v3044_v11 = vsel %vm682_vm1, %v3010_v46, 0.0  ;;  %v3047_v48 = vsel %vm682_vm1, %v3011_v15, 0.0  ;;  %v3432_v37 = vld [vmem:[%s9429_s12 + $0x88] sm:$0xff] }
 0x697   : > { %3045 = vadd.xlane.f32.xlu1 %v3044_v11  ;;  %3048 = vadd.xlane.f32.xlu0 %v3047_v48  ;;  %v7566_v45 = vcombine.low %v3432_v37, %v3433_v13  ;;  %v7567_v20 = vcombine.high %v3432_v37, %v3433_v13 }
 0x698   : > { %v3012_v47 = vmul.f32 %v10814_v9, %v10814_v9 }
 0x699   : > { %3478 = vmatprep.subr.bf16.mxu0 %v7567_v20 }
 0x69a   : > { %v3050_v32 = vsel %vm682_vm1, %v3012_v47, 0.0  ;;  %3479 = vmatpush1.bf16.msra.mxu0 %v7566_v45 }
 0x69b   : > { %3051 = vadd.xlane.f32.xlu1 %v3050_v32  ;;  %3480 = vmatprep.subr.bf16.mxu0 %v7565_v3 }
 0x69e   : > { %3481 = vmatpush1.bf16.msra.mxu0 %v7564_v51 }
 0x69f   : > { %7998 = vmatprep.subr.bf16.mxu0 %v8857_v17 }
 0x6e7   : > { %v2958_v7 = vpop.xlane.xlu0 %2957 }
 0x6e8   : > { %v2981_v50 = vmul.f32 0.03125, %v2958_v7 }
 0x6ea   : > { %v10832_v54 = vsub.f32 %v10731_v34, %v2981_v50 }
 0x6eb   : > { %v2961_v39 = vpop.xlane.xlu1 %2960  ;;  %v2964_v16 = vpop.xlane.xlu0 %2963 }
 0x6ec   : > { %v2982_v41 = vmul.f32 0.03125, %v2961_v39  ;;  %v2983_v10 = vmul.f32 0.03125, %v2964_v16  ;;  %v3013_v35 = vmul.f32 %v10832_v54, %v10832_v54 }
 0x6ee   : > { %v10837_v8 = vsub.f32 %v10739_v40, %v2982_v41  ;;  %v10840_v29 = vsub.f32 %v10733_v33, %v2983_v10  ;;  %v3053_v25 = vsel %vm682_vm1, %v3013_v35, 0.0 }
 0x6ef   : > { %v2967_v27 = vpop.xlane.xlu1 %2966  ;;  %3054 = vadd.xlane.f32.xlu0 %v3053_v25 }
 0x6f0   : > { %v2984_v42 = vmul.f32 0.03125, %v2967_v27  ;;  %v3014_v34 = vmul.f32 %v10837_v8, %v10837_v8  ;;  %v3015_v63 = vmul.f32 %v10840_v29, %v10840_v29 }
 0x6f2   : > { %v10848_v58 = vsub.f32 %v10741_v28, %v2984_v42  ;;  %v3056_v40 = vsel %vm682_vm1, %v3014_v34, 0.0  ;;  %v3059_v5 = vsel %vm682_vm1, %v3015_v63, 0.0 }
 0x6f3   : > { %3057 = vadd.xlane.f32.xlu1 %v3056_v40  ;;  %3060 = vadd.xlane.f32.xlu0 %v3059_v5 }
 0x6f4   : > { %v3016_v33 = vmul.f32 %v10848_v58, %v10848_v58 }
 0x6f6   : > { %v3062_v14 = vsel %vm682_vm1, %v3016_v33, 0.0  ;;  %v8858_v33 = vld [vmem:[%s9439_s6 + $0xb8] sm:$0xff]  }
 0x6f7   : > { %3063 = vadd.xlane.f32.xlu1 %v3062_v14  ;;  %v8859_v14 = vld [vmem:[%s9439_s6 + $0x38] sm:$0xff]  }
 0x70c   : > { %v3019_v31 = vpop.xlane.xlu0 %3018 }
 0x70d   : > { %v3065_v44 = vmul.f32 0.03125, %v3019_v31 }
 0x70f   : > { %v3081_v22 = vadd.f32 1e-05, %v3065_v44 }
 0x710   : > { %v3022_v19 = vpop.xlane.xlu1 %3021  ;;  %v3025_v62 = vpop.xlane.xlu0 %3024 }
 0x711   : > { %9240 = vrsqrt.f32 %v3081_v22  ;;  %v3066_v28 = vmul.f32 0.03125, %v3022_v19  ;;  %v3067_v53 = vmul.f32 0.03125, %v3025_v62  ;;  %v8860_v22 = vld [vmem:[%s9439_s6 + $0xf0] sm:$0xff]  }
 0x712   : > { %v8861_v19 = vld [vmem:[%s9439_s6 + $0x70] sm:$0xff]  }
 0x713   : > { %v3082_v12 = vadd.f32 1e-05, %v3066_v28  ;;  %v3083_v57 = vadd.f32 1e-05, %v3067_v53 }
 0x714   : > { %v3028_v46 = vpop.xlane.xlu1 %3027  ;;  %v3031_v15 = vpop.xlane.xlu0 %3030 }
 0x715   : > { %9242 = vrsqrt.f32 %v3082_v12  ;;  %v3068_v11 = vmul.f32 0.03125, %v3028_v46  ;;  %v3069_v47 = vmul.f32 0.03125, %v3031_v15  ;;  %v8862_v46 = vld [vmem:[%s9439_s6 + $0xb0] sm:$0xff]  }
 0x716   : > { %9244 = vrsqrt.f32 %v3083_v57  ;;  %v8863_v15 = vld [vmem:[%s9439_s6 + $0x30] sm:$0xff]  }
 0x717   : > { %v3084_v48 = vadd.f32 1e-05, %v3068_v11  ;;  %v3085_v30 = vadd.f32 1e-05, %v3069_v47  ;;  %v8864_v11 = vld [vmem:[%s9439_s6 + $0xe8] sm:$0xff]  }
 0x718   : > { %v3034_v32 = vpop.xlane.xlu1 %3033  ;;  %v3037_v38 = vpop.xlane.xlu0 %3036 }
 0x719   : > { %9246 = vrsqrt.f32 %v3084_v48  ;;  %v3070_v55 = vmul.f32 0.03125, %v3034_v32  ;;  %v3071_v20 = vmul.f32 0.03125, %v3037_v38  ;;  %v8865_v48 = vld [vmem:[%s9439_s6 + $0x68] sm:$0xff]  }
 0x71a   : > { %v8866_v38 = vld [vmem:[%s9439_s6 + $0xa8] sm:$0xff]  }
 0x71b   : > { %v3086_v37 = vadd.f32 1e-05, %v3070_v55  ;;  %v3087_v51 = vadd.f32 1e-05, %v3071_v20 }
 0x71c   : > { %v3040_v13 = vpop.xlane.xlu1 %3039  ;;  %v3043_v39 = vpop.xlane.xlu0 %3042 }
 0x71d   : > { %9248 = vrsqrt.f32 %v3086_v37  ;;  %v3072_v23 = vmul.f32 0.03125, %v3040_v13  ;;  %v3073_v25 = vmul.f32 0.03125, %v3043_v39  ;;  %v8867_v13 = vld [vmem:[%s9439_s6 + $0x28] sm:$0xff]  }
 0x71e   : > { %v9241_v45 = vpop.eup %9240  ;;  %9250 = vrsqrt.f32 %v3085_v30 }
 0x71f   : > { %v3113_v26 = vmul.f32 %v9241_v45, %v10750_v36  ;;  %v3088_v49 = vadd.f32 1e-05, %v3072_v23  ;;  %v10864_v36 = vld [vmem:[%s9434_s16 + $0x6] ss:$0 sm:$0xff] }
 0x720   : > { %v3046_v3 = vpop.xlane.xlu1 %3045  ;;  %v3049_v28 = vpop.xlane.xlu0 %3048  ;;  %v8868_v45 = vld [vmem:[%s9439_s6 + $0xe0] sm:$0xff]  }
 0x721   : > { %v3133_v7 = vmul.f32 %v10859_v52, %v3113_v26  ;;  %9252 = vrsqrt.f32 %v3088_v49  ;;  %v3074_v10 = vmul.f32 0.03125, %v3046_v3  ;;  %v8872_v3 = vld [vmem:[%s9439_s6 + $0xd8] sm:$0xff]  }
 0x722   : > { %v9243_v6 = vpop.eup %9242  ;;  %9254 = vrsqrt.f32 %v3087_v51  ;;  %v8871_v51 = vld [vmem:[%s9439_s6 + $0x20] sm:$0xff]  }
 0x723   : > { %v3114_v50 = vmul.f32 %v9243_v6, %v10755_v43  ;;  %v9245_v16 = vpop.eup %9244  ;;  %v10868_v27 = vadd.f32 %v10864_v36, %v3133_v7  ;;  %v3090_v5 = vadd.f32 1e-05, %v3074_v10  ;;  %v8870_v6 = vld [vmem:[%s9439_s6 + $0xa0] sm:$0xff]   ;;  %v8873_v7 = vld [vmem:[%s9439_s6 + $0x58] sm:$0xff]  }
 0x724   : > { %v3115_v42 = vmul.f32 %v9245_v16, %v10758_v59  ;;  %v3052_v44 = vpop.xlane.xlu1 %3051  ;;  %v3089_v59 = vadd.f32 1e-05, %v3073_v25  ;;  %v8875_v10 = vld [vmem:[%s9439_s6 + $0x18] sm:$0xff]  }
 0x725   : > { %v3134_v41 = vmul.f32 %v10859_v52, %v3114_v50  ;;  %9256 = vrsqrt.f32 %v3090_v5  ;;  %v3076_v57 = vmul.f32 0.03125, %v3052_v44 }
 0x726   : > { %v9247_v35 = vpop.eup %9246  ;;  %v3135_v62 = vmul.f32 %v10859_v52, %v3115_v42  ;;  %9258 = vrsqrt.f32 %v3089_v59 }
 0x727   : > { %v10871_v43 = vadd.f32 %v10864_v36, %v3134_v41  ;;  %v3116_v34 = vmul.f32 %v9247_v35, %v10766_v2  ;;  %v3092_v37 = vadd.f32 1e-05, %v3076_v57  ;;  %v8874_v41 = vld [vmem:[%s9439_s6 + $0x98] sm:$0xff]   ;;  %v8876_v57 = vld [vmem:[%s9439_s6 + $0xd0] sm:$0xff]  }
 0x728   : > { %v10900_v47 = vadd.f32 %v10864_v36, %v3135_v62 }
 0x729   : > { %v10877_v63 = vpack.c.bf16 %v10871_v43, %v10868_v27  ;;  %v3136_v40 = vmul.f32 %v10859_v52, %v3116_v34  ;;  %9260 = vrsqrt.f32 %v3092_v37 }
 0x72a   : > { %v9249_v31 = vpop.eup %9248 }
 0x72b   : > { %7556 = vmatmul.mubr.msk.bf16.vlgmr.msra.gmra.mxu1 %vm682_vm1, %v10877_v63  ;;  %7568 = vmatmul.mubr.msk.bf16.vlgmr.msra.gmra.mxu0 %vm682_vm1, %v10877_v63  ;;  %v9251_v2 = vpop.eup %9250  ;;  %v10892_v53 = vadd.f32 %v10864_v36, %v3136_v40  ;;  %v3118_v12 = vmul.f32 %v9249_v31, %v10778_v1  ;;  %v3075_v1 = vmul.f32 0.03125, %v3049_v28 }
 0x72c   : > { %3279 = vmatprep.mubr.bf16.mxu1 %v12453_v56  ;;  %3508 = vmatprep.mubr.bf16.mxu0 %v12453_v56  ;;  %v3117_v32 = vmul.f32 %v9251_v2, %v10769_v61  ;;  %v8869_v61 = vld [vmem:[%s9439_s6 + $0x60] sm:$0xff]  }
 0x72d   : > { %7935 = vmatpush3.bf16.msra.mxu1 %v8858_v33  ;;  %7999 = vmatpush3.bf16.msra.mxu0 %v8859_v14  ;;  %v10905_v55 = vpack.c.bf16 %v10892_v53, %v10900_v47  ;;  %v3138_v30 = vmul.f32 %v10859_v52, %v3118_v12  ;;  %v3091_v24 = vadd.f32 1e-05, %v3075_v1  ;;  %v8882_v1 = vld [vmem:[%s9439_s6 + $0x88] sm:$0xff]  }
 0x72e   : > { %7936 = vmatprep.subr.bf16.mxu1 %v8860_v22  ;;  %8000 = vmatprep.subr.bf16.mxu0 %v8861_v19  ;;  %v9253_v23 = vpop.eup %9252  ;;  %v3137_v26 = vmul.f32 %v10859_v52, %v3117_v32  ;;  %v8881_v32 = vld [vmem:[%s9439_s6 + $0x48] sm:$0xff]  }
 0x72f   : > { %v9255_v20 = vpop.eup %9254  ;;  %v10920_v17 = vadd.f32 %v10864_v36, %v3138_v30  ;;  %v3120_v49 = vmul.f32 %v9253_v23, %v10790_v18  ;;  %9262 = vrsqrt.f32 %v3091_v24  ;;  %v8883_v30 = vld [vmem:[%s9439_s6 + $0x8] sm:$0xff]   ;;  %v8886_v23 = vld [vmem:[%s9439_s6 + $0x80] sm:$0xff]  }
 0x730   : > { %v10928_v50 = vadd.f32 %v10864_v36, %v3137_v26  ;;  %v3119_v39 = vmul.f32 %v9255_v20, %v10781_v0 }
 0x731   : > { %7937 = vmatpush3.bf16.msra.mxu1 %v8862_v46  ;;  %8001 = vmatpush3.bf16.msra.mxu0 %v8863_v15  ;;  %v3140_v16 = vmul.f32 %v10859_v52, %v3120_v49  ;;  %v8877_v46 = vld [vmem:[%s9439_s6 + $0x50] sm:$0xff]  }
 0x732   : > { %7938 = vmatprep.subr.bf16.mxu1 %v8864_v11  ;;  %8002 = vmatprep.subr.bf16.mxu0 %v8865_v48  ;;  %v10933_v18 = vpack.c.bf16 %v10920_v17, %v10928_v50  ;;  %v9257_v35 = vpop.eup %9256  ;;  %v3139_v25 = vmul.f32 %v10859_v52, %v3119_v39  ;;  %v8878_v15 = vld [vmem:[%s9439_s6 + $0x90] sm:$0xff]   ;;  %v8880_v48 = vld [vmem:[%s9439_s6 + $0xc8] sm:$0xff]  }
 0x733   : > { %7557 = vmatmul.mubr.msk.bf16.gmra.mxu1 %vm682_vm1, %v10905_v55  ;;  %7569 = vmatmul.mubr.msk.bf16.gmra.mxu0 %vm682_vm1, %v10905_v55  ;;  %v9259_v0 = vpop.eup %9258  ;;  %v10946_v42 = vadd.f32 %v10864_v36, %v3140_v16  ;;  %v3122_v34 = vmul.f32 %v9257_v35, %v10802_v21  ;;  %v8879_v11 = vld [vmem:[%s9439_s6 + $0x10] sm:$0xff]  }
 0x734   : > { %3289 = vmatprep.mubr.bf16.mxu1 %v12453_v56  ;;  %3518 = vmatprep.mubr.bf16.mxu0 %v12453_v56  ;;  %v10950_v40 = vadd.f32 %v10864_v36, %v3139_v25  ;;  %v3121_v5 = vmul.f32 %v9259_v0, %v10793_v60 }
 0x735   : > { %7939 = vmatpush3.bf16.msra.mxu1 %v8866_v38  ;;  %8003 = vmatpush3.bf16.msra.mxu0 %v8867_v13  ;;  %v3142_v14 = vmul.f32 %v10859_v52, %v3122_v34  ;;  %v8884_v38 = vld [vmem:[%s9439_s6 + $0xc0] sm:$0xff]  }
 0x736   : > { %7940 = vmatprep.subr.bf16.mxu1 %v8868_v45  ;;  %8004 = vmatprep.subr.bf16.mxu0 %v8869_v61  ;;  %v10955_v33 = vpack.c.bf16 %v10946_v42, %v10950_v40  ;;  %v9261_v31 = vpop.eup %9260  ;;  %v3141_v44 = vmul.f32 %v10859_v52, %v3121_v5  ;;  %v8885_v13 = vld [vmem:[%s9439_s6 + $0x40] sm:$0xff]  }
 0x737   : > { %v10966_v60 = vadd.f32 %v10864_v36, %v3142_v14  ;;  %v3124_v22 = vmul.f32 %v9261_v31, %v10814_v9  ;;  %v8887_v61 = vld [vmem:[%s9439_s6] sm:$0xff]  }
 0x738   : > { %v10970_v19 = vadd.f32 %v10864_v36, %v3141_v44 }
 0x739   : > { %7941 = vmatpush3.bf16.msra.mxu1 %v8870_v6  ;;  %8005 = vmatpush3.bf16.msra.mxu0 %v8871_v51  ;;  %v3144_v2 = vmul.f32 %v10859_v52, %v3124_v22 }
 0x73a   : > { %7942 = vmatprep.subr.bf16.mxu1 %v8872_v3  ;;  %8006 = vmatprep.subr.bf16.mxu0 %v8873_v7  ;;  %v10975_v59 = vpack.c.bf16 %v10966_v60, %v10970_v19 }
 0x73b   : > { %7558 = vmatmul.mubr.msk.bf16.gmra.mxu1 %vm682_vm1, %v10933_v18  ;;  %7570 = vmatmul.mubr.msk.bf16.gmra.mxu0 %vm682_vm1, %v10933_v18 }
 0x73c   : > { %3299 = vmatprep.mubr.bf16.mxu1 %v12453_v56  ;;  %3528 = vmatprep.mubr.bf16.mxu0 %v12453_v56  ;;  %v9263_v21 = vpop.eup %9262 }
 0x73d   : > { %7943 = vmatpush3.bf16.msra.mxu1 %v8874_v41  ;;  %8007 = vmatpush3.bf16.msra.mxu0 %v8875_v10  ;;  %v3123_v62 = vmul.f32 %v9263_v21, %v10805_v4  ;;  %v10986_v4 = vadd.f32 %v10864_v36, %v3144_v2  ;;  %v11052_v2 = vld [vmem:[%s9429_s12 + $0x90] sm:$0xff] }
 0x73e   : > { %7944 = vmatprep.subr.bf16.mxu1 %v8876_v57  ;;  %8008 = vmatprep.subr.bf16.mxu0 %v8877_v46  ;;  %v12545_v46 = vld [vmem:[#allocation4_spill] sm:$0xff] }
 0x73f   : > { %v3143_v28 = vmul.f32 %v10859_v52, %v3123_v62 }
 0x741   : > { %v10989_v9 = vadd.f32 %v10864_v36, %v3143_v28  ;;  %7945 = vmatpush3.bf16.msra.mxu1 %v8878_v15  ;;  %8009 = vmatpush3.bf16.msra.mxu0 %v8879_v11  ;;  %v11055_v28 = vld [vmem:[%s9429_s12 + $0xd0] sm:$0xff]  ;;  %v11062_v15 = vsub.s32 1, %v12545_v46  ;;  %v3181_v11 = vld [vmem:[%s9444_s20] sm:$0x3] }
 0x742   : > { %7946 = vmatprep.subr.bf16.mxu1 %v8880_v48  ;;  %8010 = vmatprep.subr.bf16.mxu0 %v8881_v32  ;;  %v7610_v57 = vcombine.low %v11052_v2, %v11055_v28  ;;  %v3434_v48 = vld [vmem:[%s9444_s20 + $0x2] sm:$0x3] }
 0x743   : > { %7559 = vmatmul.mubr.msk.bf16.gmra.mxu1 %vm682_vm1, %v10955_v33  ;;  %7571 = vmatmul.mubr.msk.bf16.gmra.mxu0 %vm682_vm1, %v10955_v33  ;;  %v10993_v12 = vpack.c.bf16 %v10986_v4, %v10989_v9 }
 0x744   : > { %3309 = vmatprep.mubr.bf16.mxu1 %v12453_v56  ;;  %3538 = vmatprep.mubr.bf16.mxu0 %v12453_v56 }
 0x745   : > { %7947 = vmatpush3.bf16.msra.mxu1 %v8882_v1  ;;  %8011 = vmatpush3.bf16.msra.mxu0 %v8883_v30  ;;  %v11067_v30 = vrot.slane %v3181_v11, %v11062_v15 }
 0x746   : > { %7948 = vmatprep.subr.bf16.mxu1 %v8884_v38  ;;  %8012 = vmatprep.subr.bf16.mxu0 %v8885_v13  ;;  %v12546_v38 = vld [vmem:[#allocation5_spill] sm:$0xff] }
 0x747   : > { %v11073_v13 = vrot.slane %v3181_v11, %v12546_v38 }
 0x749   : > { %7949 = vmatpush3.bf16.msra.mxu1 %v8886_v23  ;;  %8013 = vmatpush3.bf16.msra.mxu0 %v8887_v61  ;;  %v11076_v23 = vrot.slane %v3434_v48, %v12546_v38 }
 0x74b   : > { %7560 = vmatmul.mubr.msk.bf16.gmra.mxu1 %vm682_vm1, %v10975_v59  ;;  %7572 = vmatmul.mubr.msk.bf16.gmra.mxu0 %vm682_vm1, %v10975_v59 }
 0x74c   : > { %3319 = vmatprep.mubr.bf16.mxu1 %v12453_v56  ;;  %3548 = vmatprep.mubr.bf16.mxu0 %v12453_v56 }
 0x753   : > { %7561 = vmatmul.mubr.msk.bf16.gmra.mxu1 %vm682_vm1, %v10993_v12  ;;  %7573 = vmatmul.mubr.msk.bf16.gmra.mxu0 %vm682_vm1, %v10993_v12 }
 0x754   : > { %3329 = vmatprep.mubr.bf16.mxu1 %v12453_v56  ;;  %3558 = vmatprep.mubr.bf16.mxu0 %v12453_v56 }
 0x778   : > { %v3055_v37 = vpop.xlane.xlu0 %3054 }
 0x779   : > { %v3077_v45 = vmul.f32 0.03125, %v3055_v37  ;;  %v11070_v37 = vrot.slane %v3434_v48, %v11062_v15 }
 0x77b   : > { %v3093_v20 = vadd.f32 1e-05, %v3077_v45 }
 0x77c   : > { %v3058_v26 = vpop.xlane.xlu1 %3057  ;;  %v3061_v24 = vpop.xlane.xlu0 %3060 }
 0x77d   : > { %9264 = vrsqrt.f32 %v3093_v20  ;;  %v3078_v49 = vmul.f32 0.03125, %v3058_v26  ;;  %v3079_v6 = vmul.f32 0.03125, %v3061_v24 }
 0x77f   : > { %v3094_v51 = vadd.f32 1e-05, %v3078_v49  ;;  %v3095_v3 = vadd.f32 1e-05, %v3079_v6 }
 0x780   : > { %v3064_v7 = vpop.xlane.xlu1 %3063 }
 0x781   : > { %9266 = vrsqrt.f32 %v3094_v51  ;;  %v3080_v39 = vmul.f32 0.03125, %v3064_v7 }
 0x782   : > { %9268 = vrsqrt.f32 %v3095_v3 }
 0x783   : > { %v3096_v16 = vadd.f32 1e-05, %v3080_v39 }
 0x785   : > { %9270 = vrsqrt.f32 %v3096_v16 }
 0x78a   : > { %v9265_v41 = vpop.eup %9264 }
 0x78b   : > { %v3125_v10 = vmul.f32 %v9265_v41, %v10832_v54 }
 0x78d   : > { %v3145_v25 = vmul.f32 %v10859_v52, %v3125_v10 }
 0x78e   : > { %v9267_v35 = vpop.eup %9266 }
 0x78f   : > { %v3126_v0 = vmul.f32 %v9267_v35, %v10837_v8  ;;  %v9269_v34 = vpop.eup %9268  ;;  %v11018_v31 = vadd.f32 %v10864_v36, %v3145_v25 }
 0x790   : > { %v3127_v21 = vmul.f32 %v9269_v34, %v10840_v29 }
 0x791   : > { %v3146_v5 = vmul.f32 %v10859_v52, %v3126_v0 }
 0x792   : > { %v9271_v14 = vpop.eup %9270  ;;  %v3147_v62 = vmul.f32 %v10859_v52, %v3127_v21 }
 0x793   : > { %v11021_v44 = vadd.f32 %v10864_v36, %v3146_v5  ;;  %v3128_v54 = vmul.f32 %v9271_v14, %v10848_v58  ;;  %v4045_v5 = vld [vmem:[%s9429_s12 + $0x10] sm:$0xff] }
 0x794   : > { %v11041_v58 = vadd.f32 %v10864_v36, %v3147_v62  ;;  %v4046_v14 = vld [vmem:[%s9429_s12 + $0x50] sm:$0xff] }
 0x795   : > { %v11027_v22 = vpack.c.bf16 %v11021_v44, %v11018_v31  ;;  %v3148_v8 = vmul.f32 %v10859_v52, %v3128_v54 }
 0x796   : > { %12544 = vst [vmem:[#allocation25_spill] sm:$0xff] %v11041_v58 }
 0x797   : > { %7562 = vmatmul.mubr.msk.bf16.gmra.mxu1 %vm682_vm1, %v11027_v22  ;;  %7574 = vmatmul.mubr.msk.bf16.gmra.mxu0 %vm682_vm1, %v11027_v22  ;;  %v11038_v29 = vadd.f32 %v10864_v36, %v3148_v8  ;;  %v7611_v36 = vcombine.high %v11052_v2, %v11055_v28 }
 0x798   : > { %3339 = vmatprep.mubr.bf16.mxu1 %v12453_v56  ;;  %3568 = vmatprep.mubr.bf16.mxu0 %v12453_v56 }
 0x799   : > { %12543 = vst [vmem:[#allocation24_spill] sm:$0xff] %v11038_v29  ;;  %v11045_v52 = vpack.c.bf16 %v11038_v29, %v11041_v58  ;;  %4093 = vmatprep.subr.bf16.mxu1 %v7611_v36 }
 0x79f   : > { %7563 = vmatmul.mubr.msk.bf16.gmra.mxu1 %vm682_vm1, %v11045_v52  ;;  %7575 = vmatmul.mubr.msk.bf16.gmra.mxu0 %vm682_vm1, %v11045_v52 }
 0x7eb   : > { %v3271_v32 = vpop.f32.mrf.mxu1  ;;  %v3500_v1 = vpop.f32.mrf.mxu0 }
 0x7ec   : > { %v3272_v3 = vadd.f32 %v3271_v32, %v11073_v13  ;;  %v3501_v7 = vadd.f32 %v3500_v1, %v11076_v23  ;;  %v11089_v32 = vld [vmem:[%s9429_s12 + $0x98] sm:$0xff] }
 0x7ed   : > { %v3273_v45 = vpop.f32.mrf.mxu1  ;;  %v3502_v61 = vpop.f32.mrf.mxu0  ;;  %v11092_v1 = vld [vmem:[%s9429_s12 + $0xd8] sm:$0xff] }
 0x7ee   : > { %v3274_v24 = vadd.f32 %v3273_v45, %v11067_v30  ;;  %v3503_v49 = vadd.f32 %v3502_v61, %v11070_v37  ;;  %v3350_v36 = vmax.f32 %v3272_v3, 0.0  ;;  %v3579_v46 = vmax.f32 %v3501_v7, 0.0 }
 0x7ef   : > { %v3275_v20 = vpop.f32.mrf.mxu1  ;;  %v3504_v26 = vpop.f32.mrf.mxu0 }
 0x7f0   : > { %v3276_v6 = vadd.f32 %v3275_v20, %v11073_v13  ;;  %v3505_v51 = vadd.f32 %v3504_v26, %v11076_v23  ;;  %v3351_v21 = vmax.f32 %v3274_v24, 0.0  ;;  %v3580_v54 = vmax.f32 %v3503_v49, 0.0 }
 0x7f1   : > { %v3277_v39 = vpop.f32.mrf.mxu1  ;;  %v3506_v16 = vpop.f32.mrf.mxu0  ;;  %v7609_v20 = vcombine.high %v4045_v5, %v4046_v14  ;;  %v7638_v49 = vcombine.low %v11089_v32, %v11092_v1 }
 0x7f2   : > { %v3278_v41 = vadd.f32 %v3277_v39, %v11067_v30  ;;  %v3507_v10 = vadd.f32 %v3506_v16, %v11070_v37  ;;  %v3352_v35 = vmax.f32 %v3276_v6, 0.0  ;;  %v3581_v25 = vmax.f32 %v3505_v51, 0.0 }
 0x7f3   : > { %v3281_v0 = vpop.f32.mrf.mxu1  ;;  %v3510_v34 = vpop.f32.mrf.mxu0 }
 0x7f4   : > { %v3353_v8 = vmax.f32 %v3278_v41, 0.0  ;;  %v3582_v62 = vmax.f32 %v3507_v10, 0.0  ;;  %v3382_v26 = vpack.c.bf16 %v3352_v35, %v3350_v36  ;;  %v3611_v6 = vpack.c.bf16 %v3581_v25, %v3579_v46 }
 0x7f5   : > { %v3283_v11 = vpop.f32.mrf.mxu1  ;;  %v3512_v48 = vpop.f32.mrf.mxu0  ;;  %v3282_v41 = vadd.f32 %v3281_v0, %v11073_v13  ;;  %v3511_v10 = vadd.f32 %v3510_v34, %v11076_v23  ;;  %v7639_v0 = vcombine.high %v11089_v32, %v11092_v1  ;;  %v8890_v32 = vld [vmem:[%s9439_s6 + $0x170] sm:$0xff]  }
 0x7f6   : > { %v3612_v45 = vpack.c.bf16 %v3582_v62, %v3580_v54  ;;  %v3383_v61 = vpack.c.bf16 %v3353_v8, %v3351_v21  ;;  %v3284_v51 = vadd.f32 %v3283_v11, %v11067_v30  ;;  %v3513_v3 = vadd.f32 %v3512_v48, %v11070_v37  ;;  %v8891_v1 = vld [vmem:[%s9439_s6 + $0x130] sm:$0xff]  }
 0x7f7   : > { %v3285_v39 = vpop.f32.mrf.mxu1  ;;  %v3514_v24 = vpop.f32.mrf.mxu0  ;;  %v7608_v8 = vcombine.low %v4045_v5, %v4046_v14 }
 0x7f8   : > { %v3286_v7 = vadd.f32 %v3285_v39, %v11073_v13  ;;  %v3515_v16 = vadd.f32 %v3514_v24, %v11076_v23  ;;  %3787 = vmatprep.mubr.bf16.mxu1 %v3612_v45  ;;  %3980 = vmatprep.mubr.bf16.mxu0 %v3383_v61  ;;  %v3355_v34 = vmax.f32 %v3284_v51, 0.0  ;;  %v3584_v48 = vmax.f32 %v3513_v3, 0.0 }
 0x7f9   : > { %v3287_v35 = vpop.f32.mrf.mxu1  ;;  %v3516_v25 = vpop.f32.mrf.mxu0  ;;  %3788 = vmatmul.mubr.bf16.vlgmr.msra.gmra.mxu1 %v3611_v6  ;;  %3981 = vmatmul.mubr.bf16.vlgmr.msra.gmra.mxu0 %v3382_v26  ;;  %v3354_v26 = vmax.f32 %v3282_v41, 0.0  ;;  %v3583_v6 = vmax.f32 %v3511_v10, 0.0 }
 0x7fa   : > { %v3288_v21 = vadd.f32 %v3287_v35, %v11067_v30  ;;  %v3517_v54 = vadd.f32 %v3516_v25, %v11070_v37  ;;  %4094 = vmatpush1.bf16.msra.mxu1 %v7610_v57  ;;  %v3356_v62 = vmax.f32 %v3286_v7, 0.0  ;;  %v3585_v36 = vmax.f32 %v3515_v16, 0.0 }
 0x7fb   : > { %v3291_v46 = vpop.f32.mrf.mxu1  ;;  %v3520_v11 = vpop.f32.mrf.mxu0  ;;  %4095 = vmatprep.subr.bf16.mxu1 %v7609_v20 }
 0x7fc   : > { %v3357_v45 = vmax.f32 %v3288_v21, 0.0  ;;  %v3586_v61 = vmax.f32 %v3517_v54, 0.0  ;;  %v3384_v28 = vpack.c.bf16 %v3356_v62, %v3354_v26  ;;  %v3613_v57 = vpack.c.bf16 %v3585_v36, %v3583_v6 }
 0x7fd   : > { %v3293_v39 = vpop.f32.mrf.mxu1  ;;  %v3522_v24 = vpop.f32.mrf.mxu0  ;;  %v3292_v16 = vadd.f32 %v3291_v46, %v11073_v13  ;;  %v3521_v41 = vadd.f32 %v3520_v11, %v11076_v23 }
 0x7fe   : > { %v3614_v35 = vpack.c.bf16 %v3586_v61, %v3584_v48  ;;  %v3385_v2 = vpack.c.bf16 %v3357_v45, %v3355_v34  ;;  %4096 = vmatpush1.bf16.msra.mxu1 %v7608_v8  ;;  %v3294_v5 = vadd.f32 %v3293_v39, %v11067_v30  ;;  %v3523_v7 = vadd.f32 %v3522_v24, %v11070_v37 }
 0x7ff   : > { %v3295_v14 = vpop.f32.mrf.mxu1  ;;  %v3524_v20 = vpop.f32.mrf.mxu0  ;;  %4531 = vmatprep.subr.bf16.mxu1 %v7639_v0  ;;  %v3358_v26 = vmax.f32 %v3292_v16, 0.0  ;;  %v3587_v46 = vmax.f32 %v3521_v41, 0.0 }
 0x800   : > { %v3296_v51 = vadd.f32 %v3295_v14, %v11073_v13  ;;  %v3525_v3 = vadd.f32 %v3524_v20, %v11076_v23  ;;  %3795 = vmatprep.mubr.bf16.mxu1 %v3614_v35  ;;  %3988 = vmatprep.mubr.bf16.mxu0 %v3385_v2  ;;  %v3359_v34 = vmax.f32 %v3294_v5, 0.0  ;;  %v3588_v48 = vmax.f32 %v3523_v7, 0.0 }
 0x801   : > { %v3297_v10 = vpop.f32.mrf.mxu1  ;;  %v3526_v25 = vpop.f32.mrf.mxu0  ;;  %3796 = vmatmul.mubr.bf16.gmra.mxu1 %v3613_v57  ;;  %3989 = vmatmul.mubr.bf16.gmra.mxu0 %v3384_v28 }
 0x802   : > { %v3298_v21 = vadd.f32 %v3297_v10, %v11067_v30  ;;  %v3527_v54 = vadd.f32 %v3526_v25, %v11070_v37  ;;  %v3360_v8 = vmax.f32 %v3296_v51, 0.0  ;;  %v3589_v62 = vmax.f32 %v3525_v3, 0.0 }
 0x803   : > { %v3301_v36 = vpop.f32.mrf.mxu1  ;;  %v3530_v0 = vpop.f32.mrf.mxu0 }
 0x804   : > { %v3361_v45 = vmax.f32 %v3298_v21, 0.0  ;;  %v3590_v61 = vmax.f32 %v3527_v54, 0.0  ;;  %v3386_v35 = vpack.c.bf16 %v3360_v8, %v3358_v26  ;;  %v3615_v2 = vpack.c.bf16 %v3589_v62, %v3587_v46 }
 0x805   : > { %v3303_v6 = vpop.f32.mrf.mxu1  ;;  %v3532_v11 = vpop.f32.mrf.mxu0  ;;  %v3302_v7 = vadd.f32 %v3301_v36, %v11073_v13  ;;  %v3531_v3 = vadd.f32 %v3530_v0, %v11076_v23 }
 0x806   : > { %v3616_v39 = vpack.c.bf16 %v3590_v61, %v3588_v48  ;;  %v3387_v24 = vpack.c.bf16 %v3361_v45, %v3359_v34  ;;  %v3304_v28 = vadd.f32 %v3303_v6, %v11067_v30  ;;  %v3533_v20 = vadd.f32 %v3532_v11, %v11070_v37 }
 0x807   : > { %v3305_v57 = vpop.f32.mrf.mxu1  ;;  %v3534_v14 = vpop.f32.mrf.mxu0  ;;  %v3362_v26 = vmax.f32 %v3302_v7, 0.0  ;;  %v3591_v36 = vmax.f32 %v3531_v3, 0.0 }
 0x808   : > { %v3306_v51 = vadd.f32 %v3305_v57, %v11073_v13  ;;  %v3535_v5 = vadd.f32 %v3534_v14, %v11076_v23  ;;  %3803 = vmatprep.mubr.bf16.mxu1 %v3616_v39  ;;  %3996 = vmatprep.mubr.bf16.mxu0 %v3387_v24  ;;  %v3363_v34 = vmax.f32 %v3304_v28, 0.0  ;;  %v3592_v48 = vmax.f32 %v3533_v20, 0.0 }
 0x809   : > { %v3307_v16 = vpop.f32.mrf.mxu1  ;;  %v3536_v41 = vpop.f32.mrf.mxu0  ;;  %3804 = vmatmul.mubr.bf16.gmra.mxu1 %v3615_v2  ;;  %3997 = vmatmul.mubr.bf16.gmra.mxu0 %v3386_v35 }
 0x80a   : > { %v3308_v10 = vadd.f32 %v3307_v16, %v11067_v30  ;;  %v3537_v25 = vadd.f32 %v3536_v41, %v11070_v37  ;;  %v3364_v21 = vmax.f32 %v3306_v51, 0.0  ;;  %v3593_v54 = vmax.f32 %v3535_v5, 0.0 }
 0x80b   : > { %v3311_v8 = vpop.f32.mrf.mxu1  ;;  %v3540_v62 = vpop.f32.mrf.mxu0 }
 0x80c   : > { %v3365_v45 = vmax.f32 %v3308_v10, 0.0  ;;  %v3594_v61 = vmax.f32 %v3537_v25, 0.0  ;;  %v3388_v39 = vpack.c.bf16 %v3364_v21, %v3362_v26  ;;  %v3617_v24 = vpack.c.bf16 %v3593_v54, %v3591_v36 }
 0x80d   : > { %v3313_v46 = vpop.f32.mrf.mxu1  ;;  %v3542_v0 = vpop.f32.mrf.mxu0  ;;  %v3312_v20 = vadd.f32 %v3311_v8, %v11073_v13  ;;  %v3541_v5 = vadd.f32 %v3540_v62, %v11076_v23 }
 0x80e   : > { %v3618_v6 = vpack.c.bf16 %v3594_v61, %v3592_v48  ;;  %v3389_v11 = vpack.c.bf16 %v3365_v45, %v3363_v34  ;;  %v3314_v35 = vadd.f32 %v3313_v46, %v11067_v30  ;;  %v3543_v14 = vadd.f32 %v3542_v0, %v11070_v37 }
 0x80f   : > { %v3315_v2 = vpop.f32.mrf.mxu1  ;;  %v3544_v57 = vpop.f32.mrf.mxu0  ;;  %v3366_v26 = vmax.f32 %v3312_v20, 0.0  ;;  %v3595_v8 = vmax.f32 %v3541_v5, 0.0 }
 0x810   : > { %v3316_v51 = vadd.f32 %v3315_v2, %v11073_v13  ;;  %v3545_v28 = vadd.f32 %v3544_v57, %v11076_v23  ;;  %3811 = vmatprep.mubr.bf16.mxu1 %v3618_v6  ;;  %4004 = vmatprep.mubr.bf16.mxu0 %v3389_v11  ;;  %v3367_v34 = vmax.f32 %v3314_v35, 0.0  ;;  %v3596_v48 = vmax.f32 %v3543_v14, 0.0 }
 0x811   : > { %v3317_v7 = vpop.f32.mrf.mxu1  ;;  %v3546_v3 = vpop.f32.mrf.mxu0  ;;  %3812 = vmatmul.mubr.bf16.gmra.mxu1 %v3617_v24  ;;  %4005 = vmatmul.mubr.bf16.gmra.mxu0 %v3388_v39 }
 0x812   : > { %v3318_v16 = vadd.f32 %v3317_v7, %v11067_v30  ;;  %v3547_v41 = vadd.f32 %v3546_v3, %v11070_v37  ;;  %v3368_v10 = vmax.f32 %v3316_v51, 0.0  ;;  %v3597_v25 = vmax.f32 %v3545_v28, 0.0 }
 0x813   : > { %v3321_v21 = vpop.f32.mrf.mxu1  ;;  %v3550_v54 = vpop.f32.mrf.mxu0 }
 0x814   : > { %v3369_v45 = vmax.f32 %v3318_v16, 0.0  ;;  %v3598_v61 = vmax.f32 %v3547_v41, 0.0  ;;  %v3390_v6 = vpack.c.bf16 %v3368_v10, %v3366_v26  ;;  %v3619_v11 = vpack.c.bf16 %v3597_v25, %v3595_v8 }
 0x815   : > { %v3323_v36 = vpop.f32.mrf.mxu1  ;;  %v3552_v62 = vpop.f32.mrf.mxu0  ;;  %v3322_v14 = vadd.f32 %v3321_v21, %v11073_v13  ;;  %v3551_v28 = vadd.f32 %v3550_v54, %v11076_v23 }
 0x816   : > { %v3620_v46 = vpack.c.bf16 %v3598_v61, %v3596_v48  ;;  %v3391_v0 = vpack.c.bf16 %v3369_v45, %v3367_v34  ;;  %v3324_v39 = vadd.f32 %v3323_v36, %v11067_v30  ;;  %v3553_v57 = vadd.f32 %v3552_v62, %v11070_v37 }
 0x817   : > { %v3325_v24 = vpop.f32.mrf.mxu1  ;;  %v3554_v2 = vpop.f32.mrf.mxu0  ;;  %v3370_v45 = vmax.f32 %v3322_v14, 0.0  ;;  %v3599_v61 = vmax.f32 %v3551_v28, 0.0 }
 0x818   : > { %v3326_v51 = vadd.f32 %v3325_v24, %v11073_v13  ;;  %v3555_v35 = vadd.f32 %v3554_v2, %v11076_v23  ;;  %3819 = vmatprep.mubr.bf16.mxu1 %v3620_v46  ;;  %4012 = vmatprep.mubr.bf16.mxu0 %v3391_v0  ;;  %v3371_v10 = vmax.f32 %v3324_v39, 0.0  ;;  %v3600_v25 = vmax.f32 %v3553_v57, 0.0 }
 0x819   : > { %v3327_v20 = vpop.f32.mrf.mxu1  ;;  %v3556_v5 = vpop.f32.mrf.mxu0  ;;  %3820 = vmatmul.mubr.bf16.gmra.mxu1 %v3619_v11  ;;  %4013 = vmatmul.mubr.bf16.gmra.mxu0 %v3390_v6 }
 0x81a   : > { %v3328_v7 = vadd.f32 %v3327_v20, %v11067_v30  ;;  %v3557_v3 = vadd.f32 %v3556_v5, %v11070_v37  ;;  %v3372_v16 = vmax.f32 %v3326_v51, 0.0  ;;  %v3601_v41 = vmax.f32 %v3555_v35, 0.0 }
 0x81c   : > { %v3373_v34 = vmax.f32 %v3328_v7, 0.0  ;;  %v3602_v48 = vmax.f32 %v3557_v3, 0.0  ;;  %v3392_v8 = vpack.c.bf16 %v3372_v16, %v3370_v45  ;;  %v3621_v54 = vpack.c.bf16 %v3601_v41, %v3599_v61 }
 0x81e   : > { %v3622_v26 = vpack.c.bf16 %v3602_v48, %v3600_v25  ;;  %v3393_v21 = vpack.c.bf16 %v3373_v34, %v3371_v10 }
 0x820   : > { %3827 = vmatprep.mubr.bf16.mxu1 %v3622_v26  ;;  %4020 = vmatprep.mubr.bf16.mxu0 %v3393_v21 }
 0x821   : > { %3828 = vmatmul.mubr.bf16.gmra.mxu1 %v3621_v54  ;;  %4021 = vmatmul.mubr.bf16.gmra.mxu0 %v3392_v8 }
 0x857   : > { %v3331_v36 = vpop.f32.mrf.mxu1  ;;  %v3560_v62 = vpop.f32.mrf.mxu0 }
 0x858   : > { %v3332_v51 = vadd.f32 %v3331_v36, %v11073_v13  ;;  %v3561_v35 = vadd.f32 %v3560_v62, %v11076_v23 }
 0x859   : > { %v3333_v46 = vpop.f32.mrf.mxu1  ;;  %v3562_v0 = vpop.f32.mrf.mxu0 }
 0x85a   : > { %v3334_v39 = vadd.f32 %v3333_v46, %v11067_v30  ;;  %v3563_v24 = vadd.f32 %v3562_v0, %v11070_v37  ;;  %v3374_v45 = vmax.f32 %v3332_v51, 0.0  ;;  %v3603_v61 = vmax.f32 %v3561_v35, 0.0 }
 0x85b   : > { %v3335_v6 = vpop.f32.mrf.mxu1  ;;  %v3564_v11 = vpop.f32.mrf.mxu0 }
 0x85c   : > { %v3336_v2 = vadd.f32 %v3335_v6, %v11073_v13  ;;  %v3565_v57 = vadd.f32 %v3564_v11, %v11076_v23  ;;  %v3375_v10 = vmax.f32 %v3334_v39, 0.0  ;;  %v3604_v25 = vmax.f32 %v3563_v24, 0.0 }
 0x85d   : > { %v3337_v14 = vpop.f32.mrf.mxu1  ;;  %v3566_v28 = vpop.f32.mrf.mxu0 }
 0x85e   : > { %v3338_v20 = vadd.f32 %v3337_v14, %v11067_v30  ;;  %v3567_v5 = vadd.f32 %v3566_v28, %v11070_v37  ;;  %v3376_v7 = vmax.f32 %v3336_v2, 0.0  ;;  %v3605_v3 = vmax.f32 %v3565_v57, 0.0 }
 0x85f   : > { %v3341_v16 = vpop.f32.mrf.mxu1  ;;  %v3570_v41 = vpop.f32.mrf.mxu0 }
 0x860   : > { %v3377_v34 = vmax.f32 %v3338_v20, 0.0  ;;  %v3606_v48 = vmax.f32 %v3567_v5, 0.0  ;;  %v3394_v36 = vpack.c.bf16 %v3376_v7, %v3374_v45  ;;  %v3623_v62 = vpack.c.bf16 %v3605_v3, %v3603_v61  ;;  %v4923_v61 = vld [vmem:[%s9429_s12 + $0xa0] sm:$0xff] }
 0x861   : > { %v3343_v26 = vpop.f32.mrf.mxu1  ;;  %v3572_v21 = vpop.f32.mrf.mxu0  ;;  %v3342_v24 = vadd.f32 %v3341_v16, %v11073_v13  ;;  %v3571_v57 = vadd.f32 %v3570_v41, %v11076_v23 }
 0x862   : > { %v3624_v8 = vpack.c.bf16 %v3606_v48, %v3604_v25  ;;  %v3395_v54 = vpack.c.bf16 %v3377_v34, %v3375_v10  ;;  %v3344_v46 = vadd.f32 %v3343_v26, %v11067_v30  ;;  %v3573_v11 = vadd.f32 %v3572_v21, %v11070_v37  ;;  %v4924_v26 = vld [vmem:[%s9429_s12 + $0xe0] sm:$0xff] }
 0x863   : > { %v3345_v0 = vpop.f32.mrf.mxu1  ;;  %v3574_v6 = vpop.f32.mrf.mxu0 }
 0x864   : > { %v3346_v2 = vadd.f32 %v3345_v0, %v11073_v13  ;;  %v3575_v39 = vadd.f32 %v3574_v6, %v11076_v23  ;;  %3835 = vmatprep.mubr.bf16.mxu1 %v3624_v8  ;;  %4028 = vmatprep.mubr.bf16.mxu0 %v3395_v54  ;;  %v3379_v7 = vmax.f32 %v3344_v46, 0.0  ;;  %v3608_v3 = vmax.f32 %v3573_v11, 0.0  ;;  %v8888_v54 = vld [vmem:[%s9439_s6 + $0x178] sm:$0xff]   ;;  %v8894_v46 = vld [vmem:[%s9439_s6 + $0x160] sm:$0xff]  }
 0x865   : > { %v3347_v51 = vpop.f32.mrf.mxu1  ;;  %v3576_v35 = vpop.f32.mrf.mxu0  ;;  %3836 = vmatmul.mubr.bf16.gmra.mxu1 %v3623_v62  ;;  %4029 = vmatmul.mubr.bf16.gmra.mxu0 %v3394_v36  ;;  %v3378_v13 = vmax.f32 %v3342_v24, 0.0  ;;  %v3607_v23 = vmax.f32 %v3571_v57, 0.0  ;;  %v7667_v8 = vcombine.high %v4923_v61, %v4924_v26  ;;  %v8889_v36 = vld [vmem:[%s9439_s6 + $0x138] sm:$0xff]   ;;  %v8893_v62 = vld [vmem:[%s9439_s6 + $0x128] sm:$0xff]   ;;  %v8895_v0 = vld [vmem:[%s9439_s6 + $0x120] sm:$0xff]  }
 0x866   : > { %v3348_v14 = vadd.f32 %v3347_v51, %v11067_v30  ;;  %v3577_v28 = vadd.f32 %v3576_v35, %v11070_v37  ;;  %v3380_v20 = vmax.f32 %v3346_v2, 0.0  ;;  %v3609_v5 = vmax.f32 %v3575_v39, 0.0  ;;  %v4483_v30 = vld [vmem:[%s9429_s12 + $0x18] sm:$0xff]  ;;  %8062 = vmatprep.subr.bf16.mxu0 %v8888_v54  ;;  %v8898_v2 = vld [vmem:[%s9439_s6 + $0x150] sm:$0xff]   ;;  %v4921_v24 = vld [vmem:[%s9429_s12 + $0x20] sm:$0xff] }
 0x867   : > { %v4484_v37 = vld [vmem:[%s9429_s12 + $0x58] sm:$0xff]  ;;  %8063 = vmatpush3.bf16.msra.mxu0 %v8889_v36  ;;  %v8899_v39 = vld [vmem:[%s9439_s6 + $0x110] sm:$0xff]   ;;  %v4922_v57 = vld [vmem:[%s9429_s12 + $0x60] sm:$0xff]  ;;  %v7666_v51 = vcombine.low %v4923_v61, %v4924_v26 }
 0x868   : > { %v3381_v10 = vmax.f32 %v3348_v14, 0.0  ;;  %v3610_v25 = vmax.f32 %v3577_v28, 0.0  ;;  %v3396_v34 = vpack.c.bf16 %v3380_v20, %v3378_v13  ;;  %v3625_v48 = vpack.c.bf16 %v3609_v5, %v3607_v23  ;;  %8064 = vmatprep.subr.bf16.mxu0 %v8890_v32  ;;  %v8896_v6 = vld [vmem:[%s9439_s6 + $0x158] sm:$0xff]   ;;  %v11204_v14 = vld [vmem:[%s9429_s12 + $0xa8] sm:$0xff] }
 0x869   : > { %v7637_v45 = vcombine.high %v4483_v30, %v4484_v37  ;;  %v7636_v21 = vcombine.low %v4483_v30, %v4484_v37  ;;  %v8897_v11 = vld [vmem:[%s9439_s6 + $0x118] sm:$0xff]   ;;  %v7665_v35 = vcombine.high %v4921_v24, %v4922_v57  ;;  %v11207_v28 = vld [vmem:[%s9429_s12 + $0xe8] sm:$0xff]  ;;  %v7664_v20 = vcombine.low %v4921_v24, %v4922_v57  ;;  %v8902_v37 = vld [vmem:[%s9439_s6 + $0x140] sm:$0xff]  }
 0x86a   : > { %v3626_v16 = vpack.c.bf16 %v3610_v25, %v3608_v3  ;;  %v3397_v41 = vpack.c.bf16 %v3381_v10, %v3379_v7  ;;  %v8900_v5 = vld [vmem:[%s9439_s6 + $0x148] sm:$0xff]   ;;  %v7695_v3 = vcombine.high %v11204_v14, %v11207_v28 }
 0x86b   : > { %8065 = vmatpush3.bf16.msra.mxu0 %v8891_v1  ;;  %v8901_v7 = vld [vmem:[%s9439_s6 + $0x108] sm:$0xff]  }
 0x86c   : > { %3843 = vmatprep.mubr.bf16.mxu1 %v3626_v16  ;;  %4036 = vmatprep.mubr.bf16.mxu0 %v3397_v41 }
 0x86d   : > { %3844 = vmatmul.mubr.bf16.gmra.mxu1 %v3625_v48  ;;  %4037 = vmatmul.mubr.bf16.gmra.mxu0 %v3396_v34 }
 0x86e   : > { %4113 = vmatprep.mubr.bf16.mxu1 %v12453_v56 }
 0x875   : > { %7612 = vmatmul.mubr.msk.bf16.vlgmr.msra.gmra.mxu1 %vm682_vm1, %v10877_v63 }
 0x876   : > { %4532 = vmatpush1.bf16.msra.mxu1 %v7638_v49  ;;  %4123 = vmatprep.mubr.bf16.mxu1 %v12453_v56  ;;  %v8892_v49 = vld [vmem:[%s9439_s6 + $0x168] sm:$0xff]  }
 0x877   : > { %4533 = vmatprep.subr.bf16.mxu1 %v7637_v45  ;;  %8066 = vmatprep.subr.bf16.mxu0 %v8892_v49  ;;  %v8903_v45 = vld [vmem:[%s9439_s6 + $0x100] sm:$0xff]  }
 0x878   : > { %8067 = vmatpush3.bf16.msra.mxu0 %v8893_v62 }
 0x879   : > { %8068 = vmatprep.subr.bf16.mxu0 %v8894_v46 }
 0x87a   : > { %4534 = vmatpush1.bf16.msra.mxu1 %v7636_v21 }
 0x87b   : > { %4969 = vmatprep.subr.bf16.mxu1 %v7667_v8 }
 0x87c   : > { %8069 = vmatpush3.bf16.msra.mxu0 %v8895_v0 }
 0x87d   : > { %7613 = vmatmul.mubr.msk.bf16.gmra.mxu1 %vm682_vm1, %v10905_v55  ;;  %8070 = vmatprep.subr.bf16.mxu0 %v8896_v6 }
 0x87e   : > { %4133 = vmatprep.mubr.bf16.mxu1 %v12453_v56 }
 0x880   : > { %8071 = vmatpush3.bf16.msra.mxu0 %v8897_v11 }
 0x881   : > { %8072 = vmatprep.subr.bf16.mxu0 %v8898_v2  ;;  %v8904_v2 = vld [vmem:[%s9439_s6 + $0x1f8] sm:$0xff]  }
 0x884   : > { %8073 = vmatpush3.bf16.msra.mxu0 %v8899_v39 }
 0x885   : > { %7614 = vmatmul.mubr.msk.bf16.gmra.mxu1 %vm682_vm1, %v10933_v18  ;;  %8074 = vmatprep.subr.bf16.mxu0 %v8900_v5 }
 0x886   : > { %4143 = vmatprep.mubr.bf16.mxu1 %v12453_v56 }
 0x888   : > { %8075 = vmatpush3.bf16.msra.mxu0 %v8901_v7 }
 0x889   : > { %8076 = vmatprep.subr.bf16.mxu0 %v8902_v37 }
 0x88c   : > { %8077 = vmatpush3.bf16.msra.mxu0 %v8903_v45 }
 0x88d   : > { %7615 = vmatmul.mubr.msk.bf16.gmra.mxu1 %vm682_vm1, %v10955_v33  ;;  %8126 = vmatprep.subr.bf16.mxu0 %v8904_v2 }
 0x88e   : > { %4153 = vmatprep.mubr.bf16.mxu1 %v12453_v56 }
 0x895   : > { %7616 = vmatmul.mubr.msk.bf16.gmra.mxu1 %vm682_vm1, %v10975_v59 }
 0x896   : > { %4163 = vmatprep.mubr.bf16.mxu1 %v12453_v56 }
 0x89d   : > { %7617 = vmatmul.mubr.msk.bf16.gmra.mxu1 %vm682_vm1, %v10993_v12 }
 0x89e   : > { %4173 = vmatprep.mubr.bf16.mxu1 %v12453_v56 }
 0x8a5   : > { %7618 = vmatmul.mubr.msk.bf16.gmra.mxu1 %vm682_vm1, %v11027_v22 }
 0x8a6   : > { %4183 = vmatprep.mubr.bf16.mxu1 %v12453_v56 }
 0x8ad   : > { %7619 = vmatmul.mubr.msk.bf16.gmra.mxu1 %vm682_vm1, %v11045_v52 }
 0x8ae   : > { %4551 = vmatprep.mubr.bf16.mxu1 %v12453_v56 }
 0x8b5   : > { %7640 = vmatmul.mubr.msk.bf16.vlgmr.msra.gmra.mxu1 %vm682_vm1, %v10877_v63 }
 0x8b6   : > { %4970 = vmatpush1.bf16.msra.mxu1 %v7666_v51  ;;  %4561 = vmatprep.mubr.bf16.mxu1 %v12453_v56 }
 0x8b7   : > { %4971 = vmatprep.subr.bf16.mxu1 %v7665_v35 }
 0x8b9   : > { %v7950_v10 = vpop.f32.mrf.mxu1  ;;  %v8014_v25 = vpop.f32.mrf.mxu0 }
 0x8ba   : > { %4972 = vmatpush1.bf16.msra.mxu1 %v7664_v20 }
 0x8bb   : > { %v7951_v13 = vpop.f32.mrf.mxu1  ;;  %v8015_v23 = vpop.f32.mrf.mxu0  ;;  %5407 = vmatprep.subr.bf16.mxu1 %v7695_v3 }
 0x8bc   : > { %v7952_v16 = vadd.f32 %v7951_v13, %v7950_v10  ;;  %v8016_v41 = vadd.f32 %v8015_v23, %v8014_v25 }
 0x8bd   : > { %v7953_v34 = vpop.f32.mrf.mxu1  ;;  %v8017_v48 = vpop.f32.mrf.mxu0  ;;  %7641 = vmatmul.mubr.msk.bf16.gmra.mxu1 %vm682_vm1, %v10905_v55 }
 0x8be   : > { %v11218_v30 = vadd.f32 %v8016_v41, %v7952_v16  ;;  %4571 = vmatprep.mubr.bf16.mxu1 %v12453_v56 }
 0x8bf   : > { %v7954_v61 = vpop.f32.mrf.mxu1  ;;  %v8018_v26 = vpop.f32.mrf.mxu0 }
 0x8c0   : > { %v7955_v21 = vadd.f32 %v7954_v61, %v7953_v34  ;;  %v8019_v8 = vadd.f32 %v8018_v26, %v8017_v48 }
 0x8c1   : > { %v7956_v54 = vpop.f32.mrf.mxu1  ;;  %v8020_v36 = vpop.f32.mrf.mxu0 }
 0x8c2   : > { %v11223_v32 = vadd.f32 %v8019_v8, %v7955_v21 }
 0x8c3   : > { %v7957_v1 = vpop.f32.mrf.mxu1  ;;  %v8021_v49 = vpop.f32.mrf.mxu0 }
 0x8c4   : > { %v7958_v62 = vadd.f32 %v7957_v1, %v7956_v54  ;;  %v8022_v46 = vadd.f32 %v8021_v49, %v8020_v36 }
 0x8c5   : > { %v7959_v0 = vpop.f32.mrf.mxu1  ;;  %v8023_v6 = vpop.f32.mrf.mxu0  ;;  %7642 = vmatmul.mubr.msk.bf16.gmra.mxu1 %vm682_vm1, %v10933_v18 }
 0x8c6   : > { %v11227_v11 = vadd.f32 %v8022_v46, %v7958_v62  ;;  %4581 = vmatprep.mubr.bf16.mxu1 %v12453_v56 }
 0x8c7   : > { %v7960_v39 = vpop.f32.mrf.mxu1  ;;  %v8024_v24 = vpop.f32.mrf.mxu0 }
 0x8c8   : > { %v7961_v57 = vadd.f32 %v7960_v39, %v7959_v0  ;;  %v8025_v51 = vadd.f32 %v8024_v24, %v8023_v6 }
 0x8c9   : > { %v7962_v35 = vpop.f32.mrf.mxu1  ;;  %v8026_v20 = vpop.f32.mrf.mxu0 }
 0x8ca   : > { %v11231_v5 = vadd.f32 %v8025_v51, %v7961_v57 }
 0x8cb   : > { %v7963_v7 = vpop.f32.mrf.mxu1  ;;  %v8027_v3 = vpop.f32.mrf.mxu0 }
 0x8cc   : > { %v7964_v10 = vadd.f32 %v7963_v7, %v7962_v35  ;;  %v8028_v25 = vadd.f32 %v8027_v3, %v8026_v20 }
 0x8cd   : > { %v7965_v13 = vpop.f32.mrf.mxu1  ;;  %v8029_v23 = vpop.f32.mrf.mxu0  ;;  %7643 = vmatmul.mubr.msk.bf16.gmra.mxu1 %vm682_vm1, %v10955_v33 }
 0x8ce   : > { %v11235_v16 = vadd.f32 %v8028_v25, %v7964_v10  ;;  %4591 = vmatprep.mubr.bf16.mxu1 %v12453_v56 }
 0x8cf   : > { %v7966_v41 = vpop.f32.mrf.mxu1  ;;  %v8030_v34 = vpop.f32.mrf.mxu0 }
 0x8d0   : > { %v7967_v48 = vadd.f32 %v7966_v41, %v7965_v13  ;;  %v8031_v37 = vadd.f32 %v8030_v34, %v8029_v23 }
 0x8d1   : > { %v7968_v45 = vpop.f32.mrf.mxu1  ;;  %v8032_v61 = vpop.f32.mrf.mxu0 }
 0x8d2   : > { %v11238_v26 = vadd.f32 %v8031_v37, %v7967_v48 }
 0x8d3   : > { %v7969_v21 = vpop.f32.mrf.mxu1  ;;  %v8033_v8 = vpop.f32.mrf.mxu0 }
 0x8d4   : > { %v7970_v54 = vadd.f32 %v7969_v21, %v7968_v45  ;;  %v8034_v36 = vadd.f32 %v8033_v8, %v8032_v61 }
 0x8d5   : > { %v7971_v1 = vpop.f32.mrf.mxu1  ;;  %v8035_v49 = vpop.f32.mrf.mxu0  ;;  %7644 = vmatmul.mubr.msk.bf16.gmra.mxu1 %vm682_vm1, %v10975_v59 }
 0x8d6   : > { %v11242_v62 = vadd.f32 %v8034_v36, %v7970_v54  ;;  %4601 = vmatprep.mubr.bf16.mxu1 %v12453_v56 }
 0x8d7   : > { %v7972_v46 = vpop.f32.mrf.mxu1  ;;  %v8036_v0 = vpop.f32.mrf.mxu0 }
 0x8d8   : > { %v7973_v6 = vadd.f32 %v7972_v46, %v7971_v1  ;;  %v8037_v2 = vadd.f32 %v8036_v0, %v8035_v49 }
 0x8d9   : > { %v7974_v39 = vpop.f32.mrf.mxu1  ;;  %v8038_v24 = vpop.f32.mrf.mxu0 }
 0x8da   : > { %v11245_v57 = vadd.f32 %v8037_v2, %v7973_v6 }
 0x8db   : > { %v7975_v51 = vpop.f32.mrf.mxu1  ;;  %v8039_v35 = vpop.f32.mrf.mxu0 }
 0x8dc   : > { %v7976_v20 = vadd.f32 %v7975_v51, %v7974_v39  ;;  %v8040_v7 = vadd.f32 %v8039_v35, %v8038_v24  ;;  %v5359_v24 = vld [vmem:[%s9429_s12 + $0x28] sm:$0xff]  ;;  %v7694_v35 = vcombine.low %v11204_v14, %v11207_v28 }
 0x8dd   : > { %v7977_v3 = vpop.f32.mrf.mxu1  ;;  %v8041_v10 = vpop.f32.mrf.mxu0  ;;  %7645 = vmatmul.mubr.msk.bf16.gmra.mxu1 %vm682_vm1, %v10993_v12  ;;  %v5360_v51 = vld [vmem:[%s9429_s12 + $0x68] sm:$0xff] }
 0x8de   : > { %v11249_v25 = vadd.f32 %v8040_v7, %v7976_v20  ;;  %4611 = vmatprep.mubr.bf16.mxu1 %v12453_v56  ;;  %v7693_v20 = vcombine.high %v5359_v24, %v5360_v51  ;;  %v5799_v7 = vld [vmem:[%s9429_s12 + $0xb0] sm:$0xff] }
 0x8df   : > { %v7978_v13 = vpop.f32.mrf.mxu1  ;;  %v8042_v23 = vpop.f32.mrf.mxu0 }
 0x8e0   : > { %v7979_v41 = vadd.f32 %v7978_v13, %v7977_v3  ;;  %v8043_v34 = vadd.f32 %v8042_v23, %v8041_v10  ;;  %v5800_v3 = vld [vmem:[%s9429_s12 + $0xf0] sm:$0xff]  ;;  %v7692_v10 = vcombine.low %v5359_v24, %v5360_v51 }
 0x8e1   : > { %v7980_v48 = vpop.f32.mrf.mxu1  ;;  %v8044_v37 = vpop.f32.mrf.mxu0  ;;  %v7723_v13 = vcombine.high %v5799_v7, %v5800_v3 }
 0x8e2   : > { %v11252_v45 = vadd.f32 %v8043_v34, %v7979_v41 }
 0x8e3   : > { %v7981_v61 = vpop.f32.mrf.mxu1  ;;  %v8045_v21 = vpop.f32.mrf.mxu0 }
 0x8e4   : > { %v7982_v8 = vadd.f32 %v7981_v61, %v7980_v48  ;;  %v8046_v54 = vadd.f32 %v8045_v21, %v8044_v37 }
 0x8e5   : > { %v7983_v36 = vpop.f32.mrf.mxu1  ;;  %v8047_v1 = vpop.f32.mrf.mxu0  ;;  %7646 = vmatmul.mubr.msk.bf16.gmra.mxu1 %vm682_vm1, %v11027_v22 }
 0x8e6   : > { %v11256_v49 = vadd.f32 %v8046_v54, %v7982_v8  ;;  %4621 = vmatprep.mubr.bf16.mxu1 %v12453_v56 }
 0x8e7   : > { %v7984_v46 = vpop.f32.mrf.mxu1  ;;  %v8048_v0 = vpop.f32.mrf.mxu0 }
 0x8e8   : > { %v7985_v6 = vadd.f32 %v7984_v46, %v7983_v36  ;;  %v8049_v2 = vadd.f32 %v8048_v0, %v8047_v1 }
 0x8ea   : > { %v11259_v39 = vadd.f32 %v8049_v2, %v7985_v6 }
 0x8ed   : > { %7647 = vmatmul.mubr.msk.bf16.gmra.mxu1 %vm682_vm1, %v11045_v52 }
 0x8ee   : > { %4989 = vmatprep.mubr.bf16.mxu1 %v12453_v56 }
 0x8f5   : > { %7668 = vmatmul.mubr.msk.bf16.vlgmr.msra.gmra.mxu1 %vm682_vm1, %v10877_v63 }
 0x8f6   : > { %5408 = vmatpush1.bf16.msra.mxu1 %v7694_v35  ;;  %4999 = vmatprep.mubr.bf16.mxu1 %v12453_v56 }
 0x8f7   : > { %5409 = vmatprep.subr.bf16.mxu1 %v7693_v20  ;;  %v5797_v20 = vld [vmem:[%s9429_s12 + $0x30] sm:$0xff] }
 0x8fa   : > { %5410 = vmatpush1.bf16.msra.mxu1 %v7692_v10  ;;  %v5798_v10 = vld [vmem:[%s9429_s12 + $0x70] sm:$0xff] }
 0x8fb   : > { %5845 = vmatprep.subr.bf16.mxu1 %v7723_v13 }
 0x8fd   : > { %7669 = vmatmul.mubr.msk.bf16.gmra.mxu1 %vm682_vm1, %v10905_v55 }
 0x8fe   : > { %5009 = vmatprep.mubr.bf16.mxu1 %v12453_v56 }
 0x905   : > { %7670 = vmatmul.mubr.msk.bf16.gmra.mxu1 %vm682_vm1, %v10933_v18 }
 0x906   : > { %5019 = vmatprep.mubr.bf16.mxu1 %v12453_v56 }
 0x90d   : > { %7671 = vmatmul.mubr.msk.bf16.gmra.mxu1 %vm682_vm1, %v10955_v33 }
 0x90e   : > { %5029 = vmatprep.mubr.bf16.mxu1 %v12453_v56 }
 0x915   : > { %7672 = vmatmul.mubr.msk.bf16.gmra.mxu1 %vm682_vm1, %v10975_v59 }
 0x916   : > { %5039 = vmatprep.mubr.bf16.mxu1 %v12453_v56 }
 0x91d   : > { %7673 = vmatmul.mubr.msk.bf16.gmra.mxu1 %vm682_vm1, %v10993_v12 }
 0x91e   : > { %5049 = vmatprep.mubr.bf16.mxu1 %v12453_v56 }
 0x925   : > { %v7986_v14 = vpop.f32.mrf.mxu1  ;;  %v8050_v28 = vpop.f32.mrf.mxu0  ;;  %7674 = vmatmul.mubr.msk.bf16.gmra.mxu1 %vm682_vm1, %v11027_v22 }
 0x926   : > { %5059 = vmatprep.mubr.bf16.mxu1 %v12453_v56 }
 0x927   : > { %v7987_v23 = vpop.f32.mrf.mxu1  ;;  %v8051_v41 = vpop.f32.mrf.mxu0 }
 0x928   : > { %v7988_v34 = vadd.f32 %v7987_v23, %v7986_v14  ;;  %v8052_v48 = vadd.f32 %v8051_v41, %v8050_v28  ;;  %v7722_v23 = vcombine.low %v5799_v7, %v5800_v3  ;;  %v7720_v7 = vcombine.low %v5797_v20, %v5798_v10 }
 0x929   : > { %v7989_v37 = vpop.f32.mrf.mxu1  ;;  %v8053_v61 = vpop.f32.mrf.mxu0 }
 0x92a   : > { %v11291_v21 = vadd.f32 %v8052_v48, %v7988_v34  ;;  %v7721_v48 = vcombine.high %v5797_v20, %v5798_v10 }
 0x92b   : > { %v7990_v8 = vpop.f32.mrf.mxu1  ;;  %v8054_v54 = vpop.f32.mrf.mxu0 }
 0x92c   : > { %v7991_v36 = vadd.f32 %v7990_v8, %v7989_v37  ;;  %v8055_v1 = vadd.f32 %v8054_v54, %v8053_v61  ;;  %v4049_v8 = vld [vmem:[%s9444_s20 + $0x4] sm:$0x3]  ;;  %v11304_v54 = vld [vmem:[%s9429_s12 + $0xb8] sm:$0xff] }
 0x92d   : > { %v7992_v46 = vpop.f32.mrf.mxu1  ;;  %v8056_v0 = vpop.f32.mrf.mxu0  ;;  %7675 = vmatmul.mubr.msk.bf16.gmra.mxu1 %vm682_vm1, %v11045_v52  ;;  %v11318_v3 = vrot.slane %v4049_v8, %v12546_v38 }
 0x92e   : > { %v11295_v6 = vadd.f32 %v8055_v1, %v7991_v36  ;;  %5427 = vmatprep.mubr.bf16.mxu1 %v12453_v56  ;;  %v11307_v36 = vld [vmem:[%s9429_s12 + $0xf8] sm:$0xff] }
 0x92f   : > { %v7993_v2 = vpop.f32.mrf.mxu1  ;;  %v8057_v24 = vpop.f32.mrf.mxu0 }
 0x930   : > { %v7994_v51 = vadd.f32 %v7993_v2, %v7992_v46  ;;  %v8058_v35 = vadd.f32 %v8057_v24, %v8056_v0  ;;  %v11314_v0 = vrot.slane %v4049_v8, %v11062_v15  ;;  %v7751_v24 = vcombine.high %v11304_v54, %v11307_v36 }
 0x931   : > { %v7995_v13 = vpop.f32.mrf.mxu1  ;;  %v8059_v14 = vpop.f32.mrf.mxu0 }
 0x932   : > { %v11300_v28 = vadd.f32 %v8058_v35, %v7994_v51 }
 0x933   : > { %v7996_v41 = vpop.f32.mrf.mxu1  ;;  %v8060_v34 = vpop.f32.mrf.mxu0 }
 0x934   : > { %v7997_v37 = vadd.f32 %v7996_v41, %v7995_v13  ;;  %v8061_v61 = vadd.f32 %v8060_v34, %v8059_v14 }
 0x935   : > { %v4115_v1 = vpop.f32.mrf.mxu1  ;;  %7696 = vmatmul.mubr.msk.bf16.vlgmr.msra.gmra.mxu1 %vm682_vm1, %v10877_v63 }
 0x936   : > { %v11311_v46 = vadd.f32 %v8061_v61, %v7997_v37  ;;  %5846 = vmatpush1.bf16.msra.mxu1 %v7722_v23  ;;  %5437 = vmatprep.mubr.bf16.mxu1 %v12453_v56  ;;  %v4116_v14 = vadd.f32 %v4115_v1, %v11318_v3 }
 0x937   : > { %v4117_v2 = vpop.f32.mrf.mxu1  ;;  %5847 = vmatprep.subr.bf16.mxu1 %v7721_v48 }
 0x938   : > { %v4118_v35 = vadd.f32 %v4117_v2, %v11314_v0  ;;  %v4194_v37 = vmax.f32 %v4116_v14, 0.0  ;;  %v8907_v14 = vld [vmem:[%s9439_s6 + $0x1b0] sm:$0xff]  }
 0x939   : > { %v4119_v51 = vpop.f32.mrf.mxu1 }
 0x93a   : > { %v4120_v13 = vadd.f32 %v4119_v51, %v11318_v3  ;;  %5848 = vmatpush1.bf16.msra.mxu1 %v7720_v7  ;;  %v4195_v34 = vmax.f32 %v4118_v35, 0.0  ;;  %v8905_v7 = vld [vmem:[%s9439_s6 + $0x1b8] sm:$0xff]  }
 0x93b   : > { %v4121_v23 = vpop.f32.mrf.mxu1  ;;  %6283 = vmatprep.subr.bf16.mxu1 %v7751_v24  ;;  %v8906_v24 = vld [vmem:[%s9439_s6 + $0x1f0] sm:$0xff]  }
 0x93c   : > { %v4122_v20 = vadd.f32 %v4121_v23, %v11314_v0  ;;  %v4196_v10 = vmax.f32 %v4120_v13, 0.0 }
 0x93d   : > { %v4125_v41 = vpop.f32.mrf.mxu1  ;;  %7697 = vmatmul.mubr.msk.bf16.gmra.mxu1 %vm682_vm1, %v10905_v55 }
 0x93e   : > { %v4197_v48 = vmax.f32 %v4122_v20, 0.0  ;;  %5447 = vmatprep.mubr.bf16.mxu1 %v12453_v56  ;;  %v4226_v1 = vpack.c.bf16 %v4196_v10, %v4194_v37  ;;  %v4126_v23 = vadd.f32 %v4125_v41, %v11318_v3 }
 0x93f   : > { %v4127_v61 = vpop.f32.mrf.mxu1 }
 0x940   : > { %v4227_v8 = vpack.c.bf16 %v4197_v48, %v4195_v34  ;;  %v4128_v51 = vadd.f32 %v4127_v61, %v11314_v0  ;;  %v8908_v48 = vld [vmem:[%s9439_s6 + $0x1e8] sm:$0xff]   ;;  %v4198_v41 = vmax.f32 %v4126_v23, 0.0 }
 0x941   : > { %v4129_v2 = vpop.f32.mrf.mxu1 }
 0x942   : > { %v4130_v13 = vadd.f32 %v4129_v2, %v11318_v3  ;;  %4402 = vmatprep.mubr.bf16.mxu0 %v4227_v8  ;;  %v4199_v37 = vmax.f32 %v4128_v51, 0.0  ;;  %v8909_v2 = vld [vmem:[%s9439_s6 + $0x1a8] sm:$0xff]  }
 0x943   : > { %v4131_v35 = vpop.f32.mrf.mxu1  ;;  %4403 = vmatmul.mubr.bf16.vlgmr.msra.gmra.mxu0 %v4226_v1 }
 0x944   : > { %v4132_v20 = vadd.f32 %v4131_v35, %v11314_v0  ;;  %8127 = vmatpush3.bf16.msra.mxu0 %v8905_v7  ;;  %v4200_v34 = vmax.f32 %v4130_v13, 0.0  ;;  %v8910_v13 = vld [vmem:[%s9439_s6 + $0x1e0] sm:$0xff]  }
 0x945   : > { %v4135_v10 = vpop.f32.mrf.mxu1  ;;  %7698 = vmatmul.mubr.msk.bf16.gmra.mxu1 %vm682_vm1, %v10933_v18  ;;  %8128 = vmatprep.subr.bf16.mxu0 %v8906_v24 }
 0x946   : > { %v4201_v61 = vmax.f32 %v4132_v20, 0.0  ;;  %5457 = vmatprep.mubr.bf16.mxu1 %v12453_v56  ;;  %v4228_v7 = vpack.c.bf16 %v4200_v34, %v4198_v41  ;;  %v4136_v51 = vadd.f32 %v4135_v10, %v11318_v3 }
 0x947   : > { %v4137_v8 = vpop.f32.mrf.mxu1 }
 0x948   : > { %v4229_v1 = vpack.c.bf16 %v4201_v61, %v4199_v37  ;;  %8129 = vmatpush3.bf16.msra.mxu0 %v8907_v14  ;;  %v4138_v29 = vadd.f32 %v4137_v8, %v11314_v0  ;;  %v8911_v14 = vld [vmem:[%s9439_s6 + $0x1a0] sm:$0xff]   ;;  %v4202_v10 = vmax.f32 %v4136_v51, 0.0 }
 0x949   : > { %v4139_v35 = vpop.f32.mrf.mxu1  ;;  %8130 = vmatprep.subr.bf16.mxu0 %v8908_v48  ;;  %v8912_v48 = vld [vmem:[%s9439_s6 + $0x1d8] sm:$0xff]  }
 0x94a   : > { %v4140_v24 = vadd.f32 %v4139_v35, %v11318_v3  ;;  %4410 = vmatprep.mubr.bf16.mxu0 %v4229_v1  ;;  %v4203_v61 = vmax.f32 %v4138_v29, 0.0 }
 0x94b   : > { %v4141_v20 = vpop.f32.mrf.mxu1  ;;  %4411 = vmatmul.mubr.bf16.gmra.mxu0 %v4228_v7  ;;  %v8913_v7 = vld [vmem:[%s9439_s6 + $0x198] sm:$0xff]  }
 0x94c   : > { %v4142_v23 = vadd.f32 %v4141_v20, %v11314_v0  ;;  %8131 = vmatpush3.bf16.msra.mxu0 %v8909_v2  ;;  %v4204_v37 = vmax.f32 %v4140_v24, 0.0  ;;  %v8914_v24 = vld [vmem:[%s9439_s6 + $0x1d0] sm:$0xff]  }
 0x94d   : > { %v4145_v34 = vpop.f32.mrf.mxu1  ;;  %7699 = vmatmul.mubr.msk.bf16.gmra.mxu1 %vm682_vm1, %v10955_v33  ;;  %8132 = vmatprep.subr.bf16.mxu0 %v8910_v13 }
 0x94e   : > { %v4205_v41 = vmax.f32 %v4142_v23, 0.0  ;;  %5467 = vmatprep.mubr.bf16.mxu1 %v12453_v56  ;;  %v4230_v2 = vpack.c.bf16 %v4204_v37, %v4202_v10  ;;  %v4146_v29 = vadd.f32 %v4145_v34, %v11318_v3 }
 0x94f   : > { %v4147_v8 = vpop.f32.mrf.mxu1 }
 0x950   : > { %v4231_v1 = vpack.c.bf16 %v4205_v41, %v4203_v61  ;;  %8133 = vmatpush3.bf16.msra.mxu0 %v8911_v14  ;;  %v4148_v20 = vadd.f32 %v4147_v8, %v11314_v0  ;;  %v8915_v14 = vld [vmem:[%s9439_s6 + $0x190] sm:$0xff]   ;;  %v4206_v34 = vmax.f32 %v4146_v29, 0.0 }
 0x951   : > { %v4149_v35 = vpop.f32.mrf.mxu1  ;;  %8134 = vmatprep.subr.bf16.mxu0 %v8912_v48  ;;  %v8916_v48 = vld [vmem:[%s9439_s6 + $0x1c8] sm:$0xff]  }
 0x952   : > { %v4150_v13 = vadd.f32 %v4149_v35, %v11318_v3  ;;  %4418 = vmatprep.mubr.bf16.mxu0 %v4231_v1  ;;  %v4207_v41 = vmax.f32 %v4148_v20, 0.0 }
 0x953   : > { %v4151_v23 = vpop.f32.mrf.mxu1  ;;  %4419 = vmatmul.mubr.bf16.gmra.mxu0 %v4230_v2  ;;  %v8917_v2 = vld [vmem:[%s9439_s6 + $0x188] sm:$0xff]  }
 0x954   : > { %v4152_v51 = vadd.f32 %v4151_v23, %v11314_v0  ;;  %8135 = vmatpush3.bf16.msra.mxu0 %v8913_v7  ;;  %v4208_v61 = vmax.f32 %v4150_v13, 0.0  ;;  %v8918_v13 = vld [vmem:[%s9439_s6 + $0x1c0] sm:$0xff]  }
 0x955   : > { %v4155_v37 = vpop.f32.mrf.mxu1  ;;  %7700 = vmatmul.mubr.msk.bf16.gmra.mxu1 %vm682_vm1, %v10975_v59  ;;  %8136 = vmatprep.subr.bf16.mxu0 %v8914_v24 }
 0x956   : > { %v4209_v10 = vmax.f32 %v4152_v51, 0.0  ;;  %5477 = vmatprep.mubr.bf16.mxu1 %v12453_v56  ;;  %v4232_v7 = vpack.c.bf16 %v4208_v61, %v4206_v34  ;;  %v4156_v20 = vadd.f32 %v4155_v37, %v11318_v3  ;;  %v8920_v61 = vld [vmem:[%s9439_s6 + $0x278] sm:$0xff]  }
 0x957   : > { %v4157_v8 = vpop.f32.mrf.mxu1 }
 0x958   : > { %v4233_v1 = vpack.c.bf16 %v4209_v10, %v4207_v41  ;;  %8137 = vmatpush3.bf16.msra.mxu0 %v8915_v14  ;;  %v4158_v23 = vadd.f32 %v4157_v8, %v11314_v0  ;;  %v8919_v41 = vld [vmem:[%s9439_s6 + $0x180] sm:$0xff]   ;;  %v4210_v8 = vmax.f32 %v4156_v20, 0.0 }
 0x959   : > { %v4159_v35 = vpop.f32.mrf.mxu1  ;;  %8138 = vmatprep.subr.bf16.mxu0 %v8916_v48 }
 0x95a   : > { %v4160_v24 = vadd.f32 %v4159_v35, %v11318_v3  ;;  %4426 = vmatprep.mubr.bf16.mxu0 %v4233_v1  ;;  %v4211_v48 = vmax.f32 %v4158_v23, 0.0 }
 0x95b   : > { %v4161_v51 = vpop.f32.mrf.mxu1  ;;  %4427 = vmatmul.mubr.bf16.gmra.mxu0 %v4232_v7 }
 0x95c   : > { %v4162_v29 = vadd.f32 %v4161_v51, %v11314_v0  ;;  %8139 = vmatpush3.bf16.msra.mxu0 %v8917_v2  ;;  %v4212_v14 = vmax.f32 %v4160_v24, 0.0 }
 0x95d   : > { %v4165_v10 = vpop.f32.mrf.mxu1  ;;  %7701 = vmatmul.mubr.msk.bf16.gmra.mxu1 %vm682_vm1, %v10993_v12  ;;  %8140 = vmatprep.subr.bf16.mxu0 %v8918_v13 }
 0x95e   : > { %v4213_v34 = vmax.f32 %v4162_v29, 0.0  ;;  %5487 = vmatprep.mubr.bf16.mxu1 %v12453_v56  ;;  %v4234_v7 = vpack.c.bf16 %v4212_v14, %v4210_v8  ;;  %v4166_v51 = vadd.f32 %v4165_v10, %v11318_v3  ;;  %v12547_v14 = vmov 0  }
 0x95f   : > { %v4167_v1 = vpop.f32.mrf.mxu1 }
 0x960   : > { %v4235_v37 = vpack.c.bf16 %v4213_v34, %v4211_v48  ;;  %8141 = vmatpush3.bf16.msra.mxu0 %v8919_v41  ;;  %v4168_v2 = vadd.f32 %v4167_v1, %v11314_v0 }
 0x961   : > { %v4169_v35 = vpop.f32.mrf.mxu1  ;;  %8190 = vmatprep.subr.bf16.mxu0 %v8920_v61  ;;  %v4214_v61 = vmax.f32 %v4166_v51, 0.0 }
 0x962   : > { %v4170_v24 = vadd.f32 %v4169_v35, %v11318_v3  ;;  %4434 = vmatprep.mubr.bf16.mxu0 %v4235_v37  ;;  %v4215_v20 = vmax.f32 %v4168_v2, 0.0 }
 0x963   : > { %v4171_v13 = vpop.f32.mrf.mxu1  ;;  %4435 = vmatmul.mubr.bf16.gmra.mxu0 %v4234_v7 }
 0x964   : > { %v4172_v23 = vadd.f32 %v4171_v13, %v11314_v0  ;;  %v4216_v29 = vmax.f32 %v4170_v24, 0.0 }
 0x965   : > { %v4175_v56 = vpop.f32.mrf.mxu1  ;;  %7702 = vmatmul.mubr.msk.bf16.gmra.mxu1 %vm682_vm1, %v11027_v22 }
 0x966   : > { %v4217_v41 = vmax.f32 %v4172_v23, 0.0  ;;  %5497 = vmatprep.mubr.bf16.mxu1 %v12547_v14  ;;  %v4236_v8 = vpack.c.bf16 %v4216_v29, %v4214_v61  ;;  %v4176_v7 = vadd.f32 %v4175_v56, %v11318_v3  ;;  %v6235_v61 = vld [vmem:[%s9429_s12 + $0x38] sm:$0xff] }
 0x967   : > { %v4177_v48 = vpop.f32.mrf.mxu1 }
 0x968   : > { %v4237_v34 = vpack.c.bf16 %v4217_v41, %v4215_v20  ;;  %v4178_v10 = vadd.f32 %v4177_v48, %v11314_v0  ;;  %v4218_v29 = vmax.f32 %v4176_v7, 0.0  ;;  %v6236_v48 = vld [vmem:[%s9429_s12 + $0x78] sm:$0xff] }
 0x969   : > { %v4179_v1 = vpop.f32.mrf.mxu1  ;;  %v7749_v7 = vcombine.high %v6235_v61, %v6236_v48 }
 0x96a   : > { %v4180_v37 = vadd.f32 %v4179_v1, %v11318_v3  ;;  %4442 = vmatprep.mubr.bf16.mxu0 %v4237_v34  ;;  %v4219_v51 = vmax.f32 %v4178_v10, 0.0 }
 0x96b   : > { %v4181_v35 = vpop.f32.mrf.mxu1  ;;  %4443 = vmatmul.mubr.bf16.gmra.mxu0 %v4236_v8 }
 0x96c   : > { %v4182_v2 = vadd.f32 %v4181_v35, %v11314_v0  ;;  %v4220_v24 = vmax.f32 %v4180_v37, 0.0  ;;  %v7750_v37 = vcombine.low %v11304_v54, %v11307_v36  ;;  %v7748_v54 = vcombine.low %v6235_v61, %v6236_v48 }
 0x96d   : > { %v4185_v13 = vpop.f32.mrf.mxu1  ;;  %7703 = vmatmul.mubr.msk.bf16.gmra.mxu1 %vm682_vm1, %v11045_v52 }
 0x96e   : > { %v4221_v23 = vmax.f32 %v4182_v2, 0.0  ;;  %5865 = vmatprep.mubr.bf16.mxu1 %v12547_v14  ;;  %v4238_v56 = vpack.c.bf16 %v4220_v24, %v4218_v29  ;;  %v4186_v10 = vadd.f32 %v4185_v13, %v11318_v3 }
 0x96f   : > { %v4187_v20 = vpop.f32.mrf.mxu1 }
 0x970   : > { %v4239_v41 = vpack.c.bf16 %v4221_v23, %v4219_v51  ;;  %v4188_v8 = vadd.f32 %v4187_v20, %v11314_v0  ;;  %v4487_v51 = vld [vmem:[%s9444_s20 + $0x6] sm:$0x3]  ;;  %v4222_v36 = vmax.f32 %v4186_v10, 0.0 }
 0x971   : > { %v4189_v34 = vpop.f32.mrf.mxu1  ;;  %v11399_v20 = vrot.slane %v4487_v51, %v11062_v15 }
 0x972   : > { %v4190_v1 = vadd.f32 %v4189_v34, %v11318_v3  ;;  %4450 = vmatprep.mubr.bf16.mxu0 %v4239_v41  ;;  %v4223_v24 = vmax.f32 %v4188_v8, 0.0  ;;  %v11403_v3 = vrot.slane %v4487_v51, %v12546_v38 }
 0x973   : > { %v4191_v35 = vpop.f32.mrf.mxu1  ;;  %4451 = vmatmul.mubr.bf16.gmra.mxu0 %v4238_v56 }
 0x974   : > { %v4192_v2 = vadd.f32 %v4191_v35, %v11314_v0  ;;  %v4224_v23 = vmax.f32 %v4190_v1, 0.0 }
 0x975   : > { %v4553_v58 = vpop.f32.mrf.mxu1  ;;  %7724 = vmatmul.mubr.msk.bf16.vlgmr.msra.gmra.mxu1 %vm682_vm1, %v10877_v63 }
 0x976   : > { %v4225_v29 = vmax.f32 %v4192_v2, 0.0  ;;  %6284 = vmatpush1.bf16.msra.mxu1 %v7750_v37  ;;  %5875 = vmatprep.mubr.bf16.mxu1 %v12547_v14  ;;  %v4240_v41 = vpack.c.bf16 %v4224_v23, %v4222_v36  ;;  %v4554_v1 = vadd.f32 %v4553_v58, %v11403_v3 }
 0x977   : > { %v4555_v0 = vpop.f32.mrf.mxu1  ;;  %6285 = vmatprep.subr.bf16.mxu1 %v7749_v7 }
 0x978   : > { %v4241_v13 = vpack.c.bf16 %v4225_v29, %v4223_v24  ;;  %v4556_v34 = vadd.f32 %v4555_v0, %v11399_v20  ;;  %v4632_v2 = vmax.f32 %v4554_v1, 0.0  ;;  %v8921_v24 = vld [vmem:[%s9439_s6 + $0x238] sm:$0xff]  }
 0x979   : > { %v4557_v56 = vpop.f32.mrf.mxu1 }
 0x97a   : > { %v4558_v8 = vadd.f32 %v4557_v56, %v11403_v3  ;;  %4458 = vmatprep.mubr.bf16.mxu0 %v4241_v13  ;;  %6286 = vmatpush1.bf16.msra.mxu1 %v7748_v54  ;;  %v4633_v35 = vmax.f32 %v4556_v34, 0.0  ;;  %v8922_v54 = vld [vmem:[%s9439_s6 + $0x270] sm:$0xff]  }
 0x97b   : > { %4459 = vmatmul.mubr.bf16.gmra.mxu0 %v4240_v41  ;;  %v4559_v61 = vpop.f32.mrf.mxu1  ;;  %v8923_v34 = vld [vmem:[%s9439_s6 + $0x230] sm:$0xff]  }
 0x97c   : > { %v4560_v48 = vadd.f32 %v4559_v61, %v11399_v20  ;;  %v4634_v37 = vmax.f32 %v4558_v8, 0.0  ;;  %v8924_v61 = vld [vmem:[%s9439_s6 + $0x268] sm:$0xff]  }
 0x97d   : > { %v4563_v10 = vpop.f32.mrf.mxu1  ;;  %7725 = vmatmul.mubr.msk.bf16.gmra.mxu1 %vm682_vm1, %v10905_v55 }
 0x97e   : > { %v4635_v7 = vmax.f32 %v4560_v48, 0.0  ;;  %5885 = vmatprep.mubr.bf16.mxu1 %v12547_v14  ;;  %v4664_v58 = vpack.c.bf16 %v4634_v37, %v4632_v2  ;;  %v4564_v13 = vadd.f32 %v4563_v10, %v11403_v3  ;;  %v8925_v2 = vld [vmem:[%s9439_s6 + $0x228] sm:$0xff]  }
 0x97f   : > { %v4565_v51 = vpop.f32.mrf.mxu1 }
 0x980   : > { %v4665_v23 = vpack.c.bf16 %v4635_v7, %v4633_v35  ;;  %v4566_v36 = vadd.f32 %v4565_v51, %v11399_v20  ;;  %v4636_v10 = vmax.f32 %v4564_v13, 0.0  ;;  %v8927_v13 = vld [vmem:[%s9439_s6 + $0x220] sm:$0xff]  }
 0x981   : > { %v4567_v29 = vpop.f32.mrf.mxu1 }
 0x982   : > { %v4568_v0 = vadd.f32 %v4567_v29, %v11403_v3  ;;  %4840 = vmatprep.mubr.bf16.mxu0 %v4665_v23  ;;  %v4637_v48 = vmax.f32 %v4566_v36, 0.0 }
 0x983   : > { %v4569_v41 = vpop.f32.mrf.mxu1  ;;  %4841 = vmatmul.mubr.bf16.vlgmr.msra.gmra.mxu0 %v4664_v58 }
 0x984   : > { %v4570_v56 = vadd.f32 %v4569_v41, %v11399_v20  ;;  %8191 = vmatpush3.bf16.msra.mxu0 %v8921_v24  ;;  %v4638_v8 = vmax.f32 %v4568_v0, 0.0  ;;  %v8926_v24 = vld [vmem:[%s9439_s6 + $0x260] sm:$0xff]  }
 0x985   : > { %v4573_v1 = vpop.f32.mrf.mxu1  ;;  %7726 = vmatmul.mubr.msk.bf16.gmra.mxu1 %vm682_vm1, %v10933_v18  ;;  %8192 = vmatprep.subr.bf16.mxu0 %v8922_v54 }
 0x986   : > { %v4639_v37 = vmax.f32 %v4570_v56, 0.0  ;;  %5895 = vmatprep.mubr.bf16.mxu1 %v12547_v14  ;;  %v4666_v51 = vpack.c.bf16 %v4638_v8, %v4636_v10  ;;  %v4574_v54 = vadd.f32 %v4573_v1, %v11403_v3  ;;  %v8929_v10 = vld [vmem:[%s9439_s6 + $0x218] sm:$0xff]  }
 0x987   : > { %v4575_v35 = vpop.f32.mrf.mxu1 }
 0x988   : > { %v4667_v7 = vpack.c.bf16 %v4639_v37, %v4637_v48  ;;  %8193 = vmatpush3.bf16.msra.mxu0 %v8923_v34  ;;  %v4576_v58 = vadd.f32 %v4575_v35, %v11399_v20  ;;  %v8928_v34 = vld [vmem:[%s9439_s6 + $0x258] sm:$0xff]   ;;  %v4640_v1 = vmax.f32 %v4574_v54, 0.0  ;;  %v8931_v54 = vld [vmem:[%s9439_s6 + $0x210] sm:$0xff]  }
 0x989   : > { %v4577_v23 = vpop.f32.mrf.mxu1  ;;  %8194 = vmatprep.subr.bf16.mxu0 %v8924_v61 }
 0x98a   : > { %v4578_v29 = vadd.f32 %v4577_v23, %v11403_v3  ;;  %4848 = vmatprep.mubr.bf16.mxu0 %v4667_v7  ;;  %v4641_v8 = vmax.f32 %v4576_v58, 0.0 }
 0x98b   : > { %v4579_v36 = vpop.f32.mrf.mxu1  ;;  %4849 = vmatmul.mubr.bf16.gmra.mxu0 %v4666_v51 }
 0x98c   : > { %v4580_v0 = vadd.f32 %v4579_v36, %v11399_v20  ;;  %8195 = vmatpush3.bf16.msra.mxu0 %v8925_v2  ;;  %v4642_v41 = vmax.f32 %v4578_v29, 0.0  ;;  %v8930_v2 = vld [vmem:[%s9439_s6 + $0x250] sm:$0xff]  }
 0x98d   : > { %v4583_v56 = vpop.f32.mrf.mxu1  ;;  %7727 = vmatmul.mubr.msk.bf16.gmra.mxu1 %vm682_vm1, %v10955_v33  ;;  %8196 = vmatprep.subr.bf16.mxu0 %v8926_v24 }
 0x98e   : > { %v4643_v61 = vmax.f32 %v4580_v0, 0.0  ;;  %5905 = vmatprep.mubr.bf16.mxu1 %v12547_v14  ;;  %v4668_v35 = vpack.c.bf16 %v4642_v41, %v4640_v1  ;;  %v4584_v24 = vadd.f32 %v4583_v56, %v11403_v3  ;;  %v8933_v1 = vld [vmem:[%s9439_s6 + $0x208] sm:$0xff]  }
 0x98f   : > { %v4585_v48 = vpop.f32.mrf.mxu1 }
 0x990   : > { %v4669_v37 = vpack.c.bf16 %v4643_v61, %v4641_v8  ;;  %8197 = vmatpush3.bf16.msra.mxu0 %v8927_v13  ;;  %v4586_v51 = vadd.f32 %v4585_v48, %v11399_v20  ;;  %v8932_v13 = vld [vmem:[%s9439_s6 + $0x248] sm:$0xff]   ;;  %v4644_v56 = vmax.f32 %v4584_v24, 0.0  ;;  %v8935_v24 = vld [vmem:[%s9439_s6 + $0x200] sm:$0xff]  }
 0x991   : > { %v4587_v7 = vpop.f32.mrf.mxu1  ;;  %8198 = vmatprep.subr.bf16.mxu0 %v8928_v34 }
 0x992   : > { %v4588_v23 = vadd.f32 %v4587_v7, %v11403_v3  ;;  %4856 = vmatprep.mubr.bf16.mxu0 %v4669_v37  ;;  %v4645_v41 = vmax.f32 %v4586_v51, 0.0 }
 0x993   : > { %v4589_v58 = vpop.f32.mrf.mxu1  ;;  %4857 = vmatmul.mubr.bf16.gmra.mxu0 %v4668_v35 }
 0x994   : > { %v4590_v29 = vadd.f32 %v4589_v58, %v11399_v20  ;;  %8199 = vmatpush3.bf16.msra.mxu0 %v8929_v10  ;;  %v4646_v36 = vmax.f32 %v4588_v23, 0.0  ;;  %v8934_v10 = vld [vmem:[%s9439_s6 + $0x240] sm:$0xff]  }
 0x995   : > { %v4593_v0 = vpop.f32.mrf.mxu1  ;;  %7728 = vmatmul.mubr.msk.bf16.gmra.mxu1 %vm682_vm1, %v10975_v59  ;;  %8200 = vmatprep.subr.bf16.mxu0 %v8930_v2 }
 0x996   : > { %v4647_v34 = vmax.f32 %v4590_v29, 0.0  ;;  %5915 = vmatprep.mubr.bf16.mxu1 %v12547_v14  ;;  %v4670_v48 = vpack.c.bf16 %v4646_v36, %v4644_v56  ;;  %v4594_v2 = vadd.f32 %v4593_v0, %v11403_v3 }
 0x997   : > { %v4595_v8 = vpop.f32.mrf.mxu1 }
 0x998   : > { %v4671_v61 = vpack.c.bf16 %v4647_v34, %v4645_v41  ;;  %8201 = vmatpush3.bf16.msra.mxu0 %v8931_v54  ;;  %v4596_v35 = vadd.f32 %v4595_v8, %v11399_v20  ;;  %v8936_v54 = vld [vmem:[%s9439_s6 + $0x2f8] sm:$0xff]   ;;  %v4648_v41 = vmax.f32 %v4594_v2, 0.0 }
 0x999   : > { %v4597_v37 = vpop.f32.mrf.mxu1  ;;  %8202 = vmatprep.subr.bf16.mxu0 %v8932_v13 }
 0x99a   : > { %v4598_v7 = vadd.f32 %v4597_v37, %v11403_v3  ;;  %4864 = vmatprep.mubr.bf16.mxu0 %v4671_v61  ;;  %v4649_v36 = vmax.f32 %v4596_v35, 0.0 }
 0x99b   : > { %v4599_v51 = vpop.f32.mrf.mxu1  ;;  %4865 = vmatmul.mubr.bf16.gmra.mxu0 %v4670_v48 }
 0x99c   : > { %v4600_v23 = vadd.f32 %v4599_v51, %v11399_v20  ;;  %8203 = vmatpush3.bf16.msra.mxu0 %v8933_v1  ;;  %v4650_v58 = vmax.f32 %v4598_v7, 0.0 }
 0x99d   : > { %v4603_v29 = vpop.f32.mrf.mxu1  ;;  %7729 = vmatmul.mubr.msk.bf16.gmra.mxu1 %vm682_vm1, %v10993_v12  ;;  %8204 = vmatprep.subr.bf16.mxu0 %v8934_v10 }
 0x99e   : > { %v4651_v13 = vmax.f32 %v4600_v23, 0.0  ;;  %5925 = vmatprep.mubr.bf16.mxu1 %v12547_v14  ;;  %v4672_v56 = vpack.c.bf16 %v4650_v58, %v4648_v41  ;;  %v4604_v48 = vadd.f32 %v4603_v29, %v11403_v3 }
 0x99f   : > { %v4605_v34 = vpop.f32.mrf.mxu1 }
 0x9a0   : > { %v4673_v0 = vpack.c.bf16 %v4651_v13, %v4649_v36  ;;  %8205 = vmatpush3.bf16.msra.mxu0 %v8935_v24  ;;  %v4606_v61 = vadd.f32 %v4605_v34, %v11399_v20  ;;  %v4652_v23 = vmax.f32 %v4604_v48, 0.0 }
 0x9a1   : > { %v4607_v8 = vpop.f32.mrf.mxu1  ;;  %8254 = vmatprep.subr.bf16.mxu0 %v8936_v54 }
 0x9a2   : > { %v4608_v1 = vadd.f32 %v4607_v8, %v11403_v3  ;;  %4872 = vmatprep.mubr.bf16.mxu0 %v4673_v0  ;;  %v4653_v2 = vmax.f32 %v4606_v61, 0.0 }
 0x9a3   : > { %v4609_v37 = vpop.f32.mrf.mxu1  ;;  %4873 = vmatmul.mubr.bf16.gmra.mxu0 %v4672_v56 }
 0x9a4   : > { %v4610_v10 = vadd.f32 %v4609_v37, %v11399_v20  ;;  %v4654_v35 = vmax.f32 %v4608_v1, 0.0 }
 0x9a5   : > { %v4613_v7 = vpop.f32.mrf.mxu1  ;;  %7730 = vmatmul.mubr.msk.bf16.gmra.mxu1 %vm682_vm1, %v11027_v22 }
 0x9a6   : > { %v4655_v51 = vmax.f32 %v4610_v10, 0.0  ;;  %5935 = vmatprep.mubr.bf16.mxu1 %v12547_v14  ;;  %v4674_v54 = vpack.c.bf16 %v4654_v35, %v4652_v23  ;;  %v4614_v41 = vadd.f32 %v4613_v7, %v11403_v3 }
 0x9a7   : > { %v4615_v24 = vpop.f32.mrf.mxu1 }
 0x9a8   : > { %v4675_v58 = vpack.c.bf16 %v4655_v51, %v4653_v2  ;;  %v4616_v29 = vadd.f32 %v4615_v24, %v11399_v20  ;;  %v4656_v48 = vmax.f32 %v4614_v41, 0.0 }
 0x9a9   : > { %v4617_v36 = vpop.f32.mrf.mxu1 }
 0x9aa   : > { %v4618_v13 = vadd.f32 %v4617_v36, %v11403_v3  ;;  %4880 = vmatprep.mubr.bf16.mxu0 %v4675_v58  ;;  %v4657_v61 = vmax.f32 %v4616_v29, 0.0 }
 0x9ab   : > { %v4619_v34 = vpop.f32.mrf.mxu1  ;;  %4881 = vmatmul.mubr.bf16.gmra.mxu0 %v4674_v54  ;;  %v4925_v54 = vld [vmem:[%s9444_s20 + $0x8] sm:$0x3] }
 0x9ac   : > { %v4620_v0 = vadd.f32 %v4619_v34, %v11399_v20  ;;  %v4658_v56 = vmax.f32 %v4618_v13, 0.0  ;;  %v11478_v34 = vrot.slane %v4925_v54, %v11062_v15 }
 0x9ad   : > { %v4623_v8 = vpop.f32.mrf.mxu1  ;;  %7731 = vmatmul.mubr.msk.bf16.gmra.mxu1 %vm682_vm1, %v11045_v52 }
 0x9ae   : > { %v4659_v1 = vmax.f32 %v4620_v0, 0.0  ;;  %6303 = vmatprep.mubr.bf16.mxu1 %v12547_v14  ;;  %v4676_v35 = vpack.c.bf16 %v4658_v56, %v4656_v48  ;;  %v4624_v23 = vadd.f32 %v4623_v8, %v11403_v3 }
 0x9af   : > { %v4625_v37 = vpop.f32.mrf.mxu1 }
 0x9b0   : > { %v4677_v10 = vpack.c.bf16 %v4659_v1, %v4657_v61  ;;  %v4626_v7 = vadd.f32 %v4625_v37, %v11399_v20  ;;  %v4660_v0 = vmax.f32 %v4624_v23, 0.0 }
 0x9b1   : > { %v4627_v2 = vpop.f32.mrf.mxu1 }
 0x9b2   : > { %v4628_v51 = vadd.f32 %v4627_v2, %v11403_v3  ;;  %4888 = vmatprep.mubr.bf16.mxu0 %v4677_v10  ;;  %v4661_v13 = vmax.f32 %v4626_v7, 0.0  ;;  %v11482_v3 = vrot.slane %v4925_v54, %v12546_v38  ;;  %v8937_v54 = vld [vmem:[%s9439_s6 + $0x2b8] sm:$0xff]  }
 0x9b3   : > { %v4629_v24 = vpop.f32.mrf.mxu1  ;;  %4889 = vmatmul.mubr.bf16.gmra.mxu0 %v4676_v35 }
 0x9b4   : > { %v4630_v58 = vadd.f32 %v4629_v24, %v11399_v20  ;;  %v4662_v36 = vmax.f32 %v4628_v51, 0.0 }
 0x9b5   : > { %v4991_v29 = vpop.f32.mrf.mxu1  ;;  %7752 = vmatmul.mubr.msk.bf16.vlgmr.msra.gmra.mxu1 %vm682_vm1, %v10877_v63 }
 0x9b6   : > { %v4663_v41 = vmax.f32 %v4630_v58, 0.0  ;;  %6313 = vmatprep.mubr.bf16.mxu1 %v12547_v14  ;;  %v4678_v20 = vpack.c.bf16 %v4662_v36, %v4660_v0  ;;  %v4992_v48 = vadd.f32 %v4991_v29, %v11482_v3 }
 0x9b7   : > { %v4993_v56 = vpop.f32.mrf.mxu1 }
 0x9b8   : > { %v4679_v8 = vpack.c.bf16 %v4663_v41, %v4661_v13  ;;  %v4994_v1 = vadd.f32 %v4993_v56, %v11478_v34  ;;  %v5070_v23 = vmax.f32 %v4992_v48, 0.0  ;;  %v8938_v13 = vld [vmem:[%s9439_s6 + $0x2f0] sm:$0xff]  }
 0x9b9   : > { %v4995_v61 = vpop.f32.mrf.mxu1 }
 0x9ba   : > { %v4996_v63 = vadd.f32 %v4995_v61, %v11482_v3  ;;  %4896 = vmatprep.mubr.bf16.mxu0 %v4679_v8  ;;  %v5071_v7 = vmax.f32 %v4994_v1, 0.0 }
 0x9bb   : > { %4897 = vmatmul.mubr.bf16.gmra.mxu0 %v4678_v20  ;;  %v4997_v37 = vpop.f32.mrf.mxu1  ;;  %v8939_v20 = vld [vmem:[%s9439_s6 + $0x2b0] sm:$0xff]  }
 0x9bc   : > { %v4998_v10 = vadd.f32 %v4997_v37, %v11478_v34  ;;  %v5072_v35 = vmax.f32 %v4996_v63, 0.0  ;;  %v8940_v63 = vld [vmem:[%s9439_s6 + $0x2e8] sm:$0xff]  }
 0x9bd   : > { %v5001_v2 = vpop.f32.mrf.mxu1  ;;  %7753 = vmatmul.mubr.msk.bf16.gmra.mxu1 %vm682_vm1, %v10905_v55 }
 0x9be   : > { %v5073_v51 = vmax.f32 %v4998_v10, 0.0  ;;  %6323 = vmatprep.mubr.bf16.mxu1 %v12547_v14  ;;  %v5102_v36 = vpack.c.bf16 %v5072_v35, %v5070_v23  ;;  %v5002_v55 = vadd.f32 %v5001_v2, %v11482_v3 }
 0x9bf   : > { %v5003_v24 = vpop.f32.mrf.mxu1 }
 0x9c0   : > { %v5103_v58 = vpack.c.bf16 %v5073_v51, %v5071_v7  ;;  %v5004_v41 = vadd.f32 %v5003_v24, %v11478_v34  ;;  %v5074_v10 = vmax.f32 %v5002_v55, 0.0  ;;  %v8941_v7 = vld [vmem:[%s9439_s6 + $0x2a8] sm:$0xff]   ;;  %v8942_v24 = vld [vmem:[%s9439_s6 + $0x2e0] sm:$0xff]   ;;  %v8944_v55 = vld [vmem:[%s9439_s6 + $0x2d8] sm:$0xff]  }
 0x9c1   : > { %v5005_v29 = vpop.f32.mrf.mxu1 }
 0x9c2   : > { %v5006_v0 = vadd.f32 %v5005_v29, %v11482_v3  ;;  %5278 = vmatprep.mubr.bf16.mxu0 %v5103_v58  ;;  %v5075_v48 = vmax.f32 %v5004_v41, 0.0 }
 0x9c3   : > { %v5007_v56 = vpop.f32.mrf.mxu1  ;;  %5279 = vmatmul.mubr.bf16.vlgmr.msra.gmra.mxu0 %v5102_v36 }
 0x9c4   : > { %v5008_v8 = vadd.f32 %v5007_v56, %v11478_v34  ;;  %8255 = vmatpush3.bf16.msra.mxu0 %v8937_v54  ;;  %v5076_v61 = vmax.f32 %v5006_v0, 0.0 }
 0x9c5   : > { %v5011_v1 = vpop.f32.mrf.mxu1  ;;  %7754 = vmatmul.mubr.msk.bf16.gmra.mxu1 %vm682_vm1, %v10933_v18  ;;  %8256 = vmatprep.subr.bf16.mxu0 %v8938_v13  ;;  %v8943_v13 = vld [vmem:[%s9439_s6 + $0x2a0] sm:$0xff]  }
 0x9c6   : > { %v5077_v37 = vmax.f32 %v5008_v8, 0.0  ;;  %6333 = vmatprep.mubr.bf16.mxu1 %v12547_v14  ;;  %v5104_v51 = vpack.c.bf16 %v5076_v61, %v5074_v10  ;;  %v5012_v54 = vadd.f32 %v5011_v1, %v11482_v3  ;;  %v8946_v10 = vld [vmem:[%s9439_s6 + $0x2d0] sm:$0xff]  }
 0x9c7   : > { %v5013_v35 = vpop.f32.mrf.mxu1 }
 0x9c8   : > { %v5105_v2 = vpack.c.bf16 %v5077_v37, %v5075_v48  ;;  %8257 = vmatpush3.bf16.msra.mxu0 %v8939_v20  ;;  %v5014_v58 = vadd.f32 %v5013_v35, %v11478_v34  ;;  %v5078_v20 = vmax.f32 %v5012_v54, 0.0 }
 0x9c9   : > { %v5015_v23 = vpop.f32.mrf.mxu1  ;;  %8258 = vmatprep.subr.bf16.mxu0 %v8940_v63  ;;  %v8945_v63 = vld [vmem:[%s9439_s6 + $0x298] sm:$0xff]  }
 0x9ca   : > { %v5016_v18 = vadd.f32 %v5015_v23, %v11482_v3  ;;  %5286 = vmatprep.mubr.bf16.mxu0 %v5105_v2  ;;  %v5079_v56 = vmax.f32 %v5014_v58, 0.0  ;;  %v8947_v23 = vld [vmem:[%s9439_s6 + $0x290] sm:$0xff]  }
 0x9cb   : > { %v5017_v36 = vpop.f32.mrf.mxu1  ;;  %5287 = vmatmul.mubr.bf16.gmra.mxu0 %v5104_v51 }
 0x9cc   : > { %v5018_v29 = vadd.f32 %v5017_v36, %v11478_v34  ;;  %8259 = vmatpush3.bf16.msra.mxu0 %v8941_v7  ;;  %v5080_v41 = vmax.f32 %v5016_v18, 0.0  ;;  %v8948_v18 = vld [vmem:[%s9439_s6 + $0x2c8] sm:$0xff]  }
 0x9cd   : > { %v5021_v0 = vpop.f32.mrf.mxu1  ;;  %7755 = vmatmul.mubr.msk.bf16.gmra.mxu1 %vm682_vm1, %v10955_v33  ;;  %8260 = vmatprep.subr.bf16.mxu0 %v8942_v24 }
 0x9ce   : > { %v5081_v8 = vmax.f32 %v5018_v29, 0.0  ;;  %6343 = vmatprep.mubr.bf16.mxu1 %v12547_v14  ;;  %v5106_v48 = vpack.c.bf16 %v5080_v41, %v5078_v20  ;;  %v5022_v2 = vadd.f32 %v5021_v0, %v11482_v3  ;;  %v8949_v0 = vld [vmem:[%s9439_s6 + $0x288] sm:$0xff]  }
 0x9cf   : > { %v5023_v61 = vpop.f32.mrf.mxu1 }
 0x9d0   : > { %v5107_v1 = vpack.c.bf16 %v5081_v8, %v5079_v56  ;;  %8261 = vmatpush3.bf16.msra.mxu0 %v8943_v13  ;;  %v5024_v35 = vadd.f32 %v5023_v61, %v11478_v34  ;;  %v5082_v29 = vmax.f32 %v5022_v2, 0.0  ;;  %v8950_v8 = vld [vmem:[%s9439_s6 + $0x2c0] sm:$0xff]  }
 0x9d1   : > { %v5025_v37 = vpop.f32.mrf.mxu1  ;;  %8262 = vmatprep.subr.bf16.mxu0 %v8944_v55 }
 0x9d2   : > { %v5026_v33 = vadd.f32 %v5025_v37, %v11482_v3  ;;  %5294 = vmatprep.mubr.bf16.mxu0 %v5107_v1  ;;  %v5083_v54 = vmax.f32 %v5024_v35, 0.0  ;;  %v8952_v35 = vld [vmem:[%s9439_s6 + $0x378] sm:$0xff]  }
 0x9d3   : > { %v5027_v7 = vpop.f32.mrf.mxu1  ;;  %5295 = vmatmul.mubr.bf16.gmra.mxu0 %v5106_v48  ;;  %v8951_v48 = vld [vmem:[%s9439_s6 + $0x280] sm:$0xff]  }
 0x9d4   : > { %v5028_v51 = vadd.f32 %v5027_v7, %v11478_v34  ;;  %8263 = vmatpush3.bf16.msra.mxu0 %v8945_v63  ;;  %v5084_v24 = vmax.f32 %v5026_v33, 0.0 }
 0x9d5   : > { %v5031_v58 = vpop.f32.mrf.mxu1  ;;  %7756 = vmatmul.mubr.msk.bf16.gmra.mxu1 %vm682_vm1, %v10975_v59  ;;  %8264 = vmatprep.subr.bf16.mxu0 %v8946_v10 }
 0x9d6   : > { %v5085_v36 = vmax.f32 %v5028_v51, 0.0  ;;  %6353 = vmatprep.mubr.bf16.mxu1 %v12547_v14  ;;  %v5108_v55 = vpack.c.bf16 %v5084_v24, %v5082_v29  ;;  %v5032_v61 = vadd.f32 %v5031_v58, %v11482_v3 }
 0x9d7   : > { %v5033_v13 = vpop.f32.mrf.mxu1 }
 0x9d8   : > { %v5109_v41 = vpack.c.bf16 %v5085_v36, %v5083_v54  ;;  %8265 = vmatpush3.bf16.msra.mxu0 %v8947_v23  ;;  %v5034_v20 = vadd.f32 %v5033_v13, %v11478_v34  ;;  %v5086_v7 = vmax.f32 %v5032_v61, 0.0 }
 0x9d9   : > { %v5035_v56 = vpop.f32.mrf.mxu1  ;;  %8266 = vmatprep.subr.bf16.mxu0 %v8948_v18 }
 0x9da   : > { %v5036_v59 = vadd.f32 %v5035_v56, %v11482_v3  ;;  %5302 = vmatprep.mubr.bf16.mxu0 %v5109_v41  ;;  %v5087_v33 = vmax.f32 %v5034_v20, 0.0 }
 0x9db   : > { %v5037_v1 = vpop.f32.mrf.mxu1  ;;  %5303 = vmatmul.mubr.bf16.gmra.mxu0 %v5108_v55 }
 0x9dc   : > { %v5038_v63 = vadd.f32 %v5037_v1, %v11478_v34  ;;  %8267 = vmatpush3.bf16.msra.mxu0 %v8949_v0  ;;  %v5088_v37 = vmax.f32 %v5036_v59, 0.0 }
 0x9dd   : > { %v5041_v10 = vpop.f32.mrf.mxu1  ;;  %7757 = vmatmul.mubr.msk.bf16.gmra.mxu1 %vm682_vm1, %v10993_v12  ;;  %8268 = vmatprep.subr.bf16.mxu0 %v8950_v8 }
 0x9de   : > { %v5089_v2 = vmax.f32 %v5038_v63, 0.0  ;;  %6363 = vmatprep.mubr.bf16.mxu1 %v12547_v14  ;;  %v5110_v24 = vpack.c.bf16 %v5088_v37, %v5086_v7  ;;  %v5042_v12 = vadd.f32 %v5041_v10, %v11482_v3 }
 0x9df   : > { %v5043_v51 = vpop.f32.mrf.mxu1 }
 0x9e0   : > { %v5111_v23 = vpack.c.bf16 %v5089_v2, %v5087_v33  ;;  %8269 = vmatpush3.bf16.msra.mxu0 %v8951_v48  ;;  %v5044_v18 = vadd.f32 %v5043_v51, %v11478_v34  ;;  %v5090_v56 = vmax.f32 %v5042_v12, 0.0 }
 0x9e1   : > { %v5045_v58 = vpop.f32.mrf.mxu1  ;;  %8318 = vmatprep.subr.bf16.mxu0 %v8952_v35 }
 0x9e2   : > { %v5046_v54 = vadd.f32 %v5045_v58, %v11482_v3  ;;  %5310 = vmatprep.mubr.bf16.mxu0 %v5111_v23  ;;  %v5091_v0 = vmax.f32 %v5044_v18, 0.0 }
 0x9e3   : > { %v5047_v36 = vpop.f32.mrf.mxu1  ;;  %5311 = vmatmul.mubr.bf16.gmra.mxu0 %v5110_v24 }
 0x9e4   : > { %v5048_v29 = vadd.f32 %v5047_v36, %v11478_v34  ;;  %v5092_v13 = vmax.f32 %v5046_v54, 0.0 }
 0x9e5   : > { %v5051_v41 = vpop.f32.mrf.mxu1  ;;  %7758 = vmatmul.mubr.msk.bf16.gmra.mxu1 %vm682_vm1, %v11027_v22 }
 0x9e6   : > { %v5093_v55 = vmax.f32 %v5048_v29, 0.0  ;;  %6373 = vmatprep.mubr.bf16.mxu1 %v12547_v14  ;;  %v5112_v59 = vpack.c.bf16 %v5092_v13, %v5090_v56  ;;  %v5052_v48 = vadd.f32 %v5051_v41, %v11482_v3  ;;  %v5363_v29 = vld [vmem:[%s9444_s20 + $0xa] sm:$0x3] }
 0x9e7   : > { %v5053_v8 = vpop.f32.mrf.mxu1 }
 0x9e8   : > { %v5113_v20 = vpack.c.bf16 %v5093_v55, %v5091_v0  ;;  %v5054_v1 = vadd.f32 %v5053_v8, %v11478_v34  ;;  %v5094_v2 = vmax.f32 %v5052_v48, 0.0  ;;  %v11554_v55 = vrot.slane %v5363_v29, %v11062_v15 }
 0x9e9   : > { %v5055_v61 = vpop.f32.mrf.mxu1  ;;  %v11557_v8 = vrot.slane %v5363_v29, %v12546_v38 }
 0x9ea   : > { %v5056_v63 = vadd.f32 %v5055_v61, %v11482_v3  ;;  %5318 = vmatprep.mubr.bf16.mxu0 %v5113_v20  ;;  %v5095_v14 = vmax.f32 %v5054_v1, 0.0 }
 0x9eb   : > { %v5057_v37 = vpop.f32.mrf.mxu1  ;;  %5319 = vmatmul.mubr.bf16.gmra.mxu0 %v5112_v59 }
 0x9ec   : > { %v5058_v22 = vadd.f32 %v5057_v37, %v11478_v34  ;;  %v5096_v10 = vmax.f32 %v5056_v63, 0.0 }
 0x9ed   : > { %v5061_v35 = vpop.f32.mrf.mxu1  ;;  %7759 = vmatmul.mubr.msk.bf16.gmra.mxu1 %vm682_vm1, %v11045_v52 }
 0x9ee   : > { %v5097_v33 = vmax.f32 %v5058_v22, 0.0  ;;  %v5114_v23 = vpack.c.bf16 %v5096_v10, %v5094_v2  ;;  %v5062_v54 = vadd.f32 %v5061_v35, %v11482_v3 }
 0x9ef   : > { %v5063_v7 = vpop.f32.mrf.mxu1 }
 0x9f0   : > { %v5115_v51 = vpack.c.bf16 %v5097_v33, %v5095_v14  ;;  %v5064_v58 = vadd.f32 %v5063_v7, %v11478_v34  ;;  %v5098_v56 = vmax.f32 %v5062_v54, 0.0 }
 0x9f1   : > { %v5065_v24 = vpop.f32.mrf.mxu1 }
 0x9f2   : > { %v5066_v18 = vadd.f32 %v5065_v24, %v11482_v3  ;;  %5326 = vmatprep.mubr.bf16.mxu0 %v5115_v51  ;;  %v5099_v41 = vmax.f32 %v5064_v58, 0.0  ;;  %v8953_v51 = vld [vmem:[%s9439_s6 + $0x338] sm:$0xff]   ;;  %v8954_v58 = vld [vmem:[%s9439_s6 + $0x370] sm:$0xff]  }
 0x9f3   : > { %v5067_v12 = vpop.f32.mrf.mxu1  ;;  %5327 = vmatmul.mubr.bf16.gmra.mxu0 %v5114_v23 }
 0x9f4   : > { %v5068_v36 = vadd.f32 %v5067_v12, %v11478_v34  ;;  %v5100_v52 = vmax.f32 %v5066_v18, 0.0 }
 0x9f5   : > { %v5429_v13 = vpop.f32.mrf.mxu1 }
 0x9f6   : > { %v5101_v0 = vmax.f32 %v5068_v36, 0.0  ;;  %v5116_v61 = vpack.c.bf16 %v5100_v52, %v5098_v56  ;;  %v5430_v63 = vadd.f32 %v5429_v13, %v11557_v8  ;;  %v8955_v13 = vld [vmem:[%s9439_s6 + $0x330] sm:$0xff]  }
 0x9f7   : > { %v5431_v20 = vpop.f32.mrf.mxu1 }
 0x9f8   : > { %v5117_v59 = vpack.c.bf16 %v5101_v0, %v5099_v41  ;;  %v5432_v1 = vadd.f32 %v5431_v20, %v11554_v55  ;;  %v5508_v33 = vmax.f32 %v5430_v63, 0.0  ;;  %v8956_v20 = vld [vmem:[%s9439_s6 + $0x368] sm:$0xff]  }
 0x9f9   : > { %v5433_v3 = vpop.f32.mrf.mxu1 }
 0x9fa   : > { %v5434_v34 = vadd.f32 %v5433_v3, %v11557_v8  ;;  %5334 = vmatprep.mubr.bf16.mxu0 %v5117_v59  ;;  %v5509_v35 = vmax.f32 %v5432_v1, 0.0 }
 0x9fb   : > { %5335 = vmatmul.mubr.bf16.gmra.mxu0 %v5116_v61  ;;  %v5435_v48 = vpop.f32.mrf.mxu1 }
 0x9fc   : > { %v5436_v37 = vadd.f32 %v5435_v48, %v11554_v55  ;;  %v5510_v22 = vmax.f32 %v5434_v34, 0.0 }
 0x9fd   : > { %v5439_v10 = vpop.f32.mrf.mxu1 }
 0x9fe   : > { %v5511_v14 = vmax.f32 %v5436_v37, 0.0  ;;  %v5540_v23 = vpack.c.bf16 %v5510_v22, %v5508_v33  ;;  %v5440_v12 = vadd.f32 %v5439_v10, %v11557_v8  ;;  %v8957_v22 = vld [vmem:[%s9439_s6 + $0x328] sm:$0xff]   ;;  %v8958_v33 = vld [vmem:[%s9439_s6 + $0x360] sm:$0xff]  }
 0x9ff   : > { %v5441_v2 = vpop.f32.mrf.mxu1 }
 0xa00   : > { %v5541_v7 = vpack.c.bf16 %v5511_v14, %v5509_v35  ;;  %v5442_v18 = vadd.f32 %v5441_v2, %v11554_v55  ;;  %v5512_v1 = vmax.f32 %v5440_v12, 0.0 }
 0xa01   : > { %v5443_v24 = vpop.f32.mrf.mxu1 }
 0xa02   : > { %v5444_v54 = vadd.f32 %v5443_v24, %v11557_v8  ;;  %5716 = vmatprep.mubr.bf16.mxu0 %v5541_v7  ;;  %v5513_v59 = vmax.f32 %v5442_v18, 0.0 }
 0xa03   : > { %v8078_v36 = vpop.f32.mrf.mxu0  ;;  %v5445_v29 = vpop.f32.mrf.mxu1  ;;  %5717 = vmatmul.mubr.bf16.vlgmr.msra.gmra.mxu0 %v5540_v23 }
 0xa04   : > { %v5446_v52 = vadd.f32 %v5445_v29, %v11554_v55  ;;  %8319 = vmatpush3.bf16.msra.mxu0 %v8953_v51  ;;  %v5514_v41 = vmax.f32 %v5444_v54, 0.0  ;;  %v8959_v54 = vld [vmem:[%s9439_s6 + $0x320] sm:$0xff]  }
 0xa05   : > { %v8079_v0 = vpop.f32.mrf.mxu0  ;;  %v5449_v56 = vpop.f32.mrf.mxu1  ;;  %8320 = vmatprep.subr.bf16.mxu0 %v8954_v58 }
 0xa06   : > { %v5515_v61 = vmax.f32 %v5446_v52, 0.0  ;;  %v8080_v3 = vadd.f32 %v8079_v0, %v8078_v36  ;;  %v5542_v10 = vpack.c.bf16 %v5514_v41, %v5512_v1  ;;  %v5450_v23 = vadd.f32 %v5449_v56, %v11557_v8  ;;  %v8960_v52 = vld [vmem:[%s9439_s6 + $0x358] sm:$0xff]  }
 0xa07   : > { %v8081_v34 = vpop.f32.mrf.mxu0  ;;  %v5451_v63 = vpop.f32.mrf.mxu1 }
 0xa08   : > { %v5543_v48 = vpack.c.bf16 %v5515_v61, %v5513_v59  ;;  %v11572_v37 = vadd.f32 %v8080_v3, %v11218_v30  ;;  %8321 = vmatpush3.bf16.msra.mxu0 %v8955_v13  ;;  %v5452_v2 = vadd.f32 %v5451_v63, %v11554_v55  ;;  %v5516_v56 = vmax.f32 %v5450_v23, 0.0  ;;  %v8961_v3 = vld [vmem:[%s9439_s6 + $0x318] sm:$0xff]  }
 0xa09   : > { %v8082_v35 = vpop.f32.mrf.mxu0  ;;  %v5453_v14 = vpop.f32.mrf.mxu1  ;;  %8322 = vmatprep.subr.bf16.mxu0 %v8956_v20 }
 0xa0a   : > { %v8083_v7 = vadd.f32 %v8082_v35, %v8081_v34  ;;  %v5454_v51 = vadd.f32 %v5453_v14, %v11557_v8  ;;  %5724 = vmatprep.mubr.bf16.mxu0 %v5543_v48  ;;  %v5517_v13 = vmax.f32 %v5452_v2, 0.0  ;;  %v8962_v48 = vld [vmem:[%s9439_s6 + $0x350] sm:$0xff]  }
 0xa0b   : > { %v8084_v24 = vpop.f32.mrf.mxu0  ;;  %v5455_v30 = vpop.f32.mrf.mxu1  ;;  %5725 = vmatmul.mubr.bf16.gmra.mxu0 %v5542_v10 }
 0xa0c   : > { %v11580_v58 = vadd.f32 %v8083_v7, %v11223_v32  ;;  %v5456_v18 = vadd.f32 %v5455_v30, %v11554_v55  ;;  %8323 = vmatpush3.bf16.msra.mxu0 %v8957_v22  ;;  %v5518_v12 = vmax.f32 %v5454_v51, 0.0  ;;  %v8963_v51 = vld [vmem:[%s9439_s6 + $0x310] sm:$0xff]  }
 0xa0d   : > { %v8085_v36 = vpop.f32.mrf.mxu0  ;;  %v5459_v29 = vpop.f32.mrf.mxu1  ;;  %8324 = vmatprep.subr.bf16.mxu0 %v8958_v33 }
 0xa0e   : > { %v5519_v41 = vmax.f32 %v5456_v18, 0.0  ;;  %v8086_v0 = vadd.f32 %v8085_v36, %v8084_v24  ;;  %v5544_v1 = vpack.c.bf16 %v5518_v12, %v5516_v56  ;;  %v5460_v14 = vadd.f32 %v5459_v29, %v11557_v8  ;;  %v8964_v18 = vld [vmem:[%s9439_s6 + $0x348] sm:$0xff]  }
 0xa0f   : > { %v8087_v20 = vpop.f32.mrf.mxu0  ;;  %v5461_v59 = vpop.f32.mrf.mxu1 }
 0xa10   : > { %v5545_v61 = vpack.c.bf16 %v5519_v41, %v5517_v13  ;;  %v11586_v32 = vadd.f32 %v8086_v0, %v11227_v11  ;;  %8325 = vmatpush3.bf16.msra.mxu0 %v8959_v54  ;;  %v5462_v22 = vadd.f32 %v5461_v59, %v11554_v55  ;;  %v5520_v29 = vmax.f32 %v5460_v14, 0.0  ;;  %v8965_v0 = vld [vmem:[%s9439_s6 + $0x308] sm:$0xff]  }
 0xa11   : > { %v8088_v34 = vpop.f32.mrf.mxu0  ;;  %v5463_v63 = vpop.f32.mrf.mxu1  ;;  %8326 = vmatprep.subr.bf16.mxu0 %v8960_v52 }
 0xa12   : > { %v8089_v10 = vadd.f32 %v8088_v34, %v8087_v20  ;;  %v5464_v35 = vadd.f32 %v5463_v63, %v11557_v8  ;;  %5732 = vmatprep.mubr.bf16.mxu0 %v5545_v61  ;;  %v5521_v54 = vmax.f32 %v5462_v22, 0.0  ;;  %v8966_v61 = vld [vmem:[%s9439_s6 + $0x340] sm:$0xff]  }
 0xa13   : > { %v8090_v33 = vpop.f32.mrf.mxu0  ;;  %v5465_v11 = vpop.f32.mrf.mxu1  ;;  %5733 = vmatmul.mubr.bf16.gmra.mxu0 %v5544_v1 }
 0xa14   : > { %v11594_v2 = vadd.f32 %v8089_v10, %v11231_v5  ;;  %v5466_v7 = vadd.f32 %v5465_v11, %v11554_v55  ;;  %8327 = vmatpush3.bf16.msra.mxu0 %v8961_v3  ;;  %v5522_v23 = vmax.f32 %v5464_v35, 0.0  ;;  %v8967_v35 = vld [vmem:[%s9439_s6 + $0x300] sm:$0xff]  }
 0xa15   : > { %v8091_v24 = vpop.f32.mrf.mxu0  ;;  %v5469_v30 = vpop.f32.mrf.mxu1  ;;  %8328 = vmatprep.subr.bf16.mxu0 %v8962_v48 }
 0xa16   : > { %v5523_v12 = vmax.f32 %v5466_v7, 0.0  ;;  %v8092_v36 = vadd.f32 %v8091_v24, %v8090_v33  ;;  %v5546_v56 = vpack.c.bf16 %v5522_v23, %v5520_v29  ;;  %v5470_v63 = vadd.f32 %v5469_v30, %v11557_v8  ;;  %v8968_v7 = vld [vmem:[%s9439_s6 + $0x3f8] sm:$0xff]  }
 0xa17   : > { %v8093_v52 = vpop.f32.mrf.mxu0  ;;  %v5471_v13 = vpop.f32.mrf.mxu1 }
 0xa18   : > { %v5547_v41 = vpack.c.bf16 %v5523_v12, %v5521_v54  ;;  %v11600_v5 = vadd.f32 %v8092_v36, %v11235_v16  ;;  %8329 = vmatpush3.bf16.msra.mxu0 %v8963_v51  ;;  %v5472_v3 = vadd.f32 %v5471_v13, %v11554_v55 }
 0xa19   : > { %v8094_v20 = vpop.f32.mrf.mxu0  ;;  %v5473_v59 = vpop.f32.mrf.mxu1  ;;  %8330 = vmatprep.subr.bf16.mxu0 %v8964_v18  ;;  %v5524_v18 = vmax.f32 %v5470_v63, 0.0 }
 0xa1a   : > { %v8095_v1 = vadd.f32 %v8094_v20, %v8093_v52  ;;  %v5474_v34 = vadd.f32 %v5473_v59, %v11557_v8  ;;  %5740 = vmatprep.mubr.bf16.mxu0 %v5547_v41  ;;  %v5525_v51 = vmax.f32 %v5472_v3, 0.0 }
 0xa1b   : > { %v8096_v48 = vpop.f32.mrf.mxu0  ;;  %v5475_v16 = vpop.f32.mrf.mxu1  ;;  %5741 = vmatmul.mubr.bf16.gmra.mxu0 %v5546_v56 }
 0xa1c   : > { %v11608_v22 = vadd.f32 %v8095_v1, %v11238_v26  ;;  %v5476_v10 = vadd.f32 %v5475_v16, %v11554_v55  ;;  %8331 = vmatpush3.bf16.msra.mxu0 %v8965_v0  ;;  %v5526_v14 = vmax.f32 %v5474_v34, 0.0 }
 0xa1d   : > { %v8097_v33 = vpop.f32.mrf.mxu0  ;;  %v5479_v11 = vpop.f32.mrf.mxu1  ;;  %8332 = vmatprep.subr.bf16.mxu0 %v8966_v61 }
 0xa1e   : > { %v5527_v23 = vmax.f32 %v5476_v10, 0.0  ;;  %v8098_v24 = vadd.f32 %v8097_v33, %v8096_v48  ;;  %v5548_v26 = vpack.c.bf16 %v5526_v14, %v5524_v18  ;;  %v5480_v56 = vadd.f32 %v5479_v11, %v11557_v8 }
 0xa1f   : > { %v8099_v30 = vpop.f32.mrf.mxu0  ;;  %v5481_v54 = vpop.f32.mrf.mxu1 }
 0xa20   : > { %v5549_v12 = vpack.c.bf16 %v5527_v23, %v5525_v51  ;;  %v11614_v36 = vadd.f32 %v8098_v24, %v11242_v62  ;;  %8333 = vmatpush3.bf16.msra.mxu0 %v8967_v35  ;;  %v5482_v13 = vadd.f32 %v5481_v54, %v11554_v55  ;;  %v5528_v10 = vmax.f32 %v5480_v56, 0.0 }
 0xa21   : > { %v8100_v29 = vpop.f32.mrf.mxu0  ;;  %v5483_v52 = vpop.f32.mrf.mxu1  ;;  %8382 = vmatprep.subr.bf16.mxu0 %v8968_v7 }
 0xa22   : > { %v8101_v41 = vadd.f32 %v8100_v29, %v8099_v30  ;;  %v5484_v0 = vadd.f32 %v5483_v52, %v11557_v8  ;;  %5748 = vmatprep.mubr.bf16.mxu0 %v5549_v12  ;;  %v5529_v63 = vmax.f32 %v5482_v13, 0.0 }
 0xa23   : > { %v8102_v20 = vpop.f32.mrf.mxu0  ;;  %v5485_v59 = vpop.f32.mrf.mxu1  ;;  %5749 = vmatmul.mubr.bf16.gmra.mxu0 %v5548_v26 }
 0xa24   : > { %v11620_v61 = vadd.f32 %v8101_v41, %v11245_v57  ;;  %v5486_v62 = vadd.f32 %v5485_v59, %v11554_v55  ;;  %v5530_v3 = vmax.f32 %v5484_v0, 0.0 }
 0xa25   : > { %v8103_v1 = vpop.f32.mrf.mxu0  ;;  %v5489_v34 = vpop.f32.mrf.mxu1 }
 0xa26   : > { %v5531_v48 = vmax.f32 %v5486_v62, 0.0  ;;  %v8104_v16 = vadd.f32 %v8103_v1, %v8102_v20  ;;  %v5550_v7 = vpack.c.bf16 %v5530_v3, %v5528_v10  ;;  %v5490_v30 = vadd.f32 %v5489_v34, %v11557_v8 }
 0xa27   : > { %v8105_v35 = vpop.f32.mrf.mxu0  ;;  %v5491_v14 = vpop.f32.mrf.mxu1 }
 0xa28   : > { %v5551_v33 = vpack.c.bf16 %v5531_v48, %v5529_v63  ;;  %v11624_v11 = vadd.f32 %v8104_v16, %v11249_v25  ;;  %v5492_v57 = vadd.f32 %v5491_v14, %v11554_v55  ;;  %v5532_v20 = vmax.f32 %v5490_v30, 0.0 }
 0xa29   : > { %v8106_v51 = vpop.f32.mrf.mxu0  ;;  %v5493_v23 = vpop.f32.mrf.mxu1 }
 0xa2a   : > { %v8107_v24 = vadd.f32 %v8106_v51, %v8105_v35  ;;  %v5494_v18 = vadd.f32 %v5493_v23, %v11557_v8  ;;  %5756 = vmatprep.mubr.bf16.mxu0 %v5551_v33  ;;  %v5533_v41 = vmax.f32 %v5492_v57, 0.0  ;;  %v5801_v51 = vld [vmem:[%s9444_s20 + $0xc] sm:$0x3] }
 0xa2b   : > { %v8108_v54 = vpop.f32.mrf.mxu0  ;;  %v5495_v12 = vpop.f32.mrf.mxu1  ;;  %5757 = vmatmul.mubr.bf16.gmra.mxu0 %v5550_v7 }
 0xa2c   : > { %v11630_v26 = vadd.f32 %v8107_v24, %v11252_v45  ;;  %v5496_v25 = vadd.f32 %v5495_v12, %v11554_v55  ;;  %v5534_v29 = vmax.f32 %v5494_v18, 0.0  ;;  %v11645_v12 = vrot.slane %v5801_v51, %v11062_v15 }
 0xa2d   : > { %v8109_v52 = vpop.f32.mrf.mxu0  ;;  %v5499_v13 = vpop.f32.mrf.mxu1 }
 0xa2e   : > { %v5535_v0 = vmax.f32 %v5496_v25, 0.0  ;;  %v8110_v56 = vadd.f32 %v8109_v52, %v8108_v54  ;;  %v5552_v34 = vpack.c.bf16 %v5534_v29, %v5532_v20  ;;  %v5500_v35 = vadd.f32 %v5499_v13, %v11557_v8 }
 0xa2f   : > { %v8111_v59 = vpop.f32.mrf.mxu0  ;;  %v5501_v62 = vpop.f32.mrf.mxu1 }
 0xa30   : > { %v5553_v3 = vpack.c.bf16 %v5535_v0, %v5533_v41  ;;  %v11634_v1 = vadd.f32 %v8110_v56, %v11256_v49  ;;  %v5502_v48 = vadd.f32 %v5501_v62, %v11554_v55  ;;  %v5536_v25 = vmax.f32 %v5500_v35, 0.0 }
 0xa31   : > { %v8112_v63 = vpop.f32.mrf.mxu0  ;;  %v5503_v45 = vpop.f32.mrf.mxu1 }
 0xa32   : > { %v8113_v16 = vadd.f32 %v8112_v63, %v8111_v59  ;;  %v5504_v10 = vadd.f32 %v5503_v45, %v11557_v8  ;;  %5764 = vmatprep.mubr.bf16.mxu0 %v5553_v3  ;;  %v5537_v18 = vmax.f32 %v5502_v48, 0.0  ;;  %v11648_v8 = vrot.slane %v5801_v51, %v12546_v38 }
 0xa33   : > { %v8114_v14 = vpop.f32.mrf.mxu0  ;;  %v5505_v33 = vpop.f32.mrf.mxu1  ;;  %5765 = vmatmul.mubr.bf16.gmra.mxu0 %v5552_v34 }
 0xa34   : > { %v11640_v7 = vadd.f32 %v8113_v16, %v11259_v39  ;;  %v5506_v49 = vadd.f32 %v5505_v33, %v11554_v55  ;;  %v5538_v23 = vmax.f32 %v5504_v10, 0.0 }
 0xa35   : > { %v8115_v57 = vpop.f32.mrf.mxu0  ;;  %v5867_v24 = vpop.f32.mrf.mxu1 }
 0xa36   : > { %v5539_v30 = vmax.f32 %v5506_v49, 0.0  ;;  %v8116_v54 = vadd.f32 %v8115_v57, %v8114_v14  ;;  %v5554_v55 = vpack.c.bf16 %v5538_v23, %v5536_v25  ;;  %v5868_v62 = vadd.f32 %v5867_v24, %v11648_v8  ;;  %v8969_v24 = vld [vmem:[%s9439_s6 + $0x3b8] sm:$0xff]  }
 0xa37   : > { %v8117_v29 = vpop.f32.mrf.mxu0  ;;  %v5869_v52 = vpop.f32.mrf.mxu1 }
 0xa38   : > { %v5555_v39 = vpack.c.bf16 %v5539_v30, %v5537_v18  ;;  %v11651_v13 = vadd.f32 %v8116_v54, %v11291_v21  ;;  %v5870_v56 = vadd.f32 %v5869_v52, %v11645_v12  ;;  %v5946_v33 = vmax.f32 %v5868_v62, 0.0  ;;  %v8970_v54 = vld [vmem:[%s9439_s6 + $0x3f0] sm:$0xff]  }
 0xa39   : > { %v8118_v41 = vpop.f32.mrf.mxu0  ;;  %v5871_v0 = vpop.f32.mrf.mxu1 }
 0xa3a   : > { %v8119_v20 = vadd.f32 %v8118_v41, %v8117_v29  ;;  %v5872_v59 = vadd.f32 %v5871_v0, %v11648_v8  ;;  %5772 = vmatprep.mubr.bf16.mxu0 %v5555_v39  ;;  %v5947_v10 = vmax.f32 %v5870_v56, 0.0  ;;  %v8971_v56 = vld [vmem:[%s9439_s6 + $0x3b0] sm:$0xff]  }
 0xa3b   : > { %v8120_v3 = vpop.f32.mrf.mxu0  ;;  %5773 = vmatmul.mubr.bf16.gmra.mxu0 %v5554_v55  ;;  %v5873_v34 = vpop.f32.mrf.mxu1 }
 0xa3c   : > { %v11657_v63 = vadd.f32 %v8119_v20, %v11295_v6  ;;  %v5874_v21 = vadd.f32 %v5873_v34, %v11645_v12  ;;  %v5948_v45 = vmax.f32 %v5872_v59, 0.0 }
 0xa3d   : > { %v8121_v48 = vpop.f32.mrf.mxu0  ;;  %v5877_v16 = vpop.f32.mrf.mxu1 }
 0xa3e   : > { %v5949_v35 = vmax.f32 %v5874_v21, 0.0  ;;  %v8122_v14 = vadd.f32 %v8121_v48, %v8120_v3  ;;  %v5978_v6 = vpack.c.bf16 %v5948_v45, %v5946_v33  ;;  %v5878_v39 = vadd.f32 %v5877_v16, %v11648_v8  ;;  %v8972_v3 = vld [vmem:[%s9439_s6 + $0x3e8] sm:$0xff]  }
 0xa3f   : > { %v8123_v49 = vpop.f32.mrf.mxu0  ;;  %v5879_v51 = vpop.f32.mrf.mxu1 }
 0xa40   : > { %v5979_v23 = vpack.c.bf16 %v5949_v35, %v5947_v10  ;;  %v11661_v57 = vadd.f32 %v8122_v14, %v11300_v28  ;;  %v5880_v25 = vadd.f32 %v5879_v51, %v11645_v12  ;;  %v5950_v48 = vmax.f32 %v5878_v39, 0.0  ;;  %v8973_v14 = vld [vmem:[%s9439_s6 + $0x3a8] sm:$0xff]  }
 0xa41   : > { %v8124_v18 = vpop.f32.mrf.mxu0  ;;  %v5881_v30 = vpop.f32.mrf.mxu1 }
 0xa42   : > { %v8125_v29 = vadd.f32 %v8124_v18, %v8123_v49  ;;  %v5882_v52 = vadd.f32 %v5881_v30, %v11648_v8  ;;  %6154 = vmatprep.mubr.bf16.mxu0 %v5979_v23  ;;  %v5951_v34 = vmax.f32 %v5880_v25, 0.0  ;;  %v8974_v23 = vld [vmem:[%s9439_s6 + $0x3e0] sm:$0xff]  }
 0xa43   : > { %v8142_v55 = vpop.f32.mrf.mxu0  ;;  %v5883_v41 = vpop.f32.mrf.mxu1  ;;  %6155 = vmatmul.mubr.bf16.vlgmr.msra.gmra.mxu0 %v5978_v6 }
 0xa44   : > { %v11669_v28 = vadd.f32 %v8125_v29, %v11311_v46  ;;  %v5884_v0 = vadd.f32 %v5883_v41, %v11645_v12  ;;  %8383 = vmatpush3.bf16.msra.mxu0 %v8969_v24  ;;  %v5952_v20 = vmax.f32 %v5882_v52, 0.0  ;;  %v8975_v52 = vld [vmem:[%s9439_s6 + $0x3a0] sm:$0xff]  }
 0xa45   : > { %v8143_v59 = vpop.f32.mrf.mxu0  ;;  %v5887_v62 = vpop.f32.mrf.mxu1  ;;  %8384 = vmatprep.subr.bf16.mxu0 %v8970_v54 }
 0xa46   : > { %v5953_v21 = vmax.f32 %v5884_v0, 0.0  ;;  %v8144_v45 = vadd.f32 %v8143_v59, %v8142_v55  ;;  %v5980_v33 = vpack.c.bf16 %v5952_v20, %v5950_v48  ;;  %v5888_v30 = vadd.f32 %v5887_v62, %v11648_v8  ;;  %v8976_v0 = vld [vmem:[%s9439_s6 + $0x3d8] sm:$0xff]  }
 0xa47   : > { %v8145_v16 = vpop.f32.mrf.mxu0  ;;  %v5889_v10 = vpop.f32.mrf.mxu1 }
 0xa48   : > { %v5981_v35 = vpack.c.bf16 %v5953_v21, %v5951_v34  ;;  %v11675_v46 = vadd.f32 %v8144_v45, %v11572_v37  ;;  %8385 = vmatpush3.bf16.msra.mxu0 %v8971_v56  ;;  %v5890_v24 = vadd.f32 %v5889_v10, %v11645_v12  ;;  %v5954_v62 = vmax.f32 %v5888_v30, 0.0  ;;  %v8977_v45 = vld [vmem:[%s9439_s6 + $0x398] sm:$0xff]  }
 0xa49   : > { %v8146_v49 = vpop.f32.mrf.mxu0  ;;  %v5891_v51 = vpop.f32.mrf.mxu1  ;;  %8386 = vmatprep.subr.bf16.mxu0 %v8972_v3 }
 0xa4a   : > { %v8147_v6 = vadd.f32 %v8146_v49, %v8145_v16  ;;  %v5892_v18 = vadd.f32 %v5891_v51, %v11648_v8  ;;  %6162 = vmatprep.mubr.bf16.mxu0 %v5981_v35  ;;  %v5955_v56 = vmax.f32 %v5890_v24, 0.0  ;;  %v8978_v35 = vld [vmem:[%s9439_s6 + $0x3d0] sm:$0xff]  }
 0xa4b   : > { %v8148_v54 = vpop.f32.mrf.mxu0  ;;  %v5893_v37 = vpop.f32.mrf.mxu1  ;;  %6163 = vmatmul.mubr.bf16.gmra.mxu0 %v5980_v33 }
 0xa4c   : > { %v11683_v25 = vadd.f32 %v8147_v6, %v11580_v58  ;;  %v5894_v29 = vadd.f32 %v5893_v37, %v11645_v12  ;;  %8387 = vmatpush3.bf16.msra.mxu0 %v8973_v14  ;;  %v5956_v39 = vmax.f32 %v5892_v18, 0.0  ;;  %v8979_v18 = vld [vmem:[%s9439_s6 + $0x390] sm:$0xff]  }
 0xa4d   : > { %v8149_v55 = vpop.f32.mrf.mxu0  ;;  %v5897_v41 = vpop.f32.mrf.mxu1  ;;  %8388 = vmatprep.subr.bf16.mxu0 %v8974_v23 }
 0xa4e   : > { %v5957_v20 = vmax.f32 %v5894_v29, 0.0  ;;  %v8150_v59 = vadd.f32 %v8149_v55, %v8148_v54  ;;  %v5982_v48 = vpack.c.bf16 %v5956_v39, %v5954_v62  ;;  %v5898_v51 = vadd.f32 %v5897_v41, %v11648_v8  ;;  %v8980_v29 = vld [vmem:[%s9439_s6 + $0x3c8] sm:$0xff]  }
 0xa4f   : > { %v8151_v3 = vpop.f32.mrf.mxu0  ;;  %v5899_v34 = vpop.f32.mrf.mxu1 }
 0xa50   : > { %v5983_v21 = vpack.c.bf16 %v5957_v20, %v5955_v56  ;;  %v11689_v58 = vadd.f32 %v8150_v59, %v11586_v32  ;;  %8389 = vmatpush3.bf16.msra.mxu0 %v8975_v52  ;;  %v5900_v14 = vadd.f32 %v5899_v34, %v11645_v12  ;;  %v5958_v41 = vmax.f32 %v5898_v51, 0.0  ;;  %v8981_v59 = vld [vmem:[%s9439_s6 + $0x388] sm:$0xff]  }
 0xa51   : > { %v8152_v16 = vpop.f32.mrf.mxu0  ;;  %v5901_v10 = vpop.f32.mrf.mxu1  ;;  %8390 = vmatprep.subr.bf16.mxu0 %v8976_v0 }
 0xa52   : > { %v8153_v33 = vadd.f32 %v8152_v16, %v8151_v3  ;;  %v5902_v49 = vadd.f32 %v5901_v10, %v11648_v8  ;;  %6170 = vmatprep.mubr.bf16.mxu0 %v5983_v21  ;;  %v5959_v52 = vmax.f32 %v5900_v14, 0.0  ;;  %v8982_v21 = vld [vmem:[%s9439_s6 + $0x3c0] sm:$0xff]  }
 0xa53   : > { %v8154_v23 = vpop.f32.mrf.mxu0  ;;  %v5903_v32 = vpop.f32.mrf.mxu1  ;;  %6171 = vmatmul.mubr.bf16.gmra.mxu0 %v5982_v48 }
 0xa54   : > { %v11697_v24 = vadd.f32 %v8153_v33, %v11594_v2  ;;  %v5904_v6 = vadd.f32 %v5903_v32, %v11645_v12  ;;  %8391 = vmatpush3.bf16.msra.mxu0 %v8977_v45  ;;  %v5960_v30 = vmax.f32 %v5902_v49, 0.0  ;;  %v8983_v49 = vld [vmem:[%s9439_s6 + $0x380] sm:$0xff]  }
 0xa55   : > { %v8155_v54 = vpop.f32.mrf.mxu0  ;;  %v5907_v37 = vpop.f32.mrf.mxu1  ;;  %8392 = vmatprep.subr.bf16.mxu0 %v8978_v35 }
 0xa56   : > { %v5961_v39 = vmax.f32 %v5904_v6, 0.0  ;;  %v8156_v55 = vadd.f32 %v8155_v54, %v8154_v23  ;;  %v5984_v62 = vpack.c.bf16 %v5960_v30, %v5958_v41  ;;  %v5908_v10 = vadd.f32 %v5907_v37, %v11648_v8 }
 0xa57   : > { %v8157_v0 = vpop.f32.mrf.mxu0  ;;  %v5909_v56 = vpop.f32.mrf.mxu1 }
 0xa58   : > { %v5985_v20 = vpack.c.bf16 %v5961_v39, %v5959_v52  ;;  %v11703_v2 = vadd.f32 %v8156_v55, %v11600_v5  ;;  %8393 = vmatpush3.bf16.msra.mxu0 %v8979_v18  ;;  %v5910_v45 = vadd.f32 %v5909_v56, %v11645_v12  ;;  %v5962_v54 = vmax.f32 %v5908_v10, 0.0 }
 0xa59   : > { %v8158_v3 = vpop.f32.mrf.mxu0  ;;  %v5911_v34 = vpop.f32.mrf.mxu1  ;;  %8394 = vmatprep.subr.bf16.mxu0 %v8980_v29 }
 0xa5a   : > { %v8159_v48 = vadd.f32 %v8158_v3, %v8157_v0  ;;  %v5912_v16 = vadd.f32 %v5911_v34, %v11648_v8  ;;  %6178 = vmatprep.mubr.bf16.mxu0 %v5985_v20  ;;  %v5963_v6 = vmax.f32 %v5910_v45, 0.0 }
 0xa5b   : > { %v8160_v35 = vpop.f32.mrf.mxu0  ;;  %v5913_v14 = vpop.f32.mrf.mxu1  ;;  %6179 = vmatmul.mubr.bf16.gmra.mxu0 %v5984_v62 }
 0xa5c   : > { %v11711_v5 = vadd.f32 %v8159_v48, %v11608_v22  ;;  %v5914_v33 = vadd.f32 %v5913_v14, %v11645_v12  ;;  %8395 = vmatpush3.bf16.msra.mxu0 %v8981_v59  ;;  %v5964_v51 = vmax.f32 %v5912_v16, 0.0 }
 0xa5d   : > { %v8161_v23 = vpop.f32.mrf.mxu0  ;;  %v5917_v32 = vpop.f32.mrf.mxu1  ;;  %8396 = vmatprep.subr.bf16.mxu0 %v8982_v21 }
 0xa5e   : > { %v5965_v18 = vmax.f32 %v5914_v33, 0.0  ;;  %v8162_v30 = vadd.f32 %v8161_v23, %v8160_v35  ;;  %v5986_v22 = vpack.c.bf16 %v5964_v51, %v5962_v54  ;;  %v5918_v59 = vadd.f32 %v5917_v32, %v11648_v8 }
 0xa5f   : > { %v8163_v29 = vpop.f32.mrf.mxu0  ;;  %v5919_v37 = vpop.f32.mrf.mxu1 }
 0xa60   : > { %v5987_v52 = vpack.c.bf16 %v5965_v18, %v5963_v6  ;;  %v11716_v39 = vadd.f32 %v8162_v30, %v11614_v36  ;;  %8397 = vmatpush3.bf16.msra.mxu0 %v8983_v49  ;;  %v5920_v0 = vadd.f32 %v5919_v37, %v11645_v12  ;;  %v5966_v14 = vmax.f32 %v5918_v59, 0.0 }
 0xa61   : > { %v8164_v55 = vpop.f32.mrf.mxu0  ;;  %v5921_v41 = vpop.f32.mrf.mxu1 }
 0xa62   : > { %v8165_v56 = vadd.f32 %v8164_v55, %v8163_v29  ;;  %v5922_v20 = vadd.f32 %v5921_v41, %v11648_v8  ;;  %6186 = vmatprep.mubr.bf16.mxu0 %v5987_v52  ;;  %v5967_v16 = vmax.f32 %v5920_v0, 0.0 }
 0xa63   : > { %v8166_v62 = vpop.f32.mrf.mxu0  ;;  %v5923_v3 = vpop.f32.mrf.mxu1  ;;  %6187 = vmatmul.mubr.bf16.gmra.mxu0 %v5986_v22 }
 0xa64   : > { %v11722_v34 = vadd.f32 %v8165_v56, %v11620_v61  ;;  %v5924_v36 = vadd.f32 %v5923_v3, %v11645_v12  ;;  %v5968_v21 = vmax.f32 %v5922_v20, 0.0 }
 0xa65   : > { %v8167_v45 = vpop.f32.mrf.mxu0  ;;  %v5927_v48 = vpop.f32.mrf.mxu1 }
 0xa66   : > { %v5969_v10 = vmax.f32 %v5924_v36, 0.0  ;;  %v8168_v35 = vadd.f32 %v8167_v45, %v8166_v62  ;;  %v5988_v32 = vpack.c.bf16 %v5968_v21, %v5966_v14  ;;  %v5928_v29 = vadd.f32 %v5927_v48, %v11648_v8 }
 0xa67   : > { %v8169_v33 = vpop.f32.mrf.mxu0  ;;  %v5929_v49 = vpop.f32.mrf.mxu1 }
 0xa68   : > { %v5989_v51 = vpack.c.bf16 %v5969_v10, %v5967_v16  ;;  %v11726_v23 = vadd.f32 %v8168_v35, %v11624_v11  ;;  %v5930_v61 = vadd.f32 %v5929_v49, %v11645_v12  ;;  %v5970_v62 = vmax.f32 %v5928_v29, 0.0 }
 0xa69   : > { %v8170_v6 = vpop.f32.mrf.mxu0  ;;  %v5931_v18 = vpop.f32.mrf.mxu1 }
 0xa6a   : > { %v8171_v30 = vadd.f32 %v8170_v6, %v8169_v33  ;;  %v5932_v54 = vadd.f32 %v5931_v18, %v11648_v8  ;;  %6194 = vmatprep.mubr.bf16.mxu0 %v5989_v51  ;;  %v5971_v56 = vmax.f32 %v5930_v61, 0.0  ;;  %v6239_v6 = vld [vmem:[%s9444_s20 + $0xe] sm:$0x3] }
 0xa6b   : > { %v8172_v37 = vpop.f32.mrf.mxu0  ;;  %v5933_v52 = vpop.f32.mrf.mxu1  ;;  %6195 = vmatmul.mubr.bf16.gmra.mxu0 %v5988_v32 }
 0xa6c   : > { %v11732_v22 = vadd.f32 %v8171_v30, %v11630_v26  ;;  %v5934_v11 = vadd.f32 %v5933_v52, %v11645_v12  ;;  %v5972_v55 = vmax.f32 %v5932_v54, 0.0  ;;  %v11747_v52 = vrot.slane %v6239_v6, %v11062_v15 }
 0xa6d   : > { %v8173_v41 = vpop.f32.mrf.mxu0  ;;  %v5937_v0 = vpop.f32.mrf.mxu1 }
 0xa6e   : > { %v5973_v20 = vmax.f32 %v5934_v11, 0.0  ;;  %v8174_v59 = vadd.f32 %v8173_v41, %v8172_v37  ;;  %v5990_v48 = vpack.c.bf16 %v5972_v55, %v5970_v62  ;;  %v5938_v33 = vadd.f32 %v5937_v0, %v11648_v8 }
 0xa6f   : > { %v8175_v3 = vpop.f32.mrf.mxu0  ;;  %v5939_v36 = vpop.f32.mrf.mxu1 }
 0xa70   : > { %v5991_v21 = vpack.c.bf16 %v5973_v20, %v5971_v56  ;;  %v11736_v45 = vadd.f32 %v8174_v59, %v11634_v1  ;;  %v5940_v10 = vadd.f32 %v5939_v36, %v11645_v12  ;;  %v5974_v11 = vmax.f32 %v5938_v33, 0.0 }
 0xa71   : > { %v8176_v16 = vpop.f32.mrf.mxu0  ;;  %v5941_v26 = vpop.f32.mrf.mxu1 }
 0xa72   : > { %v8177_v35 = vadd.f32 %v8176_v16, %v8175_v3  ;;  %v5942_v14 = vadd.f32 %v5941_v26, %v11648_v8  ;;  %6202 = vmatprep.mubr.bf16.mxu0 %v5991_v21  ;;  %v5975_v54 = vmax.f32 %v5940_v10, 0.0  ;;  %v11750_v8 = vrot.slane %v6239_v6, %v12546_v38 }
 0xa73   : > { %v8178_v49 = vpop.f32.mrf.mxu0  ;;  %v5943_v51 = vpop.f32.mrf.mxu1  ;;  %6203 = vmatmul.mubr.bf16.gmra.mxu0 %v5990_v48 }
 0xa74   : > { %v11742_v32 = vadd.f32 %v8177_v35, %v11640_v7  ;;  %v5944_v1 = vadd.f32 %v5943_v51, %v11645_v12  ;;  %v5976_v18 = vmax.f32 %v5942_v14, 0.0 }
 0xa75   : > { %v8179_v61 = vpop.f32.mrf.mxu0  ;;  %v6305_v30 = vpop.f32.mrf.mxu1 }
 0xa76   : > { %v5977_v29 = vmax.f32 %v5944_v1, 0.0  ;;  %v8180_v37 = vadd.f32 %v8179_v61, %v8178_v49  ;;  %v5992_v12 = vpack.c.bf16 %v5976_v18, %v5974_v11  ;;  %v6306_v15 = vadd.f32 %v6305_v30, %v11750_v8 }
 0xa77   : > { %v8181_v55 = vpop.f32.mrf.mxu0  ;;  %v6307_v41 = vpop.f32.mrf.mxu1 }
 0xa78   : > { %v5993_v7 = vpack.c.bf16 %v5977_v29, %v5975_v54  ;;  %v11753_v0 = vadd.f32 %v8180_v37, %v11651_v13  ;;  %v6308_v59 = vadd.f32 %v6307_v41, %v11747_v52  ;;  %v6384_v33 = vmax.f32 %v6306_v15, 0.0 }
 0xa79   : > { %v8182_v56 = vpop.f32.mrf.mxu0  ;;  %v6309_v20 = vpop.f32.mrf.mxu1 }
 0xa7a   : > { %v8183_v62 = vadd.f32 %v8182_v56, %v8181_v55  ;;  %v6310_v3 = vadd.f32 %v6309_v20, %v11750_v8  ;;  %6210 = vmatprep.mubr.bf16.mxu0 %v5993_v7  ;;  %v6385_v10 = vmax.f32 %v6308_v59, 0.0 }
 0xa7b   : > { %v8184_v36 = vpop.f32.mrf.mxu0  ;;  %6211 = vmatmul.mubr.bf16.gmra.mxu0 %v5992_v12  ;;  %v6311_v38 = vpop.f32.mrf.mxu1 }
 0xa7c   : > { %v11759_v21 = vadd.f32 %v8183_v62, %v11657_v63  ;;  %v6312_v13 = vadd.f32 %v6311_v38, %v11747_v52  ;;  %v6386_v48 = vmax.f32 %v6310_v3, 0.0 }
 0xa7d   : > { %v8185_v16 = vpop.f32.mrf.mxu0  ;;  %v6315_v26 = vpop.f32.mrf.mxu1 }
 0xa7e   : > { %v6387_v35 = vmax.f32 %v6312_v13, 0.0  ;;  %v8186_v14 = vadd.f32 %v8185_v16, %v8184_v36  ;;  %v6416_v18 = vpack.c.bf16 %v6386_v48, %v6384_v33  ;;  %v6316_v37 = vadd.f32 %v6315_v26, %v11750_v8 }
 0xa7f   : > { %v8187_v49 = vpop.f32.mrf.mxu0  ;;  %v6317_v51 = vpop.f32.mrf.mxu1 }
 0xa80   : > { %v6417_v1 = vpack.c.bf16 %v6387_v35, %v6385_v10  ;;  %v11763_v6 = vadd.f32 %v8186_v14, %v11661_v57  ;;  %v6318_v63 = vadd.f32 %v6317_v51, %v11747_v52  ;;  %v6388_v3 = vmax.f32 %v6316_v37, 0.0 }
 0xa81   : > { %v8188_v61 = vpop.f32.mrf.mxu0  ;;  %v6319_v30 = vpop.f32.mrf.mxu1 }
 0xa82   : > { %v8189_v54 = vadd.f32 %v8188_v61, %v8187_v49  ;;  %v6320_v29 = vadd.f32 %v6319_v30, %v11750_v8  ;;  %6592 = vmatprep.mubr.bf16.mxu0 %v6417_v1  ;;  %v6389_v20 = vmax.f32 %v6318_v63, 0.0 }
 0xa83   : > { %v8206_v11 = vpop.f32.mrf.mxu0  ;;  %v6321_v55 = vpop.f32.mrf.mxu1  ;;  %6593 = vmatmul.mubr.bf16.vlgmr.msra.gmra.mxu0 %v6416_v18 }
 0xa84   : > { %v11769_v41 = vadd.f32 %v8189_v54, %v11669_v28  ;;  %v6322_v57 = vadd.f32 %v6321_v55, %v11747_v52  ;;  %v6390_v7 = vmax.f32 %v6320_v29, 0.0 }
 0xa85   : > { %v8207_v12 = vpop.f32.mrf.mxu0  ;;  %v6325_v56 = vpop.f32.mrf.mxu1 }
 0xa86   : > { %v6391_v59 = vmax.f32 %v6322_v57, 0.0  ;;  %v8208_v62 = vadd.f32 %v8207_v12, %v8206_v11  ;;  %v6418_v48 = vpack.c.bf16 %v6390_v7, %v6388_v3  ;;  %v6326_v14 = vadd.f32 %v6325_v56, %v11750_v8 }
 0xa87   : > { %v8209_v15 = vpop.f32.mrf.mxu0  ;;  %v6327_v36 = vpop.f32.mrf.mxu1 }
 0xa88   : > { %v6419_v38 = vpack.c.bf16 %v6391_v59, %v6389_v20  ;;  %v11773_v13 = vadd.f32 %v8208_v62, %v11675_v46  ;;  %v6328_v28 = vadd.f32 %v6327_v36, %v11747_v52  ;;  %v6392_v29 = vmax.f32 %v6326_v14, 0.0 }
 0xa89   : > { %v8210_v16 = vpop.f32.mrf.mxu0  ;;  %v6329_v26 = vpop.f32.mrf.mxu1 }
 0xa8a   : > { %v8211_v10 = vadd.f32 %v8210_v16, %v8209_v15  ;;  %v6330_v35 = vadd.f32 %v6329_v26, %v11750_v8  ;;  %6600 = vmatprep.mubr.bf16.mxu0 %v6419_v38  ;;  %v6393_v30 = vmax.f32 %v6328_v28, 0.0 }
 0xa8b   : > { %v8212_v33 = vpop.f32.mrf.mxu0  ;;  %v6331_v49 = vpop.f32.mrf.mxu1  ;;  %6601 = vmatmul.mubr.bf16.gmra.mxu0 %v6418_v48 }
 0xa8c   : > { %v11779_v51 = vadd.f32 %v8211_v10, %v11683_v25  ;;  %v6332_v46 = vadd.f32 %v6331_v49, %v11747_v52  ;;  %v6394_v1 = vmax.f32 %v6330_v35, 0.0 }
 0xa8d   : > { %v8213_v18 = vpop.f32.mrf.mxu0  ;;  %v6335_v61 = vpop.f32.mrf.mxu1 }
 0xa8e   : > { %v6395_v63 = vmax.f32 %v6332_v46, 0.0  ;;  %v8214_v54 = vadd.f32 %v8213_v18, %v8212_v33  ;;  %v6420_v7 = vpack.c.bf16 %v6394_v1, %v6392_v29  ;;  %v6336_v62 = vadd.f32 %v6335_v61, %v11750_v8 }
 0xa8f   : > { %v8215_v37 = vpop.f32.mrf.mxu0  ;;  %v6337_v11 = vpop.f32.mrf.mxu1 }
 0xa90   : > { %v6421_v55 = vpack.c.bf16 %v6395_v63, %v6393_v30  ;;  %v11783_v57 = vadd.f32 %v8214_v54, %v11689_v58  ;;  %v6338_v25 = vadd.f32 %v6337_v11, %v11747_v52  ;;  %v6396_v35 = vmax.f32 %v6336_v62, 0.0 }
 0xa91   : > { %v8216_v12 = vpop.f32.mrf.mxu0  ;;  %v6339_v56 = vpop.f32.mrf.mxu1 }
 0xa92   : > { %v8217_v20 = vadd.f32 %v8216_v12, %v8215_v37  ;;  %v6340_v59 = vadd.f32 %v6339_v56, %v11750_v8  ;;  %6608 = vmatprep.mubr.bf16.mxu0 %v6421_v55  ;;  %v6397_v26 = vmax.f32 %v6338_v25, 0.0 }
 0xa93   : > { %v8218_v3 = vpop.f32.mrf.mxu0  ;;  %v6341_v15 = vpop.f32.mrf.mxu1  ;;  %6609 = vmatmul.mubr.bf16.gmra.mxu0 %v6420_v7 }
 0xa94   : > { %v11789_v36 = vadd.f32 %v8217_v20, %v11697_v24  ;;  %v6342_v58 = vadd.f32 %v6341_v15, %v11747_v52  ;;  %v6398_v38 = vmax.f32 %v6340_v59, 0.0 }
 0xa95   : > { %v8219_v48 = vpop.f32.mrf.mxu0  ;;  %v6345_v16 = vpop.f32.mrf.mxu1 }
 0xa96   : > { %v6399_v28 = vmax.f32 %v6342_v58, 0.0  ;;  %v8220_v10 = vadd.f32 %v8219_v48, %v8218_v3  ;;  %v6422_v1 = vpack.c.bf16 %v6398_v38, %v6396_v35  ;;  %v6346_v54 = vadd.f32 %v6345_v16, %v11750_v8 }
 0xa97   : > { %v8221_v14 = vpop.f32.mrf.mxu0  ;;  %v6347_v33 = vpop.f32.mrf.mxu1 }
 0xa98   : > { %v6423_v49 = vpack.c.bf16 %v6399_v28, %v6397_v26  ;;  %v11793_v46 = vadd.f32 %v8220_v10, %v11703_v2  ;;  %v6348_v24 = vadd.f32 %v6347_v33, %v11747_v52  ;;  %v6400_v59 = vmax.f32 %v6346_v54, 0.0 }
 0xa99   : > { %v8222_v18 = vpop.f32.mrf.mxu0  ;;  %v6349_v61 = vpop.f32.mrf.mxu1 }
 0xa9a   : > { %v8223_v30 = vadd.f32 %v8222_v18, %v8221_v14  ;;  %v6350_v63 = vadd.f32 %v6349_v61, %v11750_v8  ;;  %6616 = vmatprep.mubr.bf16.mxu0 %v6423_v49  ;;  %v6401_v56 = vmax.f32 %v6348_v24, 0.0 }
 0xa9b   : > { %v8224_v29 = vpop.f32.mrf.mxu0  ;;  %v6351_v37 = vpop.f32.mrf.mxu1  ;;  %6617 = vmatmul.mubr.bf16.gmra.mxu0 %v6422_v1 }
 0xa9c   : > { %v11799_v11 = vadd.f32 %v8223_v30, %v11711_v5  ;;  %v6352_v2 = vadd.f32 %v6351_v37, %v11747_v52  ;;  %v6402_v55 = vmax.f32 %v6350_v63, 0.0 }
 0xa9d   : > { %v8225_v7 = vpop.f32.mrf.mxu0  ;;  %v6355_v12 = vpop.f32.mrf.mxu1 }
 0xa9e   : > { %v6403_v25 = vmax.f32 %v6352_v2, 0.0  ;;  %v8226_v20 = vadd.f32 %v8225_v7, %v8224_v29  ;;  %v6424_v38 = vpack.c.bf16 %v6402_v55, %v6400_v59  ;;  %v6356_v10 = vadd.f32 %v6355_v12, %v11750_v8 }
 0xa9f   : > { %v8227_v62 = vpop.f32.mrf.mxu0  ;;  %v6357_v3 = vpop.f32.mrf.mxu1 }
 0xaa0   : > { %v6425_v15 = vpack.c.bf16 %v6403_v25, %v6401_v56  ;;  %v11803_v58 = vadd.f32 %v8226_v20, %v11716_v39  ;;  %v6358_v5 = vadd.f32 %v6357_v3, %v11747_v52  ;;  %v6404_v63 = vmax.f32 %v6356_v10, 0.0 }
 0xaa1   : > { %v8228_v48 = vpop.f32.mrf.mxu0  ;;  %v6359_v16 = vpop.f32.mrf.mxu1 }
 0xaa2   : > { %v8229_v26 = vadd.f32 %v8228_v48, %v8227_v62  ;;  %v6360_v28 = vadd.f32 %v6359_v16, %v11750_v8  ;;  %6624 = vmatprep.mubr.bf16.mxu0 %v6425_v15  ;;  %v6405_v61 = vmax.f32 %v6358_v5, 0.0 }
 0xaa3   : > { %v8230_v35 = vpop.f32.mrf.mxu0  ;;  %v6361_v14 = vpop.f32.mrf.mxu1  ;;  %6625 = vmatmul.mubr.bf16.gmra.mxu0 %v6424_v38 }
 0xaa4   : > { %v11809_v33 = vadd.f32 %v8229_v26, %v11722_v34  ;;  %v6362_v39 = vadd.f32 %v6361_v14, %v11747_v52  ;;  %v6406_v49 = vmax.f32 %v6360_v28, 0.0 }
 0xaa5   : > { %v8231_v1 = vpop.f32.mrf.mxu0  ;;  %v6365_v18 = vpop.f32.mrf.mxu1 }
 0xaa6   : > { %v6407_v24 = vmax.f32 %v6362_v39, 0.0  ;;  %v8232_v30 = vadd.f32 %v8231_v1, %v8230_v35  ;;  %v6426_v55 = vpack.c.bf16 %v6406_v49, %v6404_v63  ;;  %v6366_v20 = vadd.f32 %v6365_v18, %v11750_v8 }
 0xaa7   : > { %v8233_v54 = vpop.f32.mrf.mxu0  ;;  %v6367_v29 = vpop.f32.mrf.mxu1 }
 0xaa8   : > { %v6427_v37 = vpack.c.bf16 %v6407_v24, %v6405_v61  ;;  %v11813_v2 = vadd.f32 %v8232_v30, %v11726_v23  ;;  %v6368_v34 = vadd.f32 %v6367_v29, %v11747_v52  ;;  %v6408_v28 = vmax.f32 %v6366_v20, 0.0 }
 0xaa9   : > { %v8234_v7 = vpop.f32.mrf.mxu0  ;;  %v6369_v12 = vpop.f32.mrf.mxu1 }
 0xaaa   : > { %v8235_v56 = vadd.f32 %v8234_v7, %v8233_v54  ;;  %v6370_v25 = vadd.f32 %v6369_v12, %v11750_v8  ;;  %6632 = vmatprep.mubr.bf16.mxu0 %v6427_v37  ;;  %v6409_v16 = vmax.f32 %v6368_v34, 0.0 }
 0xaab   : > { %v8236_v59 = vpop.f32.mrf.mxu0  ;;  %v6371_v62 = vpop.f32.mrf.mxu1  ;;  %6633 = vmatmul.mubr.bf16.gmra.mxu0 %v6426_v55 }
 0xaac   : > { %v11819_v3 = vadd.f32 %v8235_v56, %v11732_v22  ;;  %v6372_v23 = vadd.f32 %v6371_v62, %v11747_v52  ;;  %v6410_v15 = vmax.f32 %v6370_v25, 0.0 }
 0xaad   : > { %v8237_v38 = vpop.f32.mrf.mxu0  ;;  %v6375_v48 = vpop.f32.mrf.mxu1 }
 0xaae   : > { %v6411_v5 = vmax.f32 %v6372_v23, 0.0  ;;  %v8238_v26 = vadd.f32 %v8237_v38, %v8236_v59  ;;  %v6428_v49 = vpack.c.bf16 %v6410_v15, %v6408_v28  ;;  %v6376_v30 = vadd.f32 %v6375_v48, %v11750_v8 }
 0xaaf   : > { %v8239_v10 = vpop.f32.mrf.mxu0  ;;  %v6377_v35 = vpop.f32.mrf.mxu1 }
 0xab0   : > { %v6429_v14 = vpack.c.bf16 %v6411_v5, %v6409_v16  ;;  %v11823_v39 = vadd.f32 %v8238_v26, %v11736_v45  ;;  %v6378_v22 = vadd.f32 %v6377_v35, %v11747_v52  ;;  %v6412_v56 = vmax.f32 %v6376_v30, 0.0 }
 0xab1   : > { %v8240_v1 = vpop.f32.mrf.mxu0  ;;  %v6379_v18 = vpop.f32.mrf.mxu1 }
 0xab2   : > { %v8241_v61 = vadd.f32 %v8240_v1, %v8239_v10  ;;  %v6380_v24 = vadd.f32 %v6379_v18, %v11750_v8  ;;  %6640 = vmatprep.mubr.bf16.mxu0 %v6429_v14  ;;  %v6413_v7 = vmax.f32 %v6378_v22, 0.0 }
 0xab3   : > { %v8242_v63 = vpop.f32.mrf.mxu0  ;;  %v6381_v54 = vpop.f32.mrf.mxu1  ;;  %6641 = vmatmul.mubr.bf16.gmra.mxu0 %v6428_v49 }
 0xab4   : > { %v11829_v29 = vadd.f32 %v8241_v61, %v11742_v32  ;;  %v6382_v45 = vadd.f32 %v6381_v54, %v11747_v52  ;;  %v6414_v37 = vmax.f32 %v6380_v24, 0.0 }
 0xab5   : > { %v8243_v55 = vpop.f32.mrf.mxu0 }
 0xab6   : > { %v6415_v12 = vmax.f32 %v6382_v45, 0.0  ;;  %v8244_v34 = vadd.f32 %v8243_v55, %v8242_v63  ;;  %v6430_v8 = vpack.c.bf16 %v6414_v37, %v6412_v56 }
 0xab7   : > { %v8245_v25 = vpop.f32.mrf.mxu0 }
 0xab8   : > { %v6431_v20 = vpack.c.bf16 %v6415_v12, %v6413_v7  ;;  %v11833_v59 = vadd.f32 %v8244_v34, %v11753_v0 }
 0xab9   : > { %v8246_v62 = vpop.f32.mrf.mxu0 }
 0xaba   : > { %v8247_v23 = vadd.f32 %v8246_v62, %v8245_v25  ;;  %6648 = vmatprep.mubr.bf16.mxu0 %v6431_v20 }
 0xabb   : > { %v8248_v15 = vpop.f32.mrf.mxu0  ;;  %6649 = vmatmul.mubr.bf16.gmra.mxu0 %v6430_v8 }
 0xabc   : > { %v11836_v32 = vadd.f32 %v8247_v23, %v11759_v21 }
 0xabd   : > { %v8249_v52 = vpop.f32.mrf.mxu0 }
 0xabe   : > { %v8250_v38 = vadd.f32 %v8249_v52, %v8248_v15 }
 0xabf   : > { %v8251_v48 = vpop.f32.mrf.mxu0 }
 0xac0   : > { %v11839_v16 = vadd.f32 %v8250_v38, %v11763_v6 }
 0xac1   : > { %v8252_v5 = vpop.f32.mrf.mxu0 }
 0xac2   : > { %v8253_v26 = vadd.f32 %v8252_v5, %v8251_v48 }
 0xac3   : > { %v8270_v28 = vpop.f32.mrf.mxu0 }
 0xac4   : > { %v11842_v0 = vadd.f32 %v8253_v26, %v11769_v41 }
 0xac5   : > { %v8271_v10 = vpop.f32.mrf.mxu0 }
 0xac6   : > { %v8272_v35 = vadd.f32 %v8271_v10, %v8270_v28 }
 0xac7   : > { %v8273_v14 = vpop.f32.mrf.mxu0 }
 0xac8   : > { %v11845_v49 = vadd.f32 %v8272_v35, %v11773_v13 }
 0xac9   : > { %v8274_v21 = vpop.f32.mrf.mxu0 }
 0xaca   : > { %v8275_v1 = vadd.f32 %v8274_v21, %v8273_v14 }
 0xacb   : > { %v8276_v18 = vpop.f32.mrf.mxu0 }
 0xacc   : > { %v11848_v22 = vadd.f32 %v8275_v1, %v11779_v51 }
 0xacd   : > { %v8277_v6 = vpop.f32.mrf.mxu0 }
 0xace   : > { %v8278_v61 = vadd.f32 %v8277_v6, %v8276_v18 }
 0xacf   : > { %v8279_v24 = vpop.f32.mrf.mxu0 }
 0xad0   : > { %v11851_v30 = vadd.f32 %v8278_v61, %v11783_v57 }
 0xad1   : > { %v8280_v41 = vpop.f32.mrf.mxu0 }
 0xad2   : > { %v8281_v63 = vadd.f32 %v8280_v41, %v8279_v24 }
 0xad3   : > { %v8282_v54 = vpop.f32.mrf.mxu0 }
 0xad4   : > { %v11854_v45 = vadd.f32 %v8281_v63, %v11789_v36 }
 0xad5   : > { %v8283_v13 = vpop.f32.mrf.mxu0 }
 0xad6   : > { %v8284_v37 = vadd.f32 %v8283_v13, %v8282_v54 }
 0xad7   : > { %v8285_v55 = vpop.f32.mrf.mxu0 }
 0xad8   : > { %v11857_v7 = vadd.f32 %v8284_v37, %v11793_v46 }
 0xad9   : > { %v8286_v51 = vpop.f32.mrf.mxu0 }
 0xada   : > { %v8287_v12 = vadd.f32 %v8286_v51, %v8285_v55 }
 0xadb   : > { %v8288_v34 = vpop.f32.mrf.mxu0 }
 0xadc   : > { %v11860_v56 = vadd.f32 %v8287_v12, %v11799_v11 }
 0xadd   : > { %v8289_v57 = vpop.f32.mrf.mxu0 }
 0xade   : > { %v8290_v25 = vadd.f32 %v8289_v57, %v8288_v34 }
 0xadf   : > { %v8291_v20 = vpop.f32.mrf.mxu0 }
 0xae0   : > { %v11863_v8 = vadd.f32 %v8290_v25, %v11803_v58 }
 0xae1   : > { %v8292_v36 = vpop.f32.mrf.mxu0 }
 0xae2   : > { %v8293_v62 = vadd.f32 %v8292_v36, %v8291_v20 }
 0xae3   : > { %v8294_v23 = vpop.f32.mrf.mxu0 }
 0xae4   : > { %v11866_v15 = vadd.f32 %v8293_v62, %v11809_v33 }
 0xae5   : > { %v8295_v46 = vpop.f32.mrf.mxu0 }
 0xae6   : > { %v8296_v52 = vadd.f32 %v8295_v46, %v8294_v23 }
 0xae7   : > { %v8297_v38 = vpop.f32.mrf.mxu0 }
 0xae8   : > { %v11869_v48 = vadd.f32 %v8296_v52, %v11813_v2 }
 0xae9   : > { %v8298_v11 = vpop.f32.mrf.mxu0 }
 0xaea   : > { %v8299_v5 = vadd.f32 %v8298_v11, %v8297_v38 }
 0xaeb   : > { %v8300_v26 = vpop.f32.mrf.mxu0 }
 0xaec   : > { %v11872_v28 = vadd.f32 %v8299_v5, %v11819_v3 }
 0xaed   : > { %v8301_v58 = vpop.f32.mrf.mxu0 }
 0xaee   : > { %v8302_v10 = vadd.f32 %v8301_v58, %v8300_v26 }
 0xaef   : > { %v8303_v35 = vpop.f32.mrf.mxu0 }
 0xaf0   : > { %v11875_v14 = vadd.f32 %v8302_v10, %v11823_v39 }
 0xaf1   : > { %v8304_v33 = vpop.f32.mrf.mxu0 }
 0xaf2   : > { %v8305_v21 = vadd.f32 %v8304_v33, %v8303_v35 }
 0xaf3   : > { %v8306_v1 = vpop.f32.mrf.mxu0 }
 0xaf4   : > { %v11878_v18 = vadd.f32 %v8305_v21, %v11829_v29 }
 0xaf5   : > { %v8307_v2 = vpop.f32.mrf.mxu0 }
 0xaf6   : > { %v8308_v6 = vadd.f32 %v8307_v2, %v8306_v1 }
 0xaf7   : > { %v8309_v61 = vpop.f32.mrf.mxu0 }
 0xaf8   : > { %v11881_v24 = vadd.f32 %v8308_v6, %v11833_v59 }
 0xaf9   : > { %v8310_v3 = vpop.f32.mrf.mxu0 }
 0xafa   : > { %v8311_v41 = vadd.f32 %v8310_v3, %v8309_v61 }
 0xafb   : > { %v8312_v63 = vpop.f32.mrf.mxu0 }
 0xafc   : > { %v11884_v54 = vadd.f32 %v8311_v41, %v11836_v32 }
 0xafd   : > { %v8313_v39 = vpop.f32.mrf.mxu0 }
 0xafe   : > { %v8314_v13 = vadd.f32 %v8313_v39, %v8312_v63 }
 0xaff   : > { %v8315_v37 = vpop.f32.mrf.mxu0 }
 0xb00   : > { %v11887_v55 = vadd.f32 %v8314_v13, %v11839_v16 }
 0xb01   : > { %v8316_v29 = vpop.f32.mrf.mxu0 }
 0xb02   : > { %v8317_v51 = vadd.f32 %v8316_v29, %v8315_v37 }
 0xb03   : > { %v8334_v12 = vpop.f32.mrf.mxu0 }
 0xb04   : > { %v11890_v34 = vadd.f32 %v8317_v51, %v11842_v0 }
 0xb05   : > { %v8335_v59 = vpop.f32.mrf.mxu0 }
 0xb06   : > { %v8336_v57 = vadd.f32 %v8335_v59, %v8334_v12 }
 0xb07   : > { %v8337_v25 = vpop.f32.mrf.mxu0 }
 0xb08   : > { %v11893_v20 = vadd.f32 %v8336_v57, %v11845_v49 }
 0xb09   : > { %v8338_v32 = vpop.f32.mrf.mxu0 }
 0xb0a   : > { %v8339_v36 = vadd.f32 %v8338_v32, %v8337_v25 }
 0xb0b   : > { %v8340_v62 = vpop.f32.mrf.mxu0 }
 0xb0c   : > { %v11896_v23 = vadd.f32 %v8339_v36, %v11848_v22 }
 0xb0d   : > { %v8341_v16 = vpop.f32.mrf.mxu0 }
 0xb0e   : > { %v8342_v46 = vadd.f32 %v8341_v16, %v8340_v62 }
 0xb0f   : > { %v8343_v52 = vpop.f32.mrf.mxu0 }
 0xb10   : > { %v11899_v38 = vadd.f32 %v8342_v46, %v11851_v30 }
 0xb11   : > { %v8344_v0 = vpop.f32.mrf.mxu0 }
 0xb12   : > { %v8345_v11 = vadd.f32 %v8344_v0, %v8343_v52 }
 0xb13   : > { %v8346_v5 = vpop.f32.mrf.mxu0 }
 0xb14   : > { %v11902_v26 = vadd.f32 %v8345_v11, %v11854_v45 }
 0xb15   : > { %v8347_v49 = vpop.f32.mrf.mxu0 }
 0xb16   : > { %v8348_v58 = vadd.f32 %v8347_v49, %v8346_v5 }
 0xb17   : > { %v8349_v10 = vpop.f32.mrf.mxu0 }
 0xb18   : > { %v11905_v35 = vadd.f32 %v8348_v58, %v11857_v7 }
 0xb19   : > { %v8350_v22 = vpop.f32.mrf.mxu0 }
 0xb1a   : > { %v8351_v33 = vadd.f32 %v8350_v22, %v8349_v10 }
 0xb1b   : > { %v8352_v21 = vpop.f32.mrf.mxu0 }
 0xb1c   : > { %v11908_v1 = vadd.f32 %v8351_v33, %v11860_v56 }
 0xb1d   : > { %v8353_v30 = vpop.f32.mrf.mxu0 }
 0xb1e   : > { %v8354_v2 = vadd.f32 %v8353_v30, %v8352_v21 }
 0xb1f   : > { %v8355_v6 = vpop.f32.mrf.mxu0 }
 0xb20   : > { %v11911_v61 = vadd.f32 %v8354_v2, %v11863_v8  ;;  %v11941_v2 = vld [vmem:[%s9434_s16 + $0x4] ss:$0 sm:$0xff] }
 0xb21   : > { %v8356_v45 = vpop.f32.mrf.mxu0 }
 0xb22   : > { %v8357_v3 = vadd.f32 %v8356_v45, %v8355_v6 }
 0xb23   : > { %v8358_v41 = vpop.f32.mrf.mxu0 }
 0xb24   : > { %v11914_v63 = vadd.f32 %v8357_v3, %v11866_v15 }
 0xb25   : > { %v8359_v7 = vpop.f32.mrf.mxu0 }
 0xb26   : > { %v8360_v39 = vadd.f32 %v8359_v7, %v8358_v41 }
 0xb27   : > { %v8361_v13 = vpop.f32.mrf.mxu0 }
 0xb28   : > { %v11917_v37 = vadd.f32 %v8360_v39, %v11869_v48 }
 0xb29   : > { %v8362_v56 = vpop.f32.mrf.mxu0 }
 0xb2a   : > { %v8363_v29 = vadd.f32 %v8362_v56, %v8361_v13 }
 0xb2b   : > { %v8364_v51 = vpop.f32.mrf.mxu0 }
 0xb2c   : > { %v11920_v12 = vadd.f32 %v8363_v29, %v11872_v28 }
 0xb2d   : > { %v8365_v8 = vpop.f32.mrf.mxu0 }
 0xb2e   : > { %v8366_v59 = vadd.f32 %v8365_v8, %v8364_v51 }
 0xb2f   : > { %v8367_v57 = vpop.f32.mrf.mxu0 }
 0xb30   : > { %v11923_v25 = vadd.f32 %v8366_v59, %v11875_v14 }
 0xb31   : > { %v8368_v15 = vpop.f32.mrf.mxu0 }
 0xb32   : > { %v8369_v32 = vadd.f32 %v8368_v15, %v8367_v57 }
 0xb33   : > { %v8370_v36 = vpop.f32.mrf.mxu0 }
 0xb34   : > { %v11926_v62 = vadd.f32 %v8369_v32, %v11878_v18 }
 0xb35   : > { %v8371_v48 = vpop.f32.mrf.mxu0 }
 0xb36   : > { %v8372_v16 = vadd.f32 %v8371_v48, %v8370_v36 }
 0xb37   : > { %v8373_v46 = vpop.f32.mrf.mxu0 }
 0xb38   : > { %v11929_v52 = vadd.f32 %v8372_v16, %v11881_v24 }
 0xb39   : > { %v8374_v28 = vpop.f32.mrf.mxu0 }
 0xb3a   : > { %v8375_v0 = vadd.f32 %v8374_v28, %v8373_v46 }
 0xb3b   : > { %v8376_v11 = vpop.f32.mrf.mxu0 }
 0xb3c   : > { %v11932_v5 = vadd.f32 %v8375_v0, %v11884_v54 }
 0xb3d   : > { %v8377_v14 = vpop.f32.mrf.mxu0 }
 0xb3e   : > { %v8378_v49 = vadd.f32 %v8377_v14, %v8376_v11 }
 0xb3f   : > { %v8379_v58 = vpop.f32.mrf.mxu0 }
 0xb40   : > { %v11935_v10 = vadd.f32 %v8378_v49, %v11887_v55 }
 0xb41   : > { %v8380_v18 = vpop.f32.mrf.mxu0 }
 0xb42   : > { %v8381_v22 = vadd.f32 %v8380_v18, %v8379_v58 }
 0xb43   : > { %v8398_v33 = vpop.f32.mrf.mxu0 }
 0xb44   : > { %v11938_v21 = vadd.f32 %v8381_v22, %v11890_v34 }
 0xb45   : > { %v8399_v24 = vpop.f32.mrf.mxu0 }
 0xb46   : > { %v8400_v30 = vadd.f32 %v8399_v24, %v8398_v33 }
 0xb47   : > { %v8401_v6 = vpop.f32.mrf.mxu0 }
 0xb48   : > { %v6657_v54 = vadd.f32 %v8400_v30, %v11893_v20 }
 0xb49   : > { %v8402_v45 = vpop.f32.mrf.mxu0 }
 0xb4a   : > { %v6678_v3 = vadd.f32 %v11941_v2, %v6657_v54  ;;  %v8403_v41 = vadd.f32 %v8402_v45, %v8401_v6 }
 0xb4b   : > { %v8404_v7 = vpop.f32.mrf.mxu0 }
 0xb4c   : > { %v6658_v55 = vadd.f32 %v8403_v41, %v11896_v23  ;;  %v11947_v39 = vadd.f32 %v6678_v3, %v10868_v27 }
 0xb4d   : > { %v8405_v13 = vpop.f32.mrf.mxu0 }
 0xb4e   : > { %v6679_v34 = vadd.f32 %v11941_v2, %v6658_v55  ;;  %v8406_v56 = vadd.f32 %v8405_v13, %v8404_v7  ;;  %v6712_v29 = vsel %vm682_vm1, %v11947_v39, 0.0 }
 0xb4f   : > { %v8407_v51 = vpop.f32.mrf.mxu0  ;;  %6713 = vadd.xlane.f32.xlu0 %v6712_v29 }
 0xb50   : > { %v6659_v20 = vadd.f32 %v8406_v56, %v11899_v38  ;;  %v11954_v8 = vadd.f32 %v6679_v34, %v10871_v43 }
 0xb51   : > { %v8408_v59 = vpop.f32.mrf.mxu0 }
 0xb52   : > { %v6680_v23 = vadd.f32 %v11941_v2, %v6659_v20  ;;  %v8409_v57 = vadd.f32 %v8408_v59, %v8407_v51  ;;  %v6715_v27 = vsel %vm682_vm1, %v11954_v8, 0.0 }
 0xb53   : > { %v8410_v15 = vpop.f32.mrf.mxu0  ;;  %6716 = vadd.xlane.f32.xlu1 %v6715_v27 }
 0xb54   : > { %v6660_v32 = vadd.f32 %v8409_v57, %v11902_v26  ;;  %v11961_v36 = vadd.f32 %v6680_v23, %v10900_v47 }
 0xb55   : > { %v8411_v48 = vpop.f32.mrf.mxu0 }
 0xb56   : > { %v6681_v38 = vadd.f32 %v11941_v2, %v6660_v32  ;;  %v8412_v16 = vadd.f32 %v8411_v48, %v8410_v15  ;;  %v6718_v43 = vsel %vm682_vm1, %v11961_v36, 0.0 }
 0xb57   : > { %v8413_v46 = vpop.f32.mrf.mxu0  ;;  %6719 = vadd.xlane.f32.xlu0 %v6718_v43 }
 0xb58   : > { %v6661_v28 = vadd.f32 %v8412_v16, %v11905_v35  ;;  %v11968_v0 = vadd.f32 %v6681_v38, %v10892_v53 }
 0xb59   : > { %v8414_v11 = vpop.f32.mrf.mxu0 }
 0xb5a   : > { %v6682_v26 = vadd.f32 %v11941_v2, %v6661_v28  ;;  %v8415_v14 = vadd.f32 %v8414_v11, %v8413_v46  ;;  %v6721_v47 = vsel %vm682_vm1, %v11968_v0, 0.0 }
 0xb5b   : > { %v8416_v49 = vpop.f32.mrf.mxu0  ;;  %6722 = vadd.xlane.f32.xlu1 %v6721_v47 }
 0xb5c   : > { %v6662_v58 = vadd.f32 %v8415_v14, %v11908_v1  ;;  %v11975_v18 = vadd.f32 %v6682_v26, %v10928_v50 }
 0xb5d   : > { %v8417_v22 = vpop.f32.mrf.mxu0 }
 0xb5e   : > { %v6683_v35 = vadd.f32 %v11941_v2, %v6662_v58  ;;  %v8418_v33 = vadd.f32 %v8417_v22, %v8416_v49  ;;  %v6724_v53 = vsel %vm682_vm1, %v11975_v18, 0.0 }
 0xb5f   : > { %v8419_v24 = vpop.f32.mrf.mxu0  ;;  %6725 = vadd.xlane.f32.xlu0 %v6724_v53 }
 0xb60   : > { %v6663_v30 = vadd.f32 %v8418_v33, %v11911_v61  ;;  %v11982_v6 = vadd.f32 %v6683_v35, %v10920_v17 }
 0xb61   : > { %v8420_v54 = vpop.f32.mrf.mxu0 }
 0xb62   : > { %v6684_v1 = vadd.f32 %v11941_v2, %v6663_v30  ;;  %v8421_v45 = vadd.f32 %v8420_v54, %v8419_v24  ;;  %v6727_v50 = vsel %vm682_vm1, %v11982_v6, 0.0 }
 0xb63   : > { %v8422_v3 = vpop.f32.mrf.mxu0  ;;  %6728 = vadd.xlane.f32.xlu1 %v6727_v50 }
 0xb64   : > { %v6664_v41 = vadd.f32 %v8421_v45, %v11914_v63  ;;  %v11989_v7 = vadd.f32 %v6684_v1, %v10950_v40 }
 0xb65   : > { %v8423_v55 = vpop.f32.mrf.mxu0 }
 0xb66   : > { %v6685_v61 = vadd.f32 %v11941_v2, %v6664_v41  ;;  %v8424_v13 = vadd.f32 %v8423_v55, %v8422_v3  ;;  %v6730_v17 = vsel %vm682_vm1, %v11989_v7, 0.0 }
 0xb67   : > { %v8425_v34 = vpop.f32.mrf.mxu0  ;;  %6731 = vadd.xlane.f32.xlu0 %v6730_v17 }
 0xb68   : > { %v6665_v56 = vadd.f32 %v8424_v13, %v11917_v37  ;;  %v11996_v29 = vadd.f32 %v6685_v61, %v10946_v42  ;;  %v12548_v61 = vld [vmem:[#allocation25_spill] sm:$0xff] }
 0xb69   : > { %v8426_v51 = vpop.f32.mrf.mxu0 }
 0xb6a   : > { %v6686_v63 = vadd.f32 %v11941_v2, %v6665_v56  ;;  %v8427_v20 = vadd.f32 %v8426_v51, %v8425_v34  ;;  %v6733_v40 = vsel %vm682_vm1, %v11996_v29, 0.0 }
 0xb6b   : > { %v8428_v59 = vpop.f32.mrf.mxu0  ;;  %6734 = vadd.xlane.f32.xlu1 %v6733_v40 }
 0xb6c   : > { %v6666_v23 = vadd.f32 %v8427_v20, %v11920_v12  ;;  %v12003_v57 = vadd.f32 %v6686_v63, %v10970_v19 }
 0xb6d   : > { %v8429_v27 = vpop.f32.mrf.mxu0 }
 0xb6e   : > { %v6687_v37 = vadd.f32 %v11941_v2, %v6666_v23  ;;  %v8430_v15 = vadd.f32 %v8429_v27, %v8428_v59  ;;  %v6736_v42 = vsel %vm682_vm1, %v12003_v57, 0.0 }
 0xb6f   : > { %v8431_v32 = vpop.f32.mrf.mxu0  ;;  %6737 = vadd.xlane.f32.xlu0 %v6736_v42 }
 0xb70   : > { %v6667_v48 = vadd.f32 %v8430_v15, %v11923_v25  ;;  %v12010_v38 = vadd.f32 %v6687_v37, %v10966_v60 }
 0xb71   : > { %v8432_v16 = vpop.f32.mrf.mxu0 }
 0xb72   : > { %v6688_v12 = vadd.f32 %v11941_v2, %v6667_v48  ;;  %v8433_v43 = vadd.f32 %v8432_v16, %v8431_v32  ;;  %v6739_v19 = vsel %vm682_vm1, %v12010_v38, 0.0 }
 0xb73   : > { %v8434_v46 = vpop.f32.mrf.mxu0  ;;  %6740 = vadd.xlane.f32.xlu1 %v6739_v19 }
 0xb74   : > { %v6668_v28 = vadd.f32 %v8433_v43, %v11926_v62  ;;  %v12017_v11 = vadd.f32 %v6688_v12, %v10989_v9 }
 0xb75   : > { %v8435_v26 = vpop.f32.mrf.mxu0 }
 0xb76   : > { %v6689_v25 = vadd.f32 %v11941_v2, %v6668_v28  ;;  %v8436_v14 = vadd.f32 %v8435_v26, %v8434_v46  ;;  %v6742_v60 = vsel %vm682_vm1, %v12017_v11, 0.0 }
 0xb77   : > { %v8437_v47 = vpop.f32.mrf.mxu0  ;;  %6743 = vadd.xlane.f32.xlu0 %v6742_v60 }
 0xb78   : > { %v6669_v49 = vadd.f32 %v8436_v14, %v11929_v52  ;;  %v12024_v58 = vadd.f32 %v6689_v25, %v10986_v4 }
 0xb79   : > { %v8438_v22 = vpop.f32.mrf.mxu0 }
 0xb7a   : > { %v6690_v62 = vadd.f32 %v11941_v2, %v6669_v49  ;;  %v8439_v35 = vadd.f32 %v8438_v22, %v8437_v47  ;;  %v6745_v9 = vsel %vm682_vm1, %v12024_v58, 0.0 }
 0xb7b   : > { %v8440_v33 = vpop.f32.mrf.mxu0  ;;  %6746 = vadd.xlane.f32.xlu1 %v6745_v9 }
 0xb7c   : > { %v6670_v53 = vadd.f32 %v8439_v35, %v11932_v5  ;;  %v12031_v24 = vadd.f32 %v6690_v62, %v11018_v31 }
 0xb7d   : > { %v8441_v30 = vpop.f32.mrf.mxu0 }
 0xb7e   : > { %v6691_v52 = vadd.f32 %v11941_v2, %v6670_v53  ;;  %v8442_v54 = vadd.f32 %v8441_v30, %v8440_v33  ;;  %v6748_v4 = vsel %vm682_vm1, %v12031_v24, 0.0 }
 0xb7f   : > { %v8443_v1 = vpop.f32.mrf.mxu0  ;;  %6749 = vadd.xlane.f32.xlu0 %v6748_v4 }
 0xb80   : > { %v6671_v45 = vadd.f32 %v8442_v54, %v11935_v10  ;;  %v12038_v50 = vadd.f32 %v6691_v52, %v11021_v44  ;;  %v12549_v44 = vld [vmem:[#allocation24_spill] sm:$0xff] }
 0xb81   : > { %v8444_v3 = vpop.f32.mrf.mxu0 }
 0xb82   : > { %v6692_v5 = vadd.f32 %v11941_v2, %v6671_v45  ;;  %v8445_v41 = vadd.f32 %v8444_v3, %v8443_v1  ;;  %v6751_v31 = vsel %vm682_vm1, %v12038_v50, 0.0 }
 0xb83   : > { %6752 = vadd.xlane.f32.xlu1 %v6751_v31 }
 0xb84   : > { %v6672_v55 = vadd.f32 %v8445_v41, %v11938_v21  ;;  %v12045_v13 = vadd.f32 %v6692_v5, %v12548_v61 }
 0xb86   : > { %v6693_v17 = vadd.f32 %v11941_v2, %v6672_v55  ;;  %v6754_v10 = vsel %vm682_vm1, %v12045_v13, 0.0 }
 0xb87   : > { %6755 = vadd.xlane.f32.xlu0 %v6754_v10 }
 0xb88   : > { %v12051_v34 = vadd.f32 %v6693_v17, %v12549_v44 }
 0xb8a   : > { %v6757_v56 = vsel %vm682_vm1, %v12051_v34, 0.0 }
 0xb8b   : > { %6758 = vadd.xlane.f32.xlu1 %v6757_v56 }
 0xbd8   : > { %v6714_v51 = vpop.xlane.xlu0 %6713 }
 0xbd9   : > { %v6760_v63 = vmul.f32 0.03125, %v6714_v51 }
 0xbdb   : > { %v12056_v21 = vsub.f32 %v11947_v39, %v6760_v63 }
 0xbdc   : > { %v6717_v20 = vpop.xlane.xlu1 %6716 }
 0xbdd   : > { %v6761_v40 = vmul.f32 0.03125, %v6717_v20  ;;  %v6792_v2 = vmul.f32 %v12056_v21, %v12056_v21 }
 0xbdf   : > { %v12061_v59 = vsub.f32 %v11954_v8, %v6761_v40  ;;  %v6808_v23 = vsel %vm682_vm1, %v6792_v2, 0.0 }
 0xbe0   : > { %v6720_v27 = vpop.xlane.xlu0 %6719  ;;  %6809 = vadd.xlane.f32.xlu0 %v6808_v23 }
 0xbe1   : > { %v6762_v37 = vmul.f32 0.03125, %v6720_v27  ;;  %v6793_v15 = vmul.f32 %v12061_v59, %v12061_v59 }
 0xbe3   : > { %v12067_v42 = vsub.f32 %v11961_v36, %v6762_v37  ;;  %v6811_v39 = vsel %vm682_vm1, %v6793_v15, 0.0 }
 0xbe4   : > { %v6723_v32 = vpop.xlane.xlu1 %6722  ;;  %6812 = vadd.xlane.f32.xlu1 %v6811_v39 }
 0xbe5   : > { %v6763_v48 = vmul.f32 0.03125, %v6723_v32  ;;  %v6794_v8 = vmul.f32 %v12067_v42, %v12067_v42 }
 0xbe7   : > { %v12073_v16 = vsub.f32 %v11968_v0, %v6763_v48  ;;  %v6814_v12 = vsel %vm682_vm1, %v6794_v8, 0.0 }
 0xbe8   : > { %v6726_v43 = vpop.xlane.xlu0 %6725  ;;  %6815 = vadd.xlane.f32.xlu0 %v6814_v12 }
 0xbe9   : > { %v6764_v19 = vmul.f32 0.03125, %v6726_v43  ;;  %v6795_v36 = vmul.f32 %v12073_v16, %v12073_v16 }
 0xbeb   : > { %v12079_v46 = vsub.f32 %v11975_v18, %v6764_v19  ;;  %v6817_v28 = vsel %vm682_vm1, %v6795_v36, 0.0 }
 0xbec   : > { %v6729_v26 = vpop.xlane.xlu1 %6728  ;;  %6818 = vadd.xlane.f32.xlu1 %v6817_v28 }
 0xbed   : > { %v6765_v25 = vmul.f32 0.03125, %v6729_v26  ;;  %v6796_v0 = vmul.f32 %v12079_v46, %v12079_v46 }
 0xbef   : > { %v12085_v14 = vsub.f32 %v11982_v6, %v6765_v25  ;;  %v6820_v60 = vsel %vm682_vm1, %v6796_v0, 0.0 }
 0xbf0   : > { %v6732_v47 = vpop.xlane.xlu0 %6731  ;;  %6821 = vadd.xlane.f32.xlu0 %v6820_v60 }
 0xbf1   : > { %v6766_v49 = vmul.f32 0.03125, %v6732_v47  ;;  %v6797_v18 = vmul.f32 %v12085_v14, %v12085_v14 }
 0xbf3   : > { %v12091_v22 = vsub.f32 %v11989_v7, %v6766_v49  ;;  %v6823_v62 = vsel %vm682_vm1, %v6797_v18, 0.0 }
 0xbf4   : > { %v6735_v35 = vpop.xlane.xlu1 %6734  ;;  %6824 = vadd.xlane.f32.xlu1 %v6823_v62 }
 0xbf5   : > { %v6767_v9 = vmul.f32 0.03125, %v6735_v35  ;;  %v6798_v6 = vmul.f32 %v12091_v22, %v12091_v22 }
 0xbf7   : > { %v12097_v33 = vsub.f32 %v11996_v29, %v6767_v9  ;;  %v6826_v53 = vsel %vm682_vm1, %v6798_v6, 0.0 }
 0xbf8   : > { %v6738_v30 = vpop.xlane.xlu0 %6737  ;;  %6827 = vadd.xlane.f32.xlu0 %v6826_v53 }
 0xbf9   : > { %v6768_v52 = vmul.f32 0.03125, %v6738_v30  ;;  %v6799_v7 = vmul.f32 %v12097_v33, %v12097_v33 }
 0xbfb   : > { %v12103_v54 = vsub.f32 %v12003_v57, %v6768_v52  ;;  %v6829_v4 = vsel %vm682_vm1, %v6799_v7, 0.0  ;;  %v12152_v52 = vld [vmem:[%s9434_s16 + $0x7] ss:$0 sm:$0xff] }
 0xbfc   : > { %v6741_v1 = vpop.xlane.xlu1 %6740  ;;  %6830 = vadd.xlane.f32.xlu1 %v6829_v4 }
 0xbfd   : > { %v6769_v45 = vmul.f32 0.03125, %v6741_v1  ;;  %v6800_v29 = vmul.f32 %v12103_v54, %v12103_v54  ;;  %v12156_v1 = vld [vmem:[%s9434_s16 + $0x8] ss:$0 sm:$0xff] }
 0xbff   : > { %v12109_v3 = vsub.f32 %v12010_v38, %v6769_v45  ;;  %v6832_v5 = vsel %vm682_vm1, %v6800_v29, 0.0 }
 0xc00   : > { %v6744_v41 = vpop.xlane.xlu0 %6743  ;;  %6833 = vadd.xlane.f32.xlu0 %v6832_v5 }
 0xc01   : > { %v6770_v31 = vmul.f32 0.03125, %v6744_v41  ;;  %v6801_v57 = vmul.f32 %v12109_v3, %v12109_v3 }
 0xc03   : > { %v12115_v55 = vsub.f32 %v12017_v11, %v6770_v31  ;;  %v6835_v61 = vsel %vm682_vm1, %v6801_v57, 0.0 }
 0xc04   : > { %v6747_v17 = vpop.xlane.xlu1 %6746  ;;  %6836 = vadd.xlane.f32.xlu1 %v6835_v61 }
 0xc05   : > { %v6771_v10 = vmul.f32 0.03125, %v6747_v17  ;;  %v6802_v38 = vmul.f32 %v12115_v55, %v12115_v55 }
 0xc07   : > { %v12121_v44 = vsub.f32 %v12024_v58, %v6771_v10  ;;  %v6838_v56 = vsel %vm682_vm1, %v6802_v38, 0.0 }
 0xc08   : > { %v6750_v51 = vpop.xlane.xlu0 %6749  ;;  %6839 = vadd.xlane.f32.xlu0 %v6838_v56 }
 0xc09   : > { %v6772_v63 = vmul.f32 0.03125, %v6750_v51  ;;  %v6803_v11 = vmul.f32 %v12121_v44, %v12121_v44 }
 0xc0b   : > { %v12127_v20 = vsub.f32 %v12031_v24, %v6772_v63  ;;  %v6841_v40 = vsel %vm682_vm1, %v6803_v11, 0.0 }
 0xc0c   : > { %v6753_v2 = vpop.xlane.xlu1 %6752  ;;  %6842 = vadd.xlane.f32.xlu1 %v6841_v40 }
 0xc0d   : > { %v6773_v23 = vmul.f32 0.03125, %v6753_v2  ;;  %v6804_v58 = vmul.f32 %v12127_v20, %v12127_v20 }
 0xc0f   : > { %v12133_v27 = vsub.f32 %v12038_v50, %v6773_v23  ;;  %v6844_v37 = vsel %vm682_vm1, %v6804_v58, 0.0 }
 0xc10   : > { %6845 = vadd.xlane.f32.xlu0 %v6844_v37  ;;  %v6756_v15 = vpop.xlane.xlu0 %6755 }
 0xc11   : > { %v6774_v39 = vmul.f32 0.03125, %v6756_v15  ;;  %v6805_v24 = vmul.f32 %v12133_v27, %v12133_v27 }
 0xc13   : > { %v12139_v32 = vsub.f32 %v12045_v13, %v6774_v39  ;;  %v6847_v48 = vsel %vm682_vm1, %v6805_v24, 0.0 }
 0xc14   : > { %6848 = vadd.xlane.f32.xlu1 %v6847_v48  ;;  %v6759_v8 = vpop.xlane.xlu1 %6758 }
 0xc15   : > { %v6775_v12 = vmul.f32 0.03125, %v6759_v8  ;;  %v6806_v50 = vmul.f32 %v12139_v32, %v12139_v32 }
 0xc17   : > { %v12145_v43 = vsub.f32 %v12051_v34, %v6775_v12  ;;  %v6850_v19 = vsel %vm682_vm1, %v6806_v50, 0.0 }
 0xc18   : > { %6851 = vadd.xlane.f32.xlu0 %v6850_v19 }
 0xc19   : > { %v6807_v36 = vmul.f32 %v12145_v43, %v12145_v43 }
 0xc1b   : > { %v6853_v13 = vsel %vm682_vm1, %v6807_v36, 0.0 }
 0xc1c   : > { %6854 = vadd.xlane.f32.xlu1 %v6853_v13 }
 0xc69   : > { %v6810_v28 = vpop.xlane.xlu0 %6809 }
 0xc6a   : > { %v6856_v26 = vmul.f32 0.03125, %v6810_v28 }
 0xc6c   : > { %v6872_v25 = vadd.f32 1e-05, %v6856_v26 }
 0xc6d   : > { %v6813_v0 = vpop.xlane.xlu1 %6812 }
 0xc6e   : > { %9272 = vrsqrt.f32 %v6872_v25  ;;  %v6857_v60 = vmul.f32 0.03125, %v6813_v0 }
 0xc70   : > { %v6873_v47 = vadd.f32 1e-05, %v6857_v60 }
 0xc71   : > { %v6816_v34 = vpop.xlane.xlu0 %6815 }
 0xc72   : > { %9274 = vrsqrt.f32 %v6873_v47  ;;  %v6858_v49 = vmul.f32 0.03125, %v6816_v34 }
 0xc74   : > { %v6874_v18 = vadd.f32 1e-05, %v6858_v49 }
 0xc75   : > { %v6819_v62 = vpop.xlane.xlu1 %6818 }
 0xc76   : > { %9276 = vrsqrt.f32 %v6874_v18  ;;  %v6859_v35 = vmul.f32 0.03125, %v6819_v62 }
 0xc78   : > { %v6875_v9 = vadd.f32 1e-05, %v6859_v35 }
 0xc79   : > { %v6822_v6 = vpop.xlane.xlu0 %6821 }
 0xc7a   : > { %9278 = vrsqrt.f32 %v6875_v9  ;;  %v6860_v53 = vmul.f32 0.03125, %v6822_v6 }
 0xc7b   : > { %v9273_v30 = vpop.eup %9272 }
 0xc7c   : > { %v6904_v7 = vmul.f32 %v9273_v30, %v12056_v21  ;;  %v6876_v4 = vadd.f32 1e-05, %v6860_v53 }
 0xc7d   : > { %v6825_v45 = vpop.xlane.xlu1 %6824 }
 0xc7e   : > { %v6924_v29 = vmul.f32 %v12152_v52, %v6904_v7  ;;  %9280 = vrsqrt.f32 %v6876_v4  ;;  %v6861_v5 = vmul.f32 0.03125, %v6825_v45 }
 0xc7f   : > { %v9275_v41 = vpop.eup %9274 }
 0xc80   : > { %v12160_v31 = vadd.f32 %v12156_v1, %v6924_v29  ;;  %v6905_v57 = vmul.f32 %v9275_v41, %v12061_v59  ;;  %v6877_v61 = vadd.f32 1e-05, %v6861_v5 }
 0xc81   : > { %v6828_v17 = vpop.xlane.xlu0 %6827 }
 0xc82   : > { %6960 = vst.msk [vmem:[#allocation2] sm:$0xff] %vm682_vm1, %v12160_v31  ;;  %v6925_v21 = vmul.f32 %v12152_v52, %v6905_v57  ;;  %9282 = vrsqrt.f32 %v6877_v61  ;;  %v6862_v10 = vmul.f32 0.03125, %v6828_v17 }
 0xc83   : > { %v9277_v38 = vpop.eup %9276 }
 0xc84   : > { %v12167_v56 = vadd.f32 %v12156_v1, %v6925_v21  ;;  %v6906_v51 = vmul.f32 %v9277_v38, %v12067_v42  ;;  %v6878_v63 = vadd.f32 1e-05, %v6862_v10 }
 0xc85   : > { %v6831_v11 = vpop.xlane.xlu1 %6830 }
 0xc86   : > { %6961 = vst.msk [vmem:[#allocation2 + $0x8] sm:$0xff] %vm682_vm1, %v12167_v56  ;;  %v6926_v59 = vmul.f32 %v12152_v52, %v6906_v51  ;;  %9284 = vrsqrt.f32 %v6878_v63  ;;  %v6863_v40 = vmul.f32 0.03125, %v6831_v11 }
 0xc87   : > { %v9279_v2 = vpop.eup %9278 }
 0xc88   : > { %v12174_v23 = vadd.f32 %v12156_v1, %v6926_v59  ;;  %v6907_v58 = vmul.f32 %v9279_v2, %v12073_v16  ;;  %v6879_v37 = vadd.f32 1e-05, %v6863_v40 }
 0xc89   : > { %v6834_v15 = vpop.xlane.xlu0 %6833 }
 0xc8a   : > { %6962 = vst.msk [vmem:[#allocation2 + $0x10] sm:$0xff] %vm682_vm1, %v12174_v23  ;;  %v6927_v42 = vmul.f32 %v12152_v52, %v6907_v58  ;;  %9286 = vrsqrt.f32 %v6879_v37  ;;  %v6864_v39 = vmul.f32 0.03125, %v6834_v15 }
 0xc8b   : > { %v9281_v24 = vpop.eup %9280 }
 0xc8c   : > { %v12181_v48 = vadd.f32 %v12156_v1, %v6927_v42  ;;  %v6908_v8 = vmul.f32 %v9281_v24, %v12079_v46  ;;  %v6880_v12 = vadd.f32 1e-05, %v6864_v39 }
 0xc8d   : > { %v6837_v50 = vpop.xlane.xlu1 %6836 }
 0xc8e   : > { %6963 = vst.msk [vmem:[#allocation2 + $0x18] sm:$0xff] %vm682_vm1, %v12181_v48  ;;  %v6928_v16 = vmul.f32 %v12152_v52, %v6908_v8  ;;  %9288 = vrsqrt.f32 %v6880_v12  ;;  %v6865_v19 = vmul.f32 0.03125, %v6837_v50 }
 0xc8f   : > { %v9283_v36 = vpop.eup %9282 }
 0xc90   : > { %v12188_v13 = vadd.f32 %v12156_v1, %v6928_v16  ;;  %v6909_v28 = vmul.f32 %v9283_v36, %v12085_v14  ;;  %v6881_v26 = vadd.f32 1e-05, %v6865_v19 }
 0xc91   : > { %v6840_v25 = vpop.xlane.xlu0 %6839 }
 0xc92   : > { %6964 = vst.msk [vmem:[#allocation2 + $0x20] sm:$0xff] %vm682_vm1, %v12188_v13  ;;  %v6929_v46 = vmul.f32 %v12152_v52, %v6909_v28  ;;  %9290 = vrsqrt.f32 %v6881_v26  ;;  %v6866_v0 = vmul.f32 0.03125, %v6840_v25 }
 0xc93   : > { %v9285_v60 = vpop.eup %9284 }
 0xc94   : > { %v12195_v47 = vadd.f32 %v12156_v1, %v6929_v46  ;;  %v6910_v34 = vmul.f32 %v9285_v60, %v12091_v22  ;;  %v6882_v49 = vadd.f32 1e-05, %v6866_v0 }
 0xc95   : > { %v6843_v18 = vpop.xlane.xlu1 %6842 }
 0xc96   : > { %6965 = vst.msk [vmem:[#allocation2 + $0x28] sm:$0xff] %vm682_vm1, %v12195_v47  ;;  %v6930_v14 = vmul.f32 %v12152_v52, %v6910_v34  ;;  %9292 = vrsqrt.f32 %v6882_v49  ;;  %v6867_v62 = vmul.f32 0.03125, %v6843_v18 }
 0xc97   : > { %v9287_v35 = vpop.eup %9286 }
 0xc98   : > { %v12202_v9 = vadd.f32 %v12156_v1, %v6930_v14  ;;  %v6911_v6 = vmul.f32 %v9287_v35, %v12097_v33  ;;  %v6883_v53 = vadd.f32 1e-05, %v6867_v62 }
 0xc99   : > { %v6846_v30 = vpop.xlane.xlu0 %6845 }
 0xc9a   : > { %6966 = vst.msk [vmem:[#allocation2 + $0x30] sm:$0xff] %vm682_vm1, %v12202_v9  ;;  %v6931_v22 = vmul.f32 %v12152_v52, %v6911_v6  ;;  %9294 = vrsqrt.f32 %v6883_v53  ;;  %v6868_v7 = vmul.f32 0.03125, %v6846_v30 }
 0xc9b   : > { %v9289_v4 = vpop.eup %9288 }
 0xc9c   : > { %v12209_v45 = vadd.f32 %v12156_v1, %v6931_v22  ;;  %v6912_v29 = vmul.f32 %v9289_v4, %v12103_v54  ;;  %v6884_v5 = vadd.f32 1e-05, %v6868_v7 }
 0xc9d   : > { %v6849_v41 = vpop.xlane.xlu1 %6848 }
 0xc9e   : > { %6967 = vst.msk [vmem:[#allocation2 + $0x38] sm:$0xff] %vm682_vm1, %v12209_v45  ;;  %v6932_v33 = vmul.f32 %v12152_v52, %v6912_v29  ;;  %9296 = vrsqrt.f32 %v6884_v5  ;;  %v6869_v57 = vmul.f32 0.03125, %v6849_v41 }
 0xc9f   : > { %v9291_v61 = vpop.eup %9290 }
 0xca0   : > { %v12216_v17 = vadd.f32 %v12156_v1, %v6932_v33  ;;  %v6913_v21 = vmul.f32 %v9291_v61, %v12109_v3  ;;  %v6885_v10 = vadd.f32 1e-05, %v6869_v57 }
 0xca1   : > { %v6852_v38 = vpop.xlane.xlu0 %6851 }
 0xca2   : > { %6968 = vst.msk [vmem:[#allocation2 + $0x40] sm:$0xff] %vm682_vm1, %v12216_v17  ;;  %v6933_v54 = vmul.f32 %v12152_v52, %v6913_v21  ;;  %9298 = vrsqrt.f32 %v6885_v10  ;;  %v6870_v51 = vmul.f32 0.03125, %v6852_v38 }
 0xca3   : > { %v9293_v63 = vpop.eup %9292 }
 0xca4   : > { %v6953_v11 = vadd.f32 %v12156_v1, %v6933_v54  ;;  %v6914_v59 = vmul.f32 %v9293_v63, %v12115_v55  ;;  %v6886_v40 = vadd.f32 1e-05, %v6870_v51 }
 0xca5   : > { %v6855_v2 = vpop.xlane.xlu1 %6854 }
 0xca6   : > { %6969 = vst.msk [vmem:[#allocation2 + $0x48] sm:$0xff] %vm682_vm1, %v6953_v11  ;;  %v6934_v3 = vmul.f32 %v12152_v52, %v6914_v59  ;;  %9300 = vrsqrt.f32 %v6886_v40  ;;  %v6871_v58 = vmul.f32 0.03125, %v6855_v2 }
 0xca7   : > { %v9295_v37 = vpop.eup %9294 }
 0xca8   : > { %v6954_v15 = vadd.f32 %v12156_v1, %v6934_v3  ;;  %v6915_v42 = vmul.f32 %v9295_v37, %v12121_v44  ;;  %v6887_v39 = vadd.f32 1e-05, %v6871_v58 }
 0xcaa   : > { %6970 = vst.msk [vmem:[#allocation2 + $0x50] sm:$0xff] %vm682_vm1, %v6954_v15  ;;  %v6935_v24 = vmul.f32 %v12152_v52, %v6915_v42  ;;  %9302 = vrsqrt.f32 %v6887_v39 }
 0xcab   : > { %v9297_v55 = vpop.eup %9296 }
 0xcac   : > { %v6955_v8 = vadd.f32 %v12156_v1, %v6935_v24  ;;  %v6916_v12 = vmul.f32 %v9297_v55, %v12127_v20 }
 0xcae   : > { %6971 = vst.msk [vmem:[#allocation2 + $0x58] sm:$0xff] %vm682_vm1, %v6955_v8  ;;  %v6936_v50 = vmul.f32 %v12152_v52, %v6916_v12 }
 0xcaf   : > { %v9299_v16 = vpop.eup %9298 }
 0xcb0   : > { %v6956_v19 = vadd.f32 %v12156_v1, %v6936_v50  ;;  %v6917_v44 = vmul.f32 %v9299_v16, %v12133_v27 }
 0xcb2   : > { %6972 = vst.msk [vmem:[#allocation2 + $0x60] sm:$0xff] %vm682_vm1, %v6956_v19  ;;  %v6937_v36 = vmul.f32 %v12152_v52, %v6917_v44 }
 0xcb3   : > { %v9301_v28 = vpop.eup %9300 }
 0xcb4   : > { %v6957_v26 = vadd.f32 %v12156_v1, %v6937_v36  ;;  %v6918_v25 = vmul.f32 %v9301_v28, %v12139_v32 }
 0xcb6   : > { %6973 = vst.msk [vmem:[#allocation2 + $0x68] sm:$0xff] %vm682_vm1, %v6957_v26  ;;  %v6938_v20 = vmul.f32 %v12152_v52, %v6918_v25 }
 0xcb7   : > { %v9303_v46 = vpop.eup %9302 }
 0xcb8   : > { %v6958_v0 = vadd.f32 %v12156_v1, %v6938_v20  ;;  %v6919_v60 = vmul.f32 %v9303_v46, %v12145_v43 }
 0xcba   : > { %6974 = vst.msk [vmem:[#allocation2 + $0x70] sm:$0xff] %vm682_vm1, %v6958_v0  ;;  %v6939_v27 = vmul.f32 %v12152_v52, %v6919_v60  ;;  %6979 = sbr.rel (%p7779_p5) target bundleno = 3949 (0xf6d), region = 72 }
 0xcbc   : > { %v6959_v34 = vadd.f32 %v12156_v1, %v6939_v27 }
 0xcbe   : > { %6975 = vst.msk [vmem:[#allocation2 + $0x78] sm:$0xff] %vm682_vm1, %v6959_v34 }
 0xcbf   : > { %v9325_v32 = vld [vmem:[%s12398_s3 + $0x8] sm:$0xff]   ;;  %v6980_v49 = vpack.c.bf16 %v12167_v56, %v12160_v31  ;;  %v9326_v43 = vld [vmem:[%s12398_s3] sm:$0xff]   ;;  %v6981_v52 = vpack.c.bf16 %v12181_v48, %v12174_v23  ;;  %v6982_v1 = vpack.c.bf16 %v12195_v47, %v12188_v13  ;;  %v6983_v31 = vpack.c.bf16 %v12209_v45, %v12202_v9  ;;  %v7283_v13 = vld [vmem:[%s12399_s4 + $0x78] sm:$0xff] }
 0xcc0   : > { %8730 = vmatprep.subr.bf16.mxu0 %v9325_v32  ;;  %v6984_v56 = vpack.c.bf16 %v6953_v11, %v12216_v17  ;;  %v6985_v18 = vpack.c.bf16 %v6955_v8, %v6954_v15  ;;  %v6986_v14 = vpack.c.bf16 %v6957_v26, %v6956_v19  ;;  %v6987_v23 = vpack.c.bf16 %v6959_v34, %v6958_v0  ;;  %v7282_v47 = vld [vmem:[%s12399_s4 + $0x70] sm:$0xff]  ;;  %v7281_v62 = vld [vmem:[%s12399_s4 + $0x68] sm:$0xff]  ;;  %v7280_v35 = vld [vmem:[%s12399_s4 + $0x60] sm:$0xff] }
 0xcc1   : > { %8734 = vmatprep.mubr.msk.bf16.mxu0 %vm682_vm1, %v6980_v49  ;;  %8731 = vmatpush3.bf16.msra.mxu0 %v9325_v32  ;;  %v9341_v48 = vmov 0.0   ;;  %vm9342_vm2 = vmmov 0   ;;  %v7279_v9 = vld [vmem:[%s12399_s4 + $0x58] sm:$0xff]  ;;  %v7278_v6 = vld [vmem:[%s12399_s4 + $0x50] sm:$0xff]  ;;  %v7277_v53 = vld [vmem:[%s12399_s4 + $0x48] sm:$0xff] }
 0xcc2   : > { %8732 = vmatprep.subr.bf16.mxu0 %v9326_v43  ;;  %8750 = vmatprep.subr.mxu1 %v9341_v48  ;;  %v7276_v30 = vld [vmem:[%s12399_s4 + $0x40] sm:$0xff]  ;;  %v7275_v22 = vld [vmem:[%s12399_s4 + $0x38] sm:$0xff]  ;;  %v7274_v7 = vld [vmem:[%s12399_s4 + $0x30] sm:$0xff] }
 0xcc3   : > { %8782 = vmatprep.mubr.msk.f32.mxu1 %vm9342_vm2, %v9341_v48  ;;  %v7273_v4 = vld [vmem:[%s12399_s4 + $0x28] sm:$0xff]  ;;  %v7272_v45 = vld [vmem:[%s12399_s4 + $0x20] sm:$0xff]  ;;  %v7271_v29 = vld [vmem:[%s12399_s4 + $0x18] sm:$0xff] }
 0xcc4   : > { %v7270_v5 = vld [vmem:[%s12399_s4 + $0x10] sm:$0xff]  ;;  %v7269_v41 = vld [vmem:[%s12399_s4 + $0x8] sm:$0xff]  ;;  %v7268_v33 = vld [vmem:[%s12399_s4] sm:$0xff] }
 0xcc5   : > { %8733 = vmatpush3.bf16.msra.mxu0 %v9326_v43  ;;  %v7780_v58 = vld [vmem:[%s12396_s1 + $0x2] ss:$0 sm:$0xff] }
 0xcc6   : > { %8785 = vmatprep.subr.mxu0 %v9341_v48 }
 0xcc8   : > { %8735 = vmatmul.mubr.msk.bf16.vlgmr.msra.gmra.mxu0 %vm682_vm1, %v6981_v52 }
 0xcc9   : > { %8738 = vmatprep.mubr.msk.bf16.mxu0 %vm682_vm1, %v6982_v1  ;;  %8786 = vmatpush3.msra.mxu0 %v7283_v13 }
 0xcca   : > { %8787 = vmatprep.subr.mxu0 %v9341_v48 }
 0xccb   : > { %8788 = vmatpush3.msra.mxu0 %v7282_v47 }
 0xccc   : > { %8789 = vmatprep.subr.mxu0 %v9341_v48 }
 0xccd   : > { %8790 = vmatpush3.msra.mxu0 %v7281_v62  ;;  %v7146_v62 = vld [vmem:[%s12396_s1 + $0x3] sm:$0x1] }
 0xcce   : > { %8791 = vmatprep.subr.mxu0 %v9341_v48 }
 0xccf   : > { %8792 = vmatpush3.msra.mxu0 %v7280_v35  ;;  %v7284_v35 = vld [vmem:[%s12396_s1 + $0x4] sm:$0x1] }
 0xcd0   : > { %8739 = vmatmul.mubr.msk.bf16.gmra.mxu0 %vm682_vm1, %v6983_v31  ;;  %8793 = vmatprep.subr.mxu0 %v9341_v48 }
 0xcd1   : > { %8742 = vmatprep.mubr.msk.bf16.mxu0 %vm682_vm1, %v6984_v56  ;;  %8794 = vmatpush3.msra.mxu0 %v7279_v9  ;;  %v9343_v9 = vmov 0  }
 0xcd2   : > { %8795 = vmatprep.subr.mxu0 %v9341_v48  ;;  %9324 = vset.pattern.permute.xlu0 %v9343_v9 }
 0xcd3   : > { %8796 = vmatpush3.msra.mxu0 %v7278_v6  ;;  %7287 = vperm.xlu0 %9324, %v7284_v35  }
 0xcd4   : > { %8797 = vmatprep.subr.mxu0 %v9341_v48 }
 0xcd5   : > { %8798 = vmatpush3.msra.mxu0 %v7277_v53 }
 0xcd6   : > { %8799 = vmatprep.subr.mxu0 %v9341_v48 }
 0xcd7   : > { %8800 = vmatpush3.msra.mxu0 %v7276_v30 }
 0xcd8   : > { %8743 = vmatmul.mubr.msk.bf16.gmra.mxu0 %vm682_vm1, %v6985_v18  ;;  %8801 = vmatprep.subr.mxu0 %v9341_v48 }
 0xcd9   : > { %8746 = vmatprep.mubr.msk.bf16.mxu0 %vm682_vm1, %v6986_v14  ;;  %8802 = vmatpush3.msra.mxu0 %v7275_v22 }
 0xcda   : > { %8803 = vmatprep.subr.mxu0 %v9341_v48 }
 0xcdb   : > { %8804 = vmatpush3.msra.mxu0 %v7274_v7 }
 0xcdc   : > { %8805 = vmatprep.subr.mxu0 %v9341_v48 }
 0xcdd   : > { %8806 = vmatpush3.msra.mxu0 %v7273_v4 }
 0xcde   : > { %8807 = vmatprep.subr.mxu0 %v9341_v48 }
 0xcdf   : > { %8808 = vmatpush3.msra.mxu0 %v7272_v45 }
 0xce0   : > { %8747 = vmatmul.mubr.msk.bf16.gmra.mxu0 %vm682_vm1, %v6987_v23  ;;  %8809 = vmatprep.subr.mxu0 %v9341_v48 }
 0xce1   : > { %8817 = vmatprep.mubr.msk.f32.mxu0 %vm9342_vm2, %v9341_v48  ;;  %8810 = vmatpush3.msra.mxu0 %v7271_v29 }
 0xce2   : > { %8811 = vmatprep.subr.mxu0 %v9341_v48 }
 0xce3   : > { %8812 = vmatpush3.msra.mxu0 %v7270_v5 }
 0xce4   : > { %8813 = vmatprep.subr.mxu0 %v9341_v48 }
 0xce5   : > { %8814 = vmatpush3.msra.mxu0 %v7269_v41 }
 0xce6   : > { %8815 = vmatprep.subr.mxu0 %v9341_v48 }
 0xce7   : > { %8816 = vmatpush3.msra.mxu0 %v7268_v33 }
 0xd88   : > { %v12339_v57 = vpop.f32.mrf.mxu0 }
 0xd89   : > { %v7076_v31 = vadd.f32 %v12339_v57, %v7780_v58 }
 0xd8a   : > { %v12341_v61 = vpop.f32.mrf.mxu0 }
 0xd8b   : > { %v7132_v18 = vmax.f32 %v7076_v31, 0.0  ;;  %v7068_v23 = vadd.f32 %v7780_v58, %v12341_v61 }
 0xd8c   : > { %v8737_v17 = vpop.f32.mrf.mxu0 }
 0xd8d   : > { %v7079_v52 = vadd.f32 %v8737_v17, %v7780_v58  ;;  %v7130_v47 = vmax.f32 %v7068_v23, 0.0 }
 0xd8e   : > { %v12343_v21 = vpop.f32.mrf.mxu0 }
 0xd8f   : > { %v7133_v56 = vmax.f32 %v7079_v52, 0.0  ;;  %v7071_v14 = vadd.f32 %v7780_v58, %v12343_v21 }
 0xd90   : > { %v8740_v10 = vpop.f32.mrf.mxu0 }
 0xd91   : > { %v7092_v60 = vadd.f32 %v8740_v10, %v7780_v58  ;;  %v7131_v13 = vmax.f32 %v7071_v14, 0.0 }
 0xd92   : > { %v7083_v38 = vpop.f32.mrf.mxu0 }
 0xd93   : > { %v7136_v34 = vmax.f32 %v7092_v60, 0.0  ;;  %v7084_v49 = vadd.f32 %v7780_v58, %v7083_v38 }
 0xd94   : > { %v8741_v54 = vpop.f32.mrf.mxu0 }
 0xd95   : > { %v7095_v46 = vadd.f32 %v8741_v54, %v7780_v58  ;;  %v7134_v1 = vmax.f32 %v7084_v49, 0.0 }
 0xd96   : > { %v7086_v51 = vpop.f32.mrf.mxu0 }
 0xd97   : > { %v7137_v27 = vmax.f32 %v7095_v46, 0.0  ;;  %v7087_v32 = vadd.f32 %v7780_v58, %v7086_v51 }
 0xd98   : > { %v8744_v63 = vpop.f32.mrf.mxu0 }
 0xd99   : > { %v7108_v44 = vadd.f32 %v8744_v63, %v7780_v58  ;;  %v7135_v43 = vmax.f32 %v7087_v32, 0.0 }
 0xd9a   : > { %v7099_v11 = vpop.f32.mrf.mxu0 }
 0xd9b   : > { %v7140_v28 = vmax.f32 %v7108_v44, 0.0  ;;  %v7100_v25 = vadd.f32 %v7780_v58, %v7099_v11 }
 0xd9c   : > { %v8745_v59 = vpop.f32.mrf.mxu0 }
 0xd9d   : > { %v7111_v16 = vadd.f32 %v8745_v59, %v7780_v58  ;;  %v7138_v0 = vmax.f32 %v7100_v25, 0.0 }
 0xd9e   : > { %v7102_v40 = vpop.f32.mrf.mxu0 }
 0xd9f   : > { %v7141_v36 = vmax.f32 %v7111_v16, 0.0  ;;  %v7103_v26 = vadd.f32 %v7780_v58, %v7102_v40 }
 0xda0   : > { %v8748_v2 = vpop.f32.mrf.mxu0 }
 0xda1   : > { %v7124_v42 = vadd.f32 %v8748_v2, %v7780_v58  ;;  %v7139_v20 = vmax.f32 %v7103_v26, 0.0 }
 0xda2   : > { %v7115_v3 = vpop.f32.mrf.mxu0 }
 0xda3   : > { %v7144_v55 = vmax.f32 %v7124_v42, 0.0  ;;  %v7116_v12 = vadd.f32 %v7780_v58, %v7115_v3 }
 0xda4   : > { %v8749_v37 = vpop.f32.mrf.mxu0 }
 0xda5   : > { %v7127_v15 = vadd.f32 %v8749_v37, %v7780_v58  ;;  %v7142_v19 = vmax.f32 %v7116_v12, 0.0 }
 0xda6   : > { %v7118_v24 = vpop.f32.mrf.mxu0 }
 0xda7   : > { %v7145_v39 = vmax.f32 %v7127_v15, 0.0  ;;  %v7119_v8 = vadd.f32 %v7780_v58, %v7118_v24 }
 0xda9   : > { %8751 = vmatpush3.xpose.msk.msra.mxu1 %vm682_vm1, %v7145_v39  ;;  %v7143_v50 = vmax.f32 %v7119_v8, 0.0 }
 0xdaa   : > { %8752 = vmatprep.subr.mxu1 %v9341_v48 }
 0xdad   : > { %8753 = vmatpush3.xpose.msk.msra.mxu1 %vm682_vm1, %v7144_v55 }
 0xdae   : > { %8754 = vmatprep.subr.mxu1 %v9341_v48 }
 0xdb1   : > { %8755 = vmatpush3.xpose.msk.msra.mxu1 %vm682_vm1, %v7143_v50 }
 0xdb2   : > { %8756 = vmatprep.subr.mxu1 %v9341_v48 }
 0xdb5   : > { %8757 = vmatpush3.xpose.msk.msra.mxu1 %vm682_vm1, %v7142_v19 }
 0xdb6   : > { %8758 = vmatprep.subr.mxu1 %v9341_v48 }
 0xdb9   : > { %8759 = vmatpush3.xpose.msk.msra.mxu1 %vm682_vm1, %v7141_v36 }
 0xdba   : > { %8760 = vmatprep.subr.mxu1 %v9341_v48 }
 0xdbd   : > { %8761 = vmatpush3.xpose.msk.msra.mxu1 %vm682_vm1, %v7140_v28 }
 0xdbe   : > { %8762 = vmatprep.subr.mxu1 %v9341_v48 }
 0xdc1   : > { %8763 = vmatpush3.xpose.msk.msra.mxu1 %vm682_vm1, %v7139_v20 }
 0xdc2   : > { %8764 = vmatprep.subr.mxu1 %v9341_v48 }
 0xdc5   : > { %8765 = vmatpush3.xpose.msk.msra.mxu1 %vm682_vm1, %v7138_v0 }
 0xdc6   : > { %8766 = vmatprep.subr.mxu1 %v9341_v48 }
 0xdc9   : > { %8767 = vmatpush3.xpose.msk.msra.mxu1 %vm682_vm1, %v7137_v27 }
 0xdca   : > { %8768 = vmatprep.subr.mxu1 %v9341_v48 }
 0xdcd   : > { %8769 = vmatpush3.xpose.msk.msra.mxu1 %vm682_vm1, %v7136_v34 }
 0xdce   : > { %8770 = vmatprep.subr.mxu1 %v9341_v48 }
 0xdd1   : > { %8771 = vmatpush3.xpose.msk.msra.mxu1 %vm682_vm1, %v7135_v43 }
 0xdd2   : > { %8772 = vmatprep.subr.mxu1 %v9341_v48 }
 0xdd5   : > { %8773 = vmatpush3.xpose.msk.msra.mxu1 %vm682_vm1, %v7134_v1 }
 0xdd6   : > { %8774 = vmatprep.subr.mxu1 %v9341_v48 }
 0xdd9   : > { %8775 = vmatpush3.xpose.msk.msra.mxu1 %vm682_vm1, %v7133_v56 }
 0xdda   : > { %8776 = vmatprep.subr.mxu1 %v9341_v48 }
 0xddd   : > { %8777 = vmatpush3.xpose.msk.msra.mxu1 %vm682_vm1, %v7132_v18 }
 0xdde   : > { %8778 = vmatprep.subr.mxu1 %v9341_v48 }
 0xde1   : > { %8779 = vmatpush3.xpose.msk.msra.mxu1 %vm682_vm1, %v7131_v13 }
 0xde2   : > { %8780 = vmatprep.subr.mxu1 %v9341_v48  ;;  %v7288_v48 = vpop.permute.xlu0 %7287 }
 0xde5   : > { %8781 = vmatpush3.xpose.msk.msra.mxu1 %vm682_vm1, %v7130_v47 }
 0xde8   : > { %8783 = vmatmul.mubr.msk.f32.vlgmr.msra.gmra.mxu1 %vm682_vm1, %v7146_v62 }
 0xea8   : > { %v7264_v6 = vpop.f32.mrf.mxu1 }
 0xea9   : > { %8818 = vmatmul.mubr.f32.vlgmr.msra.gmra.mxu0 %v7264_v6 }
 0xeaa   : > { %v8784_v53 = vpop.f32.mrf.mxu1 }
 0xf69   : > { %v7356_v30 = vpop.f32.mrf.mxu0 }
 0xf6a   : > { %v7357_v22 = vadd.f32 %v7356_v30, %v7288_v48 }
 0xf6b   : > { %v8819_v7 = vpop.f32.mrf.mxu0 }
 0xf6c   : > { %7360 = vst [vmem:[%s12406_s11] sm:$0x1] %v7357_v22 }
 0xf6d PF: > { %s12550_s18 = sld [smem:[#allocation3_spill]] }
 0xf73   : > { %s21_s17 = sadd.s32 1, %s12550_s18  }
 0xf74   : > { %p18_p6 = scmp.ge.s32.totalorder %s21_s17, 5  }
 0xf76   :  { %20 = sbr.rel (!%p18_p6) target bundleno = 2 (0x2), region = 115 }

</bundles_post_ra>
